<compile_context>
chip_gen: v7x
topology: tpu7x:2x2x1
jax: 0.10.0
libtpu: 0.0.40
codegen_flags: <defaults>
</compile_context>

<pallas_src>
import inspect

import jax
import jax.numpy as jnp
from jax import lax
from jax.experimental import pallas as pl
from jax.experimental.pallas import tpu as pltpu

KSIZE = 3
NLAYERS = 3                         # dilations 1, 2, 3
NTAPS = NLAYERS * KSIZE * KSIZE     # 27
PAD = NLAYERS * (KSIZE - 1) // 2    # max dilation * (k-1)/2 = 3
LANE = 128


def _round_up(x, m):
    return (x + m - 1) // m * m


def _vmem_capacity_bytes():
    try:
        info = pltpu.get_tpu_info()
        for name in ("vmem_capacity_bytes", "vmem_size_bytes", "vmem_bytes"):
            cap = getattr(info, name, None)
            if cap:
                return int(cap)
    except Exception:
        pass
    return 64 * 1024 * 1024          # conservative (v7x per-TensorCore VMEM)


def _blockspec_single_buffer_supported():
    try:
        return ("pipeline_mode" in inspect.signature(pl.BlockSpec).parameters
                and hasattr(pl, "Buffered"))
    except Exception:
        return False


def _pack_geometry(C):
    """Dense K packing: taps_per_group, group lane width, #groups, K, padded C."""
    Cp = _round_up(C, LANE)
    if C < LANE and LANE % C == 0:
        tpg = LANE // C              # pack several taps into one 128-lane group
    else:
        tpg = 1                      # one tap per group (lane-pad the tap)
    gw = _round_up(tpg * C, LANE)
    n_groups = -(-NTAPS // tpg)
    K = n_groups * gw
    return Cp, tpg, gw, n_groups, K


def _tap_order():
    """Tap packing order (dx-major) shared by the kernel and the weight packer."""
    taps = []
    for l in range(NLAYERS):
        d = l + 1
        for kh in range(KSIZE):
            for kw in range(KSIZE):
                taps.append((l, kh, kw, (kh - 1) * d, (kw - 1) * d))
    taps.sort(key=lambda t: (t[4], t[0], t[1]))   # sort by (dx, layer, kh)
    return taps


def _pick_rows(H, W, BB, K, budget_bytes=2 * 1024 * 1024, target_m=128):
    """Rows per strip: divisor of H, patch scratch under budget, M_strip >= target."""
    divs = [r for r in range(1, H + 1) if H % r == 0]
    ok = [r for r in divs if BB * r * W * K * 2 <= budget_bytes]
    if not ok:
        return 1
    for r in ok:
        if BB * r * W >= target_m:
            return r
    return ok[-1]


def _vmem_need(BB, rows, H, W, Wp, Cp, K, Cr, weight_bufs=2):
    m = BB * rows * W
    wbytes = K * Cp * 2 + Cp * 4 + Cp * Cr * 4 + Cr * Cp * 4
    return (4 * BB * H * W * Cp * 4                 # x + out blocks, double-buffered
            + weight_bufs * wbytes                  # constant operands
            + BB * (H + 2 * PAD) * Wp * Cp * 2      # bf16 padded-input scratch
            + m * K * 2                             # bf16 strip patch scratch
            + BB * Cp * 4)                          # pooled-sum scratch


def _make_kernel(*, C, Cp, H, W, Wp, rows, n_strips, tpg, gw, n_groups):
    order = _tap_order()
    Hp = H + 2 * PAD

    def kernel(x_ref, w_ref, b_ref, fc1_ref, fc2_ref, o_ref,
               pad_ref, patch_ref, sum_ref):
        BB = x_ref.shape[0]
        m = BB * rows * W

        # ---- zero only the halo ring of the bf16 padded scratch (interior is
        #      fully overwritten each step; unconditional so it is correct when the
        #      parallel grid is sharded across TensorCores).
        pad_ref[:, 0:PAD, :, :] = jnp.zeros((BB, PAD, Wp, Cp), pad_ref.dtype)
        pad_ref[:, PAD + H:, :, :] = jnp.zeros((BB, Hp - PAD - H, Wp, Cp),
                                               pad_ref.dtype)
        pad_ref[:, PAD:PAD + H, 0:PAD, :] = jnp.zeros((BB, H, PAD, Cp),
                                                      pad_ref.dtype)
        pad_ref[:, PAD:PAD + H, PAD + W:, :] = jnp.zeros(
            (BB, H, Wp - PAD - W, Cp), pad_ref.dtype)

        # ---- cast the f32 input block once into the bf16 padded scratch,
        #      strip-by-strip to keep live values small.
        @pl.loop(0, n_strips)
        def _(s):
            row0 = pl.multiple_of(s * rows, rows)
            pad_ref[:, pl.ds(PAD + row0, rows), PAD:PAD + W, :] = (
                x_ref[:, pl.ds(row0, rows), :, :].astype(pad_ref.dtype))

        sum_ref[...] = jnp.zeros_like(sum_ref)

        # ---- strip-mined im2col + one fused conv matmul per strip.
        @pl.loop(0, n_strips)
        def _(s):
            row0 = pl.multiple_of(s * rows, rows)

            cur_dx = None
            slab = None
            parts = []
            g = 0
            for i, (_l, _kh, _kw, dy, dx) in enumerate(order):
                if dx != cur_dx:
                    # One W-shifted (sublane-misaligned) slab load per distinct dx;
                    # all dy shifts below are free major-axis slices of it.
                    slab = pad_ref[:, pl.ds(row0, rows + 2 * PAD),
                                   PAD + dx:PAD + dx + W, :]
                    if C < Cp:
                        slab = slab[:, :, :, 0:C]
                    cur_dx = dx
                parts.append(slab[:, PAD + dy:PAD + dy + rows, :, :])
                if len(parts) == tpg or i == NTAPS - 1:
                    width = C * len(parts)
                    if width < gw:
                        parts.append(jnp.zeros((BB, rows, W, gw - width),
                                               patch_ref.dtype))
                    if len(parts) == 1:
                        chunk = parts[0]
                    else:
                        chunk = jnp.concatenate(parts, axis=-1)
                    patch_ref[:, g * gw:(g + 1) * gw] = (
                        chunk.reshape(m, gw).astype(patch_ref.dtype))
                    parts = []
                    g += 1

            # Single fused conv matmul (bf16 in, f32 accumulate):
            #   conv = sum_l w_l^2 * conv_l(x)   (weights pre-scaled in the wrapper)
            conv = jnp.dot(patch_ref[...], w_ref[...],
                           preferred_element_type=jnp.float32)
            xs = x_ref[:, pl.ds(row0, rows), :, :].reshape(m, Cp)   # f32 residual
            acc = xs + conv + b_ref[...]
            o_ref[:, pl.ds(row0, rows), :, :] = acc.reshape(BB, rows, W, Cp)
            sum_ref[...] += acc.reshape(BB, rows * W, Cp).sum(axis=1)

        # ---- SE layer on the pooled means.
        y = sum_ref[...] * (1.0 / float(H * W))
        y = jnp.maximum(
            jnp.dot(y, fc1_ref[...], preferred_element_type=jnp.float32), 0.0)
        sum_ref[...] = jax.nn.sigmoid(
            jnp.dot(y, fc2_ref[...], preferred_element_type=jnp.float32))

        # ---- second pass: scale the resident output block by the SE gate.
        @pl.loop(0, n_strips)
        def _(s):
            row0 = pl.multiple_of(s * rows, rows)
            scale = sum_ref[...]
            o_ref[:, pl.ds(row0, rows), :, :] = (
                o_ref[:, pl.ds(row0, rows), :, :] * scale[:, None, None, :])

    return kernel


def dilation_inception(x_nchw, params, *, batch_block=8):
    """Pallas forward pass.  x_nchw: (B, C, H, W) f32.  Returns (B, C, H, W)."""
    w_branch, w_conv, b_conv, fc1_w, fc2_w = params
    B, C, H, W = x_nchw.shape
    Cr = fc1_w.shape[0]
    Cp, tpg, gw, n_groups, K = _pack_geometry(C)
    Wp = _round_up(W + 2 * PAD, 8)

    # ---- per-generation sizing: fit the VMEM budget, keep the parallel grid >= 2.
    phys = _vmem_capacity_bytes()
    budget = int(0.55 * phys)
    BB = max(1, min(batch_block, B))
    if B >= 2:
        BB = min(BB, (B + 1) // 2)          # >= 2 grid steps -> both v7x cores busy
    while BB > 1 and _vmem_need(BB, _pick_rows(H, W, BB, K),
                                H, W, Wp, Cp, K, Cr) > budget:
        BB -= 1
    rows = _pick_rows(H, W, BB, K)
    n_strips = H // rows
    m = BB * rows * W
    Bp = _round_up(B, BB)
    need = _vmem_need(BB, rows, H, W, Wp, Cp, K, Cr)
    vmem_limit = int(min(0.9 * phys, max(32 * 1024 * 1024, 1.5 * need)))

    # ---- NCHW -> NHWC; lane-pad output channels; pad batch to the block size.
    x = jnp.transpose(x_nchw, (0, 2, 3, 1)).astype(jnp.float32)
    x = jnp.pad(x, ((0, Bp - B), (0, 0), (0, 0), (0, Cp - C)))

    # ---- fold branch weights (w^2) + biases into one dense-K fused weight/bias.
    wsq = w_branch.astype(jnp.float32) ** 2
    wk_all = jnp.transpose(w_conv.astype(jnp.float32), (0, 3, 4, 2, 1))
    wk_all = wk_all * wsq[:, None, None, None, None]      # (L, Kh, Kw, Cin, Cout)
    order = _tap_order()
    w_dense = jnp.zeros((K, Cp), jnp.float32)
    for i, (l, kh, kw, _dy, _dx) in enumerate(order):
        g, j = divmod(i, tpg)
        r0 = g * gw + j * C
        w_dense = w_dense.at[r0:r0 + C, :C].set(wk_all[l, kh, kw])
    w_dense = w_dense.astype(jnp.bfloat16)

    bias = jnp.sum(wsq[:, None] * b_conv.astype(jnp.float32), axis=0)
    bias = jnp.pad(bias, (0, Cp - C)).reshape(1, Cp).astype(jnp.float32)
    fc1_t = jnp.pad(fc1_w.astype(jnp.float32), ((0, 0), (0, Cp - C))).T  # (Cp, Cr)
    fc2_t = jnp.pad(fc2_w.astype(jnp.float32), ((0, Cp - C), (0, 0))).T  # (Cr, Cp)

    kernel = _make_kernel(C=C, Cp=Cp, H=H, W=W, Wp=Wp, rows=rows,
                          n_strips=n_strips, tpg=tpg, gw=gw, n_groups=n_groups)

    def run(single_buffer_consts):
        def const_spec(shape):
            idx = lambda b: (0,) * len(shape)
            if single_buffer_consts:
                return pl.BlockSpec(shape, idx,
                                    pipeline_mode=pl.Buffered(buffer_count=1))
            return pl.BlockSpec(shape, idx)

        return pl.pallas_call(
            kernel,
            out_shape=jax.ShapeDtypeStruct((Bp, H, W, Cp), jnp.float32),
            grid=(Bp // BB,),
            in_specs=[
                pl.BlockSpec((BB, H, W, Cp), lambda b: (b, 0, 0, 0)),
                const_spec((K, Cp)),
                const_spec((1, Cp)),
                const_spec((Cp, Cr)),
                const_spec((Cr, Cp)),
            ],
            out_specs=pl.BlockSpec((BB, H, W, Cp), lambda b: (b, 0, 0, 0)),
            scratch_shapes=[
                pltpu.VMEM((BB, H + 2 * PAD, Wp, Cp), jnp.bfloat16),  # padded input
                pltpu.VMEM((m, K), jnp.bfloat16),                     # strip patches
                pltpu.VMEM((BB, Cp), jnp.float32),                    # pooled sum / gate
            ],
            compiler_params=pltpu.CompilerParams(
                dimension_semantics=("parallel",),
                vmem_limit_bytes=vmem_limit,
            ),
        )(x, w_dense, bias, fc1_t, fc2_t)

    if _blockspec_single_buffer_supported():
        try:
            out_nhwc = run(True)
        except Exception:
            out_nhwc = run(False)
    else:
        out_nhwc = run(False)

    out = out_nhwc[:B, :, :, :C]                # crop batch + channel padding
    return jnp.transpose(out, (0, 3, 1, 2))     # back to NCHW


def reference(x_nchw, params):
    """Pure-JAX reference matching the PyTorch forward semantics."""
    w_branch, w_conv, b_conv, fc1_w, fc2_w = params
    out = x_nchw
    for l in range(NLAYERS):
        d = l + 1
        pad = (KSIZE + (KSIZE - 1) * (d - 1) - 1) // 2
        conv = lax.conv_general_dilated(
            x_nchw, w_conv[l], window_strides=(1, 1),
            padding=[(pad, pad), (pad, pad)],
            rhs_dilation=(d, d),
            dimension_numbers=("NCHW", "OIHW", "NCHW"))
        conv = conv + b_conv[l][None, :, None, None]
        out = out + (w_branch[l] ** 2) * conv
    y = jnp.mean(out, axis=(2, 3))                         # (B, C)
    y = jnp.maximum(y @ fc1_w.T, 0.0)
    y = jax.nn.sigmoid(y @ fc2_w.T)
    return out * y[:, :, None, None]


if __name__ == "__main__":
    # Small, module-consistent shapes: B=2, channel=16, H=W=16, se_reduction=4.
    B, C, H, W = 2, 16, 16, 16
    SE_REDUCTION = 4
    Cr = C // SE_REDUCTION

    key = jax.random.PRNGKey(0)
    ks = jax.random.split(key, 6)
    x = jax.random.normal(ks[0], (B, C, H, W), jnp.float32)
    # deterministic synthetic parameters (shapes from DilationInception.__init__)
    w_branch = 0.1 * jax.random.uniform(ks[1], (NLAYERS,), jnp.float32)
    w_conv = 0.1 * jax.random.normal(ks[2], (NLAYERS, C, C, KSIZE, KSIZE),
                                     jnp.float32)
    b_conv = 0.1 * jax.random.normal(ks[3], (NLAYERS, C), jnp.float32)
    fc1_w = 0.1 * jax.random.normal(ks[4], (Cr, C), jnp.float32)
    fc2_w = 0.1 * jax.random.normal(ks[5], (C, Cr), jnp.float32)
    params = (w_branch, w_conv, b_conv, fc1_w, fc2_w)

    out = dilation_inception(x, params)
    out = jax.block_until_ready(out)

    ref = reference(x, params)
    assert out.shape == (B, C, H, W)
    max_err = float(jnp.max(jnp.abs(out - ref)))
    assert jnp.allclose(out, ref, rtol=2e-2, atol=2e-2), max_err

    print("KERNEL_OK")
</pallas_src>

<mosaic_0001>
module attributes {stable_mosaic.version = 11 : i64} {
  func.func @kernel(%arg0: i32, %arg1: memref<1x16x16x128xf32, #tpu.memory_space<vmem>>, %arg2: memref<512x128xbf16, #tpu.memory_space<vmem>>, %arg3: memref<1x128xf32, #tpu.memory_space<vmem>>, %arg4: memref<128x4xf32, #tpu.memory_space<vmem>>, %arg5: memref<4x128xf32, #tpu.memory_space<vmem>>, %arg6: memref<1x16x16x128xf32, #tpu.memory_space<vmem>>, %arg7: memref<1x22x24x128xbf16, #tpu.memory_space<vmem>>, %arg8: memref<128x512xbf16, #tpu.memory_space<vmem>>, %arg9: memref<1x128xf32, #tpu.memory_space<vmem>>) attributes {dimension_semantics = [#tpu.dimension_semantics<parallel>], iteration_bounds = array<i64: 2>, scalar_prefetch = 0 : i64, scratch_operands = 3 : i64, tpu.core_type = #tpu.core_type<tc>, window_params = [{transform_indices = @transform_0, window_bounds = array<i64: 1, 16, 16, 128>}, {pipeline_mode = #tpu.pipeline_mode<synchronous>, transform_indices = @transform_1, window_bounds = array<i64: 512, 128>}, {pipeline_mode = #tpu.pipeline_mode<synchronous>, transform_indices = @transform_2, window_bounds = array<i64: 1, 128>}, {pipeline_mode = #tpu.pipeline_mode<synchronous>, transform_indices = @transform_3, window_bounds = array<i64: 128, 4>}, {pipeline_mode = #tpu.pipeline_mode<synchronous>, transform_indices = @transform_4, window_bounds = array<i64: 4, 128>}, {transform_indices = @transform_5, window_bounds = array<i64: 1, 16, 16, 128>}]} {
    %cst = arith.constant 0.000000e+00 : bf16
    %0 = vector.broadcast %cst : bf16 to vector<1x3x24x128xbf16>
    %c0 = arith.constant 0 : index
    %c0_0 = arith.constant 0 : index
    %c0_1 = arith.constant 0 : index
    %c0_2 = arith.constant 0 : index
    %1 = vector.load %arg7[%c0, %c0_0, %c0_1, %c0_2] : memref<1x22x24x128xbf16, #tpu.memory_space<vmem>>, vector<1x3x24x128xbf16>
    tpu.vector_store %arg7[%c0, %c0_0, %c0_1, %c0_2], %0 {strides = array<i32>} : memref<1x22x24x128xbf16, #tpu.memory_space<vmem>>, vector<1x3x24x128xbf16>,
    %cst_3 = arith.constant 0.000000e+00 : bf16
    %2 = vector.broadcast %cst_3 : bf16 to vector<1x3x24x128xbf16>
    %c0_4 = arith.constant 0 : index
    %c19 = arith.constant 19 : index
    %c0_5 = arith.constant 0 : index
    %c0_6 = arith.constant 0 : index
    %3 = vector.load %arg7[%c0_4, %c19, %c0_5, %c0_6] : memref<1x22x24x128xbf16, #tpu.memory_space<vmem>>, vector<1x3x24x128xbf16>
    tpu.vector_store %arg7[%c0_4, %c19, %c0_5, %c0_6], %2 {strides = array<i32>} : memref<1x22x24x128xbf16, #tpu.memory_space<vmem>>, vector<1x3x24x128xbf16>,
    %cst_7 = arith.constant 0.000000e+00 : bf16
    %4 = vector.broadcast %cst_7 : bf16 to vector<1x16x3x128xbf16>
    %c0_8 = arith.constant 0 : index
    %c3 = arith.constant 3 : index
    %c0_9 = arith.constant 0 : index
    %c0_10 = arith.constant 0 : index
    %5 = vector.load %arg7[%c0_8, %c3, %c0_9, %c0_10] : memref<1x22x24x128xbf16, #tpu.memory_space<vmem>>, vector<1x16x3x128xbf16>
    tpu.vector_store %arg7[%c0_8, %c3, %c0_9, %c0_10], %4 {strides = array<i32>} : memref<1x22x24x128xbf16, #tpu.memory_space<vmem>>, vector<1x16x3x128xbf16>,
    %cst_11 = arith.constant 0.000000e+00 : bf16
    %6 = vector.broadcast %cst_11 : bf16 to vector<1x16x5x128xbf16>
    %c0_12 = arith.constant 0 : index
    %c3_13 = arith.constant 3 : index
    %c19_14 = arith.constant 19 : index
    %c0_15 = arith.constant 0 : index
    %7 = vector.load %arg7[%c0_12, %c3_13, %c19_14, %c0_15] : memref<1x22x24x128xbf16, #tpu.memory_space<vmem>>, vector<1x16x5x128xbf16>
    tpu.vector_store %arg7[%c0_12, %c3_13, %c19_14, %c0_15], %6 {strides = array<i32>} : memref<1x22x24x128xbf16, #tpu.memory_space<vmem>>, vector<1x16x5x128xbf16>,
    %c0_i32 = arith.constant 0 : i32
    %c2_i32 = arith.constant 2 : i32
    %8 = arith.addi %c0_i32, %c2_i32 : i32
    %c1_i32 = arith.constant 1 : i32
    scf.for %arg10 = %c0_i32 to %8 step %c1_i32  : i32 {
      %c1_i32_41 = arith.constant 1 : i32
      %28 = arith.muli %arg10, %c1_i32_41 : i32
      %c0_i32_42 = arith.constant 0 : i32
      %29 = arith.addi %c0_i32_42, %28 : i32
      %c8_i32 = arith.constant 8 : i32
      %30 = arith.muli %29, %c8_i32 : i32
      %31 = tpu.assume_multiple %30, 8 : i32
      %c0_43 = arith.constant 0 : index
      %32 = arith.index_cast %31 : i32 to index
      %c0_44 = arith.constant 0 : index
      %c0_45 = arith.constant 0 : index
      %33 = vector.load %arg1[%c0_43, %32, %c0_44, %c0_45] : memref<1x16x16x128xf32, #tpu.memory_space<vmem>>, vector<1x8x16x128xf32>
      %34 = arith.truncf %33 : vector<1x8x16x128xf32> to vector<1x8x16x128xbf16>
      %c3_i32 = arith.constant 3 : i32
      %35 = arith.addi %c3_i32, %31 : i32
      %c0_46 = arith.constant 0 : index
      %36 = arith.index_cast %35 : i32 to index
      %c3_47 = arith.constant 3 : index
      %c0_48 = arith.constant 0 : index
      %37 = vector.load %arg7[%c0_46, %36, %c3_47, %c0_48] : memref<1x22x24x128xbf16, #tpu.memory_space<vmem>>, vector<1x8x16x128xbf16>
      tpu.vector_store %arg7[%c0_46, %36, %c3_47, %c0_48], %34 {strides = array<i32>} : memref<1x22x24x128xbf16, #tpu.memory_space<vmem>>, vector<1x8x16x128xbf16>,
    }
    %c2_i32_16 = arith.constant 2 : i32
    %cst_17 = arith.constant 0.000000e+00 : f32
    %9 = vector.broadcast %cst_17 : f32 to vector<1x128xf32>
    %c0_18 = arith.constant 0 : index
    %c0_19 = arith.constant 0 : index
    %10 = vector.load %arg9[%c0_18, %c0_19] : memref<1x128xf32, #tpu.memory_space<vmem>>, vector<1x128xf32>
    tpu.vector_store %arg9[%c0_18, %c0_19], %9 {strides = array<i32>} : memref<1x128xf32, #tpu.memory_space<vmem>>, vector<1x128xf32>,
    %c0_i32_20 = arith.constant 0 : i32
    %c2_i32_21 = arith.constant 2 : i32
    %11 = arith.addi %c0_i32_20, %c2_i32_21 : i32
    %c1_i32_22 = arith.constant 1 : i32
    scf.for %arg10 = %c0_i32_20 to %11 step %c1_i32_22  : i32 {
      %c1_i32_41 = arith.constant 1 : i32
      %28 = arith.muli %arg10, %c1_i32_41 : i32
      %c0_i32_42 = arith.constant 0 : i32
      %29 = arith.addi %c0_i32_42, %28 : i32
      %c8_i32 = arith.constant 8 : i32
      %30 = arith.muli %29, %c8_i32 : i32
      %31 = tpu.assume_multiple %30, 8 : i32
      %c0_43 = arith.constant 0 : index
      %32 = arith.index_cast %31 : i32 to index
      %c0_44 = arith.constant 0 : index
      %c0_45 = arith.constant 0 : index
      %33 = vector.load %arg7[%c0_43, %32, %c0_44, %c0_45] : memref<1x22x24x128xbf16, #tpu.memory_space<vmem>>, vector<1x14x16x128xbf16>
      %34 = vector.extract_strided_slice %33 {offsets = [0, 0, 0, 0], sizes = [1, 14, 16, 16], strides = [1, 1, 1, 1]} : vector<1x14x16x128xbf16> to vector<1x14x16x16xbf16>
      %35 = vector.extract_strided_slice %34 {offsets = [0, 0, 0, 0], sizes = [1, 8, 16, 16], strides = [1, 1, 1, 1]} : vector<1x14x16x16xbf16> to vector<1x8x16x16xbf16>
      %36 = vector.extract_strided_slice %34 {offsets = [0, 3, 0, 0], sizes = [1, 8, 16, 16], strides = [1, 1, 1, 1]} : vector<1x14x16x16xbf16> to vector<1x8x16x16xbf16>
      %37 = vector.extract_strided_slice %34 {offsets = [0, 6, 0, 0], sizes = [1, 8, 16, 16], strides = [1, 1, 1, 1]} : vector<1x14x16x16xbf16> to vector<1x8x16x16xbf16>
      %c0_46 = arith.constant 0 : index
      %38 = arith.index_cast %31 : i32 to index
      %c1 = arith.constant 1 : index
      %c0_47 = arith.constant 0 : index
      %39 = vector.load %arg7[%c0_46, %38, %c1, %c0_47] : memref<1x22x24x128xbf16, #tpu.memory_space<vmem>>, vector<1x14x16x128xbf16>
      %40 = vector.extract_strided_slice %39 {offsets = [0, 0, 0, 0], sizes = [1, 14, 16, 16], strides = [1, 1, 1, 1]} : vector<1x14x16x128xbf16> to vector<1x14x16x16xbf16>
      %41 = vector.extract_strided_slice %40 {offsets = [0, 1, 0, 0], sizes = [1, 8, 16, 16], strides = [1, 1, 1, 1]} : vector<1x14x16x16xbf16> to vector<1x8x16x16xbf16>
      %42 = vector.extract_strided_slice %40 {offsets = [0, 3, 0, 0], sizes = [1, 8, 16, 16], strides = [1, 1, 1, 1]} : vector<1x14x16x16xbf16> to vector<1x8x16x16xbf16>
      %43 = vector.extract_strided_slice %40 {offsets = [0, 5, 0, 0], sizes = [1, 8, 16, 16], strides = [1, 1, 1, 1]} : vector<1x14x16x16xbf16> to vector<1x8x16x16xbf16>
      %c0_48 = arith.constant 0 : index
      %44 = arith.index_cast %31 : i32 to index
      %c2 = arith.constant 2 : index
      %c0_49 = arith.constant 0 : index
      %45 = vector.load %arg7[%c0_48, %44, %c2, %c0_49] : memref<1x22x24x128xbf16, #tpu.memory_space<vmem>>, vector<1x14x16x128xbf16>
      %46 = vector.extract_strided_slice %45 {offsets = [0, 0, 0, 0], sizes = [1, 14, 16, 16], strides = [1, 1, 1, 1]} : vector<1x14x16x128xbf16> to vector<1x14x16x16xbf16>
      %47 = vector.extract_strided_slice %46 {offsets = [0, 2, 0, 0], sizes = [1, 8, 16, 16], strides = [1, 1, 1, 1]} : vector<1x14x16x16xbf16> to vector<1x8x16x16xbf16>
      %48 = vector.extract_strided_slice %46 {offsets = [0, 3, 0, 0], sizes = [1, 8, 16, 16], strides = [1, 1, 1, 1]} : vector<1x14x16x16xbf16> to vector<1x8x16x16xbf16>
      %49 = tpu.concatenate %35, %36, %37, %41, %42, %43, %47, %48 in 3 : vector<1x8x16x16xbf16>, vector<1x8x16x16xbf16>, vector<1x8x16x16xbf16>, vector<1x8x16x16xbf16>, vector<1x8x16x16xbf16>, vector<1x8x16x16xbf16>, vector<1x8x16x16xbf16>, vector<1x8x16x16xbf16> -> vector<1x8x16x128xbf16>
      %50 = vector.shape_cast %49 : vector<1x8x16x128xbf16> to vector<128x128xbf16>
      %c0_50 = arith.constant 0 : index
      %c0_51 = arith.constant 0 : index
      %51 = vector.load %arg8[%c0_50, %c0_51] : memref<128x512xbf16, #tpu.memory_space<vmem>>, vector<128x128xbf16>
      tpu.vector_store %arg8[%c0_50, %c0_51], %50 {strides = array<i32>} : memref<128x512xbf16, #tpu.memory_space<vmem>>, vector<128x128xbf16>,
      %52 = vector.extract_strided_slice %46 {offsets = [0, 4, 0, 0], sizes = [1, 8, 16, 16], strides = [1, 1, 1, 1]} : vector<1x14x16x16xbf16> to vector<1x8x16x16xbf16>
      %c0_52 = arith.constant 0 : index
      %53 = arith.index_cast %31 : i32 to index
      %c3_53 = arith.constant 3 : index
      %c0_54 = arith.constant 0 : index
      %54 = vector.load %arg7[%c0_52, %53, %c3_53, %c0_54] : memref<1x22x24x128xbf16, #tpu.memory_space<vmem>>, vector<1x14x16x128xbf16>
      %55 = vector.extract_strided_slice %54 {offsets = [0, 0, 0, 0], sizes = [1, 14, 16, 16], strides = [1, 1, 1, 1]} : vector<1x14x16x128xbf16> to vector<1x14x16x16xbf16>
      %56 = vector.extract_strided_slice %55 {offsets = [0, 2, 0, 0], sizes = [1, 8, 16, 16], strides = [1, 1, 1, 1]} : vector<1x14x16x16xbf16> to vector<1x8x16x16xbf16>
      %57 = vector.extract_strided_slice %55 {offsets = [0, 3, 0, 0], sizes = [1, 8, 16, 16], strides = [1, 1, 1, 1]} : vector<1x14x16x16xbf16> to vector<1x8x16x16xbf16>
      %58 = vector.extract_strided_slice %55 {offsets = [0, 4, 0, 0], sizes = [1, 8, 16, 16], strides = [1, 1, 1, 1]} : vector<1x14x16x16xbf16> to vector<1x8x16x16xbf16>
      %59 = vector.extract_strided_slice %55 {offsets = [0, 1, 0, 0], sizes = [1, 8, 16, 16], strides = [1, 1, 1, 1]} : vector<1x14x16x16xbf16> to vector<1x8x16x16xbf16>
      %60 = vector.extract_strided_slice %55 {offsets = [0, 3, 0, 0], sizes = [1, 8, 16, 16], strides = [1, 1, 1, 1]} : vector<1x14x16x16xbf16> to vector<1x8x16x16xbf16>
      %61 = vector.extract_strided_slice %55 {offsets = [0, 5, 0, 0], sizes = [1, 8, 16, 16], strides = [1, 1, 1, 1]} : vector<1x14x16x16xbf16> to vector<1x8x16x16xbf16>
      %62 = vector.extract_strided_slice %55 {offsets = [0, 0, 0, 0], sizes = [1, 8, 16, 16], strides = [1, 1, 1, 1]} : vector<1x14x16x16xbf16> to vector<1x8x16x16xbf16>
      %63 = tpu.concatenate %52, %56, %57, %58, %59, %60, %61, %62 in 3 : vector<1x8x16x16xbf16>, vector<1x8x16x16xbf16>, vector<1x8x16x16xbf16>, vector<1x8x16x16xbf16>, vector<1x8x16x16xbf16>, vector<1x8x16x16xbf16>, vector<1x8x16x16xbf16>, vector<1x8x16x16xbf16> -> vector<1x8x16x128xbf16>
      %64 = vector.shape_cast %63 : vector<1x8x16x128xbf16> to vector<128x128xbf16>
      %c0_55 = arith.constant 0 : index
      %c128 = arith.constant 128 : index
      %65 = vector.load %arg8[%c0_55, %c128] : memref<128x512xbf16, #tpu.memory_space<vmem>>, vector<128x128xbf16>
      tpu.vector_store %arg8[%c0_55, %c128], %64 {strides = array<i32>} : memref<128x512xbf16, #tpu.memory_space<vmem>>, vector<128x128xbf16>,
      %66 = vector.extract_strided_slice %55 {offsets = [0, 3, 0, 0], sizes = [1, 8, 16, 16], strides = [1, 1, 1, 1]} : vector<1x14x16x16xbf16> to vector<1x8x16x16xbf16>
      %67 = vector.extract_strided_slice %55 {offsets = [0, 6, 0, 0], sizes = [1, 8, 16, 16], strides = [1, 1, 1, 1]} : vector<1x14x16x16xbf16> to vector<1x8x16x16xbf16>
      %c0_56 = arith.constant 0 : index
      %68 = arith.index_cast %31 : i32 to index
      %c4 = arith.constant 4 : index
      %c0_57 = arith.constant 0 : index
      %69 = vector.load %arg7[%c0_56, %68, %c4, %c0_57] : memref<1x22x24x128xbf16, #tpu.memory_space<vmem>>, vector<1x14x16x128xbf16>
      %70 = vector.extract_strided_slice %69 {offsets = [0, 0, 0, 0], sizes = [1, 14, 16, 16], strides = [1, 1, 1, 1]} : vector<1x14x16x128xbf16> to vector<1x14x16x16xbf16>
      %71 = vector.extract_strided_slice %70 {offsets = [0, 2, 0, 0], sizes = [1, 8, 16, 16], strides = [1, 1, 1, 1]} : vector<1x14x16x16xbf16> to vector<1x8x16x16xbf16>
      %72 = vector.extract_strided_slice %70 {offsets = [0, 3, 0, 0], sizes = [1, 8, 16, 16], strides = [1, 1, 1, 1]} : vector<1x14x16x16xbf16> to vector<1x8x16x16xbf16>
      %73 = vector.extract_strided_slice %70 {offsets = [0, 4, 0, 0], sizes = [1, 8, 16, 16], strides = [1, 1, 1, 1]} : vector<1x14x16x16xbf16> to vector<1x8x16x16xbf16>
      %c0_58 = arith.constant 0 : index
      %74 = arith.index_cast %31 : i32 to index
      %c5 = arith.constant 5 : index
      %c0_59 = arith.constant 0 : index
      %75 = vector.load %arg7[%c0_58, %74, %c5, %c0_59] : memref<1x22x24x128xbf16, #tpu.memory_space<vmem>>, vector<1x14x16x128xbf16>
      %76 = vector.extract_strided_slice %75 {offsets = [0, 0, 0, 0], sizes = [1, 14, 16, 16], strides = [1, 1, 1, 1]} : vector<1x14x16x128xbf16> to vector<1x14x16x16xbf16>
      %77 = vector.extract_strided_slice %76 {offsets = [0, 1, 0, 0], sizes = [1, 8, 16, 16], strides = [1, 1, 1, 1]} : vector<1x14x16x16xbf16> to vector<1x8x16x16xbf16>
      %78 = vector.extract_strided_slice %76 {offsets = [0, 3, 0, 0], sizes = [1, 8, 16, 16], strides = [1, 1, 1, 1]} : vector<1x14x16x16xbf16> to vector<1x8x16x16xbf16>
      %79 = vector.extract_strided_slice %76 {offsets = [0, 5, 0, 0], sizes = [1, 8, 16, 16], strides = [1, 1, 1, 1]} : vector<1x14x16x16xbf16> to vector<1x8x16x16xbf16>
      %80 = tpu.concatenate %66, %67, %71, %72, %73, %77, %78, %79 in 3 : vector<1x8x16x16xbf16>, vector<1x8x16x16xbf16>, vector<1x8x16x16xbf16>, vector<1x8x16x16xbf16>, vector<1x8x16x16xbf16>, vector<1x8x16x16xbf16>, vector<1x8x16x16xbf16>, vector<1x8x16x16xbf16> -> vector<1x8x16x128xbf16>
      %81 = vector.shape_cast %80 : vector<1x8x16x128xbf16> to vector<128x128xbf16>
      %c0_60 = arith.constant 0 : index
      %c256 = arith.constant 256 : index
      %82 = vector.load %arg8[%c0_60, %c256] : memref<128x512xbf16, #tpu.memory_space<vmem>>, vector<128x128xbf16>
      tpu.vector_store %arg8[%c0_60, %c256], %81 {strides = array<i32>} : memref<128x512xbf16, #tpu.memory_space<vmem>>, vector<128x128xbf16>,
      %c0_61 = arith.constant 0 : index
      %83 = arith.index_cast %31 : i32 to index
      %c6 = arith.constant 6 : index
      %c0_62 = arith.constant 0 : index
      %84 = vector.load %arg7[%c0_61, %83, %c6, %c0_62] : memref<1x22x24x128xbf16, #tpu.memory_space<vmem>>, vector<1x14x16x128xbf16>
      %85 = vector.extract_strided_slice %84 {offsets = [0, 0, 0, 0], sizes = [1, 14, 16, 16], strides = [1, 1, 1, 1]} : vector<1x14x16x128xbf16> to vector<1x14x16x16xbf16>
      %86 = vector.extract_strided_slice %85 {offsets = [0, 0, 0, 0], sizes = [1, 8, 16, 16], strides = [1, 1, 1, 1]} : vector<1x14x16x16xbf16> to vector<1x8x16x16xbf16>
      %87 = vector.extract_strided_slice %85 {offsets = [0, 3, 0, 0], sizes = [1, 8, 16, 16], strides = [1, 1, 1, 1]} : vector<1x14x16x16xbf16> to vector<1x8x16x16xbf16>
      %88 = vector.extract_strided_slice %85 {offsets = [0, 6, 0, 0], sizes = [1, 8, 16, 16], strides = [1, 1, 1, 1]} : vector<1x14x16x16xbf16> to vector<1x8x16x16xbf16>
      %cst_63 = arith.constant 0.000000e+00 : bf16
      %89 = vector.broadcast %cst_63 : bf16 to vector<1x8x16x80xbf16>
      %90 = tpu.concatenate %86, %87, %88, %89 in 3 : vector<1x8x16x16xbf16>, vector<1x8x16x16xbf16>, vector<1x8x16x16xbf16>, vector<1x8x16x80xbf16> -> vector<1x8x16x128xbf16>
      %91 = vector.shape_cast %90 : vector<1x8x16x128xbf16> to vector<128x128xbf16>
      %c0_64 = arith.constant 0 : index
      %c384 = arith.constant 384 : index
      %92 = vector.load %arg8[%c0_64, %c384] : memref<128x512xbf16, #tpu.memory_space<vmem>>, vector<128x128xbf16>
      tpu.vector_store %arg8[%c0_64, %c384], %91 {strides = array<i32>} : memref<128x512xbf16, #tpu.memory_space<vmem>>, vector<128x128xbf16>,
      %c0_65 = arith.constant 0 : index
      %c0_66 = arith.constant 0 : index
      %93 = vector.load %arg8[%c0_65, %c0_66] : memref<128x512xbf16, #tpu.memory_space<vmem>>, vector<128x512xbf16>
      %c0_67 = arith.constant 0 : index
      %c0_68 = arith.constant 0 : index
      %94 = vector.load %arg2[%c0_67, %c0_68] : memref<512x128xbf16, #tpu.memory_space<vmem>>, vector<512x128xbf16>
      %cst_69 = arith.constant dense<0.000000e+00> : vector<128x128xf32>
      %95 = tpu.matmul %93, %94, %cst_69 {dimension_numbers = #tpu.dot_dimension_numbers<[1], [0], [0], [1], [0, 0, 1, 1], [], []>} : vector<128x512xbf16>, vector<512x128xbf16>, vector<128x128xf32> -> vector<128x128xf32>
      %c0_70 = arith.constant 0 : index
      %96 = arith.index_cast %31 : i32 to index
      %c0_71 = arith.constant 0 : index
      %c0_72 = arith.constant 0 : index
      %97 = vector.load %arg1[%c0_70, %96, %c0_71, %c0_72] : memref<1x16x16x128xf32, #tpu.memory_space<vmem>>, vector<1x8x16x128xf32>
      %98 = vector.shape_cast %97 : vector<1x8x16x128xf32> to vector<128x128xf32>
      %99 = arith.addf %98, %95 : vector<128x128xf32>
      %c0_73 = arith.constant 0 : index
      %c0_74 = arith.constant 0 : index
      %100 = vector.load %arg3[%c0_73, %c0_74] : memref<1x128xf32, #tpu.memory_space<vmem>>, vector<1x128xf32>
      %101 = vector.broadcast %100 : vector<1x128xf32> to vector<128x128xf32>
      %102 = arith.addf %99, %101 : vector<128x128xf32>
      %103 = vector.shape_cast %102 : vector<128x128xf32> to vector<1x8x16x128xf32>
      %c0_75 = arith.constant 0 : index
      %104 = arith.index_cast %31 : i32 to index
      %c0_76 = arith.constant 0 : index
      %c0_77 = arith.constant 0 : index
      %105 = vector.load %arg6[%c0_75, %104, %c0_76, %c0_77] : memref<1x16x16x128xf32, #tpu.memory_space<vmem>>, vector<1x8x16x128xf32>
      tpu.vector_store %arg6[%c0_75, %104, %c0_76, %c0_77], %103 {strides = array<i32>} : memref<1x16x16x128xf32, #tpu.memory_space<vmem>>, vector<1x8x16x128xf32>,
      %c0_78 = arith.constant 0 : index
      %c0_79 = arith.constant 0 : index
      %106 = vector.load %arg9[%c0_78, %c0_79] : memref<1x128xf32, #tpu.memory_space<vmem>>, vector<1x128xf32>
      %107 = vector.shape_cast %102 : vector<128x128xf32> to vector<1x128x128xf32>
      %cst_80 = arith.constant dense<0.000000e+00> : vector<1x128xf32>
      %108 = vector.multi_reduction <add>, %107, %cst_80 [1] : vector<1x128x128xf32> to vector<1x128xf32>
      %109 = arith.addf %106, %108 : vector<1x128xf32>
      %c0_81 = arith.constant 0 : index
      %c0_82 = arith.constant 0 : index
      %110 = vector.load %arg9[%c0_81, %c0_82] : memref<1x128xf32, #tpu.memory_space<vmem>>, vector<1x128xf32>
      tpu.vector_store %arg9[%c0_81, %c0_82], %109 {strides = array<i32>} : memref<1x128xf32, #tpu.memory_space<vmem>>, vector<1x128xf32>,
    }
    %c2_i32_23 = arith.constant 2 : i32
    %c0_24 = arith.constant 0 : index
    %c0_25 = arith.constant 0 : index
    %12 = vector.load %arg9[%c0_24, %c0_25] : memref<1x128xf32, #tpu.memory_space<vmem>>, vector<1x128xf32>
    %cst_26 = arith.constant 3.906250e-03 : f32
    %13 = vector.broadcast %cst_26 : f32 to vector<1x128xf32>
    %14 = arith.mulf %12, %13 : vector<1x128xf32>
    %c0_27 = arith.constant 0 : index
    %c0_28 = arith.constant 0 : index
    %15 = vector.load %arg4[%c0_27, %c0_28] : memref<128x4xf32, #tpu.memory_space<vmem>>, vector<128x4xf32>
    %cst_29 = arith.constant dense<0.000000e+00> : vector<1x4xf32>
    %16 = tpu.matmul %14, %15, %cst_29 {dimension_numbers = #tpu.dot_dimension_numbers<[1], [0], [0], [1], [0, 0, 1, 1], [], []>} : vector<1x128xf32>, vector<128x4xf32>, vector<1x4xf32> -> vector<1x4xf32>
    %cst_30 = arith.constant 0.000000e+00 : f32
    %17 = vector.broadcast %cst_30 : f32 to vector<1x4xf32>
    %18 = arith.maximumf %16, %17 : vector<1x4xf32>
    %c0_31 = arith.constant 0 : index
    %c0_32 = arith.constant 0 : index
    %19 = vector.load %arg5[%c0_31, %c0_32] : memref<4x128xf32, #tpu.memory_space<vmem>>, vector<4x128xf32>
    %cst_33 = arith.constant dense<0.000000e+00> : vector<1x128xf32>
    %20 = tpu.matmul %18, %19, %cst_33 {dimension_numbers = #tpu.dot_dimension_numbers<[1], [0], [0], [1], [0, 0, 1, 1], [], []>} : vector<1x4xf32>, vector<4x128xf32>, vector<1x128xf32> -> vector<1x128xf32>
    %21 = arith.negf %20 : vector<1x128xf32>
    %22 = math.exp %21 : vector<1x128xf32>
    %cst_34 = arith.constant 1.000000e+00 : f32
    %23 = vector.broadcast %cst_34 : f32 to vector<1x128xf32>
    %24 = arith.addf %23, %22 : vector<1x128xf32>
    %25 = arith.divf %23, %24 : vector<1x128xf32>
    %c0_35 = arith.constant 0 : index
    %c0_36 = arith.constant 0 : index
    %26 = vector.load %arg9[%c0_35, %c0_36] : memref<1x128xf32, #tpu.memory_space<vmem>>, vector<1x128xf32>
    tpu.vector_store %arg9[%c0_35, %c0_36], %25 {strides = array<i32>} : memref<1x128xf32, #tpu.memory_space<vmem>>, vector<1x128xf32>,
    %c0_i32_37 = arith.constant 0 : i32
    %c2_i32_38 = arith.constant 2 : i32
    %27 = arith.addi %c0_i32_37, %c2_i32_38 : i32
    %c1_i32_39 = arith.constant 1 : i32
    scf.for %arg10 = %c0_i32_37 to %27 step %c1_i32_39  : i32 {
      %c1_i32_41 = arith.constant 1 : i32
      %28 = arith.muli %arg10, %c1_i32_41 : i32
      %c0_i32_42 = arith.constant 0 : i32
      %29 = arith.addi %c0_i32_42, %28 : i32
      %c8_i32 = arith.constant 8 : i32
      %30 = arith.muli %29, %c8_i32 : i32
      %31 = tpu.assume_multiple %30, 8 : i32
      %c0_43 = arith.constant 0 : index
      %c0_44 = arith.constant 0 : index
      %32 = vector.load %arg9[%c0_43, %c0_44] : memref<1x128xf32, #tpu.memory_space<vmem>>, vector<1x128xf32>
      %c0_45 = arith.constant 0 : index
      %33 = arith.index_cast %31 : i32 to index
      %c0_46 = arith.constant 0 : index
      %c0_47 = arith.constant 0 : index
      %34 = vector.load %arg6[%c0_45, %33, %c0_46, %c0_47] : memref<1x16x16x128xf32, #tpu.memory_space<vmem>>, vector<1x8x16x128xf32>
      %35 = vector.shape_cast %32 : vector<1x128xf32> to vector<1x1x1x128xf32>
      %36 = vector.broadcast %35 : vector<1x1x1x128xf32> to vector<1x8x16x128xf32>
      %37 = arith.mulf %34, %36 : vector<1x8x16x128xf32>
      %c0_48 = arith.constant 0 : index
      %38 = arith.index_cast %31 : i32 to index
      %c0_49 = arith.constant 0 : index
      %c0_50 = arith.constant 0 : index
      %39 = vector.load %arg6[%c0_48, %38, %c0_49, %c0_50] : memref<1x16x16x128xf32, #tpu.memory_space<vmem>>, vector<1x8x16x128xf32>
      tpu.vector_store %arg6[%c0_48, %38, %c0_49, %c0_50], %37 {strides = array<i32>} : memref<1x16x16x128xf32, #tpu.memory_space<vmem>>, vector<1x8x16x128xf32>,
    }
    %c2_i32_40 = arith.constant 2 : i32
    return
  }
  func.func @transform_0(%arg0: i32) -> (i32, i32, i32, i32) {
    %c0_i32 = arith.constant 0 : i32
    %c0_i32_0 = arith.constant 0 : i32
    %c0_i32_1 = arith.constant 0 : i32
    %c0_i32_2 = arith.constant 0 : i32
    return %arg0, %c0_i32, %c0_i32_0, %c0_i32_1 : i32, i32, i32, i32
  }
  func.func @transform_1(%arg0: i32) -> (i32, i32) {
    %c0_i32 = arith.constant 0 : i32
    %c0_i32_0 = arith.constant 0 : i32
    %c0_i32_1 = arith.constant 0 : i32
    return %c0_i32, %c0_i32_0 : i32, i32
  }
  func.func @transform_2(%arg0: i32) -> (i32, i32) {
    %c0_i32 = arith.constant 0 : i32
    %c0_i32_0 = arith.constant 0 : i32
    %c0_i32_1 = arith.constant 0 : i32
    return %c0_i32, %c0_i32_0 : i32, i32
  }
  func.func @transform_3(%arg0: i32) -> (i32, i32) {
    %c0_i32 = arith.constant 0 : i32
    %c0_i32_0 = arith.constant 0 : i32
    %c0_i32_1 = arith.constant 0 : i32
    return %c0_i32, %c0_i32_0 : i32, i32
  }
  func.func @transform_4(%arg0: i32) -> (i32, i32) {
    %c0_i32 = arith.constant 0 : i32
    %c0_i32_0 = arith.constant 0 : i32
    %c0_i32_1 = arith.constant 0 : i32
    return %c0_i32, %c0_i32_0 : i32, i32
  }
  func.func @transform_5(%arg0: i32) -> (i32, i32, i32, i32) {
    %c0_i32 = arith.constant 0 : i32
    %c0_i32_0 = arith.constant 0 : i32
    %c0_i32_1 = arith.constant 0 : i32
    %c0_i32_2 = arith.constant 0 : i32
    return %arg0, %c0_i32, %c0_i32_0, %c0_i32_1 : i32, i32, i32, i32
  }
}

module attributes {stable_mosaic.version = 11 : i64} {
  func.func @kernel(%arg0: i32, %arg1: memref<1x16x16x128xf32, #tpu.memory_space<vmem>>, %arg2: memref<512x128xbf16, #tpu.memory_space<vmem>>, %arg3: memref<1x128xf32, #tpu.memory_space<vmem>>, %arg4: memref<128x4xf32, #tpu.memory_space<vmem>>, %arg5: memref<4x128xf32, #tpu.memory_space<vmem>>, %arg6: memref<1x16x16x128xf32, #tpu.memory_space<vmem>>, %arg7: memref<1x22x24x128xbf16, #tpu.memory_space<vmem>>, %arg8: memref<128x512xbf16, #tpu.memory_space<vmem>>, %arg9: memref<1x128xf32, #tpu.memory_space<vmem>>) attributes {dimension_semantics = [#tpu.dimension_semantics<parallel>], iteration_bounds = array<i64: 2>, scalar_prefetch = 0 : i64, scratch_operands = 3 : i64, tpu.core_type = #tpu.core_type<tc>, window_params = [{transform_indices = @transform_0, window_bounds = array<i64: 1, 16, 16, 128>}, {pipeline_mode = #tpu.pipeline_mode<synchronous>, transform_indices = @transform_1, window_bounds = array<i64: 512, 128>}, {pipeline_mode = #tpu.pipeline_mode<synchronous>, transform_indices = @transform_2, window_bounds = array<i64: 1, 128>}, {pipeline_mode = #tpu.pipeline_mode<synchronous>, transform_indices = @transform_3, window_bounds = array<i64: 128, 4>}, {pipeline_mode = #tpu.pipeline_mode<synchronous>, transform_indices = @transform_4, window_bounds = array<i64: 4, 128>}, {transform_indices = @transform_5, window_bounds = array<i64: 1, 16, 16, 128>}]} {
    %cst = arith.constant 0.000000e+00 : bf16
    %0 = vector.broadcast %cst : bf16 to vector<1x3x24x128xbf16>
    %c0 = arith.constant 0 : index
    %c0_0 = arith.constant 0 : index
    %c0_1 = arith.constant 0 : index
    %c0_2 = arith.constant 0 : index
    %1 = vector.load %arg7[%c0, %c0_0, %c0_1, %c0_2] : memref<1x22x24x128xbf16, #tpu.memory_space<vmem>>, vector<1x3x24x128xbf16>
    tpu.vector_store %arg7[%c0, %c0_0, %c0_1, %c0_2], %0 {strides = array<i32>} : memref<1x22x24x128xbf16, #tpu.memory_space<vmem>>, vector<1x3x24x128xbf16>,
    %cst_3 = arith.constant 0.000000e+00 : bf16
    %2 = vector.broadcast %cst_3 : bf16 to vector<1x3x24x128xbf16>
    %c0_4 = arith.constant 0 : index
    %c19 = arith.constant 19 : index
    %c0_5 = arith.constant 0 : index
    %c0_6 = arith.constant 0 : index
    %3 = vector.load %arg7[%c0_4, %c19, %c0_5, %c0_6] : memref<1x22x24x128xbf16, #tpu.memory_space<vmem>>, vector<1x3x24x128xbf16>
    tpu.vector_store %arg7[%c0_4, %c19, %c0_5, %c0_6], %2 {strides = array<i32>} : memref<1x22x24x128xbf16, #tpu.memory_space<vmem>>, vector<1x3x24x128xbf16>,
    %cst_7 = arith.constant 0.000000e+00 : bf16
    %4 = vector.broadcast %cst_7 : bf16 to vector<1x16x3x128xbf16>
    %c0_8 = arith.constant 0 : index
    %c3 = arith.constant 3 : index
    %c0_9 = arith.constant 0 : index
    %c0_10 = arith.constant 0 : index
    %5 = vector.load %arg7[%c0_8, %c3, %c0_9, %c0_10] : memref<1x22x24x128xbf16, #tpu.memory_space<vmem>>, vector<1x16x3x128xbf16>
    tpu.vector_store %arg7[%c0_8, %c3, %c0_9, %c0_10], %4 {strides = array<i32>} : memref<1x22x24x128xbf16, #tpu.memory_space<vmem>>, vector<1x16x3x128xbf16>,
    %cst_11 = arith.constant 0.000000e+00 : bf16
    %6 = vector.broadcast %cst_11 : bf16 to vector<1x16x5x128xbf16>
    %c0_12 = arith.constant 0 : index
    %c3_13 = arith.constant 3 : index
    %c19_14 = arith.constant 19 : index
    %c0_15 = arith.constant 0 : index
    %7 = vector.load %arg7[%c0_12, %c3_13, %c19_14, %c0_15] : memref<1x22x24x128xbf16, #tpu.memory_space<vmem>>, vector<1x16x5x128xbf16>
    tpu.vector_store %arg7[%c0_12, %c3_13, %c19_14, %c0_15], %6 {strides = array<i32>} : memref<1x22x24x128xbf16, #tpu.memory_space<vmem>>, vector<1x16x5x128xbf16>,
    %c0_i32 = arith.constant 0 : i32
    %c2_i32 = arith.constant 2 : i32
    %8 = arith.addi %c0_i32, %c2_i32 : i32
    %c1_i32 = arith.constant 1 : i32
    scf.for %arg10 = %c0_i32 to %8 step %c1_i32  : i32 {
      %c1_i32_41 = arith.constant 1 : i32
      %28 = arith.muli %arg10, %c1_i32_41 : i32
      %c0_i32_42 = arith.constant 0 : i32
      %29 = arith.addi %c0_i32_42, %28 : i32
      %c8_i32 = arith.constant 8 : i32
      %30 = arith.muli %29, %c8_i32 : i32
      %31 = tpu.assume_multiple %30, 8 : i32
      %c0_43 = arith.constant 0 : index
      %32 = arith.index_cast %31 : i32 to index
      %c0_44 = arith.constant 0 : index
      %c0_45 = arith.constant 0 : index
      %33 = vector.load %arg1[%c0_43, %32, %c0_44, %c0_45] : memref<1x16x16x128xf32, #tpu.memory_space<vmem>>, vector<1x8x16x128xf32>
      %34 = arith.truncf %33 : vector<1x8x16x128xf32> to vector<1x8x16x128xbf16>
      %c3_i32 = arith.constant 3 : i32
      %35 = arith.addi %c3_i32, %31 : i32
      %c0_46 = arith.constant 0 : index
      %36 = arith.index_cast %35 : i32 to index
      %c3_47 = arith.constant 3 : index
      %c0_48 = arith.constant 0 : index
      %37 = vector.load %arg7[%c0_46, %36, %c3_47, %c0_48] : memref<1x22x24x128xbf16, #tpu.memory_space<vmem>>, vector<1x8x16x128xbf16>
      tpu.vector_store %arg7[%c0_46, %36, %c3_47, %c0_48], %34 {strides = array<i32>} : memref<1x22x24x128xbf16, #tpu.memory_space<vmem>>, vector<1x8x16x128xbf16>,
    }
    %c2_i32_16 = arith.constant 2 : i32
    %cst_17 = arith.constant 0.000000e+00 : f32
    %9 = vector.broadcast %cst_17 : f32 to vector<1x128xf32>
    %c0_18 = arith.constant 0 : index
    %c0_19 = arith.constant 0 : index
    %10 = vector.load %arg9[%c0_18, %c0_19] : memref<1x128xf32, #tpu.memory_space<vmem>>, vector<1x128xf32>
    tpu.vector_store %arg9[%c0_18, %c0_19], %9 {strides = array<i32>} : memref<1x128xf32, #tpu.memory_space<vmem>>, vector<1x128xf32>,
    %c0_i32_20 = arith.constant 0 : i32
    %c2_i32_21 = arith.constant 2 : i32
    %11 = arith.addi %c0_i32_20, %c2_i32_21 : i32
    %c1_i32_22 = arith.constant 1 : i32
    scf.for %arg10 = %c0_i32_20 to %11 step %c1_i32_22  : i32 {
      %c1_i32_41 = arith.constant 1 : i32
      %28 = arith.muli %arg10, %c1_i32_41 : i32
      %c0_i32_42 = arith.constant 0 : i32
      %29 = arith.addi %c0_i32_42, %28 : i32
      %c8_i32 = arith.constant 8 : i32
      %30 = arith.muli %29, %c8_i32 : i32
      %31 = tpu.assume_multiple %30, 8 : i32
      %c0_43 = arith.constant 0 : index
      %32 = arith.index_cast %31 : i32 to index
      %c0_44 = arith.constant 0 : index
      %c0_45 = arith.constant 0 : index
      %33 = vector.load %arg7[%c0_43, %32, %c0_44, %c0_45] : memref<1x22x24x128xbf16, #tpu.memory_space<vmem>>, vector<1x14x16x128xbf16>
      %34 = vector.extract_strided_slice %33 {offsets = [0, 0, 0, 0], sizes = [1, 14, 16, 16], strides = [1, 1, 1, 1]} : vector<1x14x16x128xbf16> to vector<1x14x16x16xbf16>
      %35 = vector.extract_strided_slice %34 {offsets = [0, 0, 0, 0], sizes = [1, 8, 16, 16], strides = [1, 1, 1, 1]} : vector<1x14x16x16xbf16> to vector<1x8x16x16xbf16>
      %36 = vector.extract_strided_slice %34 {offsets = [0, 3, 0, 0], sizes = [1, 8, 16, 16], strides = [1, 1, 1, 1]} : vector<1x14x16x16xbf16> to vector<1x8x16x16xbf16>
      %37 = vector.extract_strided_slice %34 {offsets = [0, 6, 0, 0], sizes = [1, 8, 16, 16], strides = [1, 1, 1, 1]} : vector<1x14x16x16xbf16> to vector<1x8x16x16xbf16>
      %c0_46 = arith.constant 0 : index
      %38 = arith.index_cast %31 : i32 to index
      %c1 = arith.constant 1 : index
      %c0_47 = arith.constant 0 : index
      %39 = vector.load %arg7[%c0_46, %38, %c1, %c0_47] : memref<1x22x24x128xbf16, #tpu.memory_space<vmem>>, vector<1x14x16x128xbf16>
      %40 = vector.extract_strided_slice %39 {offsets = [0, 0, 0, 0], sizes = [1, 14, 16, 16], strides = [1, 1, 1, 1]} : vector<1x14x16x128xbf16> to vector<1x14x16x16xbf16>
      %41 = vector.extract_strided_slice %40 {offsets = [0, 1, 0, 0], sizes = [1, 8, 16, 16], strides = [1, 1, 1, 1]} : vector<1x14x16x16xbf16> to vector<1x8x16x16xbf16>
      %42 = vector.extract_strided_slice %40 {offsets = [0, 3, 0, 0], sizes = [1, 8, 16, 16], strides = [1, 1, 1, 1]} : vector<1x14x16x16xbf16> to vector<1x8x16x16xbf16>
      %43 = vector.extract_strided_slice %40 {offsets = [0, 5, 0, 0], sizes = [1, 8, 16, 16], strides = [1, 1, 1, 1]} : vector<1x14x16x16xbf16> to vector<1x8x16x16xbf16>
      %c0_48 = arith.constant 0 : index
      %44 = arith.index_cast %31 : i32 to index
      %c2 = arith.constant 2 : index
      %c0_49 = arith.constant 0 : index
      %45 = vector.load %arg7[%c0_48, %44, %c2, %c0_49] : memref<1x22x24x128xbf16, #tpu.memory_space<vmem>>, vector<1x14x16x128xbf16>
      %46 = vector.extract_strided_slice %45 {offsets = [0, 0, 0, 0], sizes = [1, 14, 16, 16], strides = [1, 1, 1, 1]} : vector<1x14x16x128xbf16> to vector<1x14x16x16xbf16>
      %47 = vector.extract_strided_slice %46 {offsets = [0, 2, 0, 0], sizes = [1, 8, 16, 16], strides = [1, 1, 1, 1]} : vector<1x14x16x16xbf16> to vector<1x8x16x16xbf16>
      %48 = vector.extract_strided_slice %46 {offsets = [0, 3, 0, 0], sizes = [1, 8, 16, 16], strides = [1, 1, 1, 1]} : vector<1x14x16x16xbf16> to vector<1x8x16x16xbf16>
      %49 = tpu.concatenate %35, %36, %37, %41, %42, %43, %47, %48 in 3 : vector<1x8x16x16xbf16>, vector<1x8x16x16xbf16>, vector<1x8x16x16xbf16>, vector<1x8x16x16xbf16>, vector<1x8x16x16xbf16>, vector<1x8x16x16xbf16>, vector<1x8x16x16xbf16>, vector<1x8x16x16xbf16> -> vector<1x8x16x128xbf16>
      %50 = vector.shape_cast %49 : vector<1x8x16x128xbf16> to vector<128x128xbf16>
      %c0_50 = arith.constant 0 : index
      %c0_51 = arith.constant 0 : index
      %51 = vector.load %arg8[%c0_50, %c0_51] : memref<128x512xbf16, #tpu.memory_space<vmem>>, vector<128x128xbf16>
      tpu.vector_store %arg8[%c0_50, %c0_51], %50 {strides = array<i32>} : memref<128x512xbf16, #tpu.memory_space<vmem>>, vector<128x128xbf16>,
      %52 = vector.extract_strided_slice %46 {offsets = [0, 4, 0, 0], sizes = [1, 8, 16, 16], strides = [1, 1, 1, 1]} : vector<1x14x16x16xbf16> to vector<1x8x16x16xbf16>
      %c0_52 = arith.constant 0 : index
      %53 = arith.index_cast %31 : i32 to index
      %c3_53 = arith.constant 3 : index
      %c0_54 = arith.constant 0 : index
      %54 = vector.load %arg7[%c0_52, %53, %c3_53, %c0_54] : memref<1x22x24x128xbf16, #tpu.memory_space<vmem>>, vector<1x14x16x128xbf16>
      %55 = vector.extract_strided_slice %54 {offsets = [0, 0, 0, 0], sizes = [1, 14, 16, 16], strides = [1, 1, 1, 1]} : vector<1x14x16x128xbf16> to vector<1x14x16x16xbf16>
      %56 = vector.extract_strided_slice %55 {offsets = [0, 2, 0, 0], sizes = [1, 8, 16, 16], strides = [1, 1, 1, 1]} : vector<1x14x16x16xbf16> to vector<1x8x16x16xbf16>
      %57 = vector.extract_strided_slice %55 {offsets = [0, 3, 0, 0], sizes = [1, 8, 16, 16], strides = [1, 1, 1, 1]} : vector<1x14x16x16xbf16> to vector<1x8x16x16xbf16>
      %58 = vector.extract_strided_slice %55 {offsets = [0, 4, 0, 0], sizes = [1, 8, 16, 16], strides = [1, 1, 1, 1]} : vector<1x14x16x16xbf16> to vector<1x8x16x16xbf16>
      %59 = vector.extract_strided_slice %55 {offsets = [0, 1, 0, 0], sizes = [1, 8, 16, 16], strides = [1, 1, 1, 1]} : vector<1x14x16x16xbf16> to vector<1x8x16x16xbf16>
      %60 = vector.extract_strided_slice %55 {offsets = [0, 3, 0, 0], sizes = [1, 8, 16, 16], strides = [1, 1, 1, 1]} : vector<1x14x16x16xbf16> to vector<1x8x16x16xbf16>
      %61 = vector.extract_strided_slice %55 {offsets = [0, 5, 0, 0], sizes = [1, 8, 16, 16], strides = [1, 1, 1, 1]} : vector<1x14x16x16xbf16> to vector<1x8x16x16xbf16>
      %62 = vector.extract_strided_slice %55 {offsets = [0, 0, 0, 0], sizes = [1, 8, 16, 16], strides = [1, 1, 1, 1]} : vector<1x14x16x16xbf16> to vector<1x8x16x16xbf16>
      %63 = tpu.concatenate %52, %56, %57, %58, %59, %60, %61, %62 in 3 : vector<1x8x16x16xbf16>, vector<1x8x16x16xbf16>, vector<1x8x16x16xbf16>, vector<1x8x16x16xbf16>, vector<1x8x16x16xbf16>, vector<1x8x16x16xbf16>, vector<1x8x16x16xbf16>, vector<1x8x16x16xbf16> -> vector<1x8x16x128xbf16>
      %64 = vector.shape_cast %63 : vector<1x8x16x128xbf16> to vector<128x128xbf16>
      %c0_55 = arith.constant 0 : index
      %c128 = arith.constant 128 : index
      %65 = vector.load %arg8[%c0_55, %c128] : memref<128x512xbf16, #tpu.memory_space<vmem>>, vector<128x128xbf16>
      tpu.vector_store %arg8[%c0_55, %c128], %64 {strides = array<i32>} : memref<128x512xbf16, #tpu.memory_space<vmem>>, vector<128x128xbf16>,
      %66 = vector.extract_strided_slice %55 {offsets = [0, 3, 0, 0], sizes = [1, 8, 16, 16], strides = [1, 1, 1, 1]} : vector<1x14x16x16xbf16> to vector<1x8x16x16xbf16>
      %67 = vector.extract_strided_slice %55 {offsets = [0, 6, 0, 0], sizes = [1, 8, 16, 16], strides = [1, 1, 1, 1]} : vector<1x14x16x16xbf16> to vector<1x8x16x16xbf16>
      %c0_56 = arith.constant 0 : index
      %68 = arith.index_cast %31 : i32 to index
      %c4 = arith.constant 4 : index
      %c0_57 = arith.constant 0 : index
      %69 = vector.load %arg7[%c0_56, %68, %c4, %c0_57] : memref<1x22x24x128xbf16, #tpu.memory_space<vmem>>, vector<1x14x16x128xbf16>
      %70 = vector.extract_strided_slice %69 {offsets = [0, 0, 0, 0], sizes = [1, 14, 16, 16], strides = [1, 1, 1, 1]} : vector<1x14x16x128xbf16> to vector<1x14x16x16xbf16>
      %71 = vector.extract_strided_slice %70 {offsets = [0, 2, 0, 0], sizes = [1, 8, 16, 16], strides = [1, 1, 1, 1]} : vector<1x14x16x16xbf16> to vector<1x8x16x16xbf16>
      %72 = vector.extract_strided_slice %70 {offsets = [0, 3, 0, 0], sizes = [1, 8, 16, 16], strides = [1, 1, 1, 1]} : vector<1x14x16x16xbf16> to vector<1x8x16x16xbf16>
      %73 = vector.extract_strided_slice %70 {offsets = [0, 4, 0, 0], sizes = [1, 8, 16, 16], strides = [1, 1, 1, 1]} : vector<1x14x16x16xbf16> to vector<1x8x16x16xbf16>
      %c0_58 = arith.constant 0 : index
      %74 = arith.index_cast %31 : i32 to index
      %c5 = arith.constant 5 : index
      %c0_59 = arith.constant 0 : index
      %75 = vector.load %arg7[%c0_58, %74, %c5, %c0_59] : memref<1x22x24x128xbf16, #tpu.memory_space<vmem>>, vector<1x14x16x128xbf16>
      %76 = vector.extract_strided_slice %75 {offsets = [0, 0, 0, 0], sizes = [1, 14, 16, 16], strides = [1, 1, 1, 1]} : vector<1x14x16x128xbf16> to vector<1x14x16x16xbf16>
      %77 = vector.extract_strided_slice %76 {offsets = [0, 1, 0, 0], sizes = [1, 8, 16, 16], strides = [1, 1, 1, 1]} : vector<1x14x16x16xbf16> to vector<1x8x16x16xbf16>
      %78 = vector.extract_strided_slice %76 {offsets = [0, 3, 0, 0], sizes = [1, 8, 16, 16], strides = [1, 1, 1, 1]} : vector<1x14x16x16xbf16> to vector<1x8x16x16xbf16>
      %79 = vector.extract_strided_slice %76 {offsets = [0, 5, 0, 0], sizes = [1, 8, 16, 16], strides = [1, 1, 1, 1]} : vector<1x14x16x16xbf16> to vector<1x8x16x16xbf16>
      %80 = tpu.concatenate %66, %67, %71, %72, %73, %77, %78, %79 in 3 : vector<1x8x16x16xbf16>, vector<1x8x16x16xbf16>, vector<1x8x16x16xbf16>, vector<1x8x16x16xbf16>, vector<1x8x16x16xbf16>, vector<1x8x16x16xbf16>, vector<1x8x16x16xbf16>, vector<1x8x16x16xbf16> -> vector<1x8x16x128xbf16>
      %81 = vector.shape_cast %80 : vector<1x8x16x128xbf16> to vector<128x128xbf16>
      %c0_60 = arith.constant 0 : index
      %c256 = arith.constant 256 : index
      %82 = vector.load %arg8[%c0_60, %c256] : memref<128x512xbf16, #tpu.memory_space<vmem>>, vector<128x128xbf16>
      tpu.vector_store %arg8[%c0_60, %c256], %81 {strides = array<i32>} : memref<128x512xbf16, #tpu.memory_space<vmem>>, vector<128x128xbf16>,
      %c0_61 = arith.constant 0 : index
      %83 = arith.index_cast %31 : i32 to index
      %c6 = arith.constant 6 : index
      %c0_62 = arith.constant 0 : index
      %84 = vector.load %arg7[%c0_61, %83, %c6, %c0_62] : memref<1x22x24x128xbf16, #tpu.memory_space<vmem>>, vector<1x14x16x128xbf16>
      %85 = vector.extract_strided_slice %84 {offsets = [0, 0, 0, 0], sizes = [1, 14, 16, 16], strides = [1, 1, 1, 1]} : vector<1x14x16x128xbf16> to vector<1x14x16x16xbf16>
      %86 = vector.extract_strided_slice %85 {offsets = [0, 0, 0, 0], sizes = [1, 8, 16, 16], strides = [1, 1, 1, 1]} : vector<1x14x16x16xbf16> to vector<1x8x16x16xbf16>
      %87 = vector.extract_strided_slice %85 {offsets = [0, 3, 0, 0], sizes = [1, 8, 16, 16], strides = [1, 1, 1, 1]} : vector<1x14x16x16xbf16> to vector<1x8x16x16xbf16>
      %88 = vector.extract_strided_slice %85 {offsets = [0, 6, 0, 0], sizes = [1, 8, 16, 16], strides = [1, 1, 1, 1]} : vector<1x14x16x16xbf16> to vector<1x8x16x16xbf16>
      %cst_63 = arith.constant 0.000000e+00 : bf16
      %89 = vector.broadcast %cst_63 : bf16 to vector<1x8x16x80xbf16>
      %90 = tpu.concatenate %86, %87, %88, %89 in 3 : vector<1x8x16x16xbf16>, vector<1x8x16x16xbf16>, vector<1x8x16x16xbf16>, vector<1x8x16x80xbf16> -> vector<1x8x16x128xbf16>
      %91 = vector.shape_cast %90 : vector<1x8x16x128xbf16> to vector<128x128xbf16>
      %c0_64 = arith.constant 0 : index
      %c384 = arith.constant 384 : index
      %92 = vector.load %arg8[%c0_64, %c384] : memref<128x512xbf16, #tpu.memory_space<vmem>>, vector<128x128xbf16>
      tpu.vector_store %arg8[%c0_64, %c384], %91 {strides = array<i32>} : memref<128x512xbf16, #tpu.memory_space<vmem>>, vector<128x128xbf16>,
      %c0_65 = arith.constant 0 : index
      %c0_66 = arith.constant 0 : index
      %93 = vector.load %arg8[%c0_65, %c0_66] : memref<128x512xbf16, #tpu.memory_space<vmem>>, vector<128x512xbf16>
      %c0_67 = arith.constant 0 : index
      %c0_68 = arith.constant 0 : index
      %94 = vector.load %arg2[%c0_67, %c0_68] : memref<512x128xbf16, #tpu.memory_space<vmem>>, vector<512x128xbf16>
      %cst_69 = arith.constant dense<0.000000e+00> : vector<128x128xf32>
      %95 = tpu.matmul %93, %94, %cst_69 {dimension_numbers = #tpu.dot_dimension_numbers<[1], [0], [0], [1], [0, 0, 1, 1], [], []>} : vector<128x512xbf16>, vector<512x128xbf16>, vector<128x128xf32> -> vector<128x128xf32>
      %c0_70 = arith.constant 0 : index
      %96 = arith.index_cast %31 : i32 to index
      %c0_71 = arith.constant 0 : index
      %c0_72 = arith.constant 0 : index
      %97 = vector.load %arg1[%c0_70, %96, %c0_71, %c0_72] : memref<1x16x16x128xf32, #tpu.memory_space<vmem>>, vector<1x8x16x128xf32>
      %98 = vector.shape_cast %97 : vector<1x8x16x128xf32> to vector<128x128xf32>
      %99 = arith.addf %98, %95 : vector<128x128xf32>
      %c0_73 = arith.constant 0 : index
      %c0_74 = arith.constant 0 : index
      %100 = vector.load %arg3[%c0_73, %c0_74] : memref<1x128xf32, #tpu.memory_space<vmem>>, vector<1x128xf32>
      %101 = vector.broadcast %100 : vector<1x128xf32> to vector<128x128xf32>
      %102 = arith.addf %99, %101 : vector<128x128xf32>
      %103 = vector.shape_cast %102 : vector<128x128xf32> to vector<1x8x16x128xf32>
      %c0_75 = arith.constant 0 : index
      %104 = arith.index_cast %31 : i32 to index
      %c0_76 = arith.constant 0 : index
      %c0_77 = arith.constant 0 : index
      %105 = vector.load %arg6[%c0_75, %104, %c0_76, %c0_77] : memref<1x16x16x128xf32, #tpu.memory_space<vmem>>, vector<1x8x16x128xf32>
      tpu.vector_store %arg6[%c0_75, %104, %c0_76, %c0_77], %103 {strides = array<i32>} : memref<1x16x16x128xf32, #tpu.memory_space<vmem>>, vector<1x8x16x128xf32>,
      %c0_78 = arith.constant 0 : index
      %c0_79 = arith.constant 0 : index
      %106 = vector.load %arg9[%c0_78, %c0_79] : memref<1x128xf32, #tpu.memory_space<vmem>>, vector<1x128xf32>
      %107 = vector.shape_cast %102 : vector<128x128xf32> to vector<1x128x128xf32>
      %cst_80 = arith.constant dense<0.000000e+00> : vector<1x128xf32>
      %108 = vector.multi_reduction <add>, %107, %cst_80 [1] : vector<1x128x128xf32> to vector<1x128xf32>
      %109 = arith.addf %106, %108 : vector<1x128xf32>
      %c0_81 = arith.constant 0 : index
      %c0_82 = arith.constant 0 : index
      %110 = vector.load %arg9[%c0_81, %c0_82] : memref<1x128xf32, #tpu.memory_space<vmem>>, vector<1x128xf32>
      tpu.vector_store %arg9[%c0_81, %c0_82], %109 {strides = array<i32>} : memref<1x128xf32, #tpu.memory_space<vmem>>, vector<1x128xf32>,
    }
    %c2_i32_23 = arith.constant 2 : i32
    %c0_24 = arith.constant 0 : index
    %c0_25 = arith.constant 0 : index
    %12 = vector.load %arg9[%c0_24, %c0_25] : memref<1x128xf32, #tpu.memory_space<vmem>>, vector<1x128xf32>
    %cst_26 = arith.constant 3.906250e-03 : f32
    %13 = vector.broadcast %cst_26 : f32 to vector<1x128xf32>
    %14 = arith.mulf %12, %13 : vector<1x128xf32>
    %c0_27 = arith.constant 0 : index
    %c0_28 = arith.constant 0 : index
    %15 = vector.load %arg4[%c0_27, %c0_28] : memref<128x4xf32, #tpu.memory_space<vmem>>, vector<128x4xf32>
    %cst_29 = arith.constant dense<0.000000e+00> : vector<1x4xf32>
    %16 = tpu.matmul %14, %15, %cst_29 {dimension_numbers = #tpu.dot_dimension_numbers<[1], [0], [0], [1], [0, 0, 1, 1], [], []>} : vector<1x128xf32>, vector<128x4xf32>, vector<1x4xf32> -> vector<1x4xf32>
    %cst_30 = arith.constant 0.000000e+00 : f32
    %17 = vector.broadcast %cst_30 : f32 to vector<1x4xf32>
    %18 = arith.maximumf %16, %17 : vector<1x4xf32>
    %c0_31 = arith.constant 0 : index
    %c0_32 = arith.constant 0 : index
    %19 = vector.load %arg5[%c0_31, %c0_32] : memref<4x128xf32, #tpu.memory_space<vmem>>, vector<4x128xf32>
    %cst_33 = arith.constant dense<0.000000e+00> : vector<1x128xf32>
    %20 = tpu.matmul %18, %19, %cst_33 {dimension_numbers = #tpu.dot_dimension_numbers<[1], [0], [0], [1], [0, 0, 1, 1], [], []>} : vector<1x4xf32>, vector<4x128xf32>, vector<1x128xf32> -> vector<1x128xf32>
    %21 = arith.negf %20 : vector<1x128xf32>
    %22 = math.exp %21 : vector<1x128xf32>
    %cst_34 = arith.constant 1.000000e+00 : f32
    %23 = vector.broadcast %cst_34 : f32 to vector<1x128xf32>
    %24 = arith.addf %23, %22 : vector<1x128xf32>
    %25 = arith.divf %23, %24 : vector<1x128xf32>
    %c0_35 = arith.constant 0 : index
    %c0_36 = arith.constant 0 : index
    %26 = vector.load %arg9[%c0_35, %c0_36] : memref<1x128xf32, #tpu.memory_space<vmem>>, vector<1x128xf32>
    tpu.vector_store %arg9[%c0_35, %c0_36], %25 {strides = array<i32>} : memref<1x128xf32, #tpu.memory_space<vmem>>, vector<1x128xf32>,
    %c0_i32_37 = arith.constant 0 : i32
    %c2_i32_38 = arith.constant 2 : i32
    %27 = arith.addi %c0_i32_37, %c2_i32_38 : i32
    %c1_i32_39 = arith.constant 1 : i32
    scf.for %arg10 = %c0_i32_37 to %27 step %c1_i32_39  : i32 {
      %c1_i32_41 = arith.constant 1 : i32
      %28 = arith.muli %arg10, %c1_i32_41 : i32
      %c0_i32_42 = arith.constant 0 : i32
      %29 = arith.addi %c0_i32_42, %28 : i32
      %c8_i32 = arith.constant 8 : i32
      %30 = arith.muli %29, %c8_i32 : i32
      %31 = tpu.assume_multiple %30, 8 : i32
      %c0_43 = arith.constant 0 : index
      %c0_44 = arith.constant 0 : index
      %32 = vector.load %arg9[%c0_43, %c0_44] : memref<1x128xf32, #tpu.memory_space<vmem>>, vector<1x128xf32>
      %c0_45 = arith.constant 0 : index
      %33 = arith.index_cast %31 : i32 to index
      %c0_46 = arith.constant 0 : index
      %c0_47 = arith.constant 0 : index
      %34 = vector.load %arg6[%c0_45, %33, %c0_46, %c0_47] : memref<1x16x16x128xf32, #tpu.memory_space<vmem>>, vector<1x8x16x128xf32>
      %35 = vector.shape_cast %32 : vector<1x128xf32> to vector<1x1x1x128xf32>
      %36 = vector.broadcast %35 : vector<1x1x1x128xf32> to vector<1x8x16x128xf32>
      %37 = arith.mulf %34, %36 : vector<1x8x16x128xf32>
      %c0_48 = arith.constant 0 : index
      %38 = arith.index_cast %31 : i32 to index
      %c0_49 = arith.constant 0 : index
      %c0_50 = arith.constant 0 : index
      %39 = vector.load %arg6[%c0_48, %38, %c0_49, %c0_50] : memref<1x16x16x128xf32, #tpu.memory_space<vmem>>, vector<1x8x16x128xf32>
      tpu.vector_store %arg6[%c0_48, %38, %c0_49, %c0_50], %37 {strides = array<i32>} : memref<1x16x16x128xf32, #tpu.memory_space<vmem>>, vector<1x8x16x128xf32>,
    }
    %c2_i32_40 = arith.constant 2 : i32
    return
  }
  func.func @transform_0(%arg0: i32) -> (i32, i32, i32, i32) {
    %c0_i32 = arith.constant 0 : i32
    %c0_i32_0 = arith.constant 0 : i32
    %c0_i32_1 = arith.constant 0 : i32
    %c0_i32_2 = arith.constant 0 : i32
    return %arg0, %c0_i32, %c0_i32_0, %c0_i32_1 : i32, i32, i32, i32
  }
  func.func @transform_1(%arg0: i32) -> (i32, i32) {
    %c0_i32 = arith.constant 0 : i32
    %c0_i32_0 = arith.constant 0 : i32
    %c0_i32_1 = arith.constant 0 : i32
    return %c0_i32, %c0_i32_0 : i32, i32
  }
  func.func @transform_2(%arg0: i32) -> (i32, i32) {
    %c0_i32 = arith.constant 0 : i32
    %c0_i32_0 = arith.constant 0 : i32
    %c0_i32_1 = arith.constant 0 : i32
    return %c0_i32, %c0_i32_0 : i32, i32
  }
  func.func @transform_3(%arg0: i32) -> (i32, i32) {
    %c0_i32 = arith.constant 0 : i32
    %c0_i32_0 = arith.constant 0 : i32
    %c0_i32_1 = arith.constant 0 : i32
    return %c0_i32, %c0_i32_0 : i32, i32
  }
  func.func @transform_4(%arg0: i32) -> (i32, i32) {
    %c0_i32 = arith.constant 0 : i32
    %c0_i32_0 = arith.constant 0 : i32
    %c0_i32_1 = arith.constant 0 : i32
    return %c0_i32, %c0_i32_0 : i32, i32
  }
  func.func @transform_5(%arg0: i32) -> (i32, i32, i32, i32) {
    %c0_i32 = arith.constant 0 : i32
    %c0_i32_0 = arith.constant 0 : i32
    %c0_i32_1 = arith.constant 0 : i32
    %c0_i32_2 = arith.constant 0 : i32
    return %arg0, %c0_i32, %c0_i32_0, %c0_i32_1 : i32, i32, i32, i32
  }
}

</mosaic_0001>

<bundles_post_ra>
// kernel: tpu_custom_call.1
= control target key start
LH: loop header
LB: loop body
LE: loop exit
PB: predicated region body
PF: predicated region fallthrough
CT: control target
= control target key end

     0   :  { %10 = vsyncpa [#allocation6], 0  ;;  %s8116_s0 = inlined_call_operand.hbm [shape: f32[2,16,16,128], index: 0, kind: input, shape index: {}]   ;;  %s8117_s1 = inlined_call_operand.hbm [shape: bf16[512,128], index: 1, kind: input, shape index: {}]   ;;  %s8118_s2 = inlined_call_operand.vmem [shape: f32[1,128], index: 2, kind: input, shape index: {}]   ;;  %s8119_s3 = inlined_call_operand.vmem [shape: f32[128,4], index: 3, kind: input, shape index: {}]   ;;  %s8120_s4 = inlined_call_operand.vmem [shape: f32[4,128], index: 4, kind: input, shape index: {}]   ;;  %s8121_s5 = inlined_call_operand.hbm [shape: f32[2,16,16,128], index: 5, kind: output, shape index: {}]  }
   0x1   :  { %12 = vsyncpa [#allocation6 + $0x1], 0 }
   0x2   :  { %13 = vsyncpa [#allocation9], 0 }
   0x3   :  { %14 = vsyncpa [#allocation7], 0 }
   0x4   :  { %16 = vsyncpa [#allocation7 + $0x1], 0  ;;  %s5415_s18 = smov 0   ;;  %s5417_s19 = smov 0  }
   0x5   :  { %s5419_s20 = smov 0   ;;  %s5421_s21 = smov 0  }
   0x6 LB: > { %s5436_s22 = sadd.s32 4294967295, %s5351_s21   ;;  %s4431_s23 = sadd.s32 4294967294, %s5351_s21   ;;  %s5351_s21 = sphi %s5421_s21, %s8477_s21   ;;  %s5347_s20 = sphi %s5419_s20, %s8476_s20   ;;  %s5343_s19 = sphi %s5417_s19, %s8475_s19   ;;  %s5339_s18 = sphi %s5415_s18, %s8474_s18  }
   0x7   : > { %p42_p0 = scmp.ne.s32.totalorder %s5343_s19, %s5339_s18  ;;  %p8122_p1 = scmp.eq.s32.totalorder %s5436_s22, 0 }
   0x8   : > { %p156_p3 = scmp.eq.s32.totalorder %s4431_s23, 1  ;;  %p4432_p5 = scmp.ge.s32.totalorder %s5351_s21, 1 }
   0x9   : > { %p5445_p4 = por %p8122_p1, %p42_p0  ;;  %p163_p7 = scmp.lt.s32.totalorder %s5351_s21, 3 }
   0xa   : > { %p5450_p6 = por %p156_p3, %p42_p0  ;;  %s5365_s27 = smov [#allocation8]  }
   0xb   : > { %s8163_s24 = scalar_select %p5445_p4, 1, 0 }
   0xc   : > { %s8164_s25 = scalar_select %p5450_p6, 1, 0 }
   0xd   : > { %p5455_p8 = pnand %p4432_p5, %p163_p7  ;;  %s175_s28 = sshll.u32 %s5365_s27, 4  ;;  %s5459_s28 = int_to_ptr.vmem [resolvable:$true] %s175_s28 }
   0xe   : > { %s5471_s30 = sadd.s32 1, %s5351_s21   ;;  %s29_s6 = sadd.s32 1, %s5347_s20 }
   0xf   : > { %s8165_s26 = scalar_select %p5455_p8, 1, 0 }
  0x10   : > { %p4917_p9 = pneg %p5455_p8  ;;  %s26_s7 = ssub.s32 %s5351_s21, %s5471_s30 }
  0x11   : > { %s5211_s10 = scalar_lea.hbm %s8117_s1, 4096 }
  0x12   : > { %p5466_p11 = pnand %p4917_p9, %p8122_p1  ;;  %p5212_p12 = scmp.ne.s32.totalorder %s8117_s1, %s5211_s10 }
  0x13   : > { %p5218_p5 = scmp.lt.u32.totalorder %s5211_s10, %s8117_s1 }
  0x14   : > { %p5213_p13 = pneg %p5466_p11 }
  0x16   : > { %p5214_p0 = pnand %p5213_p13, %p5212_p12 }
  0x18   : > { %p5215_p3 = pneg %p5214_p0 }
  0x1a   : > { %p5220_p7 = pnand %p5218_p5, %p5215_p3 }
  0x1c   : > { %5223 = shalt.err (!%p5220_p7)
}
  0x1d   : > { %s5224_s15 = scalar_lea.vmem %s5459_s28, 4096  ;;  %p5232_p2 = scmp.lt.s32.totalorder %s5459_s28, %s5459_s28 }
  0x1e   : > { %p5225_p9 = scmp.ne.s32.totalorder %s5459_s28, %s5224_s15  ;;  %p5233_p6 = scmp.lt.s32.totalorder %s5224_s15, %s5224_s15 }
  0x20   : > { %p5227_p10 = pnand %p5225_p9, %p5213_p13  ;;  %p5234_p4 = por %p5233_p6, %p5232_p2 }
  0x22   : > { %p5228_p1 = pneg %p5227_p10 }
  0x24   : > { %p5235_p8 = pnand %p5234_p4, %p5228_p1 }
  0x26   : > { %5238 = shalt.err (!%p5235_p8)
}
  0x27   : > { %s5366_s16 = smov 64   ;;  %s5367_s17 = smov 4  }
  0x28   : > { %4920 = dma.hbm_to_vmem [thread:$0]  (!%p5466_p11), %s8117_s1, 4096, %s5459_s28, [#allocation9], %s5366_s16, %s5366_s16, %s5367_s17  }
  0x29   : > { %p27_p2 = scmp.eq.s32.totalorder %s26_s7, 0  ;;  %p36_p1 = scmp.ne.s32.totalorder %s5347_s20, %s5343_s19 }
  0x2a   : > { %p37_p4 = scmp.eq.s32.totalorder %s5351_s21, 0  ;;  %p4930_p6 = scmp.lt.s32.totalorder %s5351_s21, 2 }
  0x2b   : > { %s5502_s8 = scalar_select %p27_p2, %s5347_s20, %s29_s6  }
  0x2c   : > { %p38_p8 = por %p37_p4, %p36_p1  ;;  %p8167_p10 = scmp.eq.s32.totalorder %s5436_s22, 1 }
  0x2d   : > { %s198_s10 = sand.u32 1, %s5347_s20   ;;  %s4676_s11 = sshll.u32 %s5351_s21, 12 }
  0x2e   : > { %p5506_p12 = por %p8167_p10, %p36_p1  ;;  %s4435_s12 = sshll.u32 %s198_s10, 8 }
  0x2f   : > { %s5515_s14 = scalar_lea.hbm %s8116_s0, %s4676_s11  ;;  %s202_s28 = scalar_lea.vmem [#allocation5], %s4435_s12 }
  0x30   : > { %s209_s6 = sshll.u32 %s202_s28, 4  ;;  %p5517_p11 = pnand %p4930_p6, %p38_p8  ;;  %s5521_s6 = int_to_ptr.vmem [resolvable:$true] %s209_s6 }
  0x31   : > { %s5523_s15 = scalar_lea.sflag [#allocation6], %s198_s10  ;;  %s5239_s16 = scalar_lea.hbm %s5515_s14, 4096 }
  0x32   : > { %p5240_p13 = scmp.ne.s32.totalorder %s5515_s14, %s5239_s16  ;;  %p5241_p0 = pneg %p5517_p11 }
  0x33   : > { %s5244_s27 = scalar_lea.hbm %s8116_s0, 8192  ;;  %p5245_p7 = scmp.lt.u32.totalorder %s5515_s14, %s8116_s0 }
  0x34   : > { %p5242_p3 = pnand %p5241_p0, %p5240_p13  ;;  %p5246_p9 = scmp.lt.u32.totalorder %s5244_s27, %s5239_s16 }
  0x35   : > { %p5248_p1 = scmp.lt.u32.totalorder %s5239_s16, %s5515_s14 }
  0x36   : > { %p5243_p5 = pneg %p5242_p3  ;;  %p5247_p2 = por %p5246_p9, %p5245_p7 }
  0x38   : > { %p5249_p4 = por %p5248_p1, %p5247_p2 }
  0x3a   : > { %p5250_p6 = pnand %p5249_p4, %p5243_p5 }
  0x3c   : > { %5253 = shalt.err (!%p5250_p6)
}
  0x3d   : > { %s5254_s10 = scalar_lea.vmem %s5521_s6, 4096  ;;  %s5368_s29 = smov [#allocation5]  }
  0x3e   : > { %p5255_p8 = scmp.ne.s32.totalorder %s5521_s6, %s5254_s10  ;;  %s5259_s13 = sshll.u32 %s5368_s29, 4  ;;  %s5260_s13 = int_to_ptr.vmem [resolvable:$false] %s5259_s13 }
  0x3f   : > { %s5261_s28 = scalar_lea.vmem %s5260_s13, 8192  ;;  %p5262_p3 = scmp.lt.s32.totalorder %s5521_s6, %s5260_s13 }
  0x40   : > { %p5257_p10 = pnand %p5255_p8, %p5241_p0  ;;  %p5263_p7 = scmp.lt.s32.totalorder %s5261_s28, %s5254_s10 }
  0x42   : > { %p5258_p13 = pneg %p5257_p10  ;;  %p5264_p9 = por %p5263_p7, %p5262_p3 }
  0x44   : > { %p5265_p2 = pnand %p5264_p9, %p5258_p13 }
  0x46   : > { %5268 = shalt.err (!%p5265_p2)
}
  0x47   : > { %s5369_s16 = smov 128   ;;  %s5370_s17 = smov 8  }
  0x48   : > { %4924 = dma.hbm_to_vmem [thread:$0]  (!%p5517_p11), %s5515_s14, 4096, %s5521_s6, %s5523_s15, %s5369_s16, %s5369_s16, %s5370_s17  }
  0x49   : > { %p8170_p0 = scmp.ne.s32.totalorder %s8165_s26, 0 }
  0x4a   : > { %s5554_s23 = sand.u32 (!%p8170_p0), 1, %s5343_s19   ;;  %p8171_p5 = scmp.ne.s32.totalorder (!%p8170_p0), %s8163_s24, 0 }
  0x4b   : > { %221 = sbr.rel (%p8170_p0) target bundleno = 1656 (0x678), region = 40  ;;  %s4439_s27 = sshll.u32 (!%p8170_p0), %s5554_s23, 8 }
  0x4c   : > { %s224_s11 = scalar_lea.sflag (!%p8170_p0), [#allocation6], %s5554_s23  ;;  %s5560_s12 = scalar_lea.vmem (!%p8170_p0), [#allocation5], %s4439_s27 }
  0x52   : > { %5326 = dma.done.wait (%p8171_p5), %s224_s11, 4096  }
  0x53   : > { %5328 = vsyncadd (%p8171_p5), %s224_s11, 4294963200  ;;  %p8172_p11 = scmp.eq.s32.totalorder %s5436_s22, 0 }
  0x55   : > { %5330 = dma.done.wait (%p8172_p11), [#allocation9], 4096   ;;  %p8173_p1 = pmov %p8172_p11 }
  0x56   : > { %v5371_v0 = vmov 0   ;;  %vm279_vm0 = vcmask 1041408   ;;  %vm280_vm1 = vsmask.f32 1280  ;;  %vm331_vm3 = vsmask.f32 7942 }
  0x57   : > { %5332 = vsyncadd (%p8173_p1), [#allocation9], 4294963200  ;;  %259 = vst [vmem:[#allocation2] sm:$0xf] %v5371_v0  ;;  %v282_v2 = vld [vmem:[#allocation2 + $0x24] sm:$0x3] }
  0x58   : > { %260 = vst [vmem:[#allocation2 + $0x4] sm:$0xf] %v5371_v0  ;;  %261 = vst [vmem:[#allocation2 + $0x8] sm:$0xf] %v5371_v0  ;;  %v285_v3 = vld [vmem:[#allocation2 + $0x30] sm:$0x3] }
  0x59   : > { %262 = vst [vmem:[#allocation2 + $0xc] sm:$0xf] %v5371_v0  ;;  %263 = vst [vmem:[#allocation2 + $0x10] sm:$0xf] %v5371_v0  ;;  %v288_v4 = vld [vmem:[#allocation2 + $0x3c] sm:$0x3] }
  0x5a   : > { %264 = vst [vmem:[#allocation2 + $0x14] sm:$0xf] %v5371_v0  ;;  %265 = vst [vmem:[#allocation2 + $0x18] sm:$0xf] %v5371_v0  ;;  %v291_v8 = vld [vmem:[#allocation2 + $0x48] sm:$0x3] }
  0x5b   : > { %266 = vst [vmem:[#allocation2 + $0x1c] sm:$0xf] %v5371_v0  ;;  %267 = vst [vmem:[#allocation2 + $0x20] sm:$0xf] %v5371_v0  ;;  %v294_v10 = vld [vmem:[#allocation2 + $0x54] sm:$0x3] }
  0x5c   : > { %269 = vst [vmem:[#allocation2 + $0xe4] sm:$0xf] %v5371_v0  ;;  %270 = vst [vmem:[#allocation2 + $0xe8] sm:$0xf] %v5371_v0  ;;  %v297_v11 = vld [vmem:[#allocation2 + $0x60] sm:$0x3] }
  0x5d   : > { %271 = vst [vmem:[#allocation2 + $0xec] sm:$0xf] %v5371_v0  ;;  %272 = vst [vmem:[#allocation2 + $0xf0] sm:$0xf] %v5371_v0  ;;  %vm330_vm4 = vcmask 1043457   ;;  %s5647_s24 = scalar_lea.vmem [#allocation10], %s4439_s27 }
  0x5e   : > { %273 = vst [vmem:[#allocation2 + $0xf4] sm:$0xf] %v5371_v0  ;;  %274 = vst [vmem:[#allocation2 + $0xf8] sm:$0xf] %v5371_v0  ;;  %v300_v14 = vld [vmem:[#allocation2 + $0x6c] sm:$0x3] }
  0x5f   : > { %275 = vst [vmem:[#allocation2 + $0xfc] sm:$0xf] %v5371_v0  ;;  %276 = vst [vmem:[#allocation2 + $0x100] sm:$0xf] %v5371_v0  ;;  %v303_v15 = vld [vmem:[#allocation2 + $0x78] sm:$0x3] }
  0x60   : > { %277 = vst [vmem:[#allocation2 + $0x104] sm:$0xf] %v5371_v0  ;;  %vm5571_vm2 = vmand %vm279_vm0, %vm280_vm1  ;;  %v306_v18 = vld [vmem:[#allocation2 + $0x84] sm:$0x3]  ;;  %v309_v19 = vld [vmem:[#allocation2 + $0x90] sm:$0x3] }
  0x61   : > { %v283_v5 = vsel %vm5571_vm2, 0, %v282_v2  ;;  %v286_v6 = vsel %vm5571_vm2, 0, %v285_v3  ;;  %v289_v7 = vsel %vm5571_vm2, 0, %v288_v4  ;;  %v292_v9 = vsel %vm5571_vm2, 0, %v291_v8  ;;  %v312_v22 = vld [vmem:[#allocation2 + $0x9c] sm:$0x3]  ;;  %vm5601_vm5 = vmand %vm330_vm4, %vm331_vm3 }
  0x62   : > { %284 = vst [vmem:[#allocation2 + $0x24] sm:$0x3] %v283_v5  ;;  %287 = vst [vmem:[#allocation2 + $0x30] sm:$0x3] %v286_v6  ;;  %v295_v12 = vsel %vm5571_vm2, 0, %v294_v10  ;;  %v298_v13 = vsel %vm5571_vm2, 0, %v297_v11 }
  0x63   : > { %290 = vst [vmem:[#allocation2 + $0x3c] sm:$0x3] %v289_v7  ;;  %293 = vst [vmem:[#allocation2 + $0x48] sm:$0x3] %v292_v9  ;;  %v301_v16 = vsel %vm5571_vm2, 0, %v300_v14  ;;  %v304_v17 = vsel %vm5571_vm2, 0, %v303_v15 }
  0x64   : > { %296 = vst [vmem:[#allocation2 + $0x54] sm:$0x3] %v295_v12  ;;  %299 = vst [vmem:[#allocation2 + $0x60] sm:$0x3] %v298_v13  ;;  %v307_v20 = vsel %vm5571_vm2, 0, %v306_v18  ;;  %v310_v21 = vsel %vm5571_vm2, 0, %v309_v19 }
  0x65   : > { %302 = vst [vmem:[#allocation2 + $0x6c] sm:$0x3] %v301_v16  ;;  %305 = vst [vmem:[#allocation2 + $0x78] sm:$0x3] %v304_v17  ;;  %v315_v23 = vld [vmem:[#allocation2 + $0xa8] sm:$0x3] }
  0x66   : > { %308 = vst [vmem:[#allocation2 + $0x84] sm:$0x3] %v307_v20  ;;  %311 = vst [vmem:[#allocation2 + $0x90] sm:$0x3] %v310_v21  ;;  %v313_v24 = vsel %vm5571_vm2, 0, %v312_v22  ;;  %v316_v25 = vsel %vm5571_vm2, 0, %v315_v23 }
  0x67   : > { %v318_v26 = vld [vmem:[#allocation2 + $0xb4] sm:$0x3]  ;;  %v321_v27 = vld [vmem:[#allocation2 + $0xc0] sm:$0x3]  ;;  %314 = vst [vmem:[#allocation2 + $0x9c] sm:$0x3] %v313_v24 }
  0x68   : > { %317 = vst [vmem:[#allocation2 + $0xa8] sm:$0x3] %v316_v25  ;;  %v319_v29 = vsel %vm5571_vm2, 0, %v318_v26  ;;  %v322_v30 = vsel %vm5571_vm2, 0, %v321_v27  ;;  %v324_v31 = vld [vmem:[#allocation2 + $0xcc] sm:$0x3] }
  0x69   : > { %v327_v32 = vld [vmem:[#allocation2 + $0xd8] sm:$0x3]  ;;  %320 = vst [vmem:[#allocation2 + $0xb4] sm:$0x3] %v319_v29  ;;  %323 = vst [vmem:[#allocation2 + $0xc0] sm:$0x3] %v322_v30 }
  0x6a   : > { %v325_v33 = vsel %vm5571_vm2, 0, %v324_v31  ;;  %v328_v34 = vsel %vm5571_vm2, 0, %v327_v32  ;;  %v333_v35 = vld [vmem:[#allocation2 + $0x2c] sm:$0xe]  ;;  %v336_v36 = vld [vmem:[#allocation2 + $0x38] sm:$0xe] }
  0x6b   : > { %326 = vst [vmem:[#allocation2 + $0xcc] sm:$0x3] %v325_v33  ;;  %329 = vst [vmem:[#allocation2 + $0xd8] sm:$0x3] %v328_v34  ;;  %v334_v37 = vsel %vm5601_vm5, 0, %v333_v35  ;;  %v337_v38 = vsel %vm5601_vm5, 0, %v336_v36 }
  0x6c   : > { %v339_v39 = vld [vmem:[#allocation2 + $0x44] sm:$0xe]  ;;  %v342_v40 = vld [vmem:[#allocation2 + $0x50] sm:$0xe]  ;;  %335 = vst [vmem:[#allocation2 + $0x2c] sm:$0xe] %v334_v37 }
  0x6d   : > { %338 = vst [vmem:[#allocation2 + $0x38] sm:$0xe] %v337_v38  ;;  %v340_v41 = vsel %vm5601_vm5, 0, %v339_v39  ;;  %v343_v42 = vsel %vm5601_vm5, 0, %v342_v40  ;;  %v345_v43 = vld [vmem:[#allocation2 + $0x5c] sm:$0xe] }
  0x6e   : > { %v348_v44 = vld [vmem:[#allocation2 + $0x68] sm:$0xe]  ;;  %341 = vst [vmem:[#allocation2 + $0x44] sm:$0xe] %v340_v41  ;;  %344 = vst [vmem:[#allocation2 + $0x50] sm:$0xe] %v343_v42 }
  0x6f   : > { %v346_v45 = vsel %vm5601_vm5, 0, %v345_v43  ;;  %v349_v46 = vsel %vm5601_vm5, 0, %v348_v44  ;;  %v351_v47 = vld [vmem:[#allocation2 + $0x74] sm:$0xe]  ;;  %v354_v48 = vld [vmem:[#allocation2 + $0x80] sm:$0xe] }
  0x70   : > { %347 = vst [vmem:[#allocation2 + $0x5c] sm:$0xe] %v346_v45  ;;  %350 = vst [vmem:[#allocation2 + $0x68] sm:$0xe] %v349_v46  ;;  %v352_v49 = vsel %vm5601_vm5, 0, %v351_v47  ;;  %v355_v50 = vsel %vm5601_vm5, 0, %v354_v48 }
  0x71   : > { %v357_v51 = vld [vmem:[#allocation2 + $0x8c] sm:$0xe]  ;;  %v360_v52 = vld [vmem:[#allocation2 + $0x98] sm:$0xe]  ;;  %353 = vst [vmem:[#allocation2 + $0x74] sm:$0xe] %v352_v49 }
  0x72   : > { %356 = vst [vmem:[#allocation2 + $0x80] sm:$0xe] %v355_v50  ;;  %v358_v53 = vsel %vm5601_vm5, 0, %v357_v51  ;;  %v361_v54 = vsel %vm5601_vm5, 0, %v360_v52  ;;  %v363_v55 = vld [vmem:[#allocation2 + $0xa4] sm:$0xe] }
  0x73   : > { %v366_v56 = vld [vmem:[#allocation2 + $0xb0] sm:$0xe]  ;;  %359 = vst [vmem:[#allocation2 + $0x8c] sm:$0xe] %v358_v53  ;;  %362 = vst [vmem:[#allocation2 + $0x98] sm:$0xe] %v361_v54 }
  0x74   : > { %v364_v57 = vsel %vm5601_vm5, 0, %v363_v55  ;;  %v367_v58 = vsel %vm5601_vm5, 0, %v366_v56  ;;  %v369_v59 = vld [vmem:[#allocation2 + $0xbc] sm:$0xe]  ;;  %v372_v60 = vld [vmem:[#allocation2 + $0xc8] sm:$0xe] }
  0x75   : > { %365 = vst [vmem:[#allocation2 + $0xa4] sm:$0xe] %v364_v57  ;;  %368 = vst [vmem:[#allocation2 + $0xb0] sm:$0xe] %v367_v58  ;;  %v370_v61 = vsel %vm5601_vm5, 0, %v369_v59  ;;  %v373_v62 = vsel %vm5601_vm5, 0, %v372_v60 }
  0x76   : > { %v375_v63 = vld [vmem:[#allocation2 + $0xd4] sm:$0xe]  ;;  %v378_v0 = vld [vmem:[#allocation2 + $0xe0] sm:$0xe]  ;;  %371 = vst [vmem:[#allocation2 + $0xbc] sm:$0xe] %v370_v61 }
  0x77   : > { %374 = vst [vmem:[#allocation2 + $0xc8] sm:$0xe] %v373_v62  ;;  %v376_v2 = vsel %vm5601_vm5, 0, %v375_v63  ;;  %v379_v3 = vsel %vm5601_vm5, 0, %v378_v0  ;;  %s5649_s26 = smov 0  }
  0x78   : > { %377 = vst [vmem:[#allocation2 + $0xd4] sm:$0xe] %v376_v2  ;;  %380 = vst [vmem:[#allocation2 + $0xe0] sm:$0xe] %v379_v3 }
  0x79 LB: >> { %s4677_s14 = sshll.u32 %s5355_s26, 7  ;;  %s4461_s7 = smul.u32 96, %s5355_s26  ;;  %vm455_vm6 = vsmask.f32 5392  ;;  %s5355_s26 = sphi %s5649_s26, %s386_s26  }
  0x7a   : >> { %s5656_s6 = scalar_lea.vmem %s5560_s12, %s4677_s14 [#allocation5]  ;;  %vm5671_vm7 = vmor %vm280_vm1, %vm455_vm6  ;;  %s386_s26 = sadd.s32 1, %s5355_s26  }
  0x7b   : >> { %v390_v4 = vld [vmem:[%s5656_s6] sm:$0xff]  ;;  %v391_v5 = vld [vmem:[%s5656_s6 + $0x8] sm:$0xff]  ;;  %v392_v6 = vld [vmem:[%s5656_s6 + $0x10] sm:$0xff]  ;;  %s5665_s15 = scalar_lea.vmem [#allocation2], %s4461_s7  ;;  %p383_p4 = scmp.ge.s32.totalorder %s386_s26, 2  }
  0x7c   : >> { %v4678_v7 = vpack.c.bf16 %v390_v4, %v390_v4  ;;  %v4679_v8 = vpack.c.bf16 %v391_v5, %v391_v5  ;;  %v4680_v9 = vpack.c.bf16 %v392_v6, %v392_v6  ;;  %v393_v10 = vld [vmem:[%s5656_s6 + $0x18] sm:$0xff]  ;;  %v394_v11 = vld [vmem:[%s5656_s6 + $0x20] sm:$0xff]  ;;  %v395_v24 = vld [vmem:[%s5656_s6 + $0x28] sm:$0xff]  ;;  %s5775_s10 = smov (%p383_p4), 0  }
  0x7d   : >> { %v4681_v18 = vpack.c.bf16 %v393_v10, %v393_v10  ;;  %v4682_v19 = vpack.c.bf16 %v394_v11, %v394_v11  ;;  %v4683_v41 = vpack.c.bf16 %v395_v24, %v395_v24  ;;  %v396_v46 = vld [vmem:[%s5656_s6 + $0x30] sm:$0xff]  ;;  %v397_v51 = vld [vmem:[%s5656_s6 + $0x38] sm:$0xff]  ;;  %v398_v52 = vld [vmem:[%s5656_s6 + $0x40] sm:$0xff] }
  0x7e   : >> { %v458_v12 = vshrl.u32 %v4678_v7, 16  ;;  %v461_v13 = vshll.u32 %v4678_v7, 16  ;;  %v467_v14 = vshrl.u32 %v4679_v8, 16  ;;  %v470_v15 = vshll.u32 %v4679_v8, 16  ;;  %v399_v4 = vld [vmem:[%s5656_s6 + $0x48] sm:$0xff] }
  0x7f   : >> { %v477_v16 = vshrl.u32 %v4680_v9, 16  ;;  %v480_v17 = vshll.u32 %v4680_v9, 16  ;;  %v4462_v25 = vld [vmem:[%s5665_s15 + $0x24] sm:$0xe]  ;;  %v486_v29 = vshrl.u32 %v4681_v18, 16  ;;  %v489_v30 = vshll.u32 %v4681_v18, 16 }
  0x80   : >> { %v460_v20 = vrot.slane %v458_v12, 6  ;;  %v463_v21 = vrot.slane %v461_v13, 7  ;;  %v469_v22 = vrot.slane %v467_v14, 6  ;;  %v472_v23 = vrot.slane %v470_v15, 7  ;;  %v4467_v33 = vld [vmem:[%s5665_s15 + $0x30] sm:$0xe] }
  0x81   : >> { %v479_v26 = vrot.slane %v477_v16, 6  ;;  %v482_v27 = vrot.slane %v480_v17, 7  ;;  %v496_v34 = vshrl.u32 %v4682_v19, 16  ;;  %v499_v35 = vshll.u32 %v4682_v19, 16  ;;  %v4465_v37 = vld [vmem:[%s5665_s15 + $0x2c] sm:$0x3] }
  0x82   : >> { %v464_v31 = vor.u32 %v463_v21, %v460_v20  ;;  %v473_v32 = vor.u32 %v472_v23, %v469_v22  ;;  %v488_v39 = vrot.slane %v486_v29, 6  ;;  %v491_v40 = vrot.slane %v489_v30, 7  ;;  %v4470_v55 = vld [vmem:[%s5665_s15 + $0x38] sm:$0x3]  ;;  %v4472_v56 = vld [vmem:[%s5665_s15 + $0x3c] sm:$0xe] }
  0x83   : >> { %v483_v38 = vor.u32 %v482_v27, %v479_v26  ;;  %v498_v45 = vrot.slane %v496_v34, 6  ;;  %v501_v50 = vrot.slane %v499_v35, 7  ;;  %v505_v57 = vshrl.u32 %v4683_v41, 16  ;;  %v4475_v13 = vld [vmem:[%s5665_s15 + $0x44] sm:$0x3]  ;;  %v400_v18 = vld [vmem:[%s5656_s6 + $0x50] sm:$0xff] }
  0x84   : >> { %v637_v42 = vsel %vm5601_vm5, %v464_v31, %v4462_v25  ;;  %v465_v43 = vrot.slane %v464_v31, 4  ;;  %v475_v44 = vrot.slane %v473_v32, 4  ;;  %v492_v49 = vor.u32 %v491_v40, %v488_v39  ;;  %v401_v23 = vld [vmem:[%s5656_s6 + $0x58] sm:$0xff]  ;;  %v4477_v24 = vld [vmem:[%s5665_s15 + $0x48] sm:$0xe] }
  0x85   : >> { %4463 = vst [vmem:[%s5665_s15 + $0x24] sm:$0xe] %v637_v42  ;;  %v644_v47 = vsel %vm5601_vm5, %v483_v38, %v4467_v33  ;;  %v484_v48 = vrot.slane %v483_v38, 4  ;;  %v508_v58 = vshll.u32 %v4683_v41, 16  ;;  %v502_v61 = vor.u32 %v501_v50, %v498_v45  ;;  %v4480_v42 = vld [vmem:[%s5665_s15 + $0x50] sm:$0x3] }
  0x86   : >> { %v474_v53 = vsel %vm5671_vm7, %v465_v43, %v473_v32  ;;  %v641_v54 = vsel %vm5571_vm2, %v475_v44, %v4465_v37  ;;  %4468 = vst [vmem:[%s5665_s15 + $0x30] sm:$0xe] %v644_v47  ;;  %v494_v60 = vrot.slane %v492_v49, 4  ;;  %v4684_v62 = vpack.c.bf16 %v396_v46, %v396_v46  ;;  %v4482_v32 = vld [vmem:[%s5665_s15 + $0x54] sm:$0xe]  ;;  %v402_v45 = vld [vmem:[%s5656_s6 + $0x60] sm:$0xff] }
  0x87   : >> { %4464 = vst [vmem:[%s5665_s15 + $0x28] sm:$0xf] %v474_v53  ;;  %4466 = vst [vmem:[%s5665_s15 + $0x2c] sm:$0x3] %v641_v54  ;;  %v493_v59 = vsel %vm5671_vm7, %v484_v48, %v492_v49  ;;  %v507_v63 = vrot.slane %v505_v57, 6  ;;  %v510_v0 = vrot.slane %v508_v58, 7  ;;  %v4685_v2 = vpack.c.bf16 %v397_v51, %v397_v51 }
  0x88   : >> { %4469 = vst [vmem:[%s5665_s15 + $0x34] sm:$0xf] %v493_v59  ;;  %v4686_v3 = vpack.c.bf16 %v398_v52, %v398_v52  ;;  %v648_v5 = vsel %vm5571_vm2, %v494_v60, %v4470_v55  ;;  %v651_v6 = vsel %vm5601_vm5, %v502_v61, %v4472_v56  ;;  %v503_v7 = vrot.slane %v502_v61, 4  ;;  %v403_v50 = vld [vmem:[%s5656_s6 + $0x68] sm:$0xff]  ;;  %v4485_v56 = vld [vmem:[%s5665_s15 + $0x5c] sm:$0x3] }
  0x89   : >> { %v515_v8 = vshrl.u32 %v4684_v62, 16  ;;  %4471 = vst [vmem:[%s5665_s15 + $0x38] sm:$0x3] %v648_v5  ;;  %4473 = vst [vmem:[%s5665_s15 + $0x3c] sm:$0xe] %v651_v6  ;;  %v511_v9 = vor.u32 %v510_v0, %v507_v63  ;;  %v518_v10 = vshll.u32 %v4684_v62, 16  ;;  %v4687_v17 = vpack.c.bf16 %v399_v4, %v399_v4 }
  0x8a   : >> { %v524_v11 = vshrl.u32 %v4685_v2, 16  ;;  %v527_v12 = vshll.u32 %v4685_v2, 16  ;;  %v534_v15 = vshrl.u32 %v4686_v3, 16  ;;  %v537_v16 = vshll.u32 %v4686_v3, 16  ;;  %v404_v60 = vld [vmem:[%s5656_s6 + $0x70] sm:$0xff] }
  0x8b   : >> { %v517_v14 = vrot.slane %v515_v8, 6  ;;  %v512_v19 = vsel %vm5671_vm7, %v503_v7, %v511_v9  ;;  %v513_v20 = vrot.slane %v511_v9, 4  ;;  %v520_v21 = vrot.slane %v518_v10, 7  ;;  %v4487_v63 = vld [vmem:[%s5665_s15 + $0x60] sm:$0xe] }
  0x8c   : >> { %v526_v22 = vrot.slane %v524_v11, 6  ;;  %4474 = vst [vmem:[%s5665_s15 + $0x40] sm:$0xf] %v512_v19  ;;  %v529_v25 = vrot.slane %v527_v12, 7  ;;  %v536_v26 = vrot.slane %v534_v15, 6  ;;  %v539_v27 = vrot.slane %v537_v16, 7 }
  0x8d   : >> { %v543_v29 = vshrl.u32 %v4687_v17, 16  ;;  %v655_v30 = vsel %vm5571_vm2, %v513_v20, %v4475_v13  ;;  %v521_v31 = vor.u32 %v520_v21, %v517_v14  ;;  %v546_v33 = vshll.u32 %v4687_v17, 16  ;;  %v405_v11 = vld [vmem:[%s5656_s6 + $0x78] sm:$0xff]  ;;  %v4490_v16 = vld [vmem:[%s5665_s15 + $0x68] sm:$0x3] }
  0x8e   : >> { %v4688_v34 = vpack.c.bf16 %v400_v18, %v400_v18  ;;  %4476 = vst [vmem:[%s5665_s15 + $0x44] sm:$0x3] %v655_v30  ;;  %v530_v35 = vor.u32 %v529_v25, %v526_v22  ;;  %v540_v37 = vor.u32 %v539_v27, %v536_v26  ;;  %v4689_v39 = vpack.c.bf16 %v401_v23, %v401_v23  ;;  %v4492_v23 = vld [vmem:[%s5665_s15 + $0x6c] sm:$0xe] }
  0x8f   : >> { %v545_v38 = vrot.slane %v543_v29, 6  ;;  %v658_v40 = vsel %vm5601_vm5, %v521_v31, %v4477_v24  ;;  %v522_v41 = vrot.slane %v521_v31, 4  ;;  %v548_v43 = vrot.slane %v546_v33, 7  ;;  %v4495_v31 = vld [vmem:[%s5665_s15 + $0x74] sm:$0x3] }
  0x90   : >> { %v553_v44 = vshrl.u32 %v4688_v34, 16  ;;  %4478 = vst [vmem:[%s5665_s15 + $0x48] sm:$0xe] %v658_v40  ;;  %v532_v46 = vrot.slane %v530_v35, 4  ;;  %v665_v47 = vsel %vm5601_vm5, %v540_v37, %v4482_v32  ;;  %v541_v48 = vrot.slane %v540_v37, 4 }
  0x91   : >> { %v556_v49 = vshll.u32 %v4688_v34, 16  ;;  %v531_v51 = vsel %vm5671_vm7, %v522_v41, %v530_v35  ;;  %4483 = vst [vmem:[%s5665_s15 + $0x54] sm:$0xe] %v665_v47  ;;  %v549_v52 = vor.u32 %v548_v43, %v545_v38  ;;  %v562_v54 = vshrl.u32 %v4689_v39, 16 }
  0x92   : >> { %v555_v53 = vrot.slane %v553_v44, 6  ;;  %4479 = vst [vmem:[%s5665_s15 + $0x4c] sm:$0xf] %v531_v51  ;;  %v662_v55 = vsel %vm5571_vm2, %v532_v46, %v4480_v42  ;;  %v565_v58 = vshll.u32 %v4689_v39, 16  ;;  %v4690_v59 = vpack.c.bf16 %v402_v45, %v402_v45  ;;  %v4497_v39 = vld [vmem:[%s5665_s15 + $0x78] sm:$0xe] }
  0x93   : >> { %v558_v57 = vrot.slane %v556_v49, 7  ;;  %4481 = vst [vmem:[%s5665_s15 + $0x50] sm:$0x3] %v662_v55  ;;  %v550_v61 = vsel %vm5671_vm7, %v541_v48, %v549_v52  ;;  %v551_v62 = vrot.slane %v549_v52, 4  ;;  %v564_v0 = vrot.slane %v562_v54, 6 }
  0x94   : >> { %v4691_v2 = vpack.c.bf16 %v403_v50, %v403_v50  ;;  %4484 = vst [vmem:[%s5665_s15 + $0x58] sm:$0xf] %v550_v61  ;;  %v567_v4 = vrot.slane %v565_v58, 7  ;;  %v572_v5 = vshrl.u32 %v4690_v59, 16  ;;  %v575_v6 = vshll.u32 %v4690_v59, 16 }
  0x95   : >> { %v559_v3 = vor.u32 %v558_v57, %v555_v53  ;;  %v669_v7 = vsel %vm5571_vm2, %v551_v62, %v4485_v56  ;;  %v4692_v10 = vpack.c.bf16 %v404_v60, %v404_v60  ;;  %v4693_v25 = vpack.c.bf16 %v405_v11, %v405_v11  ;;  %v4500_v48 = vld [vmem:[%s5665_s15 + $0x80] sm:$0x3] }
  0x96   : >> { %v581_v8 = vshrl.u32 %v4691_v2, 16  ;;  %v584_v9 = vshll.u32 %v4691_v2, 16  ;;  %4486 = vst [vmem:[%s5665_s15 + $0x5c] sm:$0x3] %v669_v7  ;;  %v568_v14 = vor.u32 %v567_v4, %v564_v0  ;;  %v574_v15 = vrot.slane %v572_v5, 6 }
  0x97   : >> { %v672_v12 = vsel %vm5601_vm5, %v559_v3, %v4487_v63  ;;  %v560_v13 = vrot.slane %v559_v3, 4  ;;  %v577_v17 = vrot.slane %v575_v6, 7  ;;  %v591_v20 = vshrl.u32 %v4692_v10, 16 }
  0x98   : >> { %4488 = vst [vmem:[%s5665_s15 + $0x60] sm:$0xe] %v672_v12  ;;  %v583_v18 = vrot.slane %v581_v8, 6  ;;  %v586_v19 = vrot.slane %v584_v9, 7  ;;  %v570_v22 = vrot.slane %v568_v14, 4  ;;  %v594_v24 = vshll.u32 %v4692_v10, 16 }
  0x99   : >> { %v569_v21 = vsel %vm5671_vm7, %v560_v13, %v568_v14  ;;  %v578_v26 = vor.u32 %v577_v17, %v574_v15  ;;  %v593_v29 = vrot.slane %v591_v20, 6  ;;  %v600_v33 = vshrl.u32 %v4693_v25, 16 }
  0x9a   : >> { %4489 = vst [vmem:[%s5665_s15 + $0x64] sm:$0xf] %v569_v21  ;;  %v587_v27 = vor.u32 %v586_v19, %v583_v18  ;;  %v676_v30 = vsel %vm5571_vm2, %v570_v22, %v4490_v16  ;;  %v596_v32 = vrot.slane %v594_v24, 7  ;;  %v603_v34 = vshll.u32 %v4693_v25, 16 }
  0x9b   : >> { %4491 = vst [vmem:[%s5665_s15 + $0x68] sm:$0x3] %v676_v30  ;;  %v679_v35 = vsel %vm5601_vm5, %v578_v26, %v4492_v23  ;;  %v579_v37 = vrot.slane %v578_v26, 4  ;;  %v602_v41 = vrot.slane %v600_v33, 6  ;;  %v8125_v52 = vmov (%p383_p4), 0.0  }
  0x9c   : >> { %v589_v38 = vrot.slane %v587_v27, 4  ;;  %4493 = vst [vmem:[%s5665_s15 + $0x6c] sm:$0xe] %v679_v35  ;;  %v597_v40 = vor.u32 %v596_v32, %v593_v29  ;;  %v605_v42 = vrot.slane %v603_v34, 7  ;;  %692 = vst [vmem:[#allocation4] sm:$0x1] (%p383_p4), %v8125_v52 }
  0x9d   : >> { %v588_v43 = vsel %vm5671_vm7, %v579_v37, %v587_v27  ;;  %385 = sbr.rel (!%p383_p4) target bundleno = 121 (0x79), region = 118 }
  0x9e   : >> { %v683_v44 = vsel %vm5571_vm2, %v589_v38, %v4495_v31  ;;  %4494 = vst [vmem:[%s5665_s15 + $0x70] sm:$0xf] %v588_v43  ;;  %v686_v45 = vsel %vm5601_vm5, %v597_v40, %v4497_v39  ;;  %v598_v46 = vrot.slane %v597_v40, 4  ;;  %v606_v47 = vor.u32 %v605_v42, %v602_v41 }
  0x9f   : >> { %4496 = vst [vmem:[%s5665_s15 + $0x74] sm:$0x3] %v683_v44  ;;  %4498 = vst [vmem:[%s5665_s15 + $0x78] sm:$0xe] %v686_v45 }
  0xa0   : >> { %v607_v49 = vsel %vm5671_vm7, %v598_v46, %v606_v47  ;;  %v608_v50 = vrot.slane %v606_v47, 4 }
  0xa1   : >> { %4499 = vst [vmem:[%s5665_s15 + $0x7c] sm:$0xf] %v607_v49 }
  0xa2   : >> { %v690_v51 = vsel %vm5571_vm2, %v608_v50, %v4500_v48 }
  0xa3   : >> { %4501 = vst [vmem:[%s5665_s15 + $0x80] sm:$0x3] %v690_v51 }
  0xa4 LB: >> { %s4694_s29 = smul.u32 96, %s5359_s10  ;;  %s5373_s28 = smov 16   ;;  %vm879_vm8 = vsmask.f32 7424  ;;  %vm1108_vm9 = vcmask 1046528   ;;  %vm1171_vm10 = vcmask 130048   ;;  %s5359_s10 = sphi %s5775_s10, %s698_s10  }
  0xa5   : >> { %s5374_s16 = smov 32   ;;  %s5375_s17 = smov 48   ;;  %vm1189_vm11 = vcmask 261120   ;;  %vm1206_vm12 = vcmask 392192   ;;  %vm1223_vm13 = vcmask 523264   ;;  %vm1240_vm14 = vcmask 654336  }
  0xa6   : >> { %s5781_s13 = scalar_lea.vmem [#allocation2], %s4694_s29  ;;  %s5376_s27 = smov 64   ;;  %vm1257_vm15 = vcmask 785408   ;;  %vm1274_vm0 = vcmask 916480   ;;  %vm2977_vm1 = vsmask.f32 6400 }
  0xa7   : >> { %s5377_s11 = smov 80   ;;  %s5378_s26 = smov 96   ;;  %vm3445_vm2 = vcmask 1044480  }
  0xa8   : >> { %s5379_s14 = smov 112   ;;  %s4695_s6 = sshll.u32 %s5359_s10, 7 }
  0xa9   : >> { %s7712_s7 = scalar_lea.vmem %s5560_s12, %s4695_s6 [#allocation5]  ;;  %s698_s10 = sadd.s32 1, %s5359_s10  }
  0xaa   : >> { %v713_v1 = vld [vmem:[%s5781_s13 + $0x3c] sm:$0xf]  ;;  %v5785_v28 = vld [vmem:[%s5781_s13 + $0x40] sm:$0xf]  ;;  %v709_v36 = vld [vmem:[%s5781_s13 + $0x24] sm:$0xf] }
  0xab   : >> { %v5789_v53 = vcombine.low %v713_v1, %v5785_v28  ;;  %v5792_v54 = vld [vmem:[%s5781_s13 + $0x28] sm:$0xf]  ;;  %v5796_v56 = vld [vmem:[%s5781_s13 + $0x4c] sm:$0xf]  ;;  %v711_v58 = vld [vmem:[%s5781_s13 + $0x30] sm:$0xf] }
  0xac   : >> { %v715_v55 = vld [vmem:[%s5781_s13 + $0x48] sm:$0xf]  ;;  %v5799_v57 = vcombine.low %v709_v36, %v5792_v54  ;;  %v5803_v59 = vld [vmem:[%s5781_s13 + $0x34] sm:$0xf]  ;;  %v719_v62 = vld [vmem:[%s5781_s13 + $0x60] sm:$0xf] }
  0xad   : >> { %8180 = vst [vmem:[#allocation14_spill] sm:$0xff] %v5789_v53  ;;  %812 = vrot.lane.b32.xlu1 %v5789_v53, %s5373_s28  ;;  %v5808_v60 = vcombine.low %v715_v55, %v5796_v56  ;;  %v5813_v61 = vcombine.low %v711_v58, %v5803_v59  ;;  %v5817_v63 = vld [vmem:[%s5781_s13 + $0x64] sm:$0xf]  ;;  %v717_v0 = vld [vmem:[%s5781_s13 + $0x54] sm:$0xf]  ;;  %v5021_v14 = vld [vmem:[%s5781_s13 + $0xc] sm:$0xff]  }
  0xae   : >> { %8181 = vst [vmem:[#allocation15_spill] sm:$0xff] %v5799_v57  ;;  %808 = vrot.lane.b32.xlu0 %v5799_v57, %s5373_s28  ;;  %v5821_v2 = vld [vmem:[%s5781_s13 + $0x58] sm:$0xf]  ;;  %v5826_v3 = vcombine.low %v719_v62, %v5817_v63  ;;  %v5835_v6 = vld [vmem:[%s5781_s13 + $0x7c] sm:$0xf]  ;;  %v883_v20 = vshll.u32 %v5021_v14, 16 }
  0xaf   : >> { %8182 = vst [vmem:[#allocation16_spill] sm:$0xff] %v5808_v60  ;;  %8183 = vst [vmem:[#allocation17_spill] sm:$0xff] %v5813_v61  ;;  %v5831_v4 = vcombine.low %v717_v0, %v5821_v2  ;;  %v723_v5 = vld [vmem:[%s5781_s13 + $0x78] sm:$0xf]  ;;  %v721_v7 = vld [vmem:[%s5781_s13 + $0x6c] sm:$0xf] }
  0xb0   : >> { %v5839_v8 = vld [vmem:[%s5781_s13 + $0x70] sm:$0xf]  ;;  %v5844_v9 = vcombine.low %v723_v5, %v5835_v6  ;;  %v707_v11 = vld [vmem:[%s5781_s13 + $0x18] sm:$0xf]  ;;  %v5853_v12 = vld [vmem:[%s5781_s13 + $0x1c] sm:$0xf] }
  0xb1   : >> { %814 = vrot.lane.b32.xlu1 %v5808_v60, %s5373_s28  ;;  %8184 = vst [vmem:[#allocation18_spill] sm:$0xff] %v5831_v4  ;;  %v5849_v10 = vcombine.low %v721_v7, %v5839_v8  ;;  %v5858_v13 = vcombine.low %v707_v11, %v5853_v12  ;;  %v725_v15 = vld [vmem:[%s5781_s13 + $0x84] sm:$0xf]  ;;  %v5867_v16 = vld [vmem:[%s5781_s13 + $0x20] ss:$0 sps:$4 sm:$0x11]  }
  0xb2   : >> { %810 = vrot.lane.b32.xlu0 %v5813_v61, %s5373_s28  ;;  %v726_v18 = vld [vmem:[%s5781_s13 + $0x88] sm:$0xf]  ;;  %v5022_v19 = vld [vmem:[%s5781_s13 + $0x14] ss:$0 sps:$4 sm:$0x11]   ;;  %v919_v21 = vshll.u32 %v5813_v61, 16 }
  0xb3   : >> { %8185 = vst [vmem:[#allocation19_spill] sm:$0xff] %v5858_v13  ;;  %v895_v17 = vshll.u32 %v5858_v13, 16  ;;  %v5877_v22 = vcombine.low %v725_v15, %v726_v18  ;;  %v893_v23 = vshrl.u32 %v5858_v13, 16  ;;  %v900_v25 = vshll.u32 %v5867_v16, 16  ;;  %v5017_v33 = vld [vmem:[%s5781_s13 + $0x9c] sm:$0xff]   ;;  %v5892_v34 = vld [vmem:[%s5781_s13 + $0x90] sm:$0xff]  }
  0xb4   : >> { %v5882_v26 = vld [vmem:[%s5781_s13 + $0x38] ss:$0 sps:$4 sm:$0x11]   ;;  %v881_v27 = vshrl.u32 %v5021_v14, 16  ;;  %v885_v29 = vrot.slane %v883_v20, 1  ;;  %v888_v30 = vshll.u32 %v5022_v19, 16 }
  0xb5   : >> { %818 = vrot.lane.b32.xlu1 %v5826_v3, %s5373_s28  ;;  %v897_v24 = vrot.slane %v895_v17, 1  ;;  %v5887_v31 = vld [vmem:[%s5781_s13 + $0x2c] ss:$0 sps:$4 sm:$0x11]   ;;  %v907_v32 = vshll.u32 %v5799_v57, 16  ;;  %v917_v35 = vshrl.u32 %v5813_v61, 16 }
  0xb6   : >> { %816 = vrot.lane.b32.xlu0 %v5831_v4, %s5373_s28  ;;  %v921_v37 = vrot.slane %v919_v21, 1  ;;  %v902_v39 = vrot.slane %v900_v25, 1  ;;  %v924_v40 = vshll.u32 %v5882_v26, 16  ;;  %v5899_v41 = vld [vmem:[%s5781_s13 + $0x50] ss:$0 sps:$4 sm:$0x11]   ;;  %v886_v43 = vor.u32 %v885_v29, %v881_v27 }
  0xb7   : >> { %v898_v38 = vor.u32 %v897_v24, %v893_v23  ;;  %v943_v42 = vshll.u32 %v5808_v60, 16  ;;  %v890_v44 = vrot.slane %v888_v30, 1  ;;  %v5905_v45 = vld [vmem:[%s5781_s13 + $0x44] ss:$0 sps:$4 sm:$0x11]   ;;  %v905_v46 = vshrl.u32 %v5799_v57, 16 }
  0xb8   : >> { %v909_v47 = vrot.slane %v907_v32, 1  ;;  %v912_v48 = vshll.u32 %v5887_v31, 16  ;;  %v931_v49 = vshll.u32 %v5789_v53, 16  ;;  %v922_v50 = vor.u32 %v921_v37, %v917_v35  ;;  %v5920_v7 = vld [vmem:[%s5781_s13 + $0x68] ss:$0 sps:$4 sm:$0x11]  }
  0xb9   : >> { %822 = vrot.lane.b32.xlu1 %v5844_v9, %s5373_s28  ;;  %v941_v51 = vshrl.u32 %v5808_v60, 16  ;;  %v903_v1 = vsel %vm879_vm8, %v898_v38, %v902_v39  ;;  %v926_v36 = vrot.slane %v924_v40, 1  ;;  %v945_v55 = vrot.slane %v943_v42, 1  ;;  %v5924_v18 = vld [vmem:[%s5781_s13 + $0x5c] ss:$0 sps:$4 sm:$0x11]  }
  0xba   : >> { %820 = vrot.lane.b32.xlu0 %v5849_v10, %s5373_s28  ;;  %v948_v58 = vshll.u32 %v5899_v41, 16  ;;  %v891_v62 = vsel %vm879_vm8, %v886_v43, %v890_v44  ;;  %v929_v0 = vshrl.u32 %v5789_v53, 16  ;;  %v936_v5 = vshll.u32 %v5905_v45, 16  ;;  %v5944_v44 = vld [vmem:[%s5781_s13 + $0x80] ss:$0 sps:$4 sm:$0x11]  }
  0xbb   : >> { %v967_v11 = vshll.u32 %v5826_v3, 16  ;;  %v910_v14 = vor.u32 %v909_v47, %v905_v46  ;;  %v914_v15 = vrot.slane %v912_v48, 1  ;;  %v933_v17 = vrot.slane %v931_v49, 1  ;;  %v5947_v46 = vld [vmem:[%s5781_s13 + $0x74] ss:$0 sps:$4 sm:$0x11]  }
  0xbc   : >> { %v955_v19 = vshll.u32 %v5831_v4, 16  ;;  %v927_v20 = vsel %vm879_vm8, %v922_v50, %v926_v36  ;;  %v946_v21 = vor.u32 %v945_v55, %v941_v51  ;;  %v950_v23 = vrot.slane %v948_v58, 1  ;;  %v5031_v49 = vld [vmem:[%s5781_s13 + $0x98] ss:$0 sps:$4 sm:$0x11]   ;;  %p695_p6 = scmp.ge.s32.totalorder %s698_s10, 2  }
  0xbd   : >> { %841 = vrot.lane.b32.xlu1 %v5831_v4, %s5374_s16  ;;  %v965_v24 = vshrl.u32 %v5826_v3, 16  ;;  %v938_v25 = vrot.slane %v936_v5, 1  ;;  %v969_v27 = vrot.slane %v967_v11, 1  ;;  %v972_v29 = vshll.u32 %v5920_v7, 16  ;;  %v5064_v53 = vld [vmem:[%s5781_s13 + $0xc] sm:$0xfe]  }
  0xbe   : >> { %839 = vrot.lane.b32.xlu0 %v5808_v60, %s5374_s16  ;;  %v953_v30 = vshrl.u32 %v5831_v4, 16  ;;  %v915_v32 = vsel %vm879_vm8, %v910_v14, %v914_v15  ;;  %v957_v35 = vrot.slane %v955_v19, 1  ;;  %v960_v37 = vshll.u32 %v5924_v18, 16  ;;  %v5032_v11 = vld [vmem:[%s5781_s13 + $0x8c] ss:$0 sps:$4 sm:$0x11]  }
  0xbf   : >> { %v970_v38 = vor.u32 %v969_v27, %v965_v24  ;;  %v974_v39 = vrot.slane %v972_v29, 1  ;;  %v1013_v47 = vshll.u32 %v5844_v9, 16  ;;  %v1018_v51 = vshll.u32 %v5944_v44, 16  ;;  %v743_v27 = vld [vmem:[%s5781_s13 + $0x18] sm:$0xe] }
  0xc0   : >> { %v958_v42 = vor.u32 %v957_v35, %v953_v30  ;;  %v962_v43 = vrot.slane %v960_v37, 1  ;;  %v1047_v36 = vshll.u32 %v5877_v22, 16  ;;  %v1059_v55 = vshll.u32 %v5892_v34, 16  ;;  %v746_v30 = vld [vmem:[%s5781_s13 + $0x3c] sm:$0xe] }
  0xc1   : >> { %845 = vrot.lane.b32.xlu1 %v5849_v10, %s5374_s16  ;;  %v5955_v48 = vsel %vm879_vm8, %v970_v38, %v974_v39  ;;  %v1006_v58 = vshll.u32 %v5947_v46, 16  ;;  %v1064_v5 = vshll.u32 %v5031_v49, 16  ;;  %v1020_v14 = vrot.slane %v1018_v51, 1  ;;  %v745_v35 = vld [vmem:[%s5781_s13 + $0x30] sm:$0xe] }
  0xc2   : >> { %843 = vrot.lane.b32.xlu0 %v5826_v3, %s5374_s16  ;;  %v5938_v3 = vsel %vm879_vm8, %v946_v21, %v950_v23  ;;  %v5959_v50 = vsel %vm879_vm8, %v958_v42, %v962_v43  ;;  %v999_v15 = vshrl.u32 %v5849_v10, 16  ;;  %v1057_v19 = vshrl.u32 %v5892_v34, 16  ;;  %v748_v37 = vld [vmem:[%s5781_s13 + $0x54] sm:$0xe]  ;;  %v747_v43 = vld [vmem:[%s5781_s13 + $0x48] sm:$0xe] }
  0xc3   : >> { %v1008_v21 = vrot.slane %v1006_v58, 1  ;;  %v5974_v23 = vrot.slane %v1059_v55, 1  ;;  %v5977_v24 = vrot.slane %v1047_v36, 1  ;;  %v1052_v29 = vshll.u32 %v5032_v11, 16  ;;  %v751_v51 = vld [vmem:[%s5781_s13 + $0x78] sm:$0xe] }
  0xc4   : >> { %v4531_v39 = vcombine.low %v743_v27, %v5853_v12  ;;  %v1110_v42 = vrot.slane %v5867_v16, 1  ;;  %v6005_v49 = vcombine.low %v748_v37, %v5821_v2  ;;  %v749_v12 = vld [vmem:[%s5781_s13 + $0x60] sm:$0xe]  ;;  %v6021_v2 = vcombine.low %v747_v43, %v5796_v56  ;;  %v6068_v52 = vld [vmem:[%s5781_s13 + $0x38] ss:$0 sps:$4 sm:$0x33]  }
  0xc5   : >> { %849 = vrot.lane.b32.xlu1 %v5877_v22, %s5374_s16  ;;  %v6010_v55 = vrot.slane %v1052_v29, 1  ;;  %v6044_v29 = vld [vmem:[%s5781_s13 + $0x18] sm:$0xfe]   ;;  %v1689_v61 = vshll.u32 %v5064_v53, 16  ;;  %vm5381_vm3 = vmmov (%p695_p6), 0   ;;  %vm4160_vm4 = vcmask (%p695_p6), 1043456  }
  0xc6   : >> { %847 = vrot.lane.b32.xlu0 %v5844_v9, %s5374_s16  ;;  %8186 = vst [vmem:[#allocation20_spill] sm:$0xff] %v6005_v49  ;;  %8187 = vst [vmem:[#allocation21_spill] sm:$0xff] %v6021_v2  ;;  %vm4156_vm5 = vcmask (%p695_p6), 31744  }
  0xc9   : >> { %853 = vrot.lane.b32.xlu1 %v5017_v33, %s5374_s16  ;;  %v934_v33 = vor.u32 %v933_v17, %v929_v0  ;;  %v1015_v0 = vrot.slane %v1013_v47, 1  ;;  %v750_v47 = vld [vmem:[%s5781_s13 + $0x6c] sm:$0xe] }
  0xca   : >> { %851 = vrot.lane.b32.xlu0 %v5892_v34, %s5374_s16  ;;  %v6028_v11 = vcombine.low %v750_v47, %v5839_v8  ;;  %v6086_v47 = vld [vmem:[%s5781_s13 + $0x50] ss:$0 sps:$4 sm:$0x33]  }
  0xcb   : >> { %v5941_v40 = vsel %vm879_vm8, %v934_v33, %v938_v25  ;;  %v744_v25 = vld [vmem:[%s5781_s13 + $0x24] sm:$0xe] }
  0xcc   : >> { %v4532_v38 = vcombine.low %v744_v25, %v5792_v54  ;;  %v6002_v54 = vcombine.low %v745_v35, %v5803_v59  ;;  %v1119_v59 = vrot.slane %v5905_v45, 1  ;;  %8188 = vst [vmem:[#allocation22_spill] sm:$0xff] %v6028_v11  ;;  %v6039_v25 = vcombine.low %v751_v51, %v5835_v6  ;;  %v6052_v35 = vld [vmem:[%s5781_s13 + $0x24] sm:$0xfe]   ;;  %v6073_v6 = vld [vmem:[%s5781_s13 + $0x30] sm:$0xfe]  }
  0xcd   : >> { %978 = vrot.lane.b32.xlu1 %v903_v1, %s5375_s17  ;;  %v1001_v1 = vshll.u32 %v5849_v10, 16  ;;  %v5983_v10 = vrot.slane %v1064_v5, 1  ;;  %v1116_v5 = vrot.slane %v5882_v26, 1 }
  0xce   : >> { %976 = vrot.lane.b32.xlu0 %v891_v62, %s5375_s17  ;;  %v1011_v62 = vshrl.u32 %v5844_v9, 16  ;;  %v1045_v9 = vshrl.u32 %v5877_v22, 16  ;;  %v6015_v58 = vrot.slane %v4532_v38, 1  ;;  %v1115_v56 = vrot.slane %v6002_v54, 1  ;;  %8190 = vst [vmem:[#allocation24_spill] sm:$0xff] %v6039_v25 }
  0xcf   : >> { %v1003_v17 = vrot.slane %v1001_v1, 1  ;;  %v1434_v38 = vshll.u32 %v6052_v35, 16 }
  0xd0   : >> { %v1016_v33 = vor.u32 %v1015_v0, %v1011_v62  ;;  %v6017_v62 = vrot.slane %v4531_v39, 1  ;;  %v6078_v39 = vld [vmem:[%s5781_s13 + $0x44] ss:$0 sps:$4 sm:$0x33]   ;;  %v1050_v34 = vor.u32 %v5977_v24, %v1045_v9  ;;  %v6117_v24 = vld [vmem:[%s5781_s13 + $0x48] sm:$0xfe]   ;;  %v1117_v16 = vsel %vm1108_vm9, %v1115_v56, %v1116_v5 }
  0xd1   : >> { %982 = vrot.lane.b32.xlu1 %v927_v20, %s5375_s17  ;;  %v1004_v36 = vor.u32 %v1003_v17, %v999_v15  ;;  %v1124_v15 = vrot.slane %v6005_v49, 1  ;;  %v1125_v17 = vrot.slane %v5924_v18, 1  ;;  %v1436_v43 = vrot.slane %v1434_v38, 1  ;;  %v6120_v38 = vld [vmem:[%s5781_s13 + $0x5c] ss:$0 sps:$4 sm:$0x33]  }
  0xd2   : >> { %980 = vrot.lane.b32.xlu0 %v915_v32, %s5375_s17  ;;  %v1021_v1 = vsel %vm879_vm8, %v1016_v33, %v1020_v14  ;;  %v6031_v14 = vcombine.low %v749_v12, %v5817_v63  ;;  %v6047_v63 = vld [vmem:[%s5781_s13 + $0x2c] ss:$0 sps:$4 sm:$0x33]   ;;  %v1062_v12 = vor.u32 %v5974_v23, %v1057_v19  ;;  %v1469_v23 = vshll.u32 %v6078_v39, 16  ;;  %v6579_v49 = vld [vmem:[%s5781_s13 + $0x24] sm:$0xfc]  }
  0xd3   : >> { %v1009_v27 = vsel %vm879_vm8, %v1004_v36, %v1008_v21  ;;  %v1419_v36 = vshll.u32 %v6044_v29, 16  ;;  %v1439_v37 = vshll.u32 %v6047_v63, 16  ;;  %v1484_v33 = vshll.u32 %v6086_v47, 16 }
  0xd4   : >> { %8189 = vst [vmem:[#allocation23_spill] sm:$0xff] %v6031_v14  ;;  %v1067_v22 = vsel %vm879_vm8, %v1062_v12, %v5983_v10  ;;  %v1488_v19 = vshrl.u32 %v6086_v47, 16  ;;  %v1477_v10 = vshrl.u32 %v6117_v24, 16  ;;  %v1479_v12 = vshll.u32 %v6117_v24, 16 }
  0xd5   : >> { %986 = vrot.lane.b32.xlu1 %v5938_v3, %s5375_s17  ;;  %v6097_v21 = vrot.slane %v1439_v37, 1  ;;  %v1126_v45 = vsel %vm1108_vm9, %v1124_v15, %v1125_v17  ;;  %v8194_v18 = vrot.slane %v6028_v11, 1  ;;  %v8195_v56 = vrot.slane %v5920_v7, 1 }
  0xd6   : >> { %984 = vrot.lane.b32.xlu0 %v5941_v40, %s5375_s17  ;;  %v8197_v7 = vrot.slane %v5944_v44, 1 }
  0xd9   : >> { %990 = vrot.lane.b32.xlu1 %v5955_v48, %s5375_s17 }
  0xda   : >> { %988 = vrot.lane.b32.xlu0 %v5959_v50, %s5375_s17 }
  0xdd   : >> { %1024 = vrot.lane.b32.xlu1 %v927_v20, %s5376_s27  ;;  %v1113_v20 = vrot.slane %v5887_v31, 1 }
  0xde   : >> { %1022 = vrot.lane.b32.xlu0 %v915_v32, %s5376_s27  ;;  %v5995_v32 = vcombine.low %v746_v30, %v5785_v28  ;;  %v6013_v28 = vld [vmem:[%s5781_s13 + $0x20] ss:$0 sps:$4 sm:$0x33]   ;;  %v1432_v30 = vshrl.u32 %v6052_v35, 16  ;;  %v1447_v35 = vshrl.u32 %v6073_v6, 16 }
  0xdf   : >> { %v1424_v8 = vshll.u32 %v6013_v28, 16 }
  0xe0   : >> { %v1118_v0 = vrot.slane %v5995_v32, 1 }
  0xe1   : >> { %1028 = vrot.lane.b32.xlu1 %v5938_v3, %s5376_s27  ;;  %v6064_v51 = vrot.slane %v1424_v8, 1  ;;  %v6083_v8 = vld [vmem:[%s5781_s13 + $0x3c] sm:$0xfe]  }
  0xe2   : >> { %1026 = vrot.lane.b32.xlu0 %v5941_v40, %s5376_s27  ;;  %v1120_v31 = vsel %vm1108_vm9, %v1118_v0, %v1119_v59  ;;  %v8193_v0 = vrot.slane %v5947_v46, 1  ;;  %v8198_v46 = vrot.slane %v6039_v25, 1 }
  0xe4   : >> { %v1132_v5 = vsel %vm1108_vm9, %v8194_v18, %v8193_v0  ;;  %v1154_v17 = vsel %vm1108_vm9, %v8198_v46, %v8197_v7 }
  0xe5   : >> { %1032 = vrot.lane.b32.xlu1 %v5955_v48, %s5376_s27 }
  0xe6   : >> { %1030 = vrot.lane.b32.xlu0 %v5959_v50, %s5376_s27 }
  0xe9   : >> { %1036 = vrot.lane.b32.xlu1 %v1021_v1, %s5376_s27 }
  0xea   : >> { %1034 = vrot.lane.b32.xlu0 %v1009_v27, %s5376_s27 }
  0xed   : >> { %1070 = vrot.lane.b32.xlu1 %v5938_v3, %s5377_s11  ;;  %v1454_v3 = vshll.u32 %v6068_v52, 16 }
  0xee   : >> { %1068 = vrot.lane.b32.xlu0 %v5941_v40, %s5377_s11  ;;  %v1421_v40 = vrot.slane %v1419_v36, 1 }
  0xef   : >> { %v6108_v37 = vrot.slane %v1454_v3, 1  ;;  %v6124_v3 = vrot.slane %v1469_v23, 1  ;;  %v8200_v23 = vshrl.u32 %v6013_v28, 16 }
  0xf1   : >> { %1074 = vrot.lane.b32.xlu1 %v5955_v48, %s5377_s11  ;;  %v1449_v48 = vshll.u32 %v6073_v6, 16  ;;  %v1462_v6 = vshrl.u32 %v6083_v8, 16 }
  0xf2   : >> { %1072 = vrot.lane.b32.xlu0 %v5959_v50, %s5377_s11  ;;  %v1464_v50 = vshll.u32 %v6083_v8, 16  ;;  %v1499_v8 = vshll.u32 %v6120_v38, 16 }
  0xf3   : >> { %v1451_v9 = vrot.slane %v1449_v48, 1  ;;  %v1111_v48 = vsel %vm1108_vm9, %v6017_v62, %v1110_v42  ;;  %v8191_v42 = vrot.slane %v5899_v41, 1  ;;  %v1481_v62 = vrot.slane %v1479_v12, 1 }
  0xf4   : >> { %v1466_v36 = vrot.slane %v1464_v50, 1  ;;  %v8196_v41 = vrot.slane %v6031_v14, 1  ;;  %v6202_v50 = vor.u32 %v8200_v23, %v6064_v51 }
  0xf5   : >> { %1078 = vrot.lane.b32.xlu1 %v1021_v1, %s5377_s11  ;;  %v1055_v1 = vsel %vm879_vm8, %v1050_v34, %v6010_v55  ;;  %v1114_v55 = vsel %vm1108_vm9, %v6015_v58, %v1113_v20  ;;  %v6151_v20 = vld [vmem:[%s5781_s13 + $0x54] sm:$0xfe]   ;;  %v8192_v58 = vrot.slane %v6021_v2, 1 }
  0xf6   : >> { %1076 = vrot.lane.b32.xlu0 %v1009_v27, %s5377_s11  ;;  %v6129_v27 = vrot.slane %v1484_v33, 1  ;;  %v1494_v59 = vshll.u32 %v6151_v20, 16  ;;  %v1129_v15 = vsel %vm1108_vm9, %v8196_v41, %v8195_v56  ;;  %v8199_v33 = vshrl.u32 %v6044_v29, 16 }
  0xf7   : >> { %v1123_v26 = vsel %vm1108_vm9, %v8192_v58, %v8191_v42  ;;  %v8201_v29 = vshrl.u32 %v6047_v63, 16  ;;  %v8203_v63 = vshrl.u32 %v6068_v52, 16  ;;  %v8208_v52 = vshrl.u32 %v6078_v39, 16  ;;  %v6267_v58 = vld [vmem:[%s5781_s13 + $0x6c] sm:$0xfe]  }
  0xf8   : >> { %v1422_v34 = vor.u32 %v1421_v40, %v8199_v33  ;;  %v1522_v33 = vshrl.u32 %v6267_v58, 16 }
  0xf9   : >> { %1082 = vrot.lane.b32.xlu1 %v1067_v22, %s5377_s11  ;;  %v1437_v22 = vor.u32 %v1436_v43, %v1432_v30  ;;  %v6214_v40 = vor.u32 %v8201_v29, %v6097_v21  ;;  %v6231_v30 = vor.u32 %v8203_v63, %v6108_v37  ;;  %v6234_v43 = vld [vmem:[%s5781_s13 + $0x60] sm:$0xfe]  }
  0xfa   : >> { %1080 = vrot.lane.b32.xlu0 %v1055_v1, %s5377_s11  ;;  %v6207_v44 = vsel %vm879_vm8, %v1422_v34, %v6064_v51  ;;  %v1452_v51 = vor.u32 %v1451_v9, %v1447_v35  ;;  %v1467_v35 = vor.u32 %v1466_v36, %v1462_v6  ;;  %v6245_v9 = vld [vmem:[%s5781_s13 + $0x68] ss:$0 sps:$4 sm:$0x33]   ;;  %v1492_v6 = vshrl.u32 %v6151_v20, 16 }
  0xfb   : >> { %v6222_v1 = vsel %vm879_vm8, %v1437_v22, %v6097_v21  ;;  %8204 = vst [vmem:[#allocation26_spill] sm:$0xff] %v6231_v30  ;;  %v1509_v42 = vshll.u32 %v6234_v43, 16  ;;  %v1503_v20 = vshrl.u32 %v6120_v38, 16  ;;  %v1507_v18 = vshrl.u32 %v6234_v43, 16 }
  0xfc   : >> { %v6242_v21 = vsel %vm879_vm8, %v1452_v51, %v6108_v37  ;;  %v6262_v36 = vsel %vm879_vm8, %v1467_v35, %v6124_v3 }
  0xfd   : >> { %1135 = vrot.lane.b32.xlu1 %v1114_v55, %s5378_s26  ;;  %8206 = vst [vmem:[#allocation28_spill] sm:$0xff] %v6242_v21  ;;  %8211 = vst [vmem:[#allocation32_spill] sm:$0xff] %v6262_v36 }
  0xfe   : >> { %1133 = vrot.lane.b32.xlu0 %v1111_v48, %s5378_s26 }
 0x101   : >> { %1139 = vrot.lane.b32.xlu1 %v1120_v31, %s5378_s26 }
 0x102   : >> { %1137 = vrot.lane.b32.xlu0 %v1117_v16, %s5378_s26 }
 0x105   : >> { %1143 = vrot.lane.b32.xlu1 %v1126_v45, %s5378_s26 }
 0x106   : >> { %1141 = vrot.lane.b32.xlu0 %v1123_v26, %s5378_s26 }
 0x109   : >> { %1147 = vrot.lane.b32.xlu1 %v1132_v5, %s5378_s26 }
 0x10a   : >> { %1145 = vrot.lane.b32.xlu0 %v1129_v15, %s5378_s26 }
 0x10d   : >> { %1157 = vrot.lane.b32.xlu1 %v1117_v16, %s5379_s14  ;;  %v1482_v16 = vor.u32 %v1481_v62, %v1477_v10  ;;  %v6276_v10 = vor.u32 %v1488_v19, %v6129_v27  ;;  %v6283_v62 = vld [vmem:[%s5781_s13 + $0x74] ss:$0 sps:$4 sm:$0x33]  }
 0x10e   : >> { %1155 = vrot.lane.b32.xlu0 %v1114_v55, %s5379_s14  ;;  %v1533_v51 = vshrl.u32 %v6283_v62, 16 }
 0x10f   : >> { %8213 = vst [vmem:[#allocation34_spill] sm:$0xff] %v6276_v10 }
 0x111   : >> { %1161 = vrot.lane.b32.xlu1 %v1123_v26, %s5379_s14  ;;  %v1514_v26 = vshll.u32 %v6245_v9, 16 }
 0x112   : >> { %1159 = vrot.lane.b32.xlu0 %v1120_v31, %s5379_s14  ;;  %v6254_v31 = vor.u32 %v8208_v52, %v6124_v3  ;;  %v1501_v3 = vrot.slane %v1499_v8, 1  ;;  %v1524_v8 = vshll.u32 %v6267_v58, 16 }
 0x113   : >> { %v1516_v41 = vrot.slane %v1514_v26, 1 }
 0x114   : >> { %8209 = vst [vmem:[#allocation30_spill] sm:$0xff] %v6254_v31  ;;  %v6299_v56 = vor.u32 %v1503_v20, %v1501_v3  ;;  %v1526_v34 = vrot.slane %v1524_v8, 1 }
 0x115   : >> { %1165 = vrot.lane.b32.xlu1 %v1129_v15, %s5379_s14  ;;  %v1518_v15 = vshrl.u32 %v6245_v9, 16 }
 0x116   : >> { %1163 = vrot.lane.b32.xlu0 %v1126_v45, %s5379_s14  ;;  %v1496_v45 = vrot.slane %v1494_v59, 1  ;;  %v6289_v59 = vsel %vm879_vm8, %v1482_v16, %v6129_v27  ;;  %8217 = vst [vmem:[#allocation38_spill] sm:$0xff] %v6299_v56  ;;  %v1529_v27 = vshll.u32 %v6283_v62, 16  ;;  %v1527_v52 = vor.u32 %v1526_v34, %v1522_v33 }
 0x117   : >> { %8214 = vst [vmem:[#allocation35_spill] sm:$0xff] %v6289_v59  ;;  %v6315_v22 = vor.u32 %v1518_v15, %v1516_v41  ;;  %v5060_v15 = vld [vmem:[%s5781_s13 + $0x78] sm:$0xfe]  }
 0x118   : >> { %v1497_v19 = vor.u32 %v1496_v45, %v1492_v6  ;;  %v1531_v29 = vrot.slane %v1529_v27, 1  ;;  %v1579_v34 = vshll.u32 %v5060_v15, 16 }
 0x119   : >> { %1169 = vrot.lane.b32.xlu1 %v1154_v17, %s5379_s14 }
 0x11a   : >> { %1167 = vrot.lane.b32.xlu0 %v1132_v5, %s5379_s14  ;;  %v1511_v5 = vrot.slane %v1509_v42, 1  ;;  %v6308_v46 = vsel %vm879_vm8, %v1497_v19, %v1501_v3  ;;  %v6329_v6 = vor.u32 %v1533_v51, %v1531_v29  ;;  %v6336_v42 = vsel %vm879_vm8, %v1527_v52, %v1531_v29 }
 0x11b   : >> { %8219 = vst [vmem:[#allocation40_spill] sm:$0xff] %v6308_v46  ;;  %8224 = vst [vmem:[#allocation45_spill] sm:$0xff] %v6336_v42  ;;  %v1581_v4 = vrot.slane %v1579_v34, 1 }
 0x11c   : >> { %v1512_v17 = vor.u32 %v1511_v5, %v1507_v18  ;;  %8222 = vst [vmem:[#allocation43_spill] sm:$0xff] %v6329_v6 }
 0x11d   : >> { %1538 = vrot.lane.b32.xlu1 %v6202_v50, %s5373_s28 }
 0x11e   : >> { %1536 = vrot.lane.b32.xlu0 %v6207_v44, %s5373_s28  ;;  %v6323_v35 = vsel %vm879_vm8, %v1512_v17, %v1516_v41  ;;  %v5059_v17 = vld [vmem:[%s5781_s13 + $0x80] ss:$0 sps:$4 sm:$0x33]  }
 0x11f   : >> { %v6218_v28 = vpop.permute.xlu1 %812  ;;  %v1584_v51 = vshll.u32 %v5059_v17, 16  ;;  %v1588_v25 = vshrl.u32 %v5059_v17, 16 }
 0x120   : >> { %8202 = vst [vmem:[#allocation25_spill] sm:$0xff] %v6218_v28  ;;  %v6224_v55 = vpop.permute.xlu0 %808 }
 0x121   : >> { %1542 = vrot.lane.b32.xlu1 %v6214_v40, %s5373_s28 }
 0x122   : >> { %1540 = vrot.lane.b32.xlu0 %v6222_v1, %s5373_s28 }
 0x123   : >> { %v6238_v12 = vpop.permute.xlu1 %814 }
 0x124   : >> { %8205 = vst [vmem:[#allocation27_spill] sm:$0xff] %v6238_v12  ;;  %v6247_v48 = vpop.permute.xlu0 %810 }
 0x125   : >> { %8207 = vst [vmem:[#allocation29_spill] sm:$0xff] %v6247_v48  ;;  %1546 = vrot.lane.b32.xlu1 %v6231_v30, %s5373_s28 }
 0x126   : >> { %1544 = vrot.lane.b32.xlu0 %v6242_v21, %s5373_s28 }
 0x127   : >> { %v6258_v37 = vpop.permute.xlu1 %818 }
 0x128   : >> { %8210 = vst [vmem:[#allocation31_spill] sm:$0xff] %v6258_v37  ;;  %v6269_v39 = vpop.permute.xlu0 %816 }
 0x129   : >> { %8212 = vst [vmem:[#allocation33_spill] sm:$0xff] %v6269_v39  ;;  %1550 = vrot.lane.b32.xlu1 %v6254_v31, %s5373_s28 }
 0x12a   : >> { %1548 = vrot.lane.b32.xlu0 %v6262_v36, %s5373_s28 }
 0x12b   : >> { %v6291_v0 = vpop.permute.xlu1 %822 }
 0x12c   : >> { %8215 = vst [vmem:[#allocation36_spill] sm:$0xff] %v6291_v0  ;;  %v6295_v38 = vpop.permute.xlu0 %820 }
 0x12d   : >> { %8216 = vst [vmem:[#allocation37_spill] sm:$0xff] %v6295_v38  ;;  %1554 = vrot.lane.b32.xlu1 %v6276_v10, %s5373_s28  ;;  %v5062_v38 = vld [vmem:[%s5781_s13 + $0x84] sm:$0xfe]  }
 0x12e   : >> { %1552 = vrot.lane.b32.xlu0 %v6289_v59, %s5373_s28  ;;  %v1634_v11 = vshll.u32 %v5062_v38, 16 }
 0x12f   : >> { %v6305_v7 = vpop.permute.xlu1 %841 }
 0x130   : >> { %8218 = vst [vmem:[#allocation39_spill] sm:$0xff] %v6305_v7  ;;  %v6311_v23 = vpop.permute.xlu0 %839 }
 0x131   : >> { %1558 = vrot.lane.b32.xlu1 %v6299_v56, %s5373_s28 }
 0x132   : >> { %1556 = vrot.lane.b32.xlu0 %v6308_v46, %s5373_s28 }
 0x133   : >> { %v6320_v63 = vpop.permute.xlu1 %845 }
 0x134   : >> { %8220 = vst [vmem:[#allocation41_spill] sm:$0xff] %v6320_v63  ;;  %v6325_v16 = vpop.permute.xlu0 %843  ;;  %v1691_v63 = vrot.slane %v1689_v61, 1 }
 0x135   : >> { %8221 = vst [vmem:[#allocation42_spill] sm:$0xff] %v6325_v16  ;;  %1562 = vrot.lane.b32.xlu1 %v6315_v22, %s5373_s28  ;;  %v5070_v16 = vld [vmem:[%s5781_s13 + $0x38] ss:$0 sps:$4 sm:$0x33]  }
 0x136   : >> { %1560 = vrot.lane.b32.xlu0 %v6323_v35, %s5373_s28 }
 0x137   : >> { %v6333_v45 = vpop.permute.xlu1 %849 }
 0x138   : >> { %8223 = vst [vmem:[#allocation44_spill] sm:$0xff] %v6333_v45  ;;  %v6338_v3 = vpop.permute.xlu0 %847 }
 0x139   : >> { %8225 = vst [vmem:[#allocation46_spill] sm:$0xff] %v6338_v3  ;;  %1566 = vrot.lane.b32.xlu1 %v6329_v6, %s5373_s28  ;;  %v1636_v3 = vrot.slane %v1634_v11, 1 }
 0x13a   : >> { %1564 = vrot.lane.b32.xlu0 %v6336_v42, %s5373_s28 }
 0x13b   : >> { %v6344_v20 = vpop.permute.xlu1 %853 }
 0x13c   : >> { %8226 = vst [vmem:[#allocation47_spill] sm:$0xff] %v6344_v20  ;;  %v6346_v26 = vpop.permute.xlu0 %851  ;;  %v1577_v20 = vshrl.u32 %v5060_v15, 16 }
 0x13d   : >> { %8227 = vst [vmem:[#allocation48_spill] sm:$0xff] %v6346_v26  ;;  %1593 = vrot.lane.b32.xlu1 %v6214_v40, %s5374_s16 }
 0x13e   : >> { %1591 = vrot.lane.b32.xlu0 %v6222_v1, %s5374_s16  ;;  %v1582_v26 = vor.u32 %v1581_v4, %v1577_v20 }
 0x13f   : >> { %v6352_v19 = vpop.permute.xlu1 %978 }
 0x140   : >> { %8228 = vst [vmem:[#allocation49_spill] sm:$0xff] %v6352_v19  ;;  %v6354_v18 = vpop.permute.xlu0 %976 }
 0x141   : >> { %1597 = vrot.lane.b32.xlu1 %v6231_v30, %s5374_s16 }
 0x142   : >> { %1595 = vrot.lane.b32.xlu0 %v6242_v21, %s5374_s16 }
 0x143   : >> { %v6360_v5 = vpop.permute.xlu1 %982 }
 0x144   : >> { %8229 = vst [vmem:[#allocation50_spill] sm:$0xff] %v6360_v5  ;;  %v6362_v8 = vpop.permute.xlu0 %980  ;;  %v1687_v5 = vshrl.u32 %v5064_v53, 16 }
 0x145   : >> { %8230 = vst [vmem:[#allocation51_spill] sm:$0xff] %v6362_v8  ;;  %1601 = vrot.lane.b32.xlu1 %v6254_v31, %s5374_s16 }
 0x146   : >> { %1599 = vrot.lane.b32.xlu0 %v6262_v36, %s5374_s16 }
 0x147   : >> { %v6368_v41 = vpop.permute.xlu1 %986 }
 0x148   : >> { %8231 = vst [vmem:[#allocation52_spill] sm:$0xff] %v6368_v41  ;;  %v6371_v27 = vpop.permute.xlu0 %984  ;;  %v5061_v41 = vld [vmem:[%s5781_s13 + $0x8c] ss:$0 sps:$4 sm:$0x33]  }
 0x149   : >> { %8232 = vst [vmem:[#allocation53_spill] sm:$0xff] %v6371_v27  ;;  %1605 = vrot.lane.b32.xlu1 %v6276_v10, %s5374_s16  ;;  %v1632_v27 = vshrl.u32 %v5062_v38, 16 }
 0x14a   : >> { %1603 = vrot.lane.b32.xlu0 %v6289_v59, %s5374_s16 }
 0x14b   : >> { %v6378_v33 = vpop.permute.xlu1 %990 }
 0x14c   : >> { %8233 = vst [vmem:[#allocation54_spill] sm:$0xff] %v6378_v33  ;;  %v6380_v29 = vpop.permute.xlu0 %988  ;;  %v1586_v33 = vrot.slane %v1584_v51, 1 }
 0x14d   : >> { %8234 = vst [vmem:[#allocation55_spill] sm:$0xff] %v6380_v29  ;;  %1609 = vrot.lane.b32.xlu1 %v6299_v56, %s5374_s16 }
 0x14e   : >> { %1607 = vrot.lane.b32.xlu0 %v6308_v46, %s5374_s16  ;;  %v6400_v15 = vor.u32 %v1588_v25, %v1586_v33  ;;  %v6407_v17 = vsel %vm879_vm8, %v1582_v26, %v1586_v33 }
 0x14f   : >> { %v6386_v52 = vpop.permute.xlu1 %1024  ;;  %8240 = vst [vmem:[#allocation61_spill] sm:$0xff] %v6407_v17 }
 0x150   : >> { %8235 = vst [vmem:[#allocation56_spill] sm:$0xff] %v6386_v52  ;;  %v6388_v0 = vpop.permute.xlu0 %1022  ;;  %8238 = vst [vmem:[#allocation59_spill] sm:$0xff] %v6400_v15 }
 0x151   : >> { %1613 = vrot.lane.b32.xlu1 %v6315_v22, %s5374_s16 }
 0x152   : >> { %1611 = vrot.lane.b32.xlu0 %v6323_v35, %s5374_s16 }
 0x153   : >> { %v6394_v29 = vpop.permute.xlu1 %1028 }
 0x154   : >> { %8236 = vst [vmem:[#allocation57_spill] sm:$0xff] %v6394_v29  ;;  %v6396_v60 = vpop.permute.xlu0 %1026  ;;  %v1637_v29 = vor.u32 %v1636_v3, %v1632_v27  ;;  %v1692_v3 = vor.u32 %v1691_v63, %v1687_v5 }
 0x155   : >> { %8237 = vst [vmem:[#allocation58_spill] sm:$0xff] %v6396_v60  ;;  %1617 = vrot.lane.b32.xlu1 %v6329_v6, %s5374_s16 }
 0x156   : >> { %1615 = vrot.lane.b32.xlu0 %v6336_v42, %s5374_s16 }
 0x157   : >> { %v6404_v34 = vpop.permute.xlu1 %1032 }
 0x158   : >> { %8239 = vst [vmem:[#allocation60_spill] sm:$0xff] %v6404_v34  ;;  %v6409_v51 = vpop.permute.xlu0 %1030 }
 0x159   : >> { %8241 = vst [vmem:[#allocation62_spill] sm:$0xff] %v6409_v51  ;;  %1621 = vrot.lane.b32.xlu1 %v6400_v15, %s5374_s16  ;;  %v5063_v51 = vld [vmem:[%s5781_s13 + $0x14] ss:$0 sps:$4 sm:$0x33]  }
 0x15a   : >> { %1619 = vrot.lane.b32.xlu0 %v6407_v17, %s5374_s16  ;;  %v1694_v14 = vshll.u32 %v5063_v51, 16  ;;  %v1698_v12 = vshrl.u32 %v5063_v51, 16 }
 0x15b   : >> { %v6415_v4 = vpop.permute.xlu1 %1036 }
 0x15c   : >> { %8242 = vst [vmem:[#allocation63_spill] sm:$0xff] %v6415_v4  ;;  %v6417_v25 = vpop.permute.xlu0 %1034  ;;  %v1696_v38 = vrot.slane %v1694_v14, 1 }
 0x15d   : >> { %8243 = vst [vmem:[#allocation64_spill] sm:$0xff] %v6417_v25  ;;  %1648 = vrot.lane.b32.xlu1 %v6231_v30, %s5375_s17 }
 0x15e   : >> { %1646 = vrot.lane.b32.xlu0 %v6242_v21, %s5375_s17  ;;  %v6486_v61 = vor.u32 %v1698_v12, %v1696_v38 }
 0x15f   : >> { %v6423_v20 = vpop.permute.xlu1 %1070 }
 0x160   : >> { %8244 = vst [vmem:[#allocation65_spill] sm:$0xff] %v6423_v20  ;;  %v6425_v26 = vpop.permute.xlu0 %1068 }
 0x161   : >> { %1652 = vrot.lane.b32.xlu1 %v6254_v31, %s5375_s17 }
 0x162   : >> { %1650 = vrot.lane.b32.xlu0 %v6262_v36, %s5375_s17 }
 0x163   : >> { %v6431_v33 = vpop.permute.xlu1 %1074 }
 0x164   : >> { %8245 = vst [vmem:[#allocation66_spill] sm:$0xff] %v6431_v33  ;;  %v6433_v4 = vpop.permute.xlu0 %1072 }
 0x165   : >> { %8246 = vst [vmem:[#allocation67_spill] sm:$0xff] %v6433_v4  ;;  %1656 = vrot.lane.b32.xlu1 %v6276_v10, %s5375_s17  ;;  %v6593_v4 = vld [vmem:[%s5781_s13 + $0x30] sm:$0xfc]  }
 0x166   : >> { %1654 = vrot.lane.b32.xlu0 %v6289_v59, %s5375_s17 }
 0x167   : >> { %v6439_v25 = vpop.permute.xlu1 %1078 }
 0x168   : >> { %8247 = vst [vmem:[#allocation68_spill] sm:$0xff] %v6439_v25  ;;  %v6442_v34 = vpop.permute.xlu0 %1076  ;;  %v1639_v25 = vshll.u32 %v5061_v41, 16 }
 0x169   : >> { %8248 = vst [vmem:[#allocation69_spill] sm:$0xff] %v6442_v34  ;;  %1660 = vrot.lane.b32.xlu1 %v6299_v56, %s5375_s17 }
 0x16a   : >> { %1658 = vrot.lane.b32.xlu0 %v6308_v46, %s5375_s17 }
 0x16b   : >> { %v6449_v45 = vpop.permute.xlu1 %1082 }
 0x16c   : >> { %8249 = vst [vmem:[#allocation70_spill] sm:$0xff] %v6449_v45  ;;  %v6452_v37 = vpop.permute.xlu0 %1080  ;;  %v1641_v45 = vrot.slane %v1639_v25, 1 }
 0x16d   : >> { %8250 = vst [vmem:[#allocation71_spill] sm:$0xff] %v6452_v37  ;;  %1664 = vrot.lane.b32.xlu1 %v6315_v22, %s5375_s17  ;;  %v1643_v37 = vshrl.u32 %v5061_v41, 16 }
 0x16e   : >> { %1662 = vrot.lane.b32.xlu0 %v6323_v35, %s5375_s17  ;;  %v6480_v25 = vsel %vm879_vm8, %v1637_v29, %v1641_v45 }
 0x16f   : >> { %v6459_v34 = vpop.permute.xlu1 %1135  ;;  %v6473_v11 = vor.u32 %v1643_v37, %v1641_v45  ;;  %8256 = vst [vmem:[#allocation77_spill] sm:$0xff] %v6480_v25  ;;  %v6493_v37 = vsel %vm879_vm8, %v1692_v3, %v1696_v38 }
 0x170   : >> { %8251 = vst [vmem:[#allocation72_spill] sm:$0xff] %v6459_v34  ;;  %v6461_v39 = vpop.permute.xlu0 %1133  ;;  %v5112_v34 = vld [vmem:[#allocation8 + $0xd8] sm:$0xff]  }
 0x171   : >> { %1668 = vrot.lane.b32.xlu1 %v6329_v6, %s5375_s17  ;;  %8254 = vst [vmem:[#allocation75_spill] sm:$0xff] %v6473_v11 }
 0x172   : >> { %1666 = vrot.lane.b32.xlu0 %v6336_v42, %s5375_s17  ;;  %v5099_v42 = vld [vmem:[#allocation8 + $0x80] sm:$0xff]  }
 0x173   : >> { %v6467_v33 = vpop.permute.xlu1 %1139 }
 0x174   : >> { %8252 = vst [vmem:[#allocation73_spill] sm:$0xff] %v6467_v33  ;;  %v6469_v57 = vpop.permute.xlu0 %1137  ;;  %v5066_v33 = vld [vmem:[%s5781_s13 + $0x20] ss:$0 sps:$4 sm:$0x33]  }
 0x175   : >> { %8253 = vst [vmem:[#allocation74_spill] sm:$0xff] %v6469_v57  ;;  %1672 = vrot.lane.b32.xlu1 %v6400_v15, %s5375_s17  ;;  %v2321_v15 = vshll.u32 %v5066_v33, 16  ;;  %v2331_v57 = vshll.u32 %v6579_v49, 16 }
 0x176   : >> { %1670 = vrot.lane.b32.xlu0 %v6407_v17, %s5375_s17 }
 0x177   : >> { %v6477_v41 = vpop.permute.xlu1 %1143  ;;  %v2323_v8 = vrot.slane %v2321_v15, 1  ;;  %v2333_v13 = vrot.slane %v2331_v57, 1  ;;  %v2325_v15 = vshrl.u32 %v5066_v33, 16  ;;  %v5098_v33 = vld [vmem:[#allocation8 + $0xc0] sm:$0xff]  }
 0x178   : >> { %8255 = vst [vmem:[#allocation76_spill] sm:$0xff] %v6477_v41  ;;  %v6482_v53 = vpop.permute.xlu0 %1141  ;;  %4762 = vmatprep.subr.bf16.mxu1 %v5098_v33 }
 0x179   : >> { %8257 = vst [vmem:[#allocation78_spill] sm:$0xff] %v6482_v53  ;;  %1676 = vrot.lane.b32.xlu1 %v6473_v11, %s5375_s17  ;;  %4763 = vmatpush3.bf16.msra.mxu1 %v5099_v42  ;;  %v5103_v42 = vld [vmem:[#allocation8 + $0x88] sm:$0xff]  }
 0x17a   : >> { %1674 = vrot.lane.b32.xlu0 %v6480_v25, %s5375_s17  ;;  %v6564_v25 = vld [vmem:[%s5781_s13 + $0x18] sm:$0xfc]  }
 0x17b   : >> { %v6490_v14 = vpop.permute.xlu1 %1147 }
 0x17c   : >> { %8258 = vst [vmem:[#allocation79_spill] sm:$0xff] %v6490_v14  ;;  %v6495_v27 = vpop.permute.xlu0 %1145 }
 0x17d   : >> { %8259 = vst [vmem:[#allocation80_spill] sm:$0xff] %v6495_v27  ;;  %1703 = vrot.lane.b32.xlu1 %v6486_v61, %s5376_s27 }
 0x17e   : >> { %1701 = vrot.lane.b32.xlu0 %v6493_v37, %s5376_s27 }
 0x17f   : >> { %v6501_v63 = vpop.permute.xlu1 %1157 }
 0x180   : >> { %8260 = vst [vmem:[#allocation81_spill] sm:$0xff] %v6501_v63  ;;  %v6503_v12 = vpop.permute.xlu0 %1155 }
 0x181   : >> { %1707 = vrot.lane.b32.xlu1 %v6202_v50, %s5376_s27 }
 0x182   : >> { %1705 = vrot.lane.b32.xlu0 %v6207_v44, %s5376_s27 }
 0x183   : >> { %v6509_v45 = vpop.permute.xlu1 %1161 }
 0x184   : >> { %8261 = vst [vmem:[#allocation82_spill] sm:$0xff] %v6509_v45  ;;  %v6511_v5 = vpop.permute.xlu0 %1159 }
 0x185   : >> { %8262 = vst [vmem:[#allocation83_spill] sm:$0xff] %v6511_v5  ;;  %1711 = vrot.lane.b32.xlu1 %v6214_v40, %s5376_s27  ;;  %v5068_v5 = vld [vmem:[%s5781_s13 + $0x2c] ss:$0 sps:$4 sm:$0x33]  }
 0x186   : >> { %1709 = vrot.lane.b32.xlu0 %v6222_v1, %s5376_s27  ;;  %v2336_v28 = vshll.u32 %v5068_v5, 16 }
 0x187   : >> { %v6517_v29 = vpop.permute.xlu1 %1165 }
 0x188   : >> { %8263 = vst [vmem:[#allocation84_spill] sm:$0xff] %v6517_v29  ;;  %v6519_v51 = vpop.permute.xlu0 %1163 }
 0x189   : >> { %8264 = vst [vmem:[#allocation85_spill] sm:$0xff] %v6519_v51  ;;  %1715 = vrot.lane.b32.xlu1 %v6231_v30, %s5376_s27 }
 0x18a   : >> { %1713 = vrot.lane.b32.xlu0 %v6242_v21, %s5376_s27 }
 0x18b   : >> { %v6525_v38 = vpop.permute.xlu1 %1169 }
 0x18c   : >> { %8265 = vst [vmem:[#allocation86_spill] sm:$0xff] %v6525_v38  ;;  %v6527_v3 = vpop.permute.xlu0 %1167 }
 0x18d   : >> { %8266 = vst [vmem:[#allocation87_spill] sm:$0xff] %v6527_v3  ;;  %1719 = vrot.lane.b32.xlu1 %v6254_v31, %s5376_s27 }
 0x18e   : >> { %1717 = vrot.lane.b32.xlu0 %v6262_v36, %s5376_s27 }
 0x18f   : >> { %v6533_v14 = vpop.permute.xlu1 %1538 }
 0x190   : >> { %v6535_v27 = vpop.permute.xlu0 %1536 }
 0x191   : >> { %1723 = vrot.lane.b32.xlu1 %v6276_v10, %s5376_s27 }
 0x192   : >> { %1721 = vrot.lane.b32.xlu0 %v6289_v59, %s5376_s27 }
 0x193   : >> { %v6541_v38 = vpop.permute.xlu1 %1542 }
 0x194   : >> { %v6543_v3 = vpop.permute.xlu0 %1540 }
 0x195   : >> { %1727 = vrot.lane.b32.xlu1 %v6299_v56, %s5376_s27 }
 0x196   : >> { %1725 = vrot.lane.b32.xlu0 %v6308_v46, %s5376_s27 }
 0x197   : >> { %v6549_v29 = vpop.permute.xlu1 %1546 }
 0x198   : >> { %8267 = vst [vmem:[#allocation88_spill] sm:$0xff] %v6549_v29  ;;  %v6551_v41 = vpop.permute.xlu0 %1544  ;;  %v2346_v29 = vshll.u32 %v6593_v4, 16 }
 0x199   : >> { %8268 = vst [vmem:[#allocation89_spill] sm:$0xff] %v6551_v41  ;;  %1731 = vrot.lane.b32.xlu1 %v6315_v22, %s5376_s27  ;;  %v2344_v41 = vshrl.u32 %v6593_v4, 16 }
 0x19a   : >> { %1729 = vrot.lane.b32.xlu0 %v6323_v35, %s5376_s27 }
 0x19b   : >> { %v6557_v51 = vpop.permute.xlu1 %1550 }
 0x19c   : >> { %8269 = vst [vmem:[#allocation90_spill] sm:$0xff] %v6557_v51  ;;  %v6559_v53 = vpop.permute.xlu0 %1548  ;;  %v2316_v51 = vshll.u32 %v6564_v25, 16 }
 0x19d   : >> { %8270 = vst [vmem:[#allocation91_spill] sm:$0xff] %v6559_v53  ;;  %1735 = vrot.lane.b32.xlu1 %v6214_v40, %s5377_s11 }
 0x19e   : >> { %1733 = vrot.lane.b32.xlu0 %v6222_v1, %s5377_s11 }
 0x19f   : >> { %v6568_v11 = vpop.permute.xlu1 %1554 }
 0x1a0   : >> { %8271 = vst [vmem:[#allocation92_spill] sm:$0xff] %v6568_v11  ;;  %v6570_v45 = vpop.permute.xlu0 %1552  ;;  %v2314_v11 = vshrl.u32 %v6564_v25, 16 }
 0x1a1   : >> { %8272 = vst [vmem:[#allocation93_spill] sm:$0xff] %v6570_v45  ;;  %1739 = vrot.lane.b32.xlu1 %v6231_v30, %s5377_s11  ;;  %v2318_v45 = vrot.slane %v2316_v51, 1  ;;  %v2329_v51 = vshrl.u32 %v6579_v49, 16 }
 0x1a2   : >> { %1737 = vrot.lane.b32.xlu0 %v6242_v21, %s5377_s11  ;;  %v2348_v21 = vrot.slane %v2346_v29, 1  ;;  %v5072_v29 = vld [vmem:[%s5781_s13 + $0x14] ss:$0 sps:$4 sm:$0x77]  }
 0x1a3   : >> { %v6581_v53 = vpop.permute.xlu1 %1558  ;;  %v2334_v57 = vor.u32 %v2333_v13, %v2329_v51  ;;  %v2327_v13 = vor.u32 %v2325_v15, %v2323_v8  ;;  %v5071_v51 = vld [vmem:[%s5781_s13 + $0xc] sm:$0xfc]   ;;  %v2355_v15 = vshrl.u32 %v5070_v16, 16 }
 0x1a4   : >> { %8273 = vst [vmem:[#allocation94_spill] sm:$0xff] %v6581_v53  ;;  %v6583_v17 = vpop.permute.xlu0 %1556 }
 0x1a5   : >> { %8274 = vst [vmem:[#allocation95_spill] sm:$0xff] %v6583_v17  ;;  %1743 = vrot.lane.b32.xlu1 %v6254_v31, %s5377_s11  ;;  %v2319_v17 = vor.u32 %v2318_v45, %v2314_v11  ;;  %v2351_v45 = vshll.u32 %v5070_v16, 16  ;;  %v5105_v16 = vld [vmem:[#allocation8 + $0x8] sm:$0xff]  }
 0x1a6   : >> { %1741 = vrot.lane.b32.xlu0 %v6262_v36, %s5377_s11 }
 0x1a7   : >> { %v6595_v60 = vpop.permute.xlu1 %1562  ;;  %v2324_v11 = vsel %vm879_vm8, %v2319_v17, %v2323_v8  ;;  %v2340_v17 = vshrl.u32 %v5068_v5, 16  ;;  %v5100_v5 = vld [vmem:[#allocation8 + $0x40] sm:$0xff]   ;;  %v2604_v8 = vrot.slane %v5071_v51, 1  ;;  %v5106_v51 = vld [vmem:[#allocation8 + $0xd0] sm:$0xff]  }
 0x1a8   : >> { %8275 = vst [vmem:[#allocation96_spill] sm:$0xff] %v6595_v60  ;;  %v6597_v53 = vpop.permute.xlu0 %1560  ;;  %4698 = vmatprep.subr.bf16.mxu0 %v5100_v5 }
 0x1a9   : >> { %8276 = vst [vmem:[#allocation97_spill] sm:$0xff] %v6597_v53  ;;  %1747 = vrot.lane.b32.xlu1 %v6276_v10, %s5377_s11  ;;  %v2338_v53 = vrot.slane %v2336_v28, 1  ;;  %v2349_v28 = vor.u32 %v2348_v21, %v2344_v41  ;;  %v2605_v41 = vrot.slane %v5072_v29, 1 }
 0x1aa   : >> { %1745 = vrot.lane.b32.xlu0 %v6289_v59, %s5377_s11 }
 0x1ab   : >> { %v6606_v2 = vpop.permute.xlu1 %1566  ;;  %v6624_v30 = vsel %vm879_vm8, %v2334_v57, %v2338_v53  ;;  %v5102_v57 = vld [vmem:[#allocation8 + $0xc8] sm:$0xff]   ;;  %v2606_v29 = vsel %vm1108_vm9, %v2604_v8, %v2605_v41 }
 0x1ac   : >> { %8277 = vst [vmem:[#allocation98_spill] sm:$0xff] %v6606_v2  ;;  %v6608_v60 = vpop.permute.xlu0 %1564  ;;  %4764 = vmatprep.subr.bf16.mxu1 %v5102_v57  ;;  %v5075_v57 = vld [vmem:[%s5781_s13 + $0x44] ss:$0 sps:$4 sm:$0x77]  }
 0x1ad   : >> { %8278 = vst [vmem:[#allocation99_spill] sm:$0xff] %v6608_v60  ;;  %2217 = vrot.lane.b32.xlu1 %v6117_v24, %s5373_s28  ;;  %v2353_v24 = vrot.slane %v2351_v45, 1  ;;  %v5101_v45 = vld [vmem:[#allocation8] sm:$0xff]   ;;  %4765 = vmatpush3.bf16.msra.mxu1 %v5103_v42  ;;  %v5107_v42 = vld [vmem:[#allocation8 + $0x90] sm:$0xff]  }
 0x1ae   : >> { %1749 = vrot.lane.b32.xlu0 %v6308_v46, %s5377_s11  ;;  %4699 = vmatpush3.bf16.msra.mxu0 %v5101_v45  ;;  %v6656_v45 = vld [vmem:[%s5781_s13 + $0x3c] sm:$0xfc]  }
 0x1af   : >> { %v6616_v2 = vpop.permute.xlu1 %1593  ;;  %v6639_v21 = vsel %vm879_vm8, %v2349_v28, %v2353_v24  ;;  %v6653_v5 = vor.u32 %v2355_v15, %v2353_v24  ;;  %4766 = vmatprep.subr.bf16.mxu1 %v5106_v51  ;;  %v2616_v8 = vrot.slane %v6656_v45, 1  ;;  %v6671_v15 = vrot.slane %v5075_v57, 1 }
 0x1b0   : >> { %v6618_v60 = vpop.permute.xlu0 %1591 }
 0x1b1   : >> { %2433 = vrot.lane.b32.xlu1 %v2324_v11, %s5374_s16  ;;  %v6634_v11 = vor.u32 %v2340_v17, %v2338_v53  ;;  %v5104_v17 = vld [vmem:[#allocation8 + $0x48] sm:$0xff]   ;;  %4767 = vmatpush3.bf16.msra.mxu1 %v5107_v42  ;;  %v5117_v42 = vld [vmem:[#allocation8 + $0xe0] sm:$0xff]   ;;  %v6682_v57 = vsel %vm1108_vm9, %v2616_v8, %v6671_v15  ;;  %v5079_v8 = vld [vmem:[%s5781_s13] sm:$0xfe]  }
 0x1b2   : >> { %2219 = vrot.lane.b32.xlu0 %v6086_v47, %s5373_s28  ;;  %v5073_v47 = vld [vmem:[%s5781_s13 + $0x2c] ss:$0 sps:$4 sm:$0x77]   ;;  %4700 = vmatprep.subr.bf16.mxu0 %v5104_v17  ;;  %v5113_v17 = vld [vmem:[#allocation8 + $0x98] sm:$0xff]   ;;  %v1831_v20 = vshll.u32 %v5079_v8, 16 }
 0x1b3   : >> { %v6628_v63 = vpop.permute.xlu1 %1597  ;;  %v6648_v28 = vrot.slane %v5073_v47, 1  ;;  %4701 = vmatpush3.bf16.msra.mxu0 %v5105_v16  ;;  %v5109_v47 = vld [vmem:[#allocation8 + $0x50] sm:$0xff]   ;;  %4768 = vmatprep.subr.bf16.mxu1 %v5112_v34 }
 0x1b4   : >> { %8279 = vst [vmem:[#allocation100_spill] sm:$0xff] %v6628_v63  ;;  %v6630_v6 = vpop.permute.xlu0 %1595  ;;  %4702 = vmatprep.subr.bf16.mxu0 %v5109_v47 }
 0x1b5   : >> { %2488 = vrot.lane.b32.xlu1 %v6624_v30, %s5375_s17  ;;  %4769 = vmatpush3.bf16.msra.mxu1 %v5113_v17  ;;  %v5119_v17 = vld [vmem:[#allocation8 + $0x60] sm:$0xff]  }
 0x1b6   : >> { %2435 = vrot.lane.b32.xlu0 %v2327_v13, %s5374_s16  ;;  %v2610_v13 = vrot.slane %v6579_v49, 1  ;;  %4770 = vmatprep.subr.bf16.mxu1 %v5117_v42 }
 0x1b7   : >> { %v6641_v33 = vpop.permute.xlu1 %1601 }
 0x1b8   : >> { %8280 = vst [vmem:[#allocation101_spill] sm:$0xff] %v6641_v33  ;;  %v6643_v53 = vpop.permute.xlu0 %1599  ;;  %v6668_v24 = vsel %vm1108_vm9, %v2610_v13, %v6648_v28  ;;  %v5116_v13 = vld [vmem:[#allocation8 + $0x18] sm:$0xff]  }
 0x1b9   : >> { %8281 = vst [vmem:[#allocation102_spill] sm:$0xff] %v6643_v53  ;;  %2543 = vrot.lane.b32.xlu1 %v6639_v21, %s5376_s27  ;;  %v5111_v53 = vld [vmem:[#allocation8 + $0x10] sm:$0xff]  }
 0x1ba   : >> { %2490 = vrot.lane.b32.xlu0 %v6634_v11, %s5375_s17  ;;  %4703 = vmatpush3.bf16.msra.mxu0 %v5111_v53  ;;  %v5118_v53 = vld [vmem:[#allocation8 + $0xa0] sm:$0xff]  }
 0x1bb   : >> { %v6659_v33 = vpop.permute.xlu1 %1605  ;;  %4771 = vmatpush3.bf16.msra.mxu1 %v5118_v53  ;;  %v5123_v53 = vld [vmem:[#allocation8 + $0x68] sm:$0xff]  }
 0x1bc   : >> { %8282 = vst [vmem:[#allocation103_spill] sm:$0xff] %v6659_v33  ;;  %v6661_v49 = vpop.permute.xlu0 %1603  ;;  %v5127_v33 = vld [vmem:[#allocation8 + $0xf0] sm:$0xff]  }
 0x1bd   : >> { %8283 = vst [vmem:[#allocation104_spill] sm:$0xff] %v6661_v49  ;;  %2628 = vrot.lane.b32.xlu1 %v2606_v29, %s5377_s11  ;;  %v5115_v29 = vld [vmem:[#allocation8 + $0x58] sm:$0xff]  }
 0x1be   : >> { %2545 = vrot.lane.b32.xlu0 %v6653_v5, %s5376_s27  ;;  %4704 = vmatprep.subr.bf16.mxu0 %v5115_v29  ;;  %v5122_v29 = vld [vmem:[#allocation8 + $0xa8] sm:$0xff]   ;;  %v5080_v49 = vld [vmem:[%s5781_s13 + $0x8] ss:$0 sps:$4 sm:$0x33]  }
 0x1bf   : >> { %v6673_v16 = vpop.permute.xlu1 %1609  ;;  %4705 = vmatpush3.bf16.msra.mxu0 %v5116_v13  ;;  %v1840_v19 = vshrl.u32 %v5080_v49, 16 }
 0x1c0   : >> { %8284 = vst [vmem:[#allocation105_spill] sm:$0xff] %v6673_v16  ;;  %v6675_v51 = vpop.permute.xlu0 %1607  ;;  %v5076_v16 = vld [vmem:[%s5781_s13 + $0x24] sm:$0xf8]   ;;  %4706 = vmatprep.subr.bf16.mxu0 %v5119_v17  ;;  %v5128_v17 = vld [vmem:[#allocation8 + $0xb0] sm:$0xff]  }
 0x1c1   : >> { %8285 = vst [vmem:[#allocation106_spill] sm:$0xff] %v6675_v51  ;;  %2672 = vrot.lane.b32.xlu1 %v6668_v24, %s5378_s26  ;;  %v5121_v51 = vld [vmem:[#allocation8 + $0xe8] sm:$0xff]  }
 0x1c2   : >> { %2630 = vrot.lane.b32.xlu0 %v2605_v41, %s5377_s11  ;;  %v5120_v41 = vld [vmem:[#allocation8 + $0x20] sm:$0xff]   ;;  %4772 = vmatprep.subr.bf16.mxu1 %v5121_v51 }
 0x1c3   : >> { %v6684_v34 = vpop.permute.xlu1 %1613  ;;  %4707 = vmatpush3.bf16.msra.mxu0 %v5120_v41  ;;  %4773 = vmatpush3.bf16.msra.mxu1 %v5122_v29  ;;  %v5129_v41 = vld [vmem:[#allocation8 + $0x70] sm:$0xff]   ;;  %v5131_v29 = vld [vmem:[#allocation8 + $0xf8] sm:$0xff]  }
 0x1c4   : >> { %8286 = vst [vmem:[#allocation107_spill] sm:$0xff] %v6684_v34  ;;  %v6686_v47 = vpop.permute.xlu0 %1611  ;;  %v5126_v34 = vld [vmem:[#allocation8 + $0x28] sm:$0xff]   ;;  %4708 = vmatprep.subr.bf16.mxu0 %v5123_v53  ;;  %4774 = vmatprep.subr.bf16.mxu1 %v5127_v33  ;;  %v1833_v53 = vrot.slane %v1831_v20, 1  ;;  %v5134_v20 = vld [vmem:[#allocation8 + $0x38] sm:$0xff]  }
 0x1c5   : >> { %8287 = vst [vmem:[#allocation108_spill] sm:$0xff] %v6686_v47  ;;  %2721 = vrot.lane.b32.xlu1 %v6682_v57, %s5379_s14  ;;  %v5077_v47 = vld [vmem:[%s5781_s13 + $0x2c] ss:$0 sps:$4 sm:$0x77]  }
 0x1c6   : >> { %2674 = vrot.lane.b32.xlu0 %v6648_v28, %s5378_s26 }
 0x1c7   : >> { %v6694_v13 = vpop.permute.xlu1 %1617  ;;  %4709 = vmatpush3.bf16.msra.mxu0 %v5126_v34  ;;  %4775 = vmatpush3.bf16.msra.mxu1 %v5128_v17  ;;  %v5133_v17 = vld [vmem:[#allocation8 + $0x78] sm:$0xff]  }
 0x1c8   : >> { %8288 = vst [vmem:[#allocation109_spill] sm:$0xff] %v6694_v13  ;;  %v6696_v42 = vpop.permute.xlu0 %1615  ;;  %v1836_v13 = vshll.u32 %v5080_v49, 16  ;;  %4710 = vmatprep.subr.bf16.mxu0 %v5129_v41  ;;  %4776 = vmatprep.subr.bf16.mxu1 %v5131_v29 }
 0x1c9   : >> { %8289 = vst [vmem:[#allocation110_spill] sm:$0xff] %v6696_v42  ;;  %3244 = vrot.lane.b32.xlu1 %v5076_v16, %s5373_s28  ;;  %v5130_v16 = vld [vmem:[#allocation8 + $0x30] sm:$0xff]   ;;  %v1829_v42 = vshrl.u32 %v5079_v8, 16 }
 0x1ca   : >> { %2723 = vrot.lane.b32.xlu0 %v6671_v15, %s5379_s14  ;;  %v1838_v41 = vrot.slane %v1836_v13, 1  ;;  %v2361_v13 = vshll.u32 %v6656_v45, 16 }
 0x1cb   : >> { %v6703_v52 = vpop.permute.xlu1 %1621  ;;  %4711 = vmatpush3.bf16.msra.mxu0 %v5130_v16  ;;  %v1834_v8 = vor.u32 %v1833_v53, %v1829_v42 }
 0x1cc   : >> { %8290 = vst [vmem:[#allocation111_spill] sm:$0xff] %v6703_v52  ;;  %v6705_v51 = vpop.permute.xlu0 %1619  ;;  %v5132_v52 = vld [vmem:[#allocation8 + $0xb8] sm:$0xff]   ;;  %4712 = vmatprep.subr.bf16.mxu0 %v5133_v17  ;;  %v1842_v17 = vor.u32 %v1840_v19, %v1838_v41 }
 0x1cd   : >> { %8291 = vst [vmem:[#allocation112_spill] sm:$0xff] %v6705_v51  ;;  %1788 = vrot.lane.b32.xlu1 %v6262_v36, %s5378_s26  ;;  %4777 = vmatpush3.bf16.msra.mxu1 %v5132_v52  ;;  %v5165_v51 = vld [vmem:[%s5781_s13 + $0x54] sm:$0xfe]   ;;  %v6728_v52 = vld [vmem:[%s5781_s13 + $0x50] ss:$0 sps:$4 sm:$0x77]   ;;  %v1839_v36 = vsel %vm879_vm8, %v1834_v8, %v1838_v41 }
 0x1ce   : >> { %3246 = vrot.lane.b32.xlu0 %v5077_v47, %s5373_s28  ;;  %v6717_v47 = vld [vmem:[%s5781_s13 + $0x48] sm:$0xf8]  }
 0x1cf   : >> { %v6710_v34 = vpop.permute.xlu1 %1648  ;;  %4713 = vmatpush3.bf16.msra.mxu0 %v5134_v20  ;;  %v2359_v20 = vshrl.u32 %v6656_v45, 16 }
 0x1d0   : >> { %v6712_v33 = vpop.permute.xlu0 %1646 }
 0x1d1   : >> { %2221 = vrot.lane.b32.xlu1 %v5165_v51, %s5373_s28  ;;  %v5166_v51 = vld [vmem:[%s5781_s13 + $0x5c] ss:$0 sps:$4 sm:$0x33]  }
 0x1d2   : >> { %1790 = vrot.lane.b32.xlu0 %v6254_v31, %s5378_s26  ;;  %v5082_v31 = vld [vmem:[%s5781_s13 + $0x44] ss:$0 sps:$4 sm:$0x33]  }
 0x1d3   : >> { %v6721_v16 = vpop.permute.xlu1 %1652  ;;  %v2366_v7 = vshll.u32 %v5082_v31, 16 }
 0x1d4   : >> { %8292 = vst [vmem:[#allocation113_spill] sm:$0xff] %v6721_v16  ;;  %v6723_v29 = vpop.permute.xlu0 %1650 }
 0x1d5   : >> { %8293 = vst [vmem:[#allocation114_spill] sm:$0xff] %v6723_v29  ;;  %3300 = vrot.lane.b32.xlu1 %v6717_v47, %s5374_s16 }
 0x1d6   : >> { %2223 = vrot.lane.b32.xlu0 %v5166_v51, %s5373_s28  ;;  %v2363_v51 = vrot.slane %v2361_v13, 1  ;;  %v5084_v13 = vld [vmem:[%s5781_s13 + $0x38] ss:$0 sps:$4 sm:$0x77]  }
 0x1d7   : >> { %v6735_v42 = vpop.permute.xlu1 %1656 }
 0x1d8   : >> { %8294 = vst [vmem:[#allocation115_spill] sm:$0xff] %v6735_v42  ;;  %v6737_v53 = vpop.permute.xlu0 %1654  ;;  %v2364_v42 = vor.u32 %v2363_v51, %v2359_v20  ;;  %v2613_v51 = vrot.slane %v6593_v4, 1 }
 0x1d9   : >> { %8295 = vst [vmem:[#allocation116_spill] sm:$0xff] %v6737_v53  ;;  %1843 = vrot.lane.b32.xlu1 %v1839_v36, %s5379_s14  ;;  %v2368_v36 = vrot.slane %v2366_v7, 1  ;;  %v5083_v53 = vld [vmem:[%s5781_s13 + $0x20] ss:$0 sps:$4 sm:$0x77]   ;;  %v2370_v7 = vshrl.u32 %v5082_v31, 16 }
 0x1da   : >> { %3302 = vrot.lane.b32.xlu0 %v6728_v52, %s5374_s16  ;;  %v2608_v41 = vrot.slane %v5083_v53, 1  ;;  %v5085_v31 = vld [vmem:[%s5781_s13 + $0x48] sm:$0xfc]   ;;  %v5086_v53 = vld [vmem:[%s5781_s13 + $0x50] ss:$0 sps:$4 sm:$0x77]  }
 0x1db   : >> { %v6743_v49 = vpop.permute.xlu1 %1660  ;;  %v6760_v45 = vsel %vm879_vm8, %v2364_v42, %v2368_v36  ;;  %v6774_v42 = vor.u32 %v2370_v7, %v2368_v36  ;;  %v2619_v36 = vrot.slane %v5085_v31, 1 }
 0x1dc   : >> { %8296 = vst [vmem:[#allocation117_spill] sm:$0xff] %v6743_v49  ;;  %v6745_v8 = vpop.permute.xlu0 %1658 }
 0x1dd   : >> { %8297 = vst [vmem:[#allocation118_spill] sm:$0xff] %v6745_v8  ;;  %2437 = vrot.lane.b32.xlu1 %v6624_v30, %s5374_s16  ;;  %v2607_v30 = vrot.slane %v6564_v25, 1  ;;  %v6776_v25 = vrot.slane %v5084_v13, 1 }
 0x1de   : >> { %1845 = vrot.lane.b32.xlu0 %v1842_v17, %s5379_s14 }
 0x1df   : >> { %v6751_v16 = vpop.permute.xlu1 %1664  ;;  %v6789_v4 = vsel %vm1108_vm9, %v2613_v51, %v6776_v25 }
 0x1e0   : >> { %8298 = vst [vmem:[#allocation119_spill] sm:$0xff] %v6751_v16  ;;  %v6753_v19 = vpop.permute.xlu0 %1662 }
 0x1e1   : >> { %8299 = vst [vmem:[#allocation120_spill] sm:$0xff] %v6753_v19  ;;  %2492 = vrot.lane.b32.xlu1 %v6639_v21, %s5375_s17 }
 0x1e2   : >> { %2439 = vrot.lane.b32.xlu0 %v6634_v11, %s5374_s16  ;;  %v2609_v11 = vsel %vm1108_vm9, %v2607_v30, %v2608_v41  ;;  %v6791_v30 = vrot.slane %v5086_v53, 1  ;;  %v5087_v53 = vld [vmem:[%s5781_s13 + $0x30] sm:$0xf8]  }
 0x1e3   : >> { %v6764_v17 = vpop.permute.xlu1 %1668 }
 0x1e4   : >> { %8300 = vst [vmem:[#allocation121_spill] sm:$0xff] %v6764_v17  ;;  %v6766_v20 = vpop.permute.xlu0 %1666 }
 0x1e5   : >> { %8301 = vst [vmem:[#allocation122_spill] sm:$0xff] %v6766_v20  ;;  %2547 = vrot.lane.b32.xlu1 %v6760_v45, %s5376_s27 }
 0x1e6   : >> { %2494 = vrot.lane.b32.xlu0 %v6653_v5, %s5375_s17 }
 0x1e7   : >> { %v6780_v17 = vpop.permute.xlu1 %1672 }
 0x1e8   : >> { %8302 = vst [vmem:[#allocation123_spill] sm:$0xff] %v6780_v17  ;;  %v6782_v20 = vpop.permute.xlu0 %1670 }
 0x1e9   : >> { %8303 = vst [vmem:[#allocation124_spill] sm:$0xff] %v6782_v20  ;;  %2632 = vrot.lane.b32.xlu1 %v2609_v11, %s5377_s11  ;;  %v6802_v11 = vsel %vm1108_vm9, %v2619_v36, %v6791_v30 }
 0x1ea   : >> { %2549 = vrot.lane.b32.xlu0 %v6774_v42, %s5376_s27 }
 0x1eb   : >> { %v6793_v7 = vpop.permute.xlu1 %1676 }
 0x1ec   : >> { %8304 = vst [vmem:[#allocation125_spill] sm:$0xff] %v6793_v7  ;;  %v6795_v13 = vpop.permute.xlu0 %1674 }
 0x1ed   : >> { %8305 = vst [vmem:[#allocation126_spill] sm:$0xff] %v6795_v13  ;;  %2676 = vrot.lane.b32.xlu1 %v6789_v4, %s5378_s26 }
 0x1ee   : >> { %2634 = vrot.lane.b32.xlu0 %v2608_v41, %s5377_s11  ;;  %v5088_v41 = vld [vmem:[%s5781_s13 + $0x38] ss:$0 sps:$4 sm:$0x77]  }
 0x1ef   : >> { %v6804_v20 = vpop.permute.xlu1 %1703 }
 0x1f0   : >> { %v6806_v51 = vpop.permute.xlu0 %1701 }
 0x1f1   : >> { %2725 = vrot.lane.b32.xlu1 %v6802_v11, %s5379_s14 }
 0x1f2   : >> { %2678 = vrot.lane.b32.xlu0 %v6776_v25, %s5378_s26 }
 0x1f3   : >> { %v6813_v13 = vpop.permute.xlu1 %1707 }
 0x1f4   : >> { %8306 = vst [vmem:[#allocation127_spill] sm:$0xff] %v6813_v13  ;;  %v6815_v7 = vpop.permute.xlu0 %1705 }
 0x1f5   : >> { %8307 = vst [vmem:[#allocation128_spill] sm:$0xff] %v6815_v7  ;;  %3248 = vrot.lane.b32.xlu1 %v5087_v53, %s5373_s28  ;;  %v6835_v53 = vld [vmem:[%s5781_s13 + $0x54] sm:$0xf8]  }
 0x1f6   : >> { %2727 = vrot.lane.b32.xlu0 %v6791_v30, %s5379_s14  ;;  %8312 = vst [vmem:[#allocation133_spill] sm:$0xff] %v6835_v53 }
 0x1f7   : >> { %v6821_v36 = vpop.permute.xlu1 %1711 }
 0x1f8   : >> { %8308 = vst [vmem:[#allocation129_spill] sm:$0xff] %v6821_v36  ;;  %v6823_v17 = vpop.permute.xlu0 %1709 }
 0x1f9   : >> { %8309 = vst [vmem:[#allocation130_spill] sm:$0xff] %v6823_v17  ;;  %1792 = vrot.lane.b32.xlu1 %v6289_v59, %s5378_s26  ;;  %v5091_v59 = vld [vmem:[%s5781_s13 + $0x50] ss:$0 sps:$4 sm:$0x33]  }
 0x1fa   : >> { %3250 = vrot.lane.b32.xlu0 %v5088_v41, %s5373_s28  ;;  %v6846_v41 = vld [vmem:[%s5781_s13 + $0x5c] ss:$0 sps:$4 sm:$0x77]  }
 0x1fb   : >> { %v6828_v16 = vpop.permute.xlu1 %1715  ;;  %8315 = vst [vmem:[#allocation136_spill] sm:$0xff] %v6846_v41 }
 0x1fc   : >> { %8310 = vst [vmem:[#allocation131_spill] sm:$0xff] %v6828_v16  ;;  %v6830_v19 = vpop.permute.xlu0 %1713  ;;  %v2376_v16 = vshll.u32 %v5085_v31, 16 }
 0x1fd   : >> { %8311 = vst [vmem:[#allocation132_spill] sm:$0xff] %v6830_v19  ;;  %2225 = vrot.lane.b32.xlu1 %v6234_v43, %s5373_s28 }
 0x1fe   : >> { %1794 = vrot.lane.b32.xlu0 %v6276_v10, %s5378_s26  ;;  %v2381_v10 = vshll.u32 %v5091_v59, 16 }
 0x1ff   : >> { %v6839_v49 = vpop.permute.xlu1 %1719 }
 0x200   : >> { %8313 = vst [vmem:[#allocation134_spill] sm:$0xff] %v6839_v49  ;;  %v6841_v8 = vpop.permute.xlu0 %1717  ;;  %v2374_v49 = vshrl.u32 %v5085_v31, 16 }
 0x201   : >> { %8314 = vst [vmem:[#allocation135_spill] sm:$0xff] %v6841_v8  ;;  %3304 = vrot.lane.b32.xlu1 %v6835_v53, %s5374_s16  ;;  %v2378_v8 = vrot.slane %v2376_v16, 1 }
 0x202   : >> { %2227 = vrot.lane.b32.xlu0 %v6245_v9, %s5373_s28 }
 0x203   : >> { %v6851_v43 = vpop.permute.xlu1 %1723  ;;  %v2379_v9 = vor.u32 %v2378_v8, %v2374_v49  ;;  %v5093_v49 = vld [vmem:[%s5781_s13 + $0x5c] ss:$0 sps:$4 sm:$0x77]  }
 0x204   : >> { %8316 = vst [vmem:[#allocation137_spill] sm:$0xff] %v6851_v43  ;;  %v6853_v19 = vpop.permute.xlu0 %1721 }
 0x205   : >> { %8317 = vst [vmem:[#allocation138_spill] sm:$0xff] %v6853_v19  ;;  %1847 = vrot.lane.b32.xlu1 %v6493_v37, %s5379_s14  ;;  %v2383_v37 = vrot.slane %v2381_v10, 1 }
 0x206   : >> { %3306 = vrot.lane.b32.xlu0 %v6846_v41, %s5374_s16  ;;  %v6940_v41 = vld [vmem:[%s5781_s13 + $0x68] ss:$0 sps:$4 sm:$0x77]  }
 0x207   : >> { %v6859_v36 = vpop.permute.xlu1 %1727  ;;  %v6876_v16 = vsel %vm879_vm8, %v2379_v9, %v2383_v37  ;;  %v6898_v9 = vrot.slane %v5093_v49, 1  ;;  %v5094_v49 = vld [vmem:[%s5781_s13 + $0x3c] sm:$0xf8]   ;;  %8331 = vst [vmem:[#allocation152_spill] sm:$0xff] %v6940_v41 }
 0x208   : >> { %8318 = vst [vmem:[#allocation139_spill] sm:$0xff] %v6859_v36  ;;  %v6861_v17 = vpop.permute.xlu0 %1725 }
 0x209   : >> { %8319 = vst [vmem:[#allocation140_spill] sm:$0xff] %v6861_v17  ;;  %2441 = vrot.lane.b32.xlu1 %v6639_v21, %s5374_s16  ;;  %v2385_v21 = vshrl.u32 %v5091_v59, 16  ;;  %8324 = vst [vmem:[#allocation145_spill] sm:$0xff] %v6898_v9 }
 0x20a   : >> { %1849 = vrot.lane.b32.xlu0 %v6486_v61, %s5379_s14  ;;  %v5092_v61 = vld [vmem:[%s5781_s13 + $0x54] sm:$0xfc]  }
 0x20b   : >> { %v6867_v19 = vpop.permute.xlu1 %1731  ;;  %v6886_v10 = vor.u32 %v2385_v21, %v2383_v37  ;;  %v2622_v59 = vrot.slane %v5092_v61, 1 }
 0x20c   : >> { %8320 = vst [vmem:[#allocation141_spill] sm:$0xff] %v6867_v19  ;;  %v6869_v43 = vpop.permute.xlu0 %1729 }
 0x20d   : >> { %8321 = vst [vmem:[#allocation142_spill] sm:$0xff] %v6869_v43  ;;  %2496 = vrot.lane.b32.xlu1 %v6760_v45, %s5375_s17 }
 0x20e   : >> { %2443 = vrot.lane.b32.xlu0 %v6653_v5, %s5374_s16 }
 0x20f   : >> { %v6878_v31 = vpop.permute.xlu1 %1735 }
 0x210   : >> { %v6880_v17 = vpop.permute.xlu0 %1733 }
 0x211   : >> { %2551 = vrot.lane.b32.xlu1 %v6876_v16, %s5376_s27 }
 0x212   : >> { %2498 = vrot.lane.b32.xlu0 %v6774_v42, %s5375_s17 }
 0x213   : >> { %v6890_v5 = vpop.permute.xlu1 %1739 }
 0x214   : >> { %8322 = vst [vmem:[#allocation143_spill] sm:$0xff] %v6890_v5  ;;  %v6892_v8 = vpop.permute.xlu0 %1737 }
 0x215   : >> { %8323 = vst [vmem:[#allocation144_spill] sm:$0xff] %v6892_v8  ;;  %2636 = vrot.lane.b32.xlu1 %v6668_v24, %s5377_s11  ;;  %v6910_v24 = vsel %vm1108_vm9, %v2622_v59, %v6898_v9 }
 0x216   : >> { %2553 = vrot.lane.b32.xlu0 %v6886_v10, %s5376_s27 }
 0x217   : >> { %v6900_v43 = vpop.permute.xlu1 %1743 }
 0x218   : >> { %8325 = vst [vmem:[#allocation146_spill] sm:$0xff] %v6900_v43  ;;  %v6902_v37 = vpop.permute.xlu0 %1741 }
 0x219   : >> { %8326 = vst [vmem:[#allocation147_spill] sm:$0xff] %v6902_v37  ;;  %2680 = vrot.lane.b32.xlu1 %v6682_v57, %s5378_s26 }
 0x21a   : >> { %2638 = vrot.lane.b32.xlu0 %v6648_v28, %s5377_s11  ;;  %v5095_v28 = vld [vmem:[%s5781_s13 + $0x44] ss:$0 sps:$4 sm:$0x77]  }
 0x21b   : >> { %v6912_v21 = vpop.permute.xlu1 %1747 }
 0x21c   : >> { %8327 = vst [vmem:[#allocation148_spill] sm:$0xff] %v6912_v21  ;;  %v6914_v19 = vpop.permute.xlu0 %1745 }
 0x21d   : >> { %8328 = vst [vmem:[#allocation149_spill] sm:$0xff] %v6914_v19  ;;  %2729 = vrot.lane.b32.xlu1 %v6910_v24, %s5379_s14 }
 0x21e   : >> { %2682 = vrot.lane.b32.xlu0 %v6671_v15, %s5378_s26 }
 0x21f   : >> { %v2218_v36 = vpop.permute.xlu1 %2217 }
 0x220   : >> { %v6921_v43 = vpop.permute.xlu0 %1749 }
 0x221   : >> { %8329 = vst [vmem:[#allocation150_spill] sm:$0xff] %v6921_v43  ;;  %3252 = vrot.lane.b32.xlu1 %v5094_v49, %s5373_s28  ;;  %v6933_v43 = vld [vmem:[%s5781_s13 + $0x60] sm:$0xf8]  }
 0x222   : >> { %2731 = vrot.lane.b32.xlu0 %v6898_v9, %s5379_s14  ;;  %8330 = vst [vmem:[#allocation151_spill] sm:$0xff] %v6933_v43 }
 0x223   : >> { %v2434_v59 = vpop.permute.xlu1 %2433 }
 0x224   : >> { %v2220_v21 = vpop.permute.xlu0 %2219 }
 0x225   : >> { %1796 = vrot.lane.b32.xlu1 %v6308_v46, %s5378_s26  ;;  %v2391_v46 = vshll.u32 %v5092_v61, 16 }
 0x226   : >> { %3254 = vrot.lane.b32.xlu0 %v5095_v28, %s5373_s28  ;;  %v5110_v28 = vld [vmem:[%s5781_s13 + $0x5c] ss:$0 sps:$4 sm:$0x33]  }
 0x227   : >> { %v2489_v19 = vpop.permute.xlu1 %2488  ;;  %v2396_v8 = vshll.u32 %v5110_v28, 16 }
 0x228   : >> { %v2436_v37 = vpop.permute.xlu0 %2435 }
 0x229   : >> { %2229 = vrot.lane.b32.xlu1 %v6267_v58, %s5373_s28  ;;  %v2389_v58 = vshrl.u32 %v5092_v61, 16  ;;  %v2398_v7 = vrot.slane %v2396_v8, 1 }
 0x22a   : >> { %1798 = vrot.lane.b32.xlu0 %v6299_v56, %s5378_s26  ;;  %v2393_v56 = vrot.slane %v2391_v46, 1  ;;  %v2400_v46 = vshrl.u32 %v5110_v28, 16  ;;  %v5125_v28 = vld [vmem:[%s5781_s13 + $0x68] ss:$0 sps:$4 sm:$0x77]  }
 0x22b   : >> { %v2544_v49 = vpop.permute.xlu1 %2543 }
 0x22c   : >> { %v2491_v53 = vpop.permute.xlu0 %2490 }
 0x22d   : >> { %3308 = vrot.lane.b32.xlu1 %v6933_v43, %s5374_s16 }
 0x22e   : >> { %2231 = vrot.lane.b32.xlu0 %v6283_v62, %s5373_s28  ;;  %v2394_v62 = vor.u32 %v2393_v56, %v2389_v58  ;;  %v5167_v56 = vld [vmem:[%s5781_s13 + $0x2c] ss:$0 sps:$4 sm:$0x33]   ;;  %v6970_v58 = vld [vmem:[%s5781_s13 + $0x60] sm:$0xfc]  }
 0x22f   : >> { %v2629_v5 = vpop.permute.xlu1 %2628  ;;  %v2756_v61 = vsel %vm1171_vm10, %v5167_v56, %v2220_v21 }
 0x230   : >> { %v2546_v13 = vpop.permute.xlu0 %2545  ;;  %v2788_v8 = vsel %vm1189_vm11, %v2756_v61, %v2436_v37 }
 0x231   : >> { %1851 = vrot.lane.b32.xlu1 %v6207_v44, %s5379_s14  ;;  %v6958_v44 = vsel %vm879_vm8, %v2394_v62, %v2398_v7  ;;  %v5168_v62 = vld [vmem:[%s5781_s13 + $0x24] sm:$0xfe]   ;;  %v2820_v21 = vsel %vm1206_vm12, %v2788_v8, %v2491_v53 }
 0x232   : >> { %3310 = vrot.lane.b32.xlu0 %v6940_v41, %s5374_s16  ;;  %v2754_v41 = vsel %vm1171_vm10, %v5168_v62, %v2218_v36  ;;  %v2852_v37 = vsel %vm1223_vm13, %v2820_v21, %v2546_v13  ;;  %v2625_v13 = vrot.slane %v6970_v58, 1 }
 0x233   : >> { %v2673_v48 = vpop.permute.xlu1 %2672  ;;  %v2786_v29 = vsel %vm1189_vm11, %v2754_v41, %v2434_v59  ;;  %v6987_v41 = vrot.slane %v5125_v28, 1  ;;  %v5108_v59 = vld [vmem:[%s5781_s13] sm:$0xf8]  }
 0x234   : >> { %v2631_v43 = vpop.permute.xlu0 %2630 }
 0x235   : >> { %2445 = vrot.lane.b32.xlu1 %v6760_v45, %s5374_s16 }
 0x236   : >> { %1853 = vrot.lane.b32.xlu0 %v6202_v50, %s5379_s14 }
 0x237   : >> { %v2722_v63 = vpop.permute.xlu1 %2721 }
 0x238   : >> { %v2675_v9 = vpop.permute.xlu0 %2674 }
 0x239   : >> { %2500 = vrot.lane.b32.xlu1 %v6876_v16, %s5375_s17 }
 0x23a   : >> { %2447 = vrot.lane.b32.xlu0 %v6774_v42, %s5374_s16  ;;  %v6967_v42 = vor.u32 %v2400_v46, %v2398_v7  ;;  %v2818_v7 = vsel %vm1206_vm12, %v2786_v29, %v2489_v19  ;;  %v2884_v46 = vsel %vm1240_vm14, %v2852_v37, %v2631_v43 }
 0x23b   : >> { %v3245_v45 = vpop.permute.xlu1 %3244  ;;  %v2850_v36 = vsel %vm1223_vm13, %v2818_v7, %v2544_v49  ;;  %v2916_v53 = vsel %vm1257_vm15, %v2884_v46, %v2675_v9  ;;  %v5114_v7 = vld [vmem:[%s5781_s13 + $0x8] ss:$0 sps:$4 sm:$0x77]  }
 0x23c   : >> { %v2724_v50 = vpop.permute.xlu0 %2723  ;;  %v2882_v29 = vsel %vm1240_vm14, %v2850_v36, %v2629_v5  ;;  %v7002_v5 = vsel %vm1108_vm9, %v2625_v13, %v6987_v41  ;;  %v3334_v37 = vsel %vm1171_vm10, %v5108_v59, %v3245_v45 }
 0x23d   : >> { %2555 = vrot.lane.b32.xlu1 %v6958_v44, %s5376_s27  ;;  %v2948_v19 = vsel %vm1274_vm0, %v2916_v53, %v2724_v50  ;;  %v5044_v50 = vld [vmem:[%s5781_s13] sm:$0xff]   ;;  %v5169_v53 = vld [vmem:[%s5781_s13 + $0x38] ss:$0 sps:$4 sm:$0x11]  }
 0x23e   : >> { %2502 = vrot.lane.b32.xlu0 %v6886_v10, %s5375_s17  ;;  %v2985_v8 = vshrl.u32 %v2948_v19, 16  ;;  %v2988_v28 = vshll.u32 %v2948_v19, 16  ;;  %v1879_v13 = vsel %vm1171_vm10, %v5169_v53, %v6533_v14 }
 0x23f   : >> { %v1789_v56 = vpop.permute.xlu1 %1788 }
 0x240   : >> { %v3247_v61 = vpop.permute.xlu0 %3246  ;;  %v2990_v45 = vrot.slane %v2988_v28, 2 }
 0x241   : >> { %2640 = vrot.lane.b32.xlu1 %v6789_v4, %s5377_s11  ;;  %v2914_v4 = vsel %vm1257_vm15, %v2882_v29, %v2673_v48  ;;  %v1877_v48 = vsel %vm1171_vm10, %v6002_v54, %v6535_v27  ;;  %v2987_v27 = vrot.slane %v2985_v8, 1  ;;  %v1918_v29 = vsel %vm1189_vm11, %v1879_v13, %v6616_v2 }
 0x242   : >> { %2557 = vrot.lane.b32.xlu0 %v6967_v42, %s5376_s27  ;;  %v2946_v9 = vsel %vm1274_vm0, %v2914_v4, %v2722_v63  ;;  %v1950_v28 = vsel %vm1206_vm12, %v1918_v29, %v6710_v34 }
 0x243   : >> { %v6991_v43 = vpop.permute.xlu1 %2221  ;;  %v2978_v63 = vshrl.u32 %v2946_v9, 16  ;;  %v2981_v21 = vshll.u32 %v2946_v9, 16 }
 0x244   : >> { %v1791_v49 = vpop.permute.xlu0 %1790 }
 0x245   : >> { %2684 = vrot.lane.b32.xlu1 %v6802_v11, %s5378_s26  ;;  %v2980_v14 = vrot.slane %v2978_v63, 1  ;;  %v2983_v59 = vrot.slane %v2981_v21, 2 }
 0x246   : >> { %2642 = vrot.lane.b32.xlu0 %v6776_v25, %s5377_s11  ;;  %v1916_v25 = vsel %vm1189_vm11, %v1877_v48, %v6618_v60  ;;  %v1174_v60 = vsel %vm1171_vm10, %v5044_v50, %v6224_v55  ;;  %v2991_v50 = vor.u32 %v2990_v45, %v2987_v27  ;;  %v5170_v45 = vld [vmem:[%s5781_s13 + $0x78] sm:$0xfe]  }
 0x247   : >> { %v3301_v62 = vpop.permute.xlu1 %3300  ;;  %v1948_v54 = vsel %vm1206_vm12, %v1916_v25, %v6712_v33  ;;  %v3337_v33 = vsel %vm1171_vm10, %v5114_v7, %v3247_v61  ;;  %v2984_v21 = vor.u32 %v2983_v59, %v2980_v14  ;;  %v2406_v14 = vshll.u32 %v6970_v58, 16 }
 0x248   : >> { %v7010_v46 = vpop.permute.xlu0 %2223  ;;  %v3381_v36 = vsel %vm1189_vm11, %v3334_v37, %v3301_v62  ;;  %v1980_v19 = vsel %vm1223_vm13, %v1948_v54, %v6806_v51  ;;  %v1982_v51 = vsel %vm1223_vm13, %v1950_v28, %v6804_v20  ;;  %v1191_v20 = vsel %vm1189_vm11, %v1174_v60, %v6311_v23  ;;  %v7074_v60 = vld [vmem:[%s5781_s13 + $0x6c] sm:$0xf8]  }
 0x249   : >> { %2733 = vrot.lane.b32.xlu1 %v7002_v5, %s5379_s14  ;;  %v3413_v9 = vsel %vm1206_vm12, %v3381_v36, 0  ;;  %v2012_v55 = vsel %vm1240_vm14, %v1980_v19, %v6880_v17  ;;  %v2014_v34 = vsel %vm1240_vm14, %v1982_v51, %v6878_v31  ;;  %v1208_v7 = vsel %vm1206_vm12, %v1191_v20, %v6354_v18  ;;  %v5171_v19 = vld [vmem:[%s5781_s13 + $0x80] ss:$0 sps:$4 sm:$0x33]   ;;  %v5173_v20 = vld [vmem:[%s5781_s13 + $0x30] sm:$0xfe]  }
 0x24a   : >> { %2686 = vrot.lane.b32.xlu0 %v6791_v30, %s5378_s26  ;;  %v2044_v61 = vsel %vm1257_vm15, %v2012_v55, %v1789_v56  ;;  %v3446_v17 = vrot.slane %v3413_v9, 3  ;;  %v2046_v56 = vsel %vm1257_vm15, %v2014_v34, %v1791_v49  ;;  %v1225_v36 = vsel %vm1223_vm13, %v1208_v7, %v6388_v0 }
 0x24b   : >> { %v1844_v4 = vpop.permute.xlu1 %1843  ;;  %v2992_v18 = vsel %vm2977_vm1, %v2984_v21, %v2991_v50  ;;  %v1242_v49 = vsel %vm1240_vm14, %v1225_v36, %v6425_v26  ;;  %v2408_v9 = vrot.slane %v2406_v14, 1  ;;  %v2758_v21 = vsel %vm1171_vm10, %v5173_v20, %v6991_v43  ;;  %v8336_v20 = vld [vmem:[#allocation29_spill] sm:$0xff] }
 0x24c   : >> { %v3303_v8 = vpop.permute.xlu0 %3302  ;;  %v2076_v48 = vsel %vm1274_vm0, %v2044_v61, %v1844_v4  ;;  %v1259_v54 = vsel %vm1257_vm15, %v1242_v49, %v6461_v39  ;;  %v7081_v39 = vld [vmem:[%s5781_s13 + $0x74] ss:$0 sps:$4 sm:$0x77]   ;;  %v5138_v4 = vld [vmem:[%s5781_s13 + $0x68] ss:$0 sps:$4 sm:$0x33]  }
 0x24d   : >> { %v3383_v2 = vsel %vm1189_vm11, %v3337_v33, %v3303_v8  ;;  %3256 = vrot.lane.b32.xlu1 %v6717_v47, %s5373_s28  ;;  %v2123_v23 = vrot.slane %v2076_v48, 1  ;;  %v2404_v33 = vshrl.u32 %v6970_v58, 16  ;;  %v2411_v8 = vshll.u32 %v5138_v4, 16 }
 0x24e   : >> { %v3414_v62 = vsel %vm1206_vm12, %v3383_v2, 0  ;;  %2735 = vrot.lane.b32.xlu0 %v6987_v41, %s5379_s14 }
 0x24f   : >> { %v3447_v63 = vrot.slane %v3414_v62, 3  ;;  %v7048_v47 = vpop.permute.xlu1 %2437  ;;  %v2409_v2 = vor.u32 %v2408_v9, %v2404_v33  ;;  %v2413_v51 = vrot.slane %v2411_v8, 1  ;;  %v5174_v8 = vld [vmem:[%s5781_s13 + $0x44] ss:$0 sps:$4 sm:$0x11]  }
 0x250   : >> { %v1846_v37 = vpop.permute.xlu0 %1845 }
 0x251   : >> { %v2078_v25 = vsel %vm1274_vm0, %v2046_v56, %v1846_v37  ;;  %1800 = vrot.lane.b32.xlu1 %v6323_v35, %s5378_s26  ;;  %v3448_v31 = vsel %vm3445_vm2, %v3446_v17, %v3447_v63  ;;  %v7101_v58 = vsel %vm879_vm8, %v2409_v2, %v2413_v51  ;;  %v5141_v63 = vld [vmem:[%s5781_s13 + $0x74] ss:$0 sps:$4 sm:$0x77]   ;;  %v2790_v37 = vsel %vm1189_vm11, %v2758_v21, %v7048_v47 }
 0x252   : >> { %v2124_v53 = vrot.slane %v2078_v25, 1  ;;  %3258 = vrot.lane.b32.xlu0 %v6728_v52, %s5373_s28  ;;  %3903 = vmatprep.mubr.bf16.mxu1 %v3448_v31  ;;  %v1276_v52 = vsel %vm1274_vm0, %v1259_v54, %v6503_v12  ;;  %v7133_v47 = vrot.slane %v5141_v63, 1  ;;  %v5137_v54 = vld [vmem:[%s5781_s13 + $0xc] sm:$0xf8]  }
 0x253   : >> { %3904 = vmatmul.mubr.bf16.vlgmr.msra.gmra.mrb[0].mxu1 %v2992_v18  ;;  %v2493_v13 = vpop.permute.xlu1 %2492  ;;  %v5175_v63 = vld [vmem:[%s5781_s13 + $0xc] sm:$0xff]  }
 0x254   : >> { %v2440_v0 = vpop.permute.xlu0 %2439  ;;  %v2125_v27 = vsel %vm1108_vm9, %v2123_v23, %v2124_v53  ;;  %v2822_v31 = vsel %vm1206_vm12, %v2790_v37, %v2493_v13  ;;  %v1176_v21 = vsel %vm1171_vm10, %v5175_v63, %v8336_v20  ;;  %v8351_v20 = vld [vmem:[#allocation45_spill] sm:$0xff] }
 0x255   : >> { %3806 = vmatprep.mubr.bf16.mxu0 %v2125_v27  ;;  %2233 = vrot.lane.b32.xlu1 %v5170_v45, %s5373_s28 }
 0x256   : >> { %1802 = vrot.lane.b32.xlu0 %v6315_v22, %s5378_s26  ;;  %3807 = vmatmul.mubr.bf16.vlgmr.msra.gmra.mrb[0].mxu0 %v1276_v52 }
 0x257   : >> { %v2548_v26 = vpop.permute.xlu1 %2547 }
 0x258   : >> { %v2495_v29 = vpop.permute.xlu0 %2494  ;;  %v2854_v23 = vsel %vm1223_vm13, %v2822_v31, %v2548_v26 }
 0x259   : >> { %3312 = vrot.lane.b32.xlu1 %v7074_v60, %s5374_s16 }
 0x25a   : >> { %2235 = vrot.lane.b32.xlu0 %v5171_v19, %s5373_s28  ;;  %v1882_v19 = vsel %vm1171_vm10, %v5995_v32, %v6543_v3  ;;  %v1884_v32 = vsel %vm1171_vm10, %v5174_v8, %v6541_v38  ;;  %v8332_v3 = vld [vmem:[#allocation114_spill] sm:$0xff]  ;;  %v8344_v8 = vld [vmem:[#allocation136_spill] sm:$0xff] }
 0x25b   : >> { %v2633_v12 = vpop.permute.xlu1 %2632  ;;  %v1920_v9 = vsel %vm1189_vm11, %v1882_v19, %v6630_v6  ;;  %v8342_v19 = vld [vmem:[#allocation39_spill] sm:$0xff] }
 0x25c   : >> { %v2550_v59 = vpop.permute.xlu0 %2549  ;;  %v2886_v18 = vsel %vm1240_vm14, %v2854_v23, %v2633_v12  ;;  %v8339_v23 = vld [vmem:[#allocation38_spill] sm:$0xff] }
 0x25d   : >> { %1855 = vrot.lane.b32.xlu1 %v6222_v1, %s5379_s14 }
 0x25e   : >> { %3314 = vrot.lane.b32.xlu0 %v7081_v39, %s5374_s16 }
 0x25f   : >> { %v2677_v28 = vpop.permute.xlu1 %2676 }
 0x260   : >> { %v2635_v55 = vpop.permute.xlu0 %2634 }
 0x261   : >> { %2449 = vrot.lane.b32.xlu1 %v6876_v16, %s5374_s16  ;;  %v2415_v16 = vshrl.u32 %v5138_v4, 16 }
 0x262   : >> { %1857 = vrot.lane.b32.xlu0 %v6214_v40, %s5379_s14  ;;  %v5172_v40 = vld [vmem:[%s5781_s13 + $0x38] ss:$0 sps:$4 sm:$0x33]  }
 0x263   : >> { %v2726_v1 = vpop.permute.xlu1 %2725  ;;  %v2760_v34 = vsel %vm1171_vm10, %v5172_v40, %v7010_v46  ;;  %v7111_v48 = vor.u32 %v2415_v16, %v2413_v51  ;;  %v8333_v51 = vld [vmem:[#allocation145_spill] sm:$0xff] }
 0x264   : >> { %v2679_v50 = vpop.permute.xlu0 %2678  ;;  %v2792_v17 = vsel %vm1189_vm11, %v2760_v34, %v2440_v0 }
 0x265   : >> { %2504 = vrot.lane.b32.xlu1 %v6958_v44, %s5375_s17  ;;  %v2824_v56 = vsel %vm1206_vm12, %v2792_v17, %v2495_v29 }
 0x266   : >> { %2451 = vrot.lane.b32.xlu0 %v6886_v10, %s5374_s16  ;;  %v7114_v10 = vld [vmem:[%s5781_s13 + $0x6c] sm:$0xfc]   ;;  %v2856_v7 = vsel %vm1223_vm13, %v2824_v56, %v2550_v59  ;;  %v5139_v59 = vld [vmem:[%s5781_s13 + $0x14] ss:$0 sps:$4 sm:$0x77]   ;;  %v8337_v56 = vld [vmem:[#allocation113_spill] sm:$0xff] }
 0x267   : >> { %v3249_v61 = vpop.permute.xlu1 %3248  ;;  %v2888_v36 = vsel %vm1240_vm14, %v2856_v7, %v2635_v55  ;;  %v2666_v53 = vrot.slane %v7114_v10, 1  ;;  %v8338_v7 = vld [vmem:[#allocation144_spill] sm:$0xff] }
 0x268   : >> { %v2728_v62 = vpop.permute.xlu0 %2727  ;;  %v2920_v43 = vsel %vm1257_vm15, %v2888_v36, %v2679_v50  ;;  %v3340_v12 = vsel %vm1171_vm10, %v5137_v54, %v3249_v61  ;;  %v8335_v50 = vld [vmem:[#allocation128_spill] sm:$0xff] }
 0x269   : >> { %2559 = vrot.lane.b32.xlu1 %v7101_v58, %s5376_s27  ;;  %v2952_v49 = vsel %vm1274_vm0, %v2920_v43, %v2728_v62  ;;  %v7148_v26 = vsel %vm1108_vm9, %v2666_v53, %v7133_v47  ;;  %v8340_v43 = vld [vmem:[#allocation127_spill] sm:$0xff] }
 0x26a   : >> { %2506 = vrot.lane.b32.xlu0 %v6967_v42, %s5375_s17  ;;  %v3000_v45 = vshrl.u32 %v2952_v49, 16  ;;  %v3003_v52 = vshll.u32 %v2952_v49, 16 }
 0x26b   : >> { %v1793_v46 = vpop.permute.xlu1 %1792 }
 0x26c   : >> { %v3251_v25 = vpop.permute.xlu0 %3250  ;;  %v3002_v55 = vrot.slane %v3000_v45, 1  ;;  %v3005_v2 = vrot.slane %v3003_v52, 2 }
 0x26d   : >> { %2644 = vrot.lane.b32.xlu1 %v6682_v57, %s5377_s11  ;;  %v2918_v57 = vsel %vm1257_vm15, %v2886_v18, %v2677_v28  ;;  %v1952_v28 = vsel %vm1206_vm12, %v1920_v9, %v8332_v3  ;;  %v3343_v34 = vsel %vm1171_vm10, %v5139_v59, %v3251_v25  ;;  %v8343_v59 = vld [vmem:[#allocation49_spill] sm:$0xff]  ;;  %v8345_v3 = vld [vmem:[#allocation56_spill] sm:$0xff] }
 0x26e   : >> { %2561 = vrot.lane.b32.xlu0 %v7111_v48, %s5376_s27  ;;  %v2950_v27 = vsel %vm1274_vm0, %v2918_v57, %v2726_v1  ;;  %v8334_v1 = vld [vmem:[#allocation100_spill] sm:$0xff]  ;;  %v1984_v16 = vsel %vm1223_vm13, %v1952_v28, %v8335_v50  ;;  %v3006_v53 = vor.u32 %v3005_v2, %v3002_v55  ;;  %v8341_v57 = vld [vmem:[#allocation143_spill] sm:$0xff] }
 0x26f   : >> { %v7137_v13 = vpop.permute.xlu1 %2225  ;;  %v2993_v4 = vshrl.u32 %v2950_v27, 16  ;;  %v2996_v14 = vshll.u32 %v2950_v27, 16  ;;  %v1922_v6 = vsel %vm1189_vm11, %v1884_v32, %v8334_v1  ;;  %v2016_v31 = vsel %vm1240_vm14, %v1984_v16, %v8338_v7  ;;  %v8346_v1 = vld [vmem:[#allocation133_spill] sm:$0xff]  ;;  %v7226_v7 = vld [vmem:[%s5781_s13 + $0x80] ss:$0 sps:$4 sm:$0x77]  }
 0x270   : >> { %v1795_v0 = vpop.permute.xlu0 %1794  ;;  %v1954_v37 = vsel %vm1206_vm12, %v1922_v6, %v8337_v56  ;;  %v2048_v18 = vsel %vm1257_vm15, %v2016_v31, %v1793_v46  ;;  %v8347_v6 = vld [vmem:[#allocation65_spill] sm:$0xff] }
 0x271   : >> { %2688 = vrot.lane.b32.xlu1 %v6910_v24, %s5378_s26  ;;  %v2995_v62 = vrot.slane %v2993_v4, 1  ;;  %v2998_v40 = vrot.slane %v2996_v14, 2  ;;  %v1986_v25 = vsel %vm1223_vm13, %v1954_v37, %v8340_v43  ;;  %v1193_v4 = vsel %vm1189_vm11, %v1176_v21, %v8342_v19  ;;  %v5176_v37 = vld [vmem:[%s5781_s13 + $0x8c] ss:$0 sps:$4 sm:$0x33]  }
 0x272   : >> { %2646 = vrot.lane.b32.xlu0 %v6671_v15, %s5377_s11  ;;  %v2018_v54 = vsel %vm1240_vm14, %v1986_v25, %v8341_v57  ;;  %v1210_v9 = vsel %vm1206_vm12, %v1193_v4, %v8343_v59  ;;  %v5177_v31 = vld [vmem:[%s5781_s13 + $0x84] sm:$0xfe]  }
 0x273   : >> { %v3305_v29 = vpop.permute.xlu1 %3304  ;;  %v2999_v14 = vor.u32 %v2998_v40, %v2995_v62  ;;  %v2050_v46 = vsel %vm1257_vm15, %v2018_v54, %v1795_v0  ;;  %v1227_v28 = vsel %vm1223_vm13, %v1210_v9, %v8345_v3  ;;  %v2421_v54 = vshll.u32 %v7114_v10, 16  ;;  %v8352_v19 = vld [vmem:[#allocation26_spill] sm:$0xff] }
 0x274   : >> { %v7155_v33 = vpop.permute.xlu0 %2227  ;;  %v3385_v15 = vsel %vm1189_vm11, %v3340_v12, %v3305_v29  ;;  %v1244_v50 = vsel %vm1240_vm14, %v1227_v28, %v8347_v6 }
 0x275   : >> { %2737 = vrot.lane.b32.xlu1 %v7148_v26, %s5379_s14  ;;  %v3415_v38 = vsel %vm1206_vm12, %v3385_v15, 0  ;;  %v3007_v0 = vsel %vm2977_vm1, %v2999_v14, %v3006_v53  ;;  %v5146_v53 = vld [vmem:[%s5781_s13 + $0x74] ss:$0 sps:$4 sm:$0x33]  }
 0x276   : >> { %2690 = vrot.lane.b32.xlu0 %v8333_v51, %s5378_s26  ;;  %v3449_v27 = vrot.slane %v3415_v38, 3  ;;  %v8349_v38 = vld [vmem:[#allocation43_spill] sm:$0xff]  ;;  %v2426_v4 = vshll.u32 %v5146_v53, 16 }
 0x277   : >> { %v1848_v61 = vpop.permute.xlu1 %1847 }
 0x278   : >> { %v3307_v17 = vpop.permute.xlu0 %3306  ;;  %v2080_v45 = vsel %vm1274_vm0, %v2048_v18, %v1848_v61  ;;  %v8348_v61 = vld [vmem:[#allocation72_spill] sm:$0xff]  ;;  %v7237_v18 = vld [vmem:[%s5781_s13 + $0x90] sm:$0xfe]   ;;  %v2428_v28 = vrot.slane %v2426_v4, 1 }
 0x279   : >> { %v3387_v36 = vsel %vm1189_vm11, %v3343_v34, %v3307_v17  ;;  %1751 = vrot.lane.b32.xlu1 %v8339_v23, %s5377_s11  ;;  %v2126_v55 = vrot.slane %v2080_v45, 1  ;;  %v1261_v62 = vsel %vm1257_vm15, %v1244_v50, %v8348_v61  ;;  %v8350_v17 = vld [vmem:[#allocation81_spill] sm:$0xff]  ;;  %v1774_v14 = vshrl.u32 %v7237_v18, 16 }
 0x27a   : >> { %v3416_v49 = vsel %vm1206_vm12, %v3387_v36, 0  ;;  %2739 = vrot.lane.b32.xlu0 %v7133_v47, %s5379_s14  ;;  %v1279_v63 = vsel %vm1274_vm0, %v1261_v62, %v8350_v17  ;;  %v7231_v36 = vld [vmem:[%s5781_s13 + $0x78] sm:$0xf8]  }
 0x27b   : >> { %v3450_v52 = vrot.slane %v3416_v49, 3  ;;  %v7194_v29 = vpop.permute.xlu1 %2441  ;;  %v7242_v49 = vld [vmem:[%s5781_s13 + $0x98] ss:$0 sps:$4 sm:$0x33]   ;;  %v5179_v62 = vld [vmem:[%s5781_s13 + $0x3c] sm:$0xfe]  }
 0x27c   : >> { %v1850_v12 = vpop.permute.xlu0 %1849 }
 0x27d   : >> { %v2082_v15 = vsel %vm1274_vm0, %v2050_v46, %v1850_v12  ;;  %3262 = vrot.lane.b32.xlu1 %v8344_v8, %s5373_s28  ;;  %v3451_v32 = vsel %vm3445_vm2, %v3449_v27, %v3450_v52  ;;  %v1776_v27 = vshll.u32 %v7237_v18, 16  ;;  %v1781_v52 = vshll.u32 %v7242_v49, 16  ;;  %v8353_v12 = vld [vmem:[#allocation28_spill] sm:$0xff] }
 0x27e   : >> { %v2127_v2 = vrot.slane %v2082_v15, 1  ;;  %3260 = vrot.lane.b32.xlu0 %v8346_v1, %s5373_s28  ;;  %3911 = vmatprep.mubr.bf16.mxu1 %v3451_v32  ;;  %v2419_v15 = vshrl.u32 %v7114_v10, 16  ;;  %v2423_v8 = vrot.slane %v2421_v54, 1  ;;  %v5178_v10 = vld [vmem:[%s5781_s13 + $0x44] ss:$0 sps:$4 sm:$0x33]  }
 0x27f   : >> { %3912 = vmatmul.mubr.bf16.gmra.mrb[4].mxu1 %v3007_v0  ;;  %v7212_v16 = vpop.permute.xlu1 %2496  ;;  %v1778_v46 = vrot.slane %v1776_v27, 1  ;;  %v7252_v59 = vrot.slane %v1781_v52, 1  ;;  %v2764_v50 = vsel %vm1171_vm10, %v5178_v10, %v7155_v33  ;;  %v5147_v27 = vld [vmem:[%s5781_s13 + $0x80] ss:$0 sps:$4 sm:$0x77]  }
 0x280   : >> { %v2444_v40 = vpop.permute.xlu0 %2443  ;;  %v2128_v34 = vsel %vm1108_vm9, %v2126_v55, %v2127_v2  ;;  %v2430_v55 = vshrl.u32 %v5146_v53, 16  ;;  %v2424_v0 = vor.u32 %v2423_v8, %v2419_v15  ;;  %v5144_v52 = vld [vmem:[%s5781_s13 + $0x18] sm:$0xf8]   ;;  %v8354_v15 = vld [vmem:[#allocation89_spill] sm:$0xff] }
 0x281   : >> { %3814 = vmatprep.mubr.bf16.mxu0 %v2128_v34  ;;  %1806 = vrot.lane.b32.xlu1 %v8349_v38, %s5378_s26  ;;  %v1779_v32 = vor.u32 %v1778_v46, %v1774_v14  ;;  %v2796_v61 = vsel %vm1189_vm11, %v2764_v50, %v2444_v40  ;;  %v7307_v46 = vrot.slane %v5147_v27, 1  ;;  %v8357_v10 = vld [vmem:[#allocation88_spill] sm:$0xff] }
 0x282   : >> { %1804 = vrot.lane.b32.xlu0 %v8351_v20, %s5378_s26  ;;  %3815 = vmatmul.mubr.bf16.gmra.mrb[4].mxu0 %v1279_v63  ;;  %v7278_v33 = vsel %vm879_vm8, %v2424_v0, %v2428_v28 }
 0x283   : >> { %v2552_v21 = vpop.permute.xlu1 %2551  ;;  %v7259_v2 = vsel %vm879_vm8, %v1779_v32, %v7252_v59 }
 0x284   : >> { %v2499_v56 = vpop.permute.xlu0 %2498 }
 0x285   : >> { %2239 = vrot.lane.b32.xlu1 %v5176_v37, %s5373_s28  ;;  %v2828_v34 = vsel %vm1206_vm12, %v2796_v61, %v2499_v56  ;;  %v8358_v61 = vld [vmem:[#allocation116_spill] sm:$0xff] }
 0x286   : >> { %2237 = vrot.lane.b32.xlu0 %v5177_v31, %s5373_s28 }
 0x287   : >> { %v2637_v43 = vpop.permute.xlu1 %2636 }
 0x288   : >> { %v2554_v25 = vpop.permute.xlu0 %2553 }
 0x289   : >> { %3318 = vrot.lane.b32.xlu1 %v7226_v7, %s5374_s16  ;;  %v2860_v40 = vsel %vm1223_vm13, %v2828_v34, %v2554_v25  ;;  %v8359_v34 = vld [vmem:[#allocation101_spill] sm:$0xff] }
 0x28a   : >> { %3316 = vrot.lane.b32.xlu0 %v7231_v36, %s5374_s16 }
 0x28b   : >> { %v2681_v57 = vpop.permute.xlu1 %2680 }
 0x28c   : >> { %v2639_v45 = vpop.permute.xlu0 %2638 }
 0x28d   : >> { %1861 = vrot.lane.b32.xlu1 %v8352_v19, %s5379_s14 }
 0x28e   : >> { %1859 = vrot.lane.b32.xlu0 %v8353_v12, %s5379_s14 }
 0x28f   : >> { %v2730_v9 = vpop.permute.xlu1 %2729 }
 0x290   : >> { %v2683_v3 = vpop.permute.xlu0 %2682 }
 0x291   : >> { %2455 = vrot.lane.b32.xlu1 %v6967_v42, %s5374_s16  ;;  %v7268_v42 = vor.u32 %v2430_v55, %v2428_v28  ;;  %v8356_v55 = vld [vmem:[#allocation102_spill] sm:$0xff] }
 0x292   : >> { %2453 = vrot.lane.b32.xlu0 %v6958_v44, %s5374_s16  ;;  %v2762_v44 = vsel %vm1171_vm10, %v5179_v62, %v7137_v13  ;;  %v2892_v13 = vsel %vm1240_vm14, %v2860_v40, %v2639_v45  ;;  %v8360_v40 = vld [vmem:[#allocation130_spill] sm:$0xff] }
 0x293   : >> { %v3253_v1 = vpop.permute.xlu1 %3252  ;;  %v2794_v63 = vsel %vm1189_vm11, %v2762_v44, %v7194_v29  ;;  %v2924_v53 = vsel %vm1257_vm15, %v2892_v13, %v2683_v3 }
 0x294   : >> { %v2732_v6 = vpop.permute.xlu0 %2731  ;;  %v2826_v31 = vsel %vm1206_vm12, %v2794_v63, %v7212_v16  ;;  %v7298_v16 = vld [vmem:[%s5781_s13 + $0x78] sm:$0xfc]   ;;  %v3346_v3 = vsel %vm1171_vm10, %v5144_v52, %v3253_v1  ;;  %v8361_v52 = vld [vmem:[#allocation25_spill] sm:$0xff] }
 0x295   : >> { %2510 = vrot.lane.b32.xlu1 %v7111_v48, %s5375_s17  ;;  %v2858_v56 = vsel %vm1223_vm13, %v2826_v31, %v2552_v21  ;;  %v2956_v25 = vsel %vm1274_vm0, %v2924_v53, %v2732_v6  ;;  %v2669_v12 = vrot.slane %v7298_v16, 1  ;;  %v5180_v6 = vld [vmem:[%s5781_s13 + $0x50] ss:$0 sps:$4 sm:$0x11]  }
 0x296   : >> { %2508 = vrot.lane.b32.xlu0 %v7101_v58, %s5375_s17  ;;  %v2890_v29 = vsel %vm1240_vm14, %v2858_v56, %v2637_v43  ;;  %v3015_v4 = vshrl.u32 %v2956_v25, 16  ;;  %v3018_v43 = vshll.u32 %v2956_v25, 16  ;;  %v1889_v50 = vsel %vm1171_vm10, %v5180_v6, %v8357_v10 }
 0x297   : >> { %v1797_v17 = vpop.permute.xlu1 %1796  ;;  %v2922_v45 = vsel %vm1257_vm15, %v2890_v29, %v2681_v57  ;;  %v8355_v57 = vld [vmem:[#allocation21_spill] sm:$0xff]  ;;  %v1926_v63 = vsel %vm1189_vm11, %v1889_v50, %v8359_v34  ;;  %v7335_v56 = vsel %vm1108_vm9, %v2669_v12, %v7307_v46  ;;  %v8367_v50 = vld [vmem:[#allocation42_spill] sm:$0xff] }
 0x298   : >> { %v3255_v37 = vpop.permute.xlu0 %3254  ;;  %v2954_v21 = vsel %vm1274_vm0, %v2922_v45, %v2730_v9  ;;  %v1887_v8 = vsel %vm1171_vm10, %v8355_v57, %v8354_v15  ;;  %v3017_v44 = vrot.slane %v3015_v4, 1  ;;  %v3020_v1 = vrot.slane %v3018_v43, 2  ;;  %v8363_v43 = vld [vmem:[#allocation115_spill] sm:$0xff] }
 0x299   : >> { %2565 = vrot.lane.b32.xlu1 %v7268_v42, %s5376_s27  ;;  %v3008_v32 = vshrl.u32 %v2954_v21, 16  ;;  %v3011_v9 = vshll.u32 %v2954_v21, 16  ;;  %v1924_v0 = vsel %vm1189_vm11, %v1887_v8, %v8356_v55  ;;  %v8362_v21 = vld [vmem:[#allocation19_spill] sm:$0xff]  ;;  %v8365_v8 = vld [vmem:[#allocation129_spill] sm:$0xff] }
 0x29a   : >> { %2563 = vrot.lane.b32.xlu0 %v7278_v33, %s5376_s27  ;;  %v1956_v62 = vsel %vm1206_vm12, %v1924_v0, %v8358_v61  ;;  %v1178_v4 = vsel %vm1171_vm10, %v8362_v21, %v8361_v52  ;;  %v8364_v15 = vld [vmem:[#allocation147_spill] sm:$0xff]  ;;  %v8371_v52 = vld [vmem:[#allocation74_spill] sm:$0xff] }
 0x29b   : >> { %v7294_v54 = vpop.permute.xlu1 %2229  ;;  %v1988_v31 = vsel %vm1223_vm13, %v1956_v62, %v8360_v40  ;;  %v3010_v53 = vrot.slane %v3008_v32, 1  ;;  %v3013_v29 = vrot.slane %v3011_v9, 2  ;;  %v3021_v32 = vor.u32 %v3020_v1, %v3017_v44  ;;  %v8368_v1 = vld [vmem:[#allocation51_spill] sm:$0xff] }
 0x29c   : >> { %v1799_v19 = vpop.permute.xlu0 %1798  ;;  %v2020_v57 = vsel %vm1240_vm14, %v1988_v31, %v8364_v15  ;;  %v1195_v61 = vsel %vm1189_vm11, %v1178_v4, %v8367_v50  ;;  %v8369_v31 = vld [vmem:[#allocation58_spill] sm:$0xff]  ;;  %v8374_v15 = vld [vmem:[#allocation151_spill] sm:$0xff]  ;;  %v2476_v50 = vshll.u32 %v7298_v16, 16 }
 0x29d   : >> { %2650 = vrot.lane.b32.xlu1 %v6791_v30, %s5377_s11  ;;  %v5145_v30 = vld [vmem:[%s5781_s13 + $0x20] ss:$0 sps:$4 sm:$0x77]   ;;  %v2052_v9 = vsel %vm1257_vm15, %v2020_v57, %v1797_v17  ;;  %v3014_v62 = vor.u32 %v3013_v29, %v3010_v53  ;;  %v1212_v34 = vsel %vm1206_vm12, %v1195_v61, %v8368_v1  ;;  %v8370_v53 = vld [vmem:[#allocation67_spill] sm:$0xff]  ;;  %v2474_v1 = vshrl.u32 %v7298_v16, 16 }
 0x29e   : >> { %2648 = vrot.lane.b32.xlu0 %v6802_v11, %s5377_s11  ;;  %v3349_v25 = vsel %vm1171_vm10, %v5145_v30, %v3255_v37  ;;  %v8366_v30 = vld [vmem:[#allocation146_spill] sm:$0xff] }
 0x29f   : >> { %v3309_v14 = vpop.permute.xlu1 %3308 }
 0x2a0   : >> { %v7315_v28 = vpop.permute.xlu0 %2231  ;;  %v3389_v11 = vsel %vm1189_vm11, %v3346_v3, %v3309_v14  ;;  %v1958_v14 = vsel %vm1206_vm12, %v1926_v63, %v8363_v43  ;;  %v8372_v43 = vld [vmem:[#allocation152_spill] sm:$0xff] }
 0x2a1   : >> { %2694 = vrot.lane.b32.xlu1 %v6987_v41, %s5378_s26  ;;  %v3417_v27 = vsel %vm1206_vm12, %v3389_v11, 0  ;;  %v1990_v37 = vsel %vm1223_vm13, %v1958_v14, %v8365_v8  ;;  %v8375_v8 = vld [vmem:[#allocation59_spill] sm:$0xff] }
 0x2a2   : >> { %2692 = vrot.lane.b32.xlu0 %v7002_v5, %s5378_s26  ;;  %v2022_v55 = vsel %vm1240_vm14, %v1990_v37, %v8366_v30  ;;  %v3452_v0 = vrot.slane %v3417_v27, 3  ;;  %v8376_v37 = vld [vmem:[#allocation61_spill] sm:$0xff] }
 0x2a3   : >> { %v1852_v13 = vpop.permute.xlu1 %1851  ;;  %v2054_v17 = vsel %vm1257_vm15, %v2022_v55, %v1799_v19  ;;  %v3022_v19 = vsel %vm2977_vm1, %v3014_v62, %v3021_v32  ;;  %v5152_v30 = vld [vmem:[%s5781_s13 + $0x84] sm:$0xf8]  }
 0x2a4   : >> { %v3311_v45 = vpop.permute.xlu0 %3310  ;;  %v2084_v11 = vsel %vm1274_vm0, %v2052_v9, %v1852_v13  ;;  %v1229_v13 = vsel %vm1223_vm13, %v1212_v34, %v8369_v31  ;;  %v8377_v62 = vld [vmem:[#allocation30_spill] sm:$0xff]  ;;  %v2478_v34 = vrot.slane %v2476_v50, 1  ;;  %v8380_v50 = vld [vmem:[#allocation20_spill] sm:$0xff] }
 0x2a5   : >> { %v3391_v12 = vsel %vm1189_vm11, %v3349_v25, %v3311_v45  ;;  %2743 = vrot.lane.b32.xlu1 %v7307_v46, %s5379_s14  ;;  %v2129_v25 = vrot.slane %v2084_v11, 1  ;;  %v1246_v29 = vsel %vm1240_vm14, %v1229_v13, %v8370_v53  ;;  %v5153_v11 = vld [vmem:[%s5781_s13 + $0x80] ss:$0 sps:$4 sm:$0x33]  }
 0x2a6   : >> { %v3418_v3 = vsel %vm1206_vm12, %v3391_v12, 0  ;;  %2741 = vrot.lane.b32.xlu0 %v7335_v56, %s5379_s14 }
 0x2a7   : >> { %v3453_v6 = vrot.slane %v3418_v3, 3  ;;  %v7358_v10 = vpop.permute.xlu1 %2445  ;;  %v5151_v3 = vld [vmem:[%s5781_s13 + $0x8c] ss:$0 sps:$4 sm:$0x77]  }
 0x2a8   : >> { %v1854_v44 = vpop.permute.xlu0 %1853 }
 0x2a9   : >> { %v2086_v63 = vsel %vm1274_vm0, %v2054_v17, %v1854_v44  ;;  %1755 = vrot.lane.b32.xlu1 %v6315_v22, %s5377_s11  ;;  %v3454_v40 = vsel %vm3445_vm2, %v3452_v0, %v3453_v6  ;;  %v1263_v22 = vsel %vm1257_vm15, %v1246_v29, %v8371_v52  ;;  %v2481_v17 = vshll.u32 %v5153_v11, 16 }
 0x2aa   : >> { %v2130_v27 = vrot.slane %v2086_v63, 1  ;;  %1753 = vrot.lane.b32.xlu0 %v6323_v35, %s5377_s11  ;;  %3919 = vmatprep.mubr.bf16.mxu1 %v3454_v40  ;;  %v8373_v35 = vld [vmem:[#allocation83_spill] sm:$0xff]  ;;  %v5181_v40 = vld [vmem:[%s5781_s13 + $0x50] ss:$0 sps:$4 sm:$0x33]   ;;  %v2479_v52 = vor.u32 %v2478_v34, %v2474_v1 }
 0x2ab   : >> { %3920 = vmatmul.mubr.bf16.gmra.mrb[8].mxu1 %v3022_v19  ;;  %v2501_v45 = vpop.permute.xlu1 %2500  ;;  %v1282_v14 = vsel %vm1274_vm0, %v1263_v22, %v8373_v35  ;;  %v2768_v31 = vsel %vm1171_vm10, %v5181_v40, %v7315_v28  ;;  %v2483_v13 = vrot.slane %v2481_v17, 1  ;;  %v5182_v19 = vld [vmem:[%s5781_s13 + $0x48] sm:$0xfe]   ;;  %v5184_v1 = vld [vmem:[%s5781_s13 + $0x5c] ss:$0 sps:$4 sm:$0x11]  }
 0x2ac   : >> { %v2448_v21 = vpop.permute.xlu0 %2447  ;;  %v2131_v4 = vsel %vm1108_vm9, %v2129_v25, %v2130_v27  ;;  %v2485_v25 = vshrl.u32 %v5153_v11, 16  ;;  %v2766_v16 = vsel %vm1171_vm10, %v5182_v19, %v7294_v54  ;;  %v8379_v11 = vld [vmem:[#allocation91_spill] sm:$0xff]  ;;  %v5183_v17 = vld [vmem:[%s5781_s13 + $0x24] sm:$0xf8]   ;;  %v8382_v40 = vld [vmem:[#allocation104_spill] sm:$0xff] }
 0x2ad   : >> { %3822 = vmatprep.mubr.bf16.mxu0 %v2131_v4  ;;  %3266 = vrot.lane.b32.xlu1 %v8372_v43, %s5373_s28  ;;  %v2800_v27 = vsel %vm1189_vm11, %v2768_v31, %v2448_v21  ;;  %v2798_v28 = vsel %vm1189_vm11, %v2766_v16, %v7358_v10  ;;  %v8381_v34 = vld [vmem:[#allocation90_spill] sm:$0xff] }
 0x2ae   : >> { %3264 = vrot.lane.b32.xlu0 %v8374_v15, %s5373_s28  ;;  %3823 = vmatmul.mubr.bf16.gmra.mrb[8].mxu0 %v1282_v14  ;;  %v2830_v4 = vsel %vm1206_vm12, %v2798_v28, %v2501_v45  ;;  %v7434_v14 = vsel %vm879_vm8, %v2479_v52, %v2483_v13  ;;  %v8384_v19 = vld [vmem:[#allocation118_spill] sm:$0xff]  ;;  %v8385_v52 = vld [vmem:[#allocation117_spill] sm:$0xff] }
 0x2af   : >> { %v2556_v57 = vpop.permute.xlu1 %2555 }
 0x2b0   : >> { %v2503_v12 = vpop.permute.xlu0 %2502  ;;  %v2862_v54 = vsel %vm1223_vm13, %v2830_v4, %v2556_v57 }
 0x2b1   : >> { %1810 = vrot.lane.b32.xlu1 %v8375_v8, %s5378_s26  ;;  %v2832_v53 = vsel %vm1206_vm12, %v2800_v27, %v2503_v12 }
 0x2b2   : >> { %1808 = vrot.lane.b32.xlu0 %v8376_v37, %s5378_s26 }
 0x2b3   : >> { %v2641_v32 = vpop.permute.xlu1 %2640 }
 0x2b4   : >> { %v2558_v9 = vpop.permute.xlu0 %2557  ;;  %v2894_v10 = vsel %vm1240_vm14, %v2862_v54, %v2641_v32 }
 0x2b5   : >> { %2243 = vrot.lane.b32.xlu1 %v7242_v49, %s5373_s28 }
 0x2b6   : >> { %2241 = vrot.lane.b32.xlu0 %v7237_v18, %s5373_s28  ;;  %v8378_v18 = vld [vmem:[#allocation32_spill] sm:$0xff] }
 0x2b7   : >> { %v2685_v55 = vpop.permute.xlu1 %2684 }
 0x2b8   : >> { %v2643_v0 = vpop.permute.xlu0 %2642  ;;  %v2926_v15 = vsel %vm1257_vm15, %v2894_v10, %v2685_v55  ;;  %v1892_v55 = vsel %vm1171_vm10, %v8380_v50, %v8379_v11  ;;  %v8389_v11 = vld [vmem:[#allocation131_spill] sm:$0xff] }
 0x2b9   : >> { %3322 = vrot.lane.b32.xlu1 %v5151_v3, %s5374_s16  ;;  %v1928_v31 = vsel %vm1189_vm11, %v1892_v55, %v8382_v40  ;;  %v8390_v55 = vld [vmem:[#allocation149_spill] sm:$0xff] }
 0x2ba   : >> { %3320 = vrot.lane.b32.xlu0 %v5152_v30, %s5374_s16  ;;  %v5154_v30 = vld [vmem:[%s5781_s13 + $0x8c] ss:$0 sps:$4 sm:$0x77]  }
 0x2bb   : >> { %v2734_v6 = vpop.permute.xlu1 %2733  ;;  %v2716_v54 = vrot.slane %v5154_v30, 1 }
 0x2bc   : >> { %v2687_v61 = vpop.permute.xlu0 %2686  ;;  %v2958_v12 = vsel %vm1274_vm0, %v2926_v15, %v2734_v6 }
 0x2bd   : >> { %1865 = vrot.lane.b32.xlu1 %v8377_v62, %s5379_s14  ;;  %v3026_v62 = vshll.u32 %v2958_v12, 16 }
 0x2be   : >> { %1863 = vrot.lane.b32.xlu0 %v8378_v18, %s5379_s14 }
 0x2bf   : >> { %v3257_v44 = vpop.permute.xlu1 %3256  ;;  %v3028_v10 = vrot.slane %v3026_v62, 2 }
 0x2c0   : >> { %v2736_v63 = vpop.permute.xlu0 %2735  ;;  %v3352_v6 = vsel %vm1171_vm10, %v5183_v17, %v3257_v44  ;;  %v1960_v44 = vsel %vm1206_vm12, %v1928_v31, %v8384_v19 }
 0x2c1   : >> { %2459 = vrot.lane.b32.xlu1 %v7111_v48, %s5374_s16  ;;  %v2864_v48 = vsel %vm1223_vm13, %v2832_v53, %v2558_v9 }
 0x2c2   : >> { %2457 = vrot.lane.b32.xlu0 %v7101_v58, %s5374_s16  ;;  %v2896_v21 = vsel %vm1240_vm14, %v2864_v48, %v2643_v0  ;;  %v7423_v58 = vor.u32 %v2485_v25, %v2483_v13  ;;  %v7444_v0 = vld [vmem:[%s5781_s13 + $0x84] sm:$0xfc]   ;;  %v8383_v25 = vld [vmem:[#allocation103_spill] sm:$0xff]  ;;  %v8386_v48 = vld [vmem:[#allocation132_spill] sm:$0xff] }
 0x2c3   : >> { %v1801_v29 = vpop.permute.xlu1 %1800  ;;  %v2928_v43 = vsel %vm1257_vm15, %v2896_v21, %v2687_v61  ;;  %v3023_v61 = vshrl.u32 %v2958_v12, 16  ;;  %v1992_v4 = vsel %vm1223_vm13, %v1960_v44, %v8386_v48  ;;  %v8393_v44 = vld [vmem:[#allocation50_spill] sm:$0xff] }
 0x2c4   : >> { %v3259_v22 = vpop.permute.xlu0 %3258  ;;  %v2960_v45 = vsel %vm1274_vm0, %v2928_v43, %v2736_v63  ;;  %v1894_v63 = vsel %vm1171_vm10, %v5184_v1, %v8381_v34  ;;  %v2024_v30 = vsel %vm1240_vm14, %v1992_v4, %v8390_v55  ;;  %v8399_v55 = vld [vmem:[#allocation77_spill] sm:$0xff] }
 0x2c5   : >> { %2514 = vrot.lane.b32.xlu1 %v7268_v42, %s5375_s17  ;;  %v3030_v9 = vshrl.u32 %v2960_v45, 16  ;;  %v3033_v3 = vshll.u32 %v2960_v45, 16  ;;  %v1930_v27 = vsel %vm1189_vm11, %v1894_v63, %v8383_v25  ;;  %v3025_v43 = vrot.slane %v3023_v61, 1  ;;  %v5185_v45 = vld [vmem:[%s5781_s13 + $0x2c] ss:$0 sps:$4 sm:$0x77]  }
 0x2c6   : >> { %2512 = vrot.lane.b32.xlu0 %v7278_v33, %s5375_s17  ;;  %v1962_v28 = vsel %vm1206_vm12, %v1930_v27, %v8385_v52  ;;  %v3355_v15 = vsel %vm1171_vm10, %v5185_v45, %v3259_v22  ;;  %v8391_v61 = vld [vmem:[#allocation148_spill] sm:$0xff]  ;;  %v8394_v52 = vld [vmem:[#allocation57_spill] sm:$0xff] }
 0x2c7   : >> { %v7431_v35 = vpop.permute.xlu1 %2233  ;;  %v3032_v16 = vrot.slane %v3030_v9, 1  ;;  %v3035_v53 = vrot.slane %v3033_v3, 2  ;;  %v8387_v3 = vld [vmem:[#allocation27_spill] sm:$0xff]  ;;  %v1994_v50 = vsel %vm1223_vm13, %v1962_v28, %v8389_v11  ;;  %v3029_v27 = vor.u32 %v3028_v10, %v3025_v43  ;;  %v8396_v10 = vld [vmem:[#allocation73_spill] sm:$0xff] }
 0x2c8   : >> { %v1803_v57 = vpop.permute.xlu0 %1802  ;;  %v2026_v22 = vsel %vm1240_vm14, %v1994_v50, %v8391_v61  ;;  %v8398_v11 = vld [vmem:[#allocation75_spill] sm:$0xff]  ;;  %v5156_v50 = vld [vmem:[%s5781_s13 + $0xa4] ss:$0 sps:$4 sm:$0x33]  }
 0x2c9   : >> { %2569 = vrot.lane.b32.xlu1 %v7423_v58, %s5376_s27  ;;  %v3036_v62 = vor.u32 %v3035_v53, %v3032_v16  ;;  %v2058_v19 = vsel %vm1257_vm15, %v2026_v22, %v1803_v57 }
 0x2ca   : >> { %2567 = vrot.lane.b32.xlu0 %v7434_v14, %s5376_s27 }
 0x2cb   : >> { %v3313_v32 = vpop.permute.xlu1 %3312  ;;  %v3037_v57 = vsel %vm2977_vm1, %v3029_v27, %v3036_v62  ;;  %v5160_v62 = vld [vmem:[%s5781_s13 + $0x8c] ss:$0 sps:$4 sm:$0x33]   ;;  %v8401_v27 = vld [vmem:[#allocation35_spill] sm:$0xff] }
 0x2cc   : >> { %v7451_v18 = vpop.permute.xlu0 %2235  ;;  %v3393_v13 = vsel %vm1189_vm11, %v3352_v6, %v3313_v32  ;;  %v2056_v6 = vsel %vm1257_vm15, %v2024_v30, %v1801_v29 }
 0x2cd   : >> { %2654 = vrot.lane.b32.xlu1 %v8333_v51, %s5377_s11  ;;  %v2715_v51 = vrot.slane %v7444_v0, 1  ;;  %v3419_v12 = vsel %vm1206_vm12, %v3393_v13, 0 }
 0x2ce   : >> { %2652 = vrot.lane.b32.xlu0 %v6910_v24, %s5377_s11  ;;  %v8388_v24 = vld [vmem:[#allocation15_spill] sm:$0xff]  ;;  %v3455_v34 = vrot.slane %v3419_v12, 3  ;;  %v8397_v12 = vld [vmem:[#allocation82_spill] sm:$0xff] }
 0x2cf   : >> { %v1856_v21 = vpop.permute.xlu1 %1855  ;;  %v1180_v32 = vsel %vm1171_vm10, %v8388_v24, %v8387_v3  ;;  %v2717_v13 = vsel %vm1108_vm9, %v2715_v51, %v2716_v54 }
 0x2d0   : >> { %v3315_v9 = vpop.permute.xlu0 %3314  ;;  %v2088_v63 = vsel %vm1274_vm0, %v2056_v6, %v1856_v21  ;;  %v8395_v21 = vld [vmem:[#allocation66_spill] sm:$0xff] }
 0x2d1   : >> { %v3395_v17 = vsel %vm1189_vm11, %v3355_v15, %v3315_v9  ;;  %2698 = vrot.lane.b32.xlu1 %v7133_v47, %s5378_s26  ;;  %v8392_v47 = vld [vmem:[#allocation41_spill] sm:$0xff]  ;;  %v2132_v48 = vrot.slane %v2088_v63, 1  ;;  %v5186_v63 = vld [vmem:[%s5781_s13 + $0x5c] ss:$0 sps:$4 sm:$0x33]  }
 0x2d2   : >> { %v3420_v1 = vsel %vm1206_vm12, %v3395_v17, 0  ;;  %2696 = vrot.lane.b32.xlu0 %v7148_v26, %s5378_s26  ;;  %v1197_v25 = vsel %vm1189_vm11, %v1180_v32, %v8392_v47  ;;  %v2536_v47 = vshll.u32 %v5160_v62, 16 }
 0x2d3   : >> { %v3456_v40 = vrot.slane %v3420_v1, 3  ;;  %v7492_v31 = vpop.permute.xlu1 %2449  ;;  %v1214_v16 = vsel %vm1206_vm12, %v1197_v25, %v8393_v44  ;;  %v2531_v1 = vshll.u32 %v7444_v0, 16 }
 0x2d4   : >> { %v1858_v29 = vpop.permute.xlu0 %1857  ;;  %v1231_v28 = vsel %vm1223_vm13, %v1214_v16, %v8394_v52 }
 0x2d5   : >> { %v2090_v26 = vsel %vm1274_vm0, %v2058_v19, %v1858_v29  ;;  %2747 = vrot.lane.b32.xlu1 %v2716_v54, %s5379_s14  ;;  %v3457_v53 = vsel %vm3445_vm2, %v3455_v34, %v3456_v40  ;;  %v1248_v51 = vsel %vm1240_vm14, %v1231_v28, %v8395_v21  ;;  %v2772_v40 = vsel %vm1171_vm10, %v5186_v63, %v7451_v18  ;;  %v5187_v19 = vld [vmem:[%s5781_s13 + $0x54] sm:$0xfe]   ;;  %v8409_v63 = vld [vmem:[#allocation17_spill] sm:$0xff] }
 0x2d6   : >> { %v2133_v4 = vrot.slane %v2090_v26, 1  ;;  %2745 = vrot.lane.b32.xlu0 %v2717_v13, %s5379_s14  ;;  %3927 = vmatprep.mubr.bf16.mxu1 %v3457_v53  ;;  %v1265_v54 = vsel %vm1257_vm15, %v1248_v51, %v8396_v10  ;;  %v8400_v13 = vld [vmem:[#allocation34_spill] sm:$0xff]  ;;  %v2770_v29 = vsel %vm1171_vm10, %v5187_v19, %v7431_v35  ;;  %v2529_v26 = vshrl.u32 %v7444_v0, 16  ;;  %v5189_v19 = vld [vmem:[%s5781_s13 + $0x38] ss:$0 sps:$4 sm:$0x77]  }
 0x2d7   : >> { %3928 = vmatmul.mubr.bf16.gmra.mrb[12].mxu1 %v3037_v57  ;;  %v2505_v43 = vpop.permute.xlu1 %2504  ;;  %v1285_v9 = vsel %vm1274_vm0, %v1265_v54, %v8397_v12  ;;  %v2533_v53 = vrot.slane %v2531_v1, 1  ;;  %v2802_v18 = vsel %vm1189_vm11, %v2770_v29, %v7492_v31  ;;  %v2538_v35 = vrot.slane %v2536_v47, 1 }
 0x2d8   : >> { %v2452_v45 = vpop.permute.xlu0 %2451  ;;  %v2134_v15 = vsel %vm1108_vm9, %v2132_v48, %v2133_v4  ;;  %v2834_v48 = vsel %vm1206_vm12, %v2802_v18, %v2505_v43  ;;  %v2540_v57 = vshrl.u32 %v5160_v62, 16 }
 0x2d9   : >> { %3830 = vmatprep.mubr.bf16.mxu0 %v2134_v15  ;;  %1759 = vrot.lane.b32.xlu1 %v8349_v38, %s5377_s11  ;;  %v2804_v25 = vsel %vm1189_vm11, %v2772_v40, %v2452_v45  ;;  %v2534_v43 = vor.u32 %v2533_v53, %v2529_v26  ;;  %v5161_v26 = vld [vmem:[%s5781_s13 + $0x98] ss:$0 sps:$4 sm:$0x77]   ;;  %v5162_v53 = vld [vmem:[%s5781_s13 + $0x90] sm:$0xfc]  }
 0x2da   : >> { %1757 = vrot.lane.b32.xlu0 %v8351_v20, %s5377_s11  ;;  %3831 = vmatmul.mubr.bf16.gmra.mrb[12].mxu0 %v1285_v9  ;;  %v5157_v20 = vld [vmem:[%s5781_s13 + $0x9c] sm:$0xfe]   ;;  %v2542_v15 = vor.u32 %v2540_v57, %v2538_v35 }
 0x2db   : >> { %v2560_v3 = vpop.permute.xlu1 %2559 }
 0x2dc   : >> { %v2507_v24 = vpop.permute.xlu0 %2506  ;;  %v2866_v21 = vsel %vm1223_vm13, %v2834_v48, %v2560_v3  ;;  %v2539_v3 = vsel %vm879_vm8, %v2534_v43, %v2538_v35  ;;  %v5190_v48 = vld [vmem:[%s5781_s13 + $0x30] sm:$0xf8]  }
 0x2dd   : >> { %3270 = vrot.lane.b32.xlu1 %v7081_v39, %s5373_s28  ;;  %v5158_v39 = vld [vmem:[%s5781_s13 + $0x98] ss:$0 sps:$4 sm:$0x77]   ;;  %v2836_v44 = vsel %vm1206_vm12, %v2804_v25, %v2507_v24  ;;  %v8402_v24 = vld [vmem:[#allocation93_spill] sm:$0xff] }
 0x2de   : >> { %3268 = vrot.lane.b32.xlu0 %v7074_v60, %s5373_s28  ;;  %v5159_v60 = vld [vmem:[%s5781_s13 + $0x90] sm:$0xf8]  }
 0x2df   : >> { %v2645_v32 = vpop.permute.xlu1 %2644  ;;  %v8411_v25 = vld [vmem:[#allocation135_spill] sm:$0xff] }
 0x2e0   : >> { %v2562_v38 = vpop.permute.xlu0 %2561  ;;  %v2898_v31 = vsel %vm1240_vm14, %v2866_v21, %v2645_v32  ;;  %v8403_v32 = vld [vmem:[#allocation23_spill] sm:$0xff]  ;;  %v8412_v21 = vld [vmem:[#allocation134_spill] sm:$0xff] }
 0x2e1   : >> { %1814 = vrot.lane.b32.xlu1 %v8398_v11, %s5378_s26  ;;  %v2868_v52 = vsel %vm1223_vm13, %v2836_v44, %v2562_v38  ;;  %v1897_v38 = vsel %vm1171_vm10, %v8403_v32, %v8402_v24  ;;  %v2719_v24 = vrot.slane %v5161_v26, 1  ;;  %v2718_v32 = vrot.slane %v5162_v53, 1 }
 0x2e2   : >> { %1812 = vrot.lane.b32.xlu0 %v8399_v55, %s5378_s26 }
 0x2e3   : >> { %v2689_v30 = vpop.permute.xlu1 %2688 }
 0x2e4   : >> { %v2647_v17 = vpop.permute.xlu0 %2646  ;;  %v2930_v54 = vsel %vm1257_vm15, %v2898_v31, %v2689_v30  ;;  %v8413_v31 = vld [vmem:[#allocation150_spill] sm:$0xff] }
 0x2e5   : >> { %2247 = vrot.lane.b32.xlu1 %v5156_v50, %s5373_s28  ;;  %v2900_v4 = vsel %vm1240_vm14, %v2868_v52, %v2647_v17 }
 0x2e6   : >> { %2245 = vrot.lane.b32.xlu0 %v5157_v20, %s5373_s28  ;;  %v8404_v20 = vld [vmem:[#allocation92_spill] sm:$0xff] }
 0x2e7   : >> { %v2738_v61 = vpop.permute.xlu1 %2737 }
 0x2e8   : >> { %v2691_v22 = vpop.permute.xlu0 %2690 }
 0x2e9   : >> { %3326 = vrot.lane.b32.xlu1 %v5158_v39, %s5374_s16  ;;  %v2932_v0 = vsel %vm1257_vm15, %v2900_v4, %v2691_v22  ;;  %v8406_v39 = vld [vmem:[#allocation105_spill] sm:$0xff] }
 0x2ea   : >> { %3324 = vrot.lane.b32.xlu0 %v5159_v60, %s5374_s16 }
 0x2eb   : >> { %v7535_v6 = vpop.permute.xlu1 %1751 }
 0x2ec   : >> { %v2740_v34 = vpop.permute.xlu0 %2739 }
 0x2ed   : >> { %1869 = vrot.lane.b32.xlu1 %v8400_v13, %s5379_s14  ;;  %v2964_v51 = vsel %vm1274_vm0, %v2932_v0, %v2740_v34  ;;  %v8408_v34 = vld [vmem:[#allocation33_spill] sm:$0xff]  ;;  %v8410_v13 = vld [vmem:[#allocation119_spill] sm:$0xff] }
 0x2ee   : >> { %1867 = vrot.lane.b32.xlu0 %v8401_v27, %s5379_s14  ;;  %v3045_v12 = vshrl.u32 %v2964_v51, 16  ;;  %v3048_v9 = vshll.u32 %v2964_v51, 16  ;;  %v1182_v40 = vsel %vm1171_vm10, %v8409_v63, %v8408_v34 }
 0x2ef   : >> { %v3263_v16 = vpop.permute.xlu1 %3262 }
 0x2f0   : >> { %v3261_v28 = vpop.permute.xlu0 %3260  ;;  %v3047_v62 = vrot.slane %v3045_v12, 1  ;;  %v3050_v1 = vrot.slane %v3048_v9, 2  ;;  %v3361_v29 = vsel %vm1171_vm10, %v5189_v19, %v3263_v16 }
 0x2f1   : >> { %2463 = vrot.lane.b32.xlu1 %v7268_v42, %s5374_s16  ;;  %v2962_v42 = vsel %vm1274_vm0, %v2930_v54, %v2738_v61  ;;  %v8407_v61 = vld [vmem:[#allocation120_spill] sm:$0xff]  ;;  %v3358_v4 = vsel %vm1171_vm10, %v5190_v48, %v3261_v28 }
 0x2f2   : >> { %2461 = vrot.lane.b32.xlu0 %v7278_v33, %s5374_s16  ;;  %v3038_v11 = vshrl.u32 %v2962_v42, 16  ;;  %v3041_v50 = vshll.u32 %v2962_v42, 16  ;;  %v3051_v28 = vor.u32 %v3050_v1, %v3047_v62  ;;  %v2720_v1 = vsel %vm1108_vm9, %v2718_v32, %v2719_v24 }
 0x2f3   : >> { %v1807_v10 = vpop.permute.xlu1 %1806 }
 0x2f4   : >> { %v1805_v45 = vpop.permute.xlu0 %1804  ;;  %v3040_v18 = vrot.slane %v3038_v11, 1  ;;  %v3043_v52 = vrot.slane %v3041_v50, 2 }
 0x2f5   : >> { %2518 = vrot.lane.b32.xlu1 %v7423_v58, %s5375_s17  ;;  %v5188_v58 = vld [vmem:[%s5781_s13 + $0x68] ss:$0 sps:$4 sm:$0x11]  }
 0x2f6   : >> { %2516 = vrot.lane.b32.xlu0 %v7434_v14, %s5375_s17  ;;  %v1899_v30 = vsel %vm1171_vm10, %v5188_v58, %v8404_v20  ;;  %v8405_v14 = vld [vmem:[#allocation106_spill] sm:$0xff]  ;;  %v8415_v20 = vld [vmem:[#allocation53_spill] sm:$0xff] }
 0x2f7   : >> { %v7570_v33 = vpop.permute.xlu1 %2239  ;;  %v1932_v17 = vsel %vm1189_vm11, %v1897_v38, %v8405_v14  ;;  %v1934_v60 = vsel %vm1189_vm11, %v1899_v30, %v8406_v39  ;;  %v8414_v38 = vld [vmem:[#allocation46_spill] sm:$0xff] }
 0x2f8   : >> { %v7576_v55 = vpop.permute.xlu0 %2237  ;;  %v1964_v22 = vsel %vm1206_vm12, %v1932_v17, %v8407_v61  ;;  %v1966_v47 = vsel %vm1206_vm12, %v1934_v60, %v8410_v13  ;;  %v1199_v11 = vsel %vm1189_vm11, %v1182_v40, %v8414_v38  ;;  %v8416_v17 = vld [vmem:[#allocation62_spill] sm:$0xff]  ;;  %v8417_v61 = vld [vmem:[#allocation69_spill] sm:$0xff] }
 0x2f9   : >> { %2573 = vrot.lane.b32.xlu1 %v2542_v15, %s5376_s27  ;;  %v1996_v27 = vsel %vm1223_vm13, %v1964_v22, %v8411_v25  ;;  %v1998_v0 = vsel %vm1223_vm13, %v1966_v47, %v8412_v21  ;;  %v1216_v30 = vsel %vm1206_vm12, %v1199_v11, %v8415_v20  ;;  %v5193_v20 = vld [vmem:[%s5781_s13 + $0x74] ss:$0 sps:$4 sm:$0x11]  }
 0x2fa   : >> { %2571 = vrot.lane.b32.xlu0 %v2539_v3, %s5376_s27  ;;  %v2028_v51 = vsel %vm1240_vm14, %v1996_v27, %v8413_v31  ;;  %v2030_v54 = vsel %vm1240_vm14, %v1998_v0, %v7535_v6  ;;  %v1233_v39 = vsel %vm1223_vm13, %v1216_v30, %v8416_v17  ;;  %v1785_v27 = vshrl.u32 %v7242_v49, 16  ;;  %v5164_v49 = vld [vmem:[%s5781_s13 + $0x9c] sm:$0xf8]   ;;  %v8423_v30 = vld [vmem:[#allocation94_spill] sm:$0xff] }
 0x2fb   : >> { %v3319_v44 = vpop.permute.xlu1 %3318  ;;  %v2062_v12 = vsel %vm1257_vm15, %v2030_v54, %v1807_v10  ;;  %v2060_v50 = vsel %vm1257_vm15, %v2028_v51, %v1805_v45  ;;  %v1250_v22 = vsel %vm1240_vm14, %v1233_v39, %v8417_v61 }
 0x2fc   : >> { %v3399_v35 = vsel %vm1189_vm11, %v3361_v29, %v3319_v44  ;;  %v3317_v57 = vpop.permute.xlu0 %3316  ;;  %v1787_v44 = vor.u32 %v1785_v27, %v7252_v59 }
 0x2fd   : >> { %v3422_v43 = vsel %vm1206_vm12, %v3399_v35, 0  ;;  %v3397_v16 = vsel %vm1189_vm11, %v3358_v4, %v3317_v57  ;;  %2658 = vrot.lane.b32.xlu1 %v6987_v41, %s5377_s11  ;;  %v3044_v41 = vor.u32 %v3043_v52, %v3040_v18  ;;  %v5191_v52 = vld [vmem:[%s5781_s13 + $0x68] ss:$0 sps:$4 sm:$0x33]   ;;  %v5192_v57 = vld [vmem:[%s5781_s13 + $0x60] sm:$0xfe]  }
 0x2fe   : >> { %v3459_v42 = vrot.slane %v3422_v43, 3  ;;  %v3421_v15 = vsel %vm1206_vm12, %v3397_v16, 0  ;;  %2656 = vrot.lane.b32.xlu0 %v7002_v5, %s5377_s11  ;;  %v2776_v48 = vsel %vm1171_vm10, %v5191_v52, %v7570_v33  ;;  %v2774_v21 = vsel %vm1171_vm10, %v5192_v57, %v7576_v55 }
 0x2ff   : >> { %v3458_v9 = vrot.slane %v3421_v15, 3  ;;  %v1862_v3 = vpop.permute.xlu1 %1861  ;;  %v3052_v45 = vsel %vm2977_vm1, %v3044_v41, %v3051_v28 }
 0x300   : >> { %v2094_v6 = vsel %vm1274_vm0, %v2062_v12, %v1862_v3  ;;  %v1860_v58 = vpop.permute.xlu0 %1859 }
 0x301   : >> { %v2136_v14 = vrot.slane %v2094_v6, 1  ;;  %v2092_v5 = vsel %vm1274_vm0, %v2060_v50, %v1860_v58  ;;  %2702 = vrot.lane.b32.xlu1 %v7307_v46, %s5378_s26  ;;  %v3460_v10 = vsel %vm3445_vm2, %v3458_v9, %v3459_v42  ;;  %v8418_v46 = vld [vmem:[#allocation78_spill] sm:$0xff]  ;;  %v8421_v50 = vld [vmem:[#allocation31_spill] sm:$0xff] }
 0x302   : >> { %v2135_v60 = vrot.slane %v2092_v5, 1  ;;  %2700 = vrot.lane.b32.xlu0 %v7335_v56, %s5378_s26  ;;  %3935 = vmatprep.mubr.bf16.mxu1 %v3460_v10  ;;  %v1267_v34 = vsel %vm1257_vm15, %v1250_v22, %v8418_v46  ;;  %v8419_v56 = vld [vmem:[#allocation85_spill] sm:$0xff]  ;;  %v8422_v6 = vld [vmem:[#allocation14_spill] sm:$0xff]  ;;  %v8424_v5 = vld [vmem:[#allocation95_spill] sm:$0xff] }
 0x303   : >> { %3936 = vmatmul.mubr.bf16.gmra.mrb[16].mxu1 %v3052_v45  ;;  %v2456_v62 = vpop.permute.xlu1 %2455  ;;  %v1288_v13 = vsel %vm1274_vm0, %v1267_v34, %v8419_v56  ;;  %v1184_v58 = vsel %vm1171_vm10, %v8422_v6, %v8421_v50  ;;  %v8425_v10 = vld [vmem:[#allocation22_spill] sm:$0xff]  ;;  %v8426_v45 = vld [vmem:[#allocation107_spill] sm:$0xff]  ;;  %v8428_v56 = vld [vmem:[#allocation108_spill] sm:$0xff] }
 0x304   : >> { %v2454_v63 = vpop.permute.xlu0 %2453  ;;  %v2137_v40 = vsel %vm1108_vm9, %v2135_v60, %v2136_v14  ;;  %v2808_v4 = vsel %vm1189_vm11, %v2776_v48, %v2456_v62  ;;  %v1904_v14 = vsel %vm1171_vm10, %v5193_v20, %v8423_v30  ;;  %v1902_v17 = vsel %vm1171_vm10, %v8425_v10, %v8424_v5  ;;  %v8433_v20 = vld [vmem:[#allocation52_spill] sm:$0xff] }
 0x305   : >> { %3838 = vmatprep.mubr.bf16.mxu0 %v2137_v40  ;;  %2751 = vrot.lane.b32.xlu1 %v2719_v24, %s5379_s14  ;;  %v1938_v61 = vsel %vm1189_vm11, %v1904_v14, %v8426_v45  ;;  %v8434_v45 = vld [vmem:[#allocation60_spill] sm:$0xff] }
 0x306   : >> { %2749 = vrot.lane.b32.xlu0 %v2720_v1, %s5379_s14  ;;  %3839 = vmatmul.mubr.bf16.gmra.mrb[16].mxu0 %v1288_v13  ;;  %v1936_v13 = vsel %vm1189_vm11, %v1902_v17, %v8428_v56  ;;  %v8436_v56 = vld [vmem:[#allocation76_spill] sm:$0xff] }
 0x307   : >> { %v2511_v47 = vpop.permute.xlu1 %2510 }
 0x308   : >> { %v2509_v25 = vpop.permute.xlu0 %2508  ;;  %v2840_v0 = vsel %vm1206_vm12, %v2808_v4, %v2511_v47  ;;  %v8429_v47 = vld [vmem:[#allocation121_spill] sm:$0xff] }
 0x309   : >> { %1763 = vrot.lane.b32.xlu1 %v8375_v8, %s5377_s11  ;;  %v5163_v8 = vld [vmem:[%s5781_s13 + $0xa4] ss:$0 sps:$4 sm:$0x77]  }
 0x30a   : >> { %1761 = vrot.lane.b32.xlu0 %v8376_v37, %s5377_s11 }
 0x30b   : >> { %v2566_v19 = vpop.permute.xlu1 %2565 }
 0x30c   : >> { %v2564_v29 = vpop.permute.xlu0 %2563  ;;  %v2872_v31 = vsel %vm1223_vm13, %v2840_v0, %v2566_v19 }
 0x30d   : >> { %3274 = vrot.lane.b32.xlu1 %v7226_v7, %s5373_s28 }
 0x30e   : >> { %3272 = vrot.lane.b32.xlu0 %v7231_v36, %s5373_s28  ;;  %v8420_v36 = vld [vmem:[#allocation40_spill] sm:$0xff]  ;;  %s7747_s28 = scalar_lea.vmem %s5647_s24, %s4695_s6 [#allocation10] }
 0x30f   : >> { %v2651_v26 = vpop.permute.xlu1 %2650 }
 0x310   : >> { %v2649_v53 = vpop.permute.xlu0 %2648  ;;  %v2904_v43 = vsel %vm1240_vm14, %v2872_v31, %v2651_v26 }
 0x311   : >> { %1818 = vrot.lane.b32.xlu1 %v1787_v44, %s5378_s26 }
 0x312   : >> { %1816 = vrot.lane.b32.xlu0 %v7259_v2, %s5378_s26 }
 0x313   : >> { %v2695_v37 = vpop.permute.xlu1 %2694 }
 0x314   : >> { %v2693_v18 = vpop.permute.xlu0 %2692  ;;  %v2936_v54 = vsel %vm1257_vm15, %v2904_v43, %v2695_v37  ;;  %v8431_v37 = vld [vmem:[#allocation137_spill] sm:$0xff] }
 0x315   : >> { %3330 = vrot.lane.b32.xlu1 %v5163_v8, %s5374_s16 }
 0x316   : >> { %3328 = vrot.lane.b32.xlu0 %v5164_v49, %s5374_s16 }
 0x317   : >> { %v2744_v7 = vpop.permute.xlu1 %2743 }
 0x318   : >> { %v2742_v59 = vpop.permute.xlu0 %2741  ;;  %v2968_v42 = vsel %vm1274_vm0, %v2936_v54, %v2744_v7  ;;  %v8432_v7 = vld [vmem:[#allocation138_spill] sm:$0xff] }
 0x319   : >> { %1873 = vrot.lane.b32.xlu1 %v8339_v23, %s5379_s14  ;;  %v2806_v23 = vsel %vm1189_vm11, %v2774_v21, %v2454_v63  ;;  %v3060_v3 = vshrl.u32 %v2968_v42, 16  ;;  %v3063_v24 = vshll.u32 %v2968_v42, 16  ;;  %v8427_v63 = vld [vmem:[#allocation44_spill] sm:$0xff] }
 0x31a   : >> { %1871 = vrot.lane.b32.xlu0 %v8420_v36, %s5379_s14  ;;  %v2838_v51 = vsel %vm1206_vm12, %v2806_v23, %v2509_v25  ;;  %v1201_v40 = vsel %vm1189_vm11, %v1184_v58, %v8427_v63  ;;  %v1970_v25 = vsel %vm1206_vm12, %v1938_v61, %v8429_v47  ;;  %v5194_v36 = vld [vmem:[%s5781_s13 + $0x44] ss:$0 sps:$4 sm:$0x77]   ;;  %v5195_v23 = vld [vmem:[%s5781_s13 + $0x3c] sm:$0xf8]   ;;  %s8021_s14 = smov (%p695_p6), 0  }
 0x31b   : >> { %v1756_v2 = vpop.permute.xlu1 %1755  ;;  %v2870_v16 = vsel %vm1223_vm13, %v2838_v51, %v2564_v29  ;;  %v7697_v22 = vrot.slane %v3060_v3, 1  ;;  %v7699_v62 = vrot.slane %v3063_v24, 2  ;;  %v8430_v29 = vld [vmem:[#allocation122_spill] sm:$0xff]  ;;  %v3970_v51 = vld [vmem:[%s7712_s7] sm:$0xff]  ;;  %v1218_v30 = vsel %vm1206_vm12, %v1201_v40, %v8433_v20 }
 0x31c   : >> { %v7667_v35 = vpop.permute.xlu0 %1753  ;;  %v2902_v55 = vsel %vm1240_vm14, %v2870_v16, %v2649_v53  ;;  %v1968_v44 = vsel %vm1206_vm12, %v1936_v13, %v8430_v29  ;;  %v1235_v61 = vsel %vm1223_vm13, %v1218_v30, %v8434_v45  ;;  %v8440_v45 = vld [vmem:[#allocation48_spill] sm:$0xff] }
 0x31d   : >> { %v2934_v15 = vsel %vm1257_vm15, %v2902_v55, %v2693_v18  ;;  %v2002_v18 = vsel %vm1223_vm13, %v1970_v25, %v8431_v37  ;;  %v3066_v21 = vor.u32 %v7699_v62, %v7697_v22  ;;  %v8435_v62 = vld [vmem:[#allocation68_spill] sm:$0xff] }
 0x31e   : >> { %v2966_v12 = vsel %vm1274_vm0, %v2934_v15, %v2742_v59  ;;  %v2000_v59 = vsel %vm1223_vm13, %v1968_v44, %v8432_v7  ;;  %v2034_v0 = vsel %vm1240_vm14, %v2002_v18, %v1756_v2 }
 0x31f   : >> { %v3267_v33 = vpop.permute.xlu1 %3266  ;;  %v3053_v38 = vshrl.u32 %v2966_v12, 16  ;;  %v3056_v11 = vshll.u32 %v2966_v12, 16  ;;  %v2032_v2 = vsel %vm1240_vm14, %v2000_v59, %v7667_v35 }
 0x320   : >> { %v3265_v28 = vpop.permute.xlu0 %3264  ;;  %v3367_v52 = vsel %vm1171_vm10, %v5194_v36, %v3267_v33 }
 0x321   : >> { %v3055_v26 = vrot.slane %v3053_v38, 1  ;;  %v3058_v53 = vrot.slane %v3056_v11, 2  ;;  %v3364_v31 = vsel %vm1171_vm10, %v5195_v23, %v3265_v28  ;;  %v7736_v28 = vld [vmem:[%s8118_s2] ss:$0 sm:$0xff]  ;;  %v3971_v38 = vld [vmem:[%s7712_s7 + $0x8] sm:$0xff] }
 0x323   : >> { %v1811_v9 = vpop.permute.xlu1 %1810  ;;  %v3059_v12 = vor.u32 %v3058_v53, %v3055_v26 }
 0x324   : >> { %v1809_v32 = vpop.permute.xlu0 %1808  ;;  %v2066_v11 = vsel %vm1257_vm15, %v2034_v0, %v1811_v9  ;;  %v5197_v0 = vld [vmem:[%s5781_s13 + $0x6c] sm:$0xfe]  }
 0x325   : >> { %v2064_v35 = vsel %vm1257_vm15, %v2032_v2, %v1809_v32  ;;  %v3067_v63 = vsel %vm2977_vm1, %v3059_v12, %v3066_v21 }
 0x326   : >> { %v4778_v41 = vpop.f32.mrb[0].mxu1 }
 0x327   : >> { %v4779_v39 = vpop.f32.mrb[1].mxu1  ;;  %v7693_v60 = vpop.permute.xlu1 %2243 }
 0x328   : >> { %v4780_v1 = vadd.f32 %v4779_v39, %v4778_v41  ;;  %v4781_v46 = vpop.f32.mrb[2].mxu1  ;;  %v7701_v34 = vpop.permute.xlu0 %2241 }
 0x329   : >> { %v4714_v27 = vpop.f32.mrb[0].mxu0  ;;  %v4782_v19 = vpop.f32.mrb[3].mxu1  ;;  %v2778_v23 = vsel %vm1171_vm10, %v5197_v0, %v7701_v34 }
 0x32a   : >> { %v4783_v8 = vadd.f32 %v4782_v19, %v4781_v46  ;;  %v4715_v49 = vpop.f32.mrb[1].mxu0  ;;  %v8437_v19 = vld [vmem:[#allocation84_spill] sm:$0xff] }
 0x32b   : >> { %v4716_v48 = vadd.f32 %v4715_v49, %v4714_v27  ;;  %v4717_v4 = vpop.f32.mrb[2].mxu0  ;;  %v3323_v57 = vpop.permute.xlu1 %3322 }
 0x32c   : >> { %v3403_v43 = vsel %vm1189_vm11, %v3367_v52, %v3323_v57  ;;  %v3321_v16 = vpop.permute.xlu0 %3320  ;;  %v4718_v54 = vpop.f32.mrb[3].mxu0  ;;  %v5196_v52 = vld [vmem:[%s5781_s13 + $0x74] ss:$0 sps:$4 sm:$0x33]  }
 0x32d   : >> { %v3906_v55 = vadd.f32 %v4780_v1, %v4716_v48  ;;  %v3424_v33 = vsel %vm1206_vm12, %v3403_v43, 0  ;;  %v3401_v42 = vsel %vm1189_vm11, %v3364_v31, %v3321_v16  ;;  %v4719_v15 = vadd.f32 %v4718_v54, %v4717_v4 }
 0x32e   : >> { %v3462_v3 = vrot.slane %v3424_v33, 3  ;;  %v3423_v24 = vsel %vm1206_vm12, %v3401_v42, 0  ;;  %v1252_v1 = vsel %vm1240_vm14, %v1235_v61, %v8435_v62  ;;  %v2780_v48 = vsel %vm1171_vm10, %v5196_v52, %v7693_v60 }
 0x32f   : >> { %v3986_v41 = vadd.f32 %v3970_v51, %v3906_v55  ;;  %v3461_v50 = vrot.slane %v3423_v24, 3  ;;  %v3909_v6 = vadd.f32 %v4783_v8, %v4719_v15  ;;  %v1866_v58 = vpop.permute.xlu1 %1865  ;;  %v1269_v13 = vsel %vm1257_vm15, %v1252_v1, %v8436_v56  ;;  %v8443_v56 = vld [vmem:[#allocation24_spill] sm:$0xff] }
 0x330   : >> { %v2098_v14 = vsel %vm1274_vm0, %v2066_v11, %v1866_v58  ;;  %v1864_v5 = vpop.permute.xlu0 %1863  ;;  %v1291_v29 = vsel %vm1274_vm0, %v1269_v13, %v8437_v19 }
 0x331   : >> { %v4009_v10 = vadd.f32 %v7736_v28, %v3986_v41  ;;  %v3987_v17 = vadd.f32 %v3971_v38, %v3909_v6  ;;  %v2139_v9 = vrot.slane %v2098_v14, 1  ;;  %v2096_v39 = vsel %vm1274_vm0, %v2064_v35, %v1864_v5  ;;  %v8438_v35 = vld [vmem:[#allocation37_spill] sm:$0xff]  ;;  %v8439_v14 = vld [vmem:[#allocation16_spill] sm:$0xff] }
 0x332   : >> { %v2138_v22 = vrot.slane %v2096_v39, 1  ;;  %v3463_v32 = vsel %vm3445_vm2, %v3461_v50, %v3462_v3  ;;  %v1186_v5 = vsel %vm1171_vm10, %v8439_v14, %v8438_v35 }
 0x333   : >> { %4026 = vst [vmem:[%s7747_s28] sm:$0xff] %v4009_v10  ;;  %v4010_v46 = vadd.f32 %v7736_v28, %v3987_v17  ;;  %3943 = vmatprep.mubr.bf16.mxu1 %v3463_v32  ;;  %v2460_v40 = vpop.permute.xlu1 %2459  ;;  %v1203_v61 = vsel %vm1189_vm11, %v1186_v5, %v8440_v45  ;;  %v8441_v32 = vld [vmem:[#allocation96_spill] sm:$0xff] }
 0x334   : >> { %3944 = vmatmul.mubr.bf16.gmra.mrb[20].mxu1 %v3067_v63  ;;  %v2458_v47 = vpop.permute.xlu0 %2457  ;;  %v2140_v25 = vsel %vm1108_vm9, %v2138_v22, %v2139_v9  ;;  %v2812_v57 = vsel %vm1189_vm11, %v2780_v48, %v2460_v40  ;;  %v5198_v22 = vld [vmem:[%s5781_s13 + $0x80] ss:$0 sps:$4 sm:$0x11]   ;;  %v8442_v40 = vld [vmem:[#allocation97_spill] sm:$0xff]  ;;  %v8448_v48 = vld [vmem:[#allocation139_spill] sm:$0xff] }
 0x335   : >> { %4027 = vst [vmem:[%s7747_s28 + $0x8] sm:$0xff] %v4010_v46  ;;  %v7764_v27 = vadd.f32 %v4010_v46, %v4009_v10  ;;  %3846 = vmatprep.mubr.bf16.mxu0 %v2140_v25  ;;  %v2810_v51 = vsel %vm1189_vm11, %v2778_v23, %v2458_v47  ;;  %v1909_v62 = vsel %vm1171_vm10, %v5198_v22, %v8441_v32  ;;  %v8444_v47 = vld [vmem:[#allocation109_spill] sm:$0xff] }
 0x336   : >> { %3847 = vmatmul.mubr.bf16.gmra.mrb[20].mxu0 %v1291_v29  ;;  %v1907_v13 = vsel %vm1171_vm10, %v8443_v56, %v8442_v40  ;;  %v1942_v25 = vsel %vm1189_vm11, %v1909_v62, %v8444_v47  ;;  %v8452_v56 = vld [vmem:[#allocation71_spill] sm:$0xff]  ;;  %v8453_v47 = vld [vmem:[#allocation80_spill] sm:$0xff] }
 0x337   : >> { %v2515_v44 = vpop.permute.xlu1 %2514 }
 0x338   : >> { %v2513_v26 = vpop.permute.xlu0 %2512  ;;  %v2844_v31 = vsel %vm1206_vm12, %v2812_v57, %v2515_v44  ;;  %v3972_v44 = vld [vmem:[%s7712_s7 + $0x10] sm:$0xff] }
 0x339   : >> { %v2842_v16 = vsel %vm1206_vm12, %v2810_v51, %v2513_v26  ;;  %v8449_v51 = vld [vmem:[#allocation140_spill] sm:$0xff] }
 0x33b   : >> { %v2570_v53 = vpop.permute.xlu1 %2569 }
 0x33c   : >> { %v2568_v8 = vpop.permute.xlu0 %2567  ;;  %v2876_v43 = vsel %vm1223_vm13, %v2844_v31, %v2570_v53  ;;  %v3973_v31 = vld [vmem:[%s7712_s7 + $0x18] sm:$0xff] }
 0x33d   : >> { %v2874_v55 = vsel %vm1223_vm13, %v2842_v16, %v2568_v8  ;;  %v8445_v8 = vld [vmem:[#allocation110_spill] sm:$0xff] }
 0x33e   : >> { %v5199_v16 = vld [vmem:[%s5781_s13 + $0x50] ss:$0 sps:$4 sm:$0x77]  }
 0x33f   : >> { %v2655_v49 = vpop.permute.xlu1 %2654 }
 0x340   : >> { %v2653_v37 = vpop.permute.xlu0 %2652  ;;  %v2908_v60 = vsel %vm1240_vm14, %v2876_v43, %v2655_v49  ;;  %v1940_v49 = vsel %vm1189_vm11, %v1907_v13, %v8445_v8 }
 0x341   : >> { %v2906_v15 = vsel %vm1240_vm14, %v2874_v55, %v2653_v37  ;;  %v8446_v37 = vld [vmem:[#allocation123_spill] sm:$0xff] }
 0x343   : >> { %v2699_v18 = vpop.permute.xlu1 %2698 }
 0x344   : >> { %v2697_v7 = vpop.permute.xlu0 %2696  ;;  %v2940_v33 = vsel %vm1257_vm15, %v2908_v60, %v2699_v18  ;;  %v1974_v18 = vsel %vm1206_vm12, %v1942_v25, %v8446_v37 }
 0x345   : >> { %v2938_v12 = vsel %vm1257_vm15, %v2906_v15, %v2697_v7  ;;  %v2006_v57 = vsel %vm1223_vm13, %v1974_v18, %v8448_v48  ;;  %v5201_v48 = vld [vmem:[%s5781_s13 + $0x80] ss:$0 sps:$4 sm:$0x33]  }
 0x347   : >> { %v2748_v59 = vpop.permute.xlu1 %2747 }
 0x348   : >> { %v2746_v36 = vpop.permute.xlu0 %2745  ;;  %v2972_v34 = vsel %vm1274_vm0, %v2940_v33, %v2748_v59 }
 0x349   : >> { %v2970_v3 = vsel %vm1274_vm0, %v2938_v12, %v2746_v36  ;;  %v3075_v11 = vshrl.u32 %v2972_v34, 16  ;;  %v3078_v41 = vshll.u32 %v2972_v34, 16  ;;  %v8447_v36 = vld [vmem:[#allocation124_spill] sm:$0xff] }
 0x34a   : >> { %v3068_v10 = vshrl.u32 %v2970_v3, 16  ;;  %v3071_v17 = vshll.u32 %v2970_v3, 16  ;;  %v1972_v52 = vsel %vm1206_vm12, %v1940_v49, %v8447_v36 }
 0x34b   : >> { %v7771_v4 = vpop.permute.xlu1 %1759  ;;  %v3077_v19 = vrot.slane %v3075_v11, 1  ;;  %v3080_v29 = vrot.slane %v3078_v41, 2  ;;  %v2004_v43 = vsel %vm1223_vm13, %v1972_v52, %v8449_v51  ;;  %v5202_v51 = vld [vmem:[%s5781_s13 + $0x78] sm:$0xfe]  }
 0x34c   : >> { %v7774_v21 = vpop.permute.xlu0 %1757  ;;  %v3070_v0 = vrot.slane %v3068_v10, 1  ;;  %v3073_v23 = vrot.slane %v3071_v17, 2  ;;  %v2038_v12 = vsel %vm1240_vm14, %v2006_v57, %v7771_v4 }
 0x34d   : >> { %v3081_v34 = vor.u32 %v3080_v29, %v3077_v19 }
 0x34f   : >> { %v3271_v54 = vpop.permute.xlu1 %3270 }
 0x350   : >> { %v3269_v42 = vpop.permute.xlu0 %3268  ;;  %v3373_v60 = vsel %vm1171_vm10, %v5199_v16, %v3271_v54 }
 0x352   : >> { %v4784_v2 = vpop.f32.mrb[4].mxu1 }
 0x353   : >> { %v4785_v24 = vpop.f32.mrb[5].mxu1  ;;  %v1815_v38 = vpop.permute.xlu1 %1814 }
 0x354   : >> { %v4786_v50 = vadd.f32 %v4785_v24, %v4784_v2  ;;  %v4787_v6 = vpop.f32.mrb[6].mxu1  ;;  %v1813_v58 = vpop.permute.xlu0 %1812  ;;  %v5200_v2 = vld [vmem:[%s5781_s13 + $0x48] sm:$0xf8]  }
 0x355   : >> { %v4720_v20 = vpop.f32.mrb[4].mxu0  ;;  %v4788_v30 = vpop.f32.mrb[7].mxu1  ;;  %v3370_v3 = vsel %vm1171_vm10, %v5200_v2, %v3269_v42  ;;  %v2070_v42 = vsel %vm1257_vm15, %v2038_v12, %v1815_v38 }
 0x356   : >> { %v4789_v9 = vadd.f32 %v4788_v30, %v4787_v6  ;;  %v4721_v39 = vpop.f32.mrb[5].mxu0  ;;  %v2036_v30 = vsel %vm1240_vm14, %v2004_v43, %v7774_v21 }
 0x357   : >> { %v4722_v1 = vadd.f32 %v4721_v39, %v4720_v20  ;;  %v4723_v46 = vpop.f32.mrb[6].mxu0  ;;  %v7798_v63 = vpop.permute.xlu1 %2247  ;;  %v3074_v20 = vor.u32 %v3073_v23, %v3070_v0  ;;  %v2068_v45 = vsel %vm1257_vm15, %v2036_v30, %v1813_v58 }
 0x358   : >> { %v7806_v26 = vpop.permute.xlu0 %2245  ;;  %v4724_v53 = vpop.f32.mrb[7].mxu0  ;;  %v2784_v57 = vsel %vm1171_vm10, %v5201_v48, %v7798_v63 }
 0x359   : >> { %v3914_v7 = vadd.f32 %v4786_v50, %v4722_v1  ;;  %v4725_v59 = vadd.f32 %v4724_v53, %v4723_v46  ;;  %v8451_v1 = vld [vmem:[#allocation64_spill] sm:$0xff]  ;;  %v2782_v43 = vsel %vm1171_vm10, %v5202_v51, %v7806_v26 }
 0x35b   : >> { %v3988_v55 = vadd.f32 %v3972_v44, %v3914_v7  ;;  %v3917_v33 = vadd.f32 %v4789_v9, %v4725_v59  ;;  %v3327_v15 = vpop.permute.xlu1 %3326  ;;  %v8450_v9 = vld [vmem:[#allocation55_spill] sm:$0xff] }
 0x35c   : >> { %v3407_v24 = vsel %vm1189_vm11, %v3373_v60, %v3327_v15  ;;  %v3325_v11 = vpop.permute.xlu0 %3324  ;;  %v1220_v39 = vsel %vm1206_vm12, %v1203_v61, %v8450_v9  ;;  %v3082_v61 = vsel %vm2977_vm1, %v3074_v20, %v3081_v34  ;;  %v8454_v44 = vld [vmem:[#allocation87_spill] sm:$0xff]  ;;  %v5203_v20 = vld [vmem:[%s5781_s13 + $0x88] sm:$0xf]  ;;  %v8455_v9 = vld [vmem:[#allocation36_spill] sm:$0xff] }
 0x35d   : >> { %v4011_v41 = vadd.f32 %v7736_v28, %v3988_v55  ;;  %v3989_v50 = vadd.f32 %v3973_v31, %v3917_v33  ;;  %v3426_v6 = vsel %vm1206_vm12, %v3407_v24, 0  ;;  %v3405_v54 = vsel %vm1189_vm11, %v3370_v3, %v3325_v11  ;;  %v752_v3 = vld [vmem:[%s5781_s13 + $0x84] sm:$0xe] }
 0x35e   : >> { %v3465_v35 = vrot.slane %v3426_v6, 3  ;;  %v3425_v4 = vsel %vm1206_vm12, %v3405_v54, 0  ;;  %v1237_v46 = vsel %vm1223_vm13, %v1220_v39, %v8451_v1  ;;  %v4540_v30 = vcombine.low %v752_v3, %v5203_v20  ;;  %v8456_v39 = vld [vmem:[#allocation18_spill] sm:$0xff] }
 0x35f   : >> { %4028 = vst [vmem:[%s7747_s28 + $0x10] sm:$0xff] %v4011_v41  ;;  %v4044_v14 = vadd.f32 %v7764_v27, %v4011_v41  ;;  %v4012_v5 = vadd.f32 %v7736_v28, %v3989_v50  ;;  %v3464_v10 = vrot.slane %v3425_v4, 3  ;;  %v1870_v17 = vpop.permute.xlu1 %1869  ;;  %v1254_v58 = vsel %vm1240_vm14, %v1237_v46, %v8452_v56  ;;  %v5204_v46 = vld [vmem:[%s5781_s13 + $0x8c] ss:$0 sps:$4 sm:$0x11]  }
 0x360   : >> { %v2102_v22 = vsel %vm1274_vm0, %v2070_v42, %v1870_v17  ;;  %v1868_v21 = vpop.permute.xlu0 %1867  ;;  %v1271_v25 = vsel %vm1257_vm15, %v1254_v58, %v8453_v47  ;;  %v8459_v47 = vld [vmem:[#allocation99_spill] sm:$0xff] }
 0x361   : >> { %4029 = vst [vmem:[%s7747_s28 + $0x18] sm:$0xff] %v4012_v5  ;;  %v7841_v32 = vadd.f32 %v4044_v14, %v4012_v5  ;;  %v2142_v62 = vrot.slane %v2102_v22, 1  ;;  %v2100_v38 = vsel %vm1274_vm0, %v2068_v45, %v1868_v21  ;;  %v3466_v27 = vsel %vm3445_vm2, %v3464_v10, %v3465_v35 }
 0x362   : >> { %v2141_v40 = vrot.slane %v2100_v38, 1  ;;  %3951 = vmatprep.mubr.bf16.mxu1 %v3466_v27  ;;  %v1294_v53 = vsel %vm1274_vm0, %v1271_v25, %v8454_v44  ;;  %v1188_v45 = vsel %vm1171_vm10, %v8456_v39, %v8455_v9  ;;  %v8457_v27 = vld [vmem:[#allocation47_spill] sm:$0xff]  ;;  %v1912_v25 = vsel %vm1171_vm10, %v4540_v30, %v8459_v47 }
 0x363   : >> { %3952 = vmatmul.mubr.bf16.gmra.mrb[24].mxu1 %v3082_v61  ;;  %v2464_v13 = vpop.permute.xlu1 %2463  ;;  %v1205_v1 = vsel %vm1189_vm11, %v1188_v45, %v8457_v27  ;;  %v8466_v45 = vld [vmem:[#allocation54_spill] sm:$0xff]  ;;  %v8469_v47 = vld [vmem:[#allocation79_spill] sm:$0xff] }
 0x364   : >> { %v2462_v19 = vpop.permute.xlu0 %2461  ;;  %v2143_v29 = vsel %vm1108_vm9, %v2141_v40, %v2142_v62  ;;  %v2816_v23 = vsel %vm1189_vm11, %v2784_v57, %v2464_v13  ;;  %v8458_v40 = vld [vmem:[#allocation98_spill] sm:$0xff] }
 0x365   : >> { %3854 = vmatprep.mubr.bf16.mxu0 %v2143_v29  ;;  %v2814_v60 = vsel %vm1189_vm11, %v2782_v43, %v2462_v19  ;;  %v1914_v61 = vsel %vm1171_vm10, %v5204_v46, %v8458_v40  ;;  %v8460_v19 = vld [vmem:[#allocation111_spill] sm:$0xff]  ;;  %v8463_v57 = vld [vmem:[#allocation126_spill] sm:$0xff] }
 0x366   : >> { %3855 = vmatmul.mubr.bf16.gmra.mrb[24].mxu0 %v1294_v53  ;;  %v1946_v29 = vsel %vm1189_vm11, %v1914_v61, %v8460_v19  ;;  %v8467_v40 = vld [vmem:[#allocation63_spill] sm:$0xff] }
 0x367   : >> { %v2519_v8 = vpop.permute.xlu1 %2518 }
 0x368   : >> { %v2517_v49 = vpop.permute.xlu0 %2516  ;;  %v2848_v16 = vsel %vm1206_vm12, %v2816_v23, %v2519_v8  ;;  %v3974_v8 = vld [vmem:[%s7712_s7 + $0x20] sm:$0xff] }
 0x369   : >> { %v2846_v33 = vsel %vm1206_vm12, %v2814_v60, %v2517_v49  ;;  %v8464_v23 = vld [vmem:[#allocation141_spill] sm:$0xff]  ;;  %v8465_v60 = vld [vmem:[#allocation142_spill] sm:$0xff] }
 0x36b   : >> { %v2574_v37 = vpop.permute.xlu1 %2573 }
 0x36c   : >> { %v2572_v18 = vpop.permute.xlu0 %2571  ;;  %v2880_v55 = vsel %vm1223_vm13, %v2848_v16, %v2574_v37  ;;  %v3975_v16 = vld [vmem:[%s7712_s7 + $0x28] sm:$0xff] }
 0x36d   : >> { %v2878_v34 = vsel %vm1223_vm13, %v2846_v33, %v2572_v18  ;;  %v8461_v18 = vld [vmem:[#allocation112_spill] sm:$0xff] }
 0x36e   : >> { %v5205_v33 = vld [vmem:[%s5781_s13 + $0x5c] ss:$0 sps:$4 sm:$0x77]  }
 0x36f   : >> { %v2659_v7 = vpop.permute.xlu1 %2658 }
 0x370   : >> { %v2657_v59 = vpop.permute.xlu0 %2656  ;;  %v2912_v15 = vsel %vm1240_vm14, %v2880_v55, %v2659_v7  ;;  %v1944_v7 = vsel %vm1189_vm11, %v1912_v25, %v8461_v18 }
 0x371   : >> { %v2910_v26 = vsel %vm1240_vm14, %v2878_v34, %v2657_v59  ;;  %v8462_v59 = vld [vmem:[#allocation125_spill] sm:$0xff] }
 0x373   : >> { %v2703_v36 = vpop.permute.xlu1 %2702 }
 0x374   : >> { %v2701_v52 = vpop.permute.xlu0 %2700  ;;  %v2944_v12 = vsel %vm1257_vm15, %v2912_v15, %v2703_v36  ;;  %v1978_v36 = vsel %vm1206_vm12, %v1946_v29, %v8462_v59  ;;  %v8470_v29 = vld [vmem:[#allocation86_spill] sm:$0xff] }
 0x375   : >> { %v2942_v11 = vsel %vm1257_vm15, %v2910_v26, %v2701_v52 }
 0x377   : >> { %v2752_v0 = vpop.permute.xlu1 %2751 }
 0x378   : >> { %v2750_v31 = vpop.permute.xlu0 %2749  ;;  %v2976_v24 = vsel %vm1274_vm0, %v2944_v12, %v2752_v0  ;;  %v1976_v0 = vsel %vm1206_vm12, %v1944_v7, %v8463_v57  ;;  %v3976_v57 = vld [vmem:[%s7712_s7 + $0x30] sm:$0xff] }
 0x379   : >> { %v2974_v50 = vsel %vm1274_vm0, %v2942_v11, %v2750_v31  ;;  %v3090_v35 = vshrl.u32 %v2976_v24, 16  ;;  %v3093_v4 = vshll.u32 %v2976_v24, 16  ;;  %v2010_v31 = vsel %vm1223_vm13, %v1978_v36, %v8464_v23  ;;  %v5206_v11 = vld [vmem:[%s5781_s13 + $0x54] sm:$0xf8]  }
 0x37a   : >> { %v3083_v22 = vshrl.u32 %v2974_v50, 16  ;;  %v3086_v21 = vshll.u32 %v2974_v50, 16  ;;  %v2008_v55 = vsel %vm1223_vm13, %v1976_v0, %v8465_v60 }
 0x37b   : >> { %v1764_v63 = vpop.permute.xlu1 %1763  ;;  %v3092_v44 = vrot.slane %v3090_v35, 1  ;;  %v3095_v53 = vrot.slane %v3093_v4, 2 }
 0x37c   : >> { %v7869_v2 = vpop.permute.xlu0 %1761  ;;  %v3085_v51 = vrot.slane %v3083_v22, 1  ;;  %v3088_v43 = vrot.slane %v3086_v21, 2  ;;  %v2042_v24 = vsel %vm1240_vm14, %v2010_v31, %v1764_v63  ;;  %v1222_v22 = vsel %vm1206_vm12, %v1205_v1, %v8466_v45  ;;  %v8468_v1 = vld [vmem:[#allocation70_spill] sm:$0xff] }
 0x37d   : >> { %v3096_v26 = vor.u32 %v3095_v53, %v3092_v44  ;;  %v1239_v61 = vsel %vm1223_vm13, %v1222_v22, %v8467_v40 }
 0x37e   : >> { %v4790_v41 = vpop.f32.mrb[8].mxu1  ;;  %v3089_v4 = vor.u32 %v3088_v43, %v3085_v51  ;;  %v3977_v51 = vld [vmem:[%s7712_s7 + $0x38] sm:$0xff] }
 0x37f   : >> { %v4791_v6 = vpop.f32.mrb[9].mxu1  ;;  %v3275_v54 = vpop.permute.xlu1 %3274 }
 0x380   : >> { %v4792_v42 = vadd.f32 %v4791_v6, %v4790_v41  ;;  %v4793_v14 = vpop.f32.mrb[10].mxu1  ;;  %v3273_v5 = vpop.permute.xlu0 %3272  ;;  %v3379_v15 = vsel %vm1171_vm10, %v5205_v33, %v3275_v54 }
 0x381   : >> { %v4726_v10 = vpop.f32.mrb[8].mxu0  ;;  %v4794_v17 = vpop.f32.mrb[11].mxu1  ;;  %v3376_v41 = vsel %vm1171_vm10, %v5206_v11, %v3273_v5 }
 0x382   : >> { %v4795_v62 = vadd.f32 %v4794_v17, %v4793_v14  ;;  %v4727_v38 = vpop.f32.mrb[9].mxu0 }
 0x383   : >> { %v4728_v56 = vadd.f32 %v4727_v38, %v4726_v10  ;;  %v4729_v58 = vpop.f32.mrb[10].mxu0  ;;  %v1819_v13 = vpop.permute.xlu1 %1818 }
 0x384   : >> { %v1817_v49 = vpop.permute.xlu0 %1816  ;;  %v4730_v37 = vpop.f32.mrb[11].mxu0  ;;  %v2074_v10 = vsel %vm1257_vm15, %v2042_v24, %v1819_v13  ;;  %v1256_v13 = vsel %vm1240_vm14, %v1239_v61, %v8468_v1 }
 0x385   : >> { %v3922_v52 = vadd.f32 %v4792_v42, %v4728_v56  ;;  %v4731_v48 = vadd.f32 %v4730_v37, %v4729_v58  ;;  %v2040_v42 = vsel %vm1240_vm14, %v2008_v55, %v7869_v2  ;;  %v3097_v58 = vsel %vm2977_vm1, %v3089_v4, %v3096_v26 }
 0x386   : >> { %v2072_v21 = vsel %vm1257_vm15, %v2040_v42, %v1817_v49  ;;  %v1273_v25 = vsel %vm1257_vm15, %v1256_v13, %v8469_v47  ;;  %v3981_v47 = vld [vmem:[%s7712_s7 + $0x58] sm:$0xff] }
 0x387   : >> { %v3990_v34 = vadd.f32 %v3974_v8, %v3922_v52  ;;  %v3925_v12 = vadd.f32 %v4795_v62, %v4731_v48  ;;  %v3331_v3 = vpop.permute.xlu1 %3330  ;;  %v1297_v44 = vsel %vm1274_vm0, %v1273_v25, %v8470_v29 }
 0x388   : >> { %v3411_v50 = vsel %vm1189_vm11, %v3379_v15, %v3331_v3  ;;  %v3329_v6 = vpop.permute.xlu0 %3328 }
 0x389   : >> { %v4013_v20 = vadd.f32 %v7736_v28, %v3990_v34  ;;  %v3991_v30 = vadd.f32 %v3975_v16, %v3925_v12  ;;  %v3428_v35 = vsel %vm1206_vm12, %v3411_v50, 0  ;;  %v3409_v54 = vsel %vm1189_vm11, %v3376_v41, %v3329_v6 }
 0x38a   : >> { %v3468_v14 = vrot.slane %v3428_v35, 3  ;;  %v3427_v63 = vsel %vm1206_vm12, %v3409_v54, 0  ;;  %v3978_v35 = vld [vmem:[%s7712_s7 + $0x40] sm:$0xff] }
 0x38b   : >> { %4030 = vst [vmem:[%s7747_s28 + $0x20] sm:$0xff] %v4013_v20  ;;  %v4046_v5 = vadd.f32 %v7841_v32, %v4013_v20  ;;  %v4014_v17 = vadd.f32 %v7736_v28, %v3991_v30  ;;  %v3467_v9 = vrot.slane %v3427_v63, 3  ;;  %v1874_v39 = vpop.permute.xlu1 %1873 }
 0x38c   : >> { %v2106_v62 = vsel %vm1274_vm0, %v2074_v10, %v1874_v39  ;;  %v1872_v2 = vpop.permute.xlu0 %1871 }
 0x38d   : >> { %4031 = vst [vmem:[%s7747_s28 + $0x28] sm:$0xff] %v4014_v17  ;;  %v4047_v38 = vadd.f32 %v4046_v5, %v4014_v17  ;;  %v2145_v27 = vrot.slane %v2106_v62, 1  ;;  %v2104_v46 = vsel %vm1274_vm0, %v2072_v21, %v1872_v2  ;;  %v3469_v32 = vsel %vm3445_vm2, %v3467_v9, %v3468_v14  ;;  %v3979_v14 = vld [vmem:[%s7712_s7 + $0x48] sm:$0xff] }
 0x38e   : >> { %v2144_v56 = vrot.slane %v2104_v46, 1  ;;  %3959 = vmatprep.mubr.bf16.mxu1 %v3469_v32 }
 0x38f   : >> { %3960 = vmatmul.mubr.bf16.gmra.mrb[28].mxu1 %v3097_v58 }
 0x390   : >> { %v2146_v19 = vsel %vm1108_vm9, %v2144_v56, %v2145_v27  ;;  %v3980_v56 = vld [vmem:[%s7712_s7 + $0x50] sm:$0xff] }
 0x391   : >> { %3862 = vmatprep.mubr.bf16.mxu0 %v2146_v19 }
 0x392   : >> { %3863 = vmatmul.mubr.bf16.gmra.mrb[28].mxu0 %v1297_v44 }
 0x3aa   : >> { %v4796_v53 = vpop.f32.mrb[12].mxu1 }
 0x3ab   : >> { %v4797_v8 = vpop.f32.mrb[13].mxu1 }
 0x3ac   : >> { %v4798_v49 = vadd.f32 %v4797_v8, %v4796_v53  ;;  %v4799_v37 = vpop.f32.mrb[14].mxu1 }
 0x3ad   : >> { %v4732_v18 = vpop.f32.mrb[12].mxu0  ;;  %v4800_v7 = vpop.f32.mrb[15].mxu1 }
 0x3ae   : >> { %v4801_v59 = vadd.f32 %v4800_v7, %v4799_v37  ;;  %v4733_v36 = vpop.f32.mrb[13].mxu0 }
 0x3af   : >> { %v4734_v52 = vadd.f32 %v4733_v36, %v4732_v18  ;;  %v4735_v48 = vpop.f32.mrb[14].mxu0 }
 0x3b0   : >> { %v4736_v0 = vpop.f32.mrb[15].mxu0 }
 0x3b1   : >> { %v3930_v23 = vadd.f32 %v4798_v49, %v4734_v52  ;;  %v4737_v31 = vadd.f32 %v4736_v0, %v4735_v48 }
 0x3b3   : >> { %v3992_v43 = vadd.f32 %v3976_v57, %v3930_v23  ;;  %v3933_v16 = vadd.f32 %v4801_v59, %v4737_v31  ;;  %v3982_v31 = vld [vmem:[%s7712_s7 + $0x60] sm:$0xff] }
 0x3b5   : >> { %v4015_v60 = vadd.f32 %v7736_v28, %v3992_v43  ;;  %v3993_v55 = vadd.f32 %v3977_v51, %v3933_v16 }
 0x3b7   : >> { %4032 = vst [vmem:[%s7747_s28 + $0x30] sm:$0xff] %v4015_v60  ;;  %v4048_v33 = vadd.f32 %v4047_v38, %v4015_v60  ;;  %v4016_v15 = vadd.f32 %v7736_v28, %v3993_v55  ;;  %v3983_v60 = vld [vmem:[%s7712_s7 + $0x68] sm:$0xff] }
 0x3b9   : >> { %4033 = vst [vmem:[%s7747_s28 + $0x38] sm:$0xff] %v4016_v15  ;;  %v4049_v34 = vadd.f32 %v4048_v33, %v4016_v15 }
 0x3d6   : >> { %v4802_v12 = vpop.f32.mrb[16].mxu1 }
 0x3d7   : >> { %v4803_v3 = vpop.f32.mrb[17].mxu1 }
 0x3d8   : >> { %v4804_v26 = vadd.f32 %v4803_v3, %v4802_v12  ;;  %v4805_v24 = vpop.f32.mrb[18].mxu1 }
 0x3d9   : >> { %v4738_v11 = vpop.f32.mrb[16].mxu0  ;;  %v4806_v41 = vpop.f32.mrb[19].mxu1 }
 0x3da   : >> { %v4807_v50 = vadd.f32 %v4806_v41, %v4805_v24  ;;  %v4739_v6 = vpop.f32.mrb[17].mxu0 }
 0x3db   : >> { %v4740_v20 = vadd.f32 %v4739_v6, %v4738_v11  ;;  %v4741_v30 = vpop.f32.mrb[18].mxu0 }
 0x3dc   : >> { %v4742_v54 = vpop.f32.mrb[19].mxu0 }
 0x3dd   : >> { %v3938_v4 = vadd.f32 %v4804_v26, %v4740_v20  ;;  %v4743_v42 = vadd.f32 %v4742_v54, %v4741_v30 }
 0x3df   : >> { %v3994_v63 = vadd.f32 %v3978_v35, %v3938_v4  ;;  %v3941_v5 = vadd.f32 %v4807_v50, %v4743_v42  ;;  %v3984_v42 = vld [vmem:[%s7712_s7 + $0x70] sm:$0xff] }
 0x3e1   : >> { %v4017_v10 = vadd.f32 %v7736_v28, %v3994_v63  ;;  %v3995_v17 = vadd.f32 %v3979_v14, %v3941_v5 }
 0x3e3   : >> { %4034 = vst [vmem:[%s7747_s28 + $0x40] sm:$0xff] %v4017_v10  ;;  %v4050_v9 = vadd.f32 %v4049_v34, %v4017_v10  ;;  %v4018_v39 = vadd.f32 %v7736_v28, %v3995_v17  ;;  %v3985_v10 = vld [vmem:[%s7712_s7 + $0x78] sm:$0xff] }
 0x3e5   : >> { %4035 = vst [vmem:[%s7747_s28 + $0x48] sm:$0xff] %v4018_v39  ;;  %v4051_v45 = vadd.f32 %v4050_v9, %v4018_v39 }
 0x407   : >> { %v4808_v22 = vpop.f32.mrb[20].mxu1 }
 0x408   : >> { %v4809_v21 = vpop.f32.mrb[21].mxu1 }
 0x409   : >> { %v4810_v62 = vadd.f32 %v4809_v21, %v4808_v22  ;;  %v4811_v2 = vpop.f32.mrb[22].mxu1  ;;  %v4744_v38 = vpop.f32.mrb[20].mxu0 }
 0x40a   : >> { %v4812_v27 = vpop.f32.mrb[23].mxu1  ;;  %v4745_v46 = vpop.f32.mrb[21].mxu0 }
 0x40b   : >> { %v4813_v32 = vadd.f32 %v4812_v27, %v4811_v2  ;;  %v4746_v40 = vadd.f32 %v4745_v46, %v4744_v38  ;;  %v4747_v61 = vpop.f32.mrb[22].mxu0 }
 0x40c   : >> { %v4748_v58 = vpop.f32.mrb[23].mxu0 }
 0x40d   : >> { %v3946_v1 = vadd.f32 %v4810_v62, %v4746_v40  ;;  %v4749_v13 = vadd.f32 %v4748_v58, %v4747_v61  ;;  %v4042_v40 = vld [vmem:[#allocation4] sm:$0x1] }
 0x40e   : > { %v4069_v58 = vld [vmem:[%s8119_s3 + $0x8] sm:$0xff] (%p695_p6) }
 0x40f   : >> { %v3996_v25 = vadd.f32 %v3980_v56, %v3946_v1  ;;  %v3949_v19 = vadd.f32 %v4813_v32, %v4749_v13  ;;  %v4070_v1 = vld [vmem:[%s8119_s3 + $0x10] sm:$0xff] (%p695_p6)  ;;  %v8471_v13 = vmov (%p695_p6), 0.0  }
 0x410   : > { %4880 = vmatprep.subr.mxu1 (%p695_p6), %v8471_v13  ;;  %4877 = vmatprep.mubr.msk.f32.mxu0 (%p695_p6), %vm5381_vm3, %v8471_v13 }
 0x411   : >> { %v4019_v29 = vadd.f32 %v7736_v28, %v3996_v25  ;;  %v3997_v44 = vadd.f32 %v3981_v47, %v3949_v19  ;;  %v5380_v47 = vmov (%p695_p6), 0.0|0.0   ;;  %v4071_v19 = vld [vmem:[%s8119_s3 + $0x18] sm:$0xff] (%p695_p6)  ;;  %4882 = vmatprep.mubr.msk.f32.mxu1 (%p695_p6), %vm5381_vm3, %v8471_v13 }
 0x412   : > { %4885 = vmatprep.subr.bf16.mxu0 (%p695_p6), %v5380_v47 }
 0x413   : >> { %4036 = vst [vmem:[%s7747_s28 + $0x50] sm:$0xff] %v4019_v29  ;;  %v4052_v53 = vadd.f32 %v4051_v45, %v4019_v29  ;;  %v4020_v8 = vadd.f32 %v7736_v28, %v3997_v44  ;;  %v4889_v29 = vpack.c.bf16 (%p695_p6), %v4071_v19, %v4070_v1  ;;  %v4072_v44 = vld [vmem:[%s8119_s3 + $0x20] sm:$0xff] (%p695_p6) }
 0x415   : >> { %4037 = vst [vmem:[%s7747_s28 + $0x58] sm:$0xff] %v4020_v8  ;;  %v4053_v49 = vadd.f32 %v4052_v53, %v4020_v8  ;;  %v4073_v53 = vld [vmem:[%s8119_s3 + $0x28] sm:$0xff] (%p695_p6) }
 0x416   : > { %v4892_v8 = vpack.c.bf16 (%p695_p6), %v4073_v53, %v4072_v44 }
 0x436   : >> { %v4814_v37 = vpop.f32.mrb[24].mxu1 }
 0x437   : >> { %v4815_v18 = vpop.f32.mrb[25].mxu1 }
 0x438   : >> { %v4816_v7 = vadd.f32 %v4815_v18, %v4814_v37  ;;  %v4817_v59 = vpop.f32.mrb[26].mxu1  ;;  %v4075_v37 = vld [vmem:[%s8119_s3 + $0x38] sm:$0xff] (%p695_p6) }
 0x439   : >> { %v4750_v36 = vpop.f32.mrb[24].mxu0  ;;  %v4818_v52 = vpop.f32.mrb[27].mxu1 }
 0x43a   : >> { %v4819_v48 = vadd.f32 %v4818_v52, %v4817_v59  ;;  %v4751_v57 = vpop.f32.mrb[25].mxu0  ;;  %v4077_v59 = vld [vmem:[%s8119_s3 + $0x48] sm:$0xff] (%p695_p6)  ;;  %v4078_v52 = vld [vmem:[%s8119_s3 + $0x50] sm:$0xff] (%p695_p6) }
 0x43b   : >> { %v4752_v0 = vadd.f32 %v4751_v57, %v4750_v36  ;;  %v4753_v23 = vpop.f32.mrb[26].mxu0 }
 0x43c   : >> { %v4754_v51 = vpop.f32.mrb[27].mxu0 }
 0x43d   : >> { %v3954_v43 = vadd.f32 %v4816_v7, %v4752_v0  ;;  %v4755_v16 = vadd.f32 %v4754_v51, %v4753_v23  ;;  %v4076_v7 = vld [vmem:[%s8119_s3 + $0x40] sm:$0xff] (%p695_p6)  ;;  %v4081_v23 = vld [vmem:[%s8119_s3 + $0x68] sm:$0xff] (%p695_p6)  ;;  %v4082_v51 = vld [vmem:[%s8119_s3 + $0x70] sm:$0xff] (%p695_p6) }
 0x43e   : > { %v4898_v36 = vpack.c.bf16 (%p695_p6), %v4077_v59, %v4076_v7  ;;  %v4080_v0 = vld [vmem:[%s8119_s3 + $0x60] sm:$0xff] (%p695_p6) }
 0x43f   : >> { %v3998_v55 = vadd.f32 %v3982_v31, %v3954_v43  ;;  %v3957_v33 = vadd.f32 %v4819_v48, %v4755_v16  ;;  %v4079_v48 = vld [vmem:[%s8119_s3 + $0x58] sm:$0xff] (%p695_p6)  ;;  %v4904_v31 = vpack.c.bf16 (%p695_p6), %v4081_v23, %v4080_v0 }
 0x440   : > { %v4901_v57 = vpack.c.bf16 (%p695_p6), %v4079_v48, %v4078_v52  ;;  %v4083_v43 = vld [vmem:[%s8119_s3 + $0x78] sm:$0xff] (%p695_p6) }
 0x441   : >> { %v4021_v15 = vadd.f32 %v7736_v28, %v3998_v55  ;;  %v3999_v34 = vadd.f32 %v3983_v60, %v3957_v33  ;;  %v4907_v16 = vpack.c.bf16 (%p695_p6), %v4083_v43, %v4082_v51  ;;  %v4155_v33 = vld [vmem:[%s8120_s4] sm:$0xf] (%p695_p6) }
 0x442   : > { %4881 = vmatpush3.msk.msra.mxu1 (%p695_p6), %vm4160_vm4, %v4155_v33 }
 0x443   : >> { %4038 = vst [vmem:[%s7747_s28 + $0x60] sm:$0xff] %v4021_v15  ;;  %v4054_v12 = vadd.f32 %v4053_v49, %v4021_v15  ;;  %v4022_v3 = vadd.f32 %v7736_v28, %v3999_v34  ;;  %v4074_v49 = vld [vmem:[%s8119_s3 + $0x30] sm:$0xff] (%p695_p6) }
 0x444   : > { %v4895_v18 = vpack.c.bf16 (%p695_p6), %v4075_v37, %v4074_v49 }
 0x445   : >> { %4039 = vst [vmem:[%s7747_s28 + $0x68] sm:$0xff] %v4022_v3  ;;  %v4055_v26 = vadd.f32 %v4054_v12, %v4022_v3 }
 0x462   : >> { %v4820_v24 = vpop.f32.mrb[28].mxu1 }
 0x463   : >> { %v4821_v11 = vpop.f32.mrb[29].mxu1 }
 0x464   : >> { %v4822_v41 = vadd.f32 %v4821_v11, %v4820_v24  ;;  %v4823_v50 = vpop.f32.mrb[30].mxu1 }
 0x465   : >> { %v4756_v6 = vpop.f32.mrb[28].mxu0  ;;  %v4824_v20 = vpop.f32.mrb[31].mxu1 }
 0x466   : >> { %v4825_v30 = vadd.f32 %v4824_v20, %v4823_v50  ;;  %v4757_v35 = vpop.f32.mrb[29].mxu0 }
 0x467   : >> { %v4758_v54 = vadd.f32 %v4757_v35, %v4756_v6  ;;  %v4759_v4 = vpop.f32.mrb[30].mxu0 }
 0x468   : >> { %v4760_v14 = vpop.f32.mrb[31].mxu0 }
 0x469   : >> { %v3962_v63 = vadd.f32 %v4822_v41, %v4758_v54  ;;  %v4761_v5 = vadd.f32 %v4760_v14, %v4759_v4 }
 0x46b   : >> { %v4000_v17 = vadd.f32 %v3984_v42, %v3962_v63  ;;  %v3965_v9 = vadd.f32 %v4825_v30, %v4761_v5 }
 0x46d   : >> { %v4023_v39 = vadd.f32 %v7736_v28, %v4000_v17  ;;  %v4001_v45 = vadd.f32 %v3985_v10, %v3965_v9 }
 0x46f   : >> { %4040 = vst [vmem:[%s7747_s28 + $0x70] sm:$0xff] %v4023_v39  ;;  %v4056_v22 = vadd.f32 %v4055_v26, %v4023_v39  ;;  %v4024_v21 = vadd.f32 %v7736_v28, %v4001_v45  ;;  %v4068_v28 = vld [vmem:[%s8119_s3] sm:$0xff] (%p695_p6) }
 0x470   : > { %v4886_v25 = vpack.c.bf16 (%p695_p6), %v4069_v58, %v4068_v28 }
 0x471   : >> { %4041 = vst [vmem:[%s7747_s28 + $0x78] sm:$0xff] %v4024_v21  ;;  %v4057_v62 = vadd.f32 %v4056_v22, %v4024_v21 }
 0x472   : > { %4887 = vmatpush3.bf16.msra.mxu0 (%p695_p6), %v4886_v25 }
 0x473   : >> { %v4058_v2 = vrot.slane %v4057_v62, 4  ;;  %4888 = vmatprep.subr.bf16.mxu0 (%p695_p6), %v5380_v47 }
 0x475   : >> { %v4059_v38 = vadd.f32 %v4058_v2, %v4057_v62 }
 0x476   : > { %4890 = vmatpush3.bf16.msra.mxu0 (%p695_p6), %v4889_v29 }
 0x477   : >> { %v4060_v27 = vrot.slane %v4059_v38, 2  ;;  %4891 = vmatprep.subr.bf16.mxu0 (%p695_p6), %v5380_v47 }
 0x479   : >> { %v4061_v46 = vadd.f32 %v4060_v27, %v4059_v38 }
 0x47a   : > { %4893 = vmatpush3.bf16.msra.mxu0 (%p695_p6), %v4892_v8 }
 0x47b   : >> { %v4062_v32 = vrot.slane %v4061_v46, 1  ;;  %697 = sbr.rel (!%p695_p6) target bundleno = 164 (0xa4), region = 129  ;;  %4894 = vmatprep.subr.bf16.mxu0 (%p695_p6), %v5380_v47 }
 0x47d   : >> { %v4063_v61 = vadd.f32 %v4062_v32, %v4061_v46 }
 0x47e   : > { %4896 = vmatpush3.bf16.msra.mxu0 (%p695_p6), %v4895_v18 }
 0x47f   : >> { %v4064_v56 = vadd.f32 %v4063_v61, %v4042_v40  ;;  %4897 = vmatprep.subr.bf16.mxu0 (%p695_p6), %v5380_v47 }
 0x481   : >> { %4065 = vst [vmem:[#allocation4] sm:$0x1] %v4064_v56 }
 0x482   : > { %4899 = vmatpush3.bf16.msra.mxu0 %v4898_v36 }
 0x483   : > { %4900 = vmatprep.subr.bf16.mxu0 %v5380_v47 }
 0x486   : > { %4902 = vmatpush3.bf16.msra.mxu0 %v4901_v57 }
 0x487   : > { %4903 = vmatprep.subr.bf16.mxu0 %v5380_v47 }
 0x488   : > { %v4066_v60 = vld [vmem:[#allocation4] sm:$0x1] }
 0x489   : > { %v4067_v55 = vmul.f32 0.00390625, %v4066_v60 }
 0x48a   : > { %4905 = vmatpush3.bf16.msra.mxu0 %v4904_v31 }
 0x48b   : > { %4906 = vmatprep.subr.bf16.mxu0 %v5380_v47 }
 0x48e   : > { %4908 = vmatpush3.bf16.msra.mxu0 %v4907_v16 }
 0x491   : > { %4878 = vmatmul.mubr.f32.vlgmr.msra.gmra.mrb[0].mxu0 %v4067_v55 }
 0x564   : > { %v4150_v15 = vpop.f32.mrb[0].mxu0 }
 0x565   : > { %v4154_v34 = vmax.f32 %v4150_v15, 0.0  ;;  %v4879_v12 = vpop.f32.mrb[1].mxu0 }
 0x567   : > { %4883 = vmatmul.mubr.msk.f32.vlgmr.msra.gmra.mrb[0].mxu1 %vm4156_vm5, %v4154_v34 }
 0x63a   : > { %v4230_v3 = vpop.f32.mrb[0].mxu1 }
 0x63b   : > { %v4667_v26 = vmul.f32 -1.442695, %v4230_v3  ;;  %v4884_v24 = vpop.f32.mrb[1].mxu1 }
 0x63d   : > { %5207 = vpow2.f32 %v4667_v26 }
 0x647   : > { %v5208_v11 = vpop.eup %5207 }
 0x648   : > { %v4237_v41 = vadd.f32 1.0, %v5208_v11 }
 0x64a   : > { %5209 = vrcp.f32 %v4237_v41 }
 0x654   : > { %v5210_v50 = vpop.eup %5209 }
 0x655   : > { %4240 = vst [vmem:[#allocation4] sm:$0x1] %v5210_v50 }
 0x656 LB: >> { %s4696_s10 = sshll.u32 %s5363_s14, 7  ;;  %s4246_s14 = sadd.s32 1, %s5363_s14   ;;  %s5363_s14 = sphi %s8021_s14, %s4246_s14  }
 0x657   : >> { %s8028_s12 = scalar_lea.vmem %s5647_s24, %s4696_s10 [#allocation10]  ;;  %p4243_p8 = scmp.ge.s32.totalorder %s4246_s14, 2  }
 0x658   : >> { %v4251_v20 = vld [vmem:[%s8028_s12] sm:$0xff]  ;;  %v4252_v30 = vld [vmem:[%s8028_s12 + $0x8] sm:$0xff]  ;;  %v4253_v35 = vld [vmem:[%s8028_s12 + $0x10] sm:$0xff]  ;;  %s4697_s6 = sshll.u32 (%p4243_p8), %s5436_s22, 12  ;;  %s4319_s28 = sshll.u32 (%p4243_p8), %s5647_s24, 4  ;;  %s8072_s28 = int_to_ptr.vmem [resolvable:$true] %s4319_s28 }
 0x659   : >> { %v4254_v14 = vld [vmem:[%s8028_s12 + $0x18] sm:$0xff]  ;;  %v4255_v63 = vld [vmem:[%s8028_s12 + $0x20] sm:$0xff]  ;;  %v4256_v5 = vld [vmem:[%s8028_s12 + $0x28] sm:$0xff]  ;;  %s8069_s29 = scalar_lea.hbm (%p4243_p8), %s8121_s5, %s4697_s6  ;;  %s4306_s13 = scalar_lea.sflag (%p4243_p8), [#allocation7], %s5554_s23 }
 0x65a   : >> { %v4257_v39 = vld [vmem:[%s8028_s12 + $0x30] sm:$0xff]  ;;  %v4258_v45 = vld [vmem:[%s8028_s12 + $0x38] sm:$0xff]  ;;  %v4259_v22 = vld [vmem:[%s8028_s12 + $0x40] sm:$0xff]  ;;  %s5269_s16 = scalar_lea.vmem (%p4243_p8), %s8072_s28, 4096  ;;  %s5382_s17 = smov (%p4243_p8), [#allocation10]  }
 0x65b   : >> { %v4260_v38 = vld [vmem:[%s8028_s12 + $0x48] sm:$0xff]  ;;  %v4261_v27 = vld [vmem:[%s8028_s12 + $0x50] sm:$0xff]  ;;  %v4262_v46 = vld [vmem:[%s8028_s12 + $0x58] sm:$0xff]  ;;  %p5270_p10 = scmp.ne.s32.totalorder (%p4243_p8), %s8072_s28, %s5269_s16  ;;  %s5273_s27 = sshll.u32 (%p4243_p8), %s5382_s17, 4  ;;  %s5274_s27 = int_to_ptr.vmem [resolvable:$false] %s5273_s27 }
 0x65c   : >> { %v4670_v6 = vld [vmem:[#allocation4] ss:$0 sm:$0xff]  ;;  %v4263_v56 = vld [vmem:[%s8028_s12 + $0x60] sm:$0xff]  ;;  %v4265_v58 = vld [vmem:[%s8028_s12 + $0x70] sm:$0xff]  ;;  %s5275_s22 = scalar_lea.vmem (%p4243_p8), %s5274_s27, 8192  ;;  %p5276_p7 = scmp.lt.s32.totalorder (%p4243_p8), %s8072_s28, %s5274_s27 }
 0x65d   : >> { %v4273_v54 = vmul.f32 %v4670_v6, %v4251_v20  ;;  %v4274_v4 = vmul.f32 %v4670_v6, %v4252_v30  ;;  %v4275_v42 = vmul.f32 %v4670_v6, %v4253_v35  ;;  %v4276_v10 = vmul.f32 %v4670_v6, %v4254_v14  ;;  %v4264_v28 = vld [vmem:[%s8028_s12 + $0x68] sm:$0xff]  ;;  %v4266_v25 = vld [vmem:[%s8028_s12 + $0x78] sm:$0xff]  ;;  %p5271_p13 = pnand (%p4243_p8), %p5270_p10, %p5506_p12  ;;  %p5277_p9 = scmp.lt.s32.totalorder (%p4243_p8), %s5275_s22, %s5269_s16 }
 0x65e   : >> { %v4277_v17 = vmul.f32 %v4670_v6, %v4255_v63  ;;  %v4278_v9 = vmul.f32 %v4670_v6, %v4256_v5  ;;  %v4279_v21 = vmul.f32 %v4670_v6, %v4257_v39  ;;  %v4280_v62 = vmul.f32 %v4670_v6, %v4258_v45 }
 0x65f   : >> { %4289 = vst [vmem:[%s8028_s12] sm:$0xff] %v4273_v54  ;;  %4290 = vst [vmem:[%s8028_s12 + $0x8] sm:$0xff] %v4274_v4  ;;  %v4281_v2 = vmul.f32 %v4670_v6, %v4259_v22  ;;  %v4282_v32 = vmul.f32 %v4670_v6, %v4260_v38  ;;  %v4283_v40 = vmul.f32 %v4670_v6, %v4261_v27  ;;  %p5272_p3 = pneg (%p4243_p8), %p5271_p13  ;;  %p5278_p2 = por (%p4243_p8), %p5277_p9, %p5276_p7 }
 0x660   : >> { %4291 = vst [vmem:[%s8028_s12 + $0x10] sm:$0xff] %v4275_v42  ;;  %4292 = vst [vmem:[%s8028_s12 + $0x18] sm:$0xff] %v4276_v10  ;;  %v4284_v61 = vmul.f32 %v4670_v6, %v4262_v46  ;;  %v4285_v1 = vmul.f32 %v4670_v6, %v4263_v56  ;;  %v4286_v13 = vmul.f32 %v4670_v6, %v4264_v28 }
 0x661   : >> { %4293 = vst [vmem:[%s8028_s12 + $0x20] sm:$0xff] %v4277_v17  ;;  %4294 = vst [vmem:[%s8028_s12 + $0x28] sm:$0xff] %v4278_v9  ;;  %v4287_v47 = vmul.f32 %v4670_v6, %v4265_v58  ;;  %v4288_v19 = vmul.f32 %v4670_v6, %v4266_v25  ;;  %p5279_p0 = pnand (%p4243_p8), %p5278_p2, %p5272_p3 }
 0x662   : >> { %4295 = vst [vmem:[%s8028_s12 + $0x30] sm:$0xff] %v4279_v21  ;;  %4296 = vst [vmem:[%s8028_s12 + $0x38] sm:$0xff] %v4280_v62 }
 0x663   : >> { %4297 = vst [vmem:[%s8028_s12 + $0x40] sm:$0xff] %v4281_v2  ;;  %4298 = vst [vmem:[%s8028_s12 + $0x48] sm:$0xff] %v4282_v32  ;;  %4245 = sbr.rel (!%p4243_p8) target bundleno = 1622 (0x656), region = 140 }
 0x664   : >> { %4299 = vst [vmem:[%s8028_s12 + $0x50] sm:$0xff] %v4283_v40  ;;  %4300 = vst [vmem:[%s8028_s12 + $0x58] sm:$0xff] %v4284_v61 }
 0x665   : >> { %4301 = vst [vmem:[%s8028_s12 + $0x60] sm:$0xff] %v4285_v1  ;;  %4302 = vst [vmem:[%s8028_s12 + $0x68] sm:$0xff] %v4286_v13 }
 0x666   : >> { %4303 = vst [vmem:[%s8028_s12 + $0x70] sm:$0xff] %v4287_v47  ;;  %4304 = vst [vmem:[%s8028_s12 + $0x78] sm:$0xff] %v4288_v19 }
 0x66a   : > { %5282 = shalt.err (!%p5279_p0)
}
 0x66b   : > { %s5283_s24 = scalar_lea.hbm %s8069_s29, 4096  ;;  %s5287_s14 = scalar_lea.hbm %s8121_s5, 8192 }
 0x66c   : > { %p5284_p5 = scmp.ne.s32.totalorder %s8069_s29, %s5283_s24  ;;  %p5288_p4 = scmp.lt.u32.totalorder %s8069_s29, %s8121_s5 }
 0x66d   : > { %p5289_p6 = scmp.lt.u32.totalorder %s5287_s14, %s5283_s24  ;;  %p5291_p10 = scmp.lt.u32.totalorder %s5283_s24, %s8069_s29 }
 0x66e   : > { %p5285_p11 = pnand %p5284_p5, %p5506_p12 }
 0x66f   : > { %p5290_p8 = por %p5289_p6, %p5288_p4 }
 0x670   : > { %p5286_p1 = pneg %p5285_p11 }
 0x671   : > { %p5292_p13 = por %p5291_p10, %p5290_p8 }
 0x673   : > { %p5293_p3 = pnand %p5292_p13, %p5286_p1 }
 0x675   : > { %5296 = shalt.err (!%p5293_p3)
}
 0x676   : > { %s5383_s6 = smov 128   ;;  %s5384_s7 = smov 8  }
 0x677   : > { %4915 = dma.vmem_to_hbm [thread:$0]  (%p5506_p12), %s8072_s28, 4096, %s8069_s29, %s4306_s13, %s5383_s6, %s5383_s6, %s5384_s7  }
 0x678 PF: > { %s4334_s15 = sand.u32 1, %s5339_s18   ;;  %p8472_p7 = scmp.ne.s32.totalorder %s8164_s25, 0 }
 0x679   : > { %p8473_p9 = scmp.ge.s32.totalorder %s5351_s21, 2  ;;  %s4335_s16 = scalar_lea.sflag [#allocation7], %s4334_s15 }
 0x67b   : > { %p4926_p2 = pnand %p8473_p9, %p8472_p7 }
 0x67d   : > { %5334 = dma.done.wait (!%p4926_p2), %s4335_s16, 4096  }
 0x67e   : > { %5336 = vsyncadd (!%p4926_p2), %s4335_s16, 4294963200  ;;  %p19_p0 = scmp.ge.s32.totalorder %s5471_s30, 4   ;;  %s8474_s18 = smov %s5343_s19 }
 0x67f   : > { %s8475_s19 = smov %s5347_s20  ;;  %s8476_s20 = smov %s5502_s8 }
 0x680   : > { %s8477_s21 = smov %s5471_s30  ;;  %21 = sbr.rel (!%p19_p0) target bundleno = 6 (0x6), region = 151 }
 0x687   :  { %4340 = vsyncpa [#allocation6], 1 }
 0x688   :  { %4342 = vsyncpa [#allocation6 + $0x1], 1 }
 0x689   :  { %4343 = vsyncpa [#allocation9], 1 }
 0x68a   :  { %4344 = vsyncpa [#allocation7], 1 }
 0x68b   :  { %4346 = vsyncpa [#allocation7 + $0x1], 1 }

// kernel: tpu_custom_call.1
= control target key start
LH: loop header
LB: loop body
LE: loop exit
PB: predicated region body
PF: predicated region fallthrough
CT: control target
= control target key end

     0   :  { %10 = vsyncpa [#allocation6], 0  ;;  %s8116_s0 = inlined_call_operand.hbm [shape: f32[2,16,16,128], index: 0, kind: input, shape index: {}]   ;;  %s8117_s1 = inlined_call_operand.hbm [shape: bf16[512,128], index: 1, kind: input, shape index: {}]   ;;  %s8118_s2 = inlined_call_operand.vmem [shape: f32[1,128], index: 2, kind: input, shape index: {}]   ;;  %s8119_s3 = inlined_call_operand.vmem [shape: f32[128,4], index: 3, kind: input, shape index: {}]   ;;  %s8120_s4 = inlined_call_operand.vmem [shape: f32[4,128], index: 4, kind: input, shape index: {}]   ;;  %s8121_s5 = inlined_call_operand.hbm [shape: f32[2,16,16,128], index: 5, kind: output, shape index: {}]  }
   0x1   :  { %12 = vsyncpa [#allocation6 + $0x1], 0 }
   0x2   :  { %13 = vsyncpa [#allocation9], 0 }
   0x3   :  { %14 = vsyncpa [#allocation7], 0 }
   0x4   :  { %16 = vsyncpa [#allocation7 + $0x1], 0  ;;  %s5415_s18 = smov 0   ;;  %s5417_s19 = smov 0  }
   0x5   :  { %s5419_s20 = smov 0   ;;  %s5421_s21 = smov 0  }
   0x6 LB: > { %s5436_s22 = sadd.s32 4294967295, %s5351_s21   ;;  %s4431_s23 = sadd.s32 4294967294, %s5351_s21   ;;  %s5351_s21 = sphi %s5421_s21, %s8477_s21   ;;  %s5347_s20 = sphi %s5419_s20, %s8476_s20   ;;  %s5343_s19 = sphi %s5417_s19, %s8475_s19   ;;  %s5339_s18 = sphi %s5415_s18, %s8474_s18  }
   0x7   : > { %p42_p0 = scmp.ne.s32.totalorder %s5343_s19, %s5339_s18  ;;  %p8122_p1 = scmp.eq.s32.totalorder %s5436_s22, 0 }
   0x8   : > { %p156_p3 = scmp.eq.s32.totalorder %s4431_s23, 1  ;;  %p4432_p5 = scmp.ge.s32.totalorder %s5351_s21, 1 }
   0x9   : > { %p5445_p4 = por %p8122_p1, %p42_p0  ;;  %p163_p7 = scmp.lt.s32.totalorder %s5351_s21, 3 }
   0xa   : > { %p5450_p6 = por %p156_p3, %p42_p0  ;;  %s5365_s27 = smov [#allocation8]  }
   0xb   : > { %s8163_s24 = scalar_select %p5445_p4, 1, 0 }
   0xc   : > { %s8164_s25 = scalar_select %p5450_p6, 1, 0 }
   0xd   : > { %p5455_p8 = pnand %p4432_p5, %p163_p7  ;;  %s175_s28 = sshll.u32 %s5365_s27, 4  ;;  %s5459_s28 = int_to_ptr.vmem [resolvable:$true] %s175_s28 }
   0xe   : > { %s5471_s30 = sadd.s32 1, %s5351_s21   ;;  %s29_s6 = sadd.s32 1, %s5347_s20 }
   0xf   : > { %s8165_s26 = scalar_select %p5455_p8, 1, 0 }
  0x10   : > { %p4917_p9 = pneg %p5455_p8  ;;  %s26_s7 = ssub.s32 %s5351_s21, %s5471_s30 }
  0x11   : > { %s5211_s10 = scalar_lea.hbm %s8117_s1, 4096 }
  0x12   : > { %p5466_p11 = pnand %p4917_p9, %p8122_p1  ;;  %p5212_p12 = scmp.ne.s32.totalorder %s8117_s1, %s5211_s10 }
  0x13   : > { %p5218_p5 = scmp.lt.u32.totalorder %s5211_s10, %s8117_s1 }
  0x14   : > { %p5213_p13 = pneg %p5466_p11 }
  0x16   : > { %p5214_p0 = pnand %p5213_p13, %p5212_p12 }
  0x18   : > { %p5215_p3 = pneg %p5214_p0 }
  0x1a   : > { %p5220_p7 = pnand %p5218_p5, %p5215_p3 }
  0x1c   : > { %5223 = shalt.err (!%p5220_p7)
}
  0x1d   : > { %s5224_s15 = scalar_lea.vmem %s5459_s28, 4096  ;;  %p5232_p2 = scmp.lt.s32.totalorder %s5459_s28, %s5459_s28 }
  0x1e   : > { %p5225_p9 = scmp.ne.s32.totalorder %s5459_s28, %s5224_s15  ;;  %p5233_p6 = scmp.lt.s32.totalorder %s5224_s15, %s5224_s15 }
  0x20   : > { %p5227_p10 = pnand %p5225_p9, %p5213_p13  ;;  %p5234_p4 = por %p5233_p6, %p5232_p2 }
  0x22   : > { %p5228_p1 = pneg %p5227_p10 }
  0x24   : > { %p5235_p8 = pnand %p5234_p4, %p5228_p1 }
  0x26   : > { %5238 = shalt.err (!%p5235_p8)
}
  0x27   : > { %s5366_s16 = smov 64   ;;  %s5367_s17 = smov 4  }
  0x28   : > { %4920 = dma.hbm_to_vmem [thread:$0]  (!%p5466_p11), %s8117_s1, 4096, %s5459_s28, [#allocation9], %s5366_s16, %s5366_s16, %s5367_s17  }
  0x29   : > { %p27_p2 = scmp.eq.s32.totalorder %s26_s7, 0  ;;  %p36_p1 = scmp.ne.s32.totalorder %s5347_s20, %s5343_s19 }
  0x2a   : > { %p37_p4 = scmp.eq.s32.totalorder %s5351_s21, 0  ;;  %p4930_p6 = scmp.lt.s32.totalorder %s5351_s21, 2 }
  0x2b   : > { %s5502_s8 = scalar_select %p27_p2, %s5347_s20, %s29_s6  }
  0x2c   : > { %p38_p8 = por %p37_p4, %p36_p1  ;;  %p8167_p10 = scmp.eq.s32.totalorder %s5436_s22, 1 }
  0x2d   : > { %s198_s10 = sand.u32 1, %s5347_s20   ;;  %s4676_s11 = sshll.u32 %s5351_s21, 12 }
  0x2e   : > { %p5506_p12 = por %p8167_p10, %p36_p1  ;;  %s4435_s12 = sshll.u32 %s198_s10, 8 }
  0x2f   : > { %s5515_s14 = scalar_lea.hbm %s8116_s0, %s4676_s11  ;;  %s202_s28 = scalar_lea.vmem [#allocation5], %s4435_s12 }
  0x30   : > { %s209_s6 = sshll.u32 %s202_s28, 4  ;;  %p5517_p11 = pnand %p4930_p6, %p38_p8  ;;  %s5521_s6 = int_to_ptr.vmem [resolvable:$true] %s209_s6 }
  0x31   : > { %s5523_s15 = scalar_lea.sflag [#allocation6], %s198_s10  ;;  %s5239_s16 = scalar_lea.hbm %s5515_s14, 4096 }
  0x32   : > { %p5240_p13 = scmp.ne.s32.totalorder %s5515_s14, %s5239_s16  ;;  %p5241_p0 = pneg %p5517_p11 }
  0x33   : > { %s5244_s27 = scalar_lea.hbm %s8116_s0, 8192  ;;  %p5245_p7 = scmp.lt.u32.totalorder %s5515_s14, %s8116_s0 }
  0x34   : > { %p5242_p3 = pnand %p5241_p0, %p5240_p13  ;;  %p5246_p9 = scmp.lt.u32.totalorder %s5244_s27, %s5239_s16 }
  0x35   : > { %p5248_p1 = scmp.lt.u32.totalorder %s5239_s16, %s5515_s14 }
  0x36   : > { %p5243_p5 = pneg %p5242_p3  ;;  %p5247_p2 = por %p5246_p9, %p5245_p7 }
  0x38   : > { %p5249_p4 = por %p5248_p1, %p5247_p2 }
  0x3a   : > { %p5250_p6 = pnand %p5249_p4, %p5243_p5 }
  0x3c   : > { %5253 = shalt.err (!%p5250_p6)
}
  0x3d   : > { %s5254_s10 = scalar_lea.vmem %s5521_s6, 4096  ;;  %s5368_s29 = smov [#allocation5]  }
  0x3e   : > { %p5255_p8 = scmp.ne.s32.totalorder %s5521_s6, %s5254_s10  ;;  %s5259_s13 = sshll.u32 %s5368_s29, 4  ;;  %s5260_s13 = int_to_ptr.vmem [resolvable:$false] %s5259_s13 }
  0x3f   : > { %s5261_s28 = scalar_lea.vmem %s5260_s13, 8192  ;;  %p5262_p3 = scmp.lt.s32.totalorder %s5521_s6, %s5260_s13 }
  0x40   : > { %p5257_p10 = pnand %p5255_p8, %p5241_p0  ;;  %p5263_p7 = scmp.lt.s32.totalorder %s5261_s28, %s5254_s10 }
  0x42   : > { %p5258_p13 = pneg %p5257_p10  ;;  %p5264_p9 = por %p5263_p7, %p5262_p3 }
  0x44   : > { %p5265_p2 = pnand %p5264_p9, %p5258_p13 }
  0x46   : > { %5268 = shalt.err (!%p5265_p2)
}
  0x47   : > { %s5369_s16 = smov 128   ;;  %s5370_s17 = smov 8  }
  0x48   : > { %4924 = dma.hbm_to_vmem [thread:$0]  (!%p5517_p11), %s5515_s14, 4096, %s5521_s6, %s5523_s15, %s5369_s16, %s5369_s16, %s5370_s17  }
  0x49   : > { %p8170_p0 = scmp.ne.s32.totalorder %s8165_s26, 0 }
  0x4a   : > { %s5554_s23 = sand.u32 (!%p8170_p0), 1, %s5343_s19   ;;  %p8171_p5 = scmp.ne.s32.totalorder (!%p8170_p0), %s8163_s24, 0 }
  0x4b   : > { %221 = sbr.rel (%p8170_p0) target bundleno = 1656 (0x678), region = 40  ;;  %s4439_s27 = sshll.u32 (!%p8170_p0), %s5554_s23, 8 }
  0x4c   : > { %s224_s11 = scalar_lea.sflag (!%p8170_p0), [#allocation6], %s5554_s23  ;;  %s5560_s12 = scalar_lea.vmem (!%p8170_p0), [#allocation5], %s4439_s27 }
  0x52   : > { %5326 = dma.done.wait (%p8171_p5), %s224_s11, 4096  }
  0x53   : > { %5328 = vsyncadd (%p8171_p5), %s224_s11, 4294963200  ;;  %p8172_p11 = scmp.eq.s32.totalorder %s5436_s22, 0 }
  0x55   : > { %5330 = dma.done.wait (%p8172_p11), [#allocation9], 4096   ;;  %p8173_p1 = pmov %p8172_p11 }
  0x56   : > { %v5371_v0 = vmov 0   ;;  %vm279_vm0 = vcmask 1041408   ;;  %vm280_vm1 = vsmask.f32 1280  ;;  %vm331_vm3 = vsmask.f32 7942 }
  0x57   : > { %5332 = vsyncadd (%p8173_p1), [#allocation9], 4294963200  ;;  %259 = vst [vmem:[#allocation2] sm:$0xf] %v5371_v0  ;;  %v282_v2 = vld [vmem:[#allocation2 + $0x24] sm:$0x3] }
  0x58   : > { %260 = vst [vmem:[#allocation2 + $0x4] sm:$0xf] %v5371_v0  ;;  %261 = vst [vmem:[#allocation2 + $0x8] sm:$0xf] %v5371_v0  ;;  %v285_v3 = vld [vmem:[#allocation2 + $0x30] sm:$0x3] }
  0x59   : > { %262 = vst [vmem:[#allocation2 + $0xc] sm:$0xf] %v5371_v0  ;;  %263 = vst [vmem:[#allocation2 + $0x10] sm:$0xf] %v5371_v0  ;;  %v288_v4 = vld [vmem:[#allocation2 + $0x3c] sm:$0x3] }
  0x5a   : > { %264 = vst [vmem:[#allocation2 + $0x14] sm:$0xf] %v5371_v0  ;;  %265 = vst [vmem:[#allocation2 + $0x18] sm:$0xf] %v5371_v0  ;;  %v291_v8 = vld [vmem:[#allocation2 + $0x48] sm:$0x3] }
  0x5b   : > { %266 = vst [vmem:[#allocation2 + $0x1c] sm:$0xf] %v5371_v0  ;;  %267 = vst [vmem:[#allocation2 + $0x20] sm:$0xf] %v5371_v0  ;;  %v294_v10 = vld [vmem:[#allocation2 + $0x54] sm:$0x3] }
  0x5c   : > { %269 = vst [vmem:[#allocation2 + $0xe4] sm:$0xf] %v5371_v0  ;;  %270 = vst [vmem:[#allocation2 + $0xe8] sm:$0xf] %v5371_v0  ;;  %v297_v11 = vld [vmem:[#allocation2 + $0x60] sm:$0x3] }
  0x5d   : > { %271 = vst [vmem:[#allocation2 + $0xec] sm:$0xf] %v5371_v0  ;;  %272 = vst [vmem:[#allocation2 + $0xf0] sm:$0xf] %v5371_v0  ;;  %vm330_vm4 = vcmask 1043457   ;;  %s5647_s24 = scalar_lea.vmem [#allocation10], %s4439_s27 }
  0x5e   : > { %273 = vst [vmem:[#allocation2 + $0xf4] sm:$0xf] %v5371_v0  ;;  %274 = vst [vmem:[#allocation2 + $0xf8] sm:$0xf] %v5371_v0  ;;  %v300_v14 = vld [vmem:[#allocation2 + $0x6c] sm:$0x3] }
  0x5f   : > { %275 = vst [vmem:[#allocation2 + $0xfc] sm:$0xf] %v5371_v0  ;;  %276 = vst [vmem:[#allocation2 + $0x100] sm:$0xf] %v5371_v0  ;;  %v303_v15 = vld [vmem:[#allocation2 + $0x78] sm:$0x3] }
  0x60   : > { %277 = vst [vmem:[#allocation2 + $0x104] sm:$0xf] %v5371_v0  ;;  %vm5571_vm2 = vmand %vm279_vm0, %vm280_vm1  ;;  %v306_v18 = vld [vmem:[#allocation2 + $0x84] sm:$0x3]  ;;  %v309_v19 = vld [vmem:[#allocation2 + $0x90] sm:$0x3] }
  0x61   : > { %v283_v5 = vsel %vm5571_vm2, 0, %v282_v2  ;;  %v286_v6 = vsel %vm5571_vm2, 0, %v285_v3  ;;  %v289_v7 = vsel %vm5571_vm2, 0, %v288_v4  ;;  %v292_v9 = vsel %vm5571_vm2, 0, %v291_v8  ;;  %v312_v22 = vld [vmem:[#allocation2 + $0x9c] sm:$0x3]  ;;  %vm5601_vm5 = vmand %vm330_vm4, %vm331_vm3 }
  0x62   : > { %284 = vst [vmem:[#allocation2 + $0x24] sm:$0x3] %v283_v5  ;;  %287 = vst [vmem:[#allocation2 + $0x30] sm:$0x3] %v286_v6  ;;  %v295_v12 = vsel %vm5571_vm2, 0, %v294_v10  ;;  %v298_v13 = vsel %vm5571_vm2, 0, %v297_v11 }
  0x63   : > { %290 = vst [vmem:[#allocation2 + $0x3c] sm:$0x3] %v289_v7  ;;  %293 = vst [vmem:[#allocation2 + $0x48] sm:$0x3] %v292_v9  ;;  %v301_v16 = vsel %vm5571_vm2, 0, %v300_v14  ;;  %v304_v17 = vsel %vm5571_vm2, 0, %v303_v15 }
  0x64   : > { %296 = vst [vmem:[#allocation2 + $0x54] sm:$0x3] %v295_v12  ;;  %299 = vst [vmem:[#allocation2 + $0x60] sm:$0x3] %v298_v13  ;;  %v307_v20 = vsel %vm5571_vm2, 0, %v306_v18  ;;  %v310_v21 = vsel %vm5571_vm2, 0, %v309_v19 }
  0x65   : > { %302 = vst [vmem:[#allocation2 + $0x6c] sm:$0x3] %v301_v16  ;;  %305 = vst [vmem:[#allocation2 + $0x78] sm:$0x3] %v304_v17  ;;  %v315_v23 = vld [vmem:[#allocation2 + $0xa8] sm:$0x3] }
  0x66   : > { %308 = vst [vmem:[#allocation2 + $0x84] sm:$0x3] %v307_v20  ;;  %311 = vst [vmem:[#allocation2 + $0x90] sm:$0x3] %v310_v21  ;;  %v313_v24 = vsel %vm5571_vm2, 0, %v312_v22  ;;  %v316_v25 = vsel %vm5571_vm2, 0, %v315_v23 }
  0x67   : > { %v318_v26 = vld [vmem:[#allocation2 + $0xb4] sm:$0x3]  ;;  %v321_v27 = vld [vmem:[#allocation2 + $0xc0] sm:$0x3]  ;;  %314 = vst [vmem:[#allocation2 + $0x9c] sm:$0x3] %v313_v24 }
  0x68   : > { %317 = vst [vmem:[#allocation2 + $0xa8] sm:$0x3] %v316_v25  ;;  %v319_v29 = vsel %vm5571_vm2, 0, %v318_v26  ;;  %v322_v30 = vsel %vm5571_vm2, 0, %v321_v27  ;;  %v324_v31 = vld [vmem:[#allocation2 + $0xcc] sm:$0x3] }
  0x69   : > { %v327_v32 = vld [vmem:[#allocation2 + $0xd8] sm:$0x3]  ;;  %320 = vst [vmem:[#allocation2 + $0xb4] sm:$0x3] %v319_v29  ;;  %323 = vst [vmem:[#allocation2 + $0xc0] sm:$0x3] %v322_v30 }
  0x6a   : > { %v325_v33 = vsel %vm5571_vm2, 0, %v324_v31  ;;  %v328_v34 = vsel %vm5571_vm2, 0, %v327_v32  ;;  %v333_v35 = vld [vmem:[#allocation2 + $0x2c] sm:$0xe]  ;;  %v336_v36 = vld [vmem:[#allocation2 + $0x38] sm:$0xe] }
  0x6b   : > { %326 = vst [vmem:[#allocation2 + $0xcc] sm:$0x3] %v325_v33  ;;  %329 = vst [vmem:[#allocation2 + $0xd8] sm:$0x3] %v328_v34  ;;  %v334_v37 = vsel %vm5601_vm5, 0, %v333_v35  ;;  %v337_v38 = vsel %vm5601_vm5, 0, %v336_v36 }
  0x6c   : > { %v339_v39 = vld [vmem:[#allocation2 + $0x44] sm:$0xe]  ;;  %v342_v40 = vld [vmem:[#allocation2 + $0x50] sm:$0xe]  ;;  %335 = vst [vmem:[#allocation2 + $0x2c] sm:$0xe] %v334_v37 }
  0x6d   : > { %338 = vst [vmem:[#allocation2 + $0x38] sm:$0xe] %v337_v38  ;;  %v340_v41 = vsel %vm5601_vm5, 0, %v339_v39  ;;  %v343_v42 = vsel %vm5601_vm5, 0, %v342_v40  ;;  %v345_v43 = vld [vmem:[#allocation2 + $0x5c] sm:$0xe] }
  0x6e   : > { %v348_v44 = vld [vmem:[#allocation2 + $0x68] sm:$0xe]  ;;  %341 = vst [vmem:[#allocation2 + $0x44] sm:$0xe] %v340_v41  ;;  %344 = vst [vmem:[#allocation2 + $0x50] sm:$0xe] %v343_v42 }
  0x6f   : > { %v346_v45 = vsel %vm5601_vm5, 0, %v345_v43  ;;  %v349_v46 = vsel %vm5601_vm5, 0, %v348_v44  ;;  %v351_v47 = vld [vmem:[#allocation2 + $0x74] sm:$0xe]  ;;  %v354_v48 = vld [vmem:[#allocation2 + $0x80] sm:$0xe] }
  0x70   : > { %347 = vst [vmem:[#allocation2 + $0x5c] sm:$0xe] %v346_v45  ;;  %350 = vst [vmem:[#allocation2 + $0x68] sm:$0xe] %v349_v46  ;;  %v352_v49 = vsel %vm5601_vm5, 0, %v351_v47  ;;  %v355_v50 = vsel %vm5601_vm5, 0, %v354_v48 }
  0x71   : > { %v357_v51 = vld [vmem:[#allocation2 + $0x8c] sm:$0xe]  ;;  %v360_v52 = vld [vmem:[#allocation2 + $0x98] sm:$0xe]  ;;  %353 = vst [vmem:[#allocation2 + $0x74] sm:$0xe] %v352_v49 }
  0x72   : > { %356 = vst [vmem:[#allocation2 + $0x80] sm:$0xe] %v355_v50  ;;  %v358_v53 = vsel %vm5601_vm5, 0, %v357_v51  ;;  %v361_v54 = vsel %vm5601_vm5, 0, %v360_v52  ;;  %v363_v55 = vld [vmem:[#allocation2 + $0xa4] sm:$0xe] }
  0x73   : > { %v366_v56 = vld [vmem:[#allocation2 + $0xb0] sm:$0xe]  ;;  %359 = vst [vmem:[#allocation2 + $0x8c] sm:$0xe] %v358_v53  ;;  %362 = vst [vmem:[#allocation2 + $0x98] sm:$0xe] %v361_v54 }
  0x74   : > { %v364_v57 = vsel %vm5601_vm5, 0, %v363_v55  ;;  %v367_v58 = vsel %vm5601_vm5, 0, %v366_v56  ;;  %v369_v59 = vld [vmem:[#allocation2 + $0xbc] sm:$0xe]  ;;  %v372_v60 = vld [vmem:[#allocation2 + $0xc8] sm:$0xe] }
  0x75   : > { %365 = vst [vmem:[#allocation2 + $0xa4] sm:$0xe] %v364_v57  ;;  %368 = vst [vmem:[#allocation2 + $0xb0] sm:$0xe] %v367_v58  ;;  %v370_v61 = vsel %vm5601_vm5, 0, %v369_v59  ;;  %v373_v62 = vsel %vm5601_vm5, 0, %v372_v60 }
  0x76   : > { %v375_v63 = vld [vmem:[#allocation2 + $0xd4] sm:$0xe]  ;;  %v378_v0 = vld [vmem:[#allocation2 + $0xe0] sm:$0xe]  ;;  %371 = vst [vmem:[#allocation2 + $0xbc] sm:$0xe] %v370_v61 }
  0x77   : > { %374 = vst [vmem:[#allocation2 + $0xc8] sm:$0xe] %v373_v62  ;;  %v376_v2 = vsel %vm5601_vm5, 0, %v375_v63  ;;  %v379_v3 = vsel %vm5601_vm5, 0, %v378_v0  ;;  %s5649_s26 = smov 0  }
  0x78   : > { %377 = vst [vmem:[#allocation2 + $0xd4] sm:$0xe] %v376_v2  ;;  %380 = vst [vmem:[#allocation2 + $0xe0] sm:$0xe] %v379_v3 }
  0x79 LB: >> { %s4677_s14 = sshll.u32 %s5355_s26, 7  ;;  %s4461_s7 = smul.u32 96, %s5355_s26  ;;  %vm455_vm6 = vsmask.f32 5392  ;;  %s5355_s26 = sphi %s5649_s26, %s386_s26  }
  0x7a   : >> { %s5656_s6 = scalar_lea.vmem %s5560_s12, %s4677_s14 [#allocation5]  ;;  %vm5671_vm7 = vmor %vm280_vm1, %vm455_vm6  ;;  %s386_s26 = sadd.s32 1, %s5355_s26  }
  0x7b   : >> { %v390_v4 = vld [vmem:[%s5656_s6] sm:$0xff]  ;;  %v391_v5 = vld [vmem:[%s5656_s6 + $0x8] sm:$0xff]  ;;  %v392_v6 = vld [vmem:[%s5656_s6 + $0x10] sm:$0xff]  ;;  %s5665_s15 = scalar_lea.vmem [#allocation2], %s4461_s7  ;;  %p383_p4 = scmp.ge.s32.totalorder %s386_s26, 2  }
  0x7c   : >> { %v4678_v7 = vpack.c.bf16 %v390_v4, %v390_v4  ;;  %v4679_v8 = vpack.c.bf16 %v391_v5, %v391_v5  ;;  %v4680_v9 = vpack.c.bf16 %v392_v6, %v392_v6  ;;  %v393_v10 = vld [vmem:[%s5656_s6 + $0x18] sm:$0xff]  ;;  %v394_v11 = vld [vmem:[%s5656_s6 + $0x20] sm:$0xff]  ;;  %v395_v24 = vld [vmem:[%s5656_s6 + $0x28] sm:$0xff]  ;;  %s5775_s10 = smov (%p383_p4), 0  }
  0x7d   : >> { %v4681_v18 = vpack.c.bf16 %v393_v10, %v393_v10  ;;  %v4682_v19 = vpack.c.bf16 %v394_v11, %v394_v11  ;;  %v4683_v41 = vpack.c.bf16 %v395_v24, %v395_v24  ;;  %v396_v46 = vld [vmem:[%s5656_s6 + $0x30] sm:$0xff]  ;;  %v397_v51 = vld [vmem:[%s5656_s6 + $0x38] sm:$0xff]  ;;  %v398_v52 = vld [vmem:[%s5656_s6 + $0x40] sm:$0xff] }
  0x7e   : >> { %v458_v12 = vshrl.u32 %v4678_v7, 16  ;;  %v461_v13 = vshll.u32 %v4678_v7, 16  ;;  %v467_v14 = vshrl.u32 %v4679_v8, 16  ;;  %v470_v15 = vshll.u32 %v4679_v8, 16  ;;  %v399_v4 = vld [vmem:[%s5656_s6 + $0x48] sm:$0xff] }
  0x7f   : >> { %v477_v16 = vshrl.u32 %v4680_v9, 16  ;;  %v480_v17 = vshll.u32 %v4680_v9, 16  ;;  %v4462_v25 = vld [vmem:[%s5665_s15 + $0x24] sm:$0xe]  ;;  %v486_v29 = vshrl.u32 %v4681_v18, 16  ;;  %v489_v30 = vshll.u32 %v4681_v18, 16 }
  0x80   : >> { %v460_v20 = vrot.slane %v458_v12, 6  ;;  %v463_v21 = vrot.slane %v461_v13, 7  ;;  %v469_v22 = vrot.slane %v467_v14, 6  ;;  %v472_v23 = vrot.slane %v470_v15, 7  ;;  %v4467_v33 = vld [vmem:[%s5665_s15 + $0x30] sm:$0xe] }
  0x81   : >> { %v479_v26 = vrot.slane %v477_v16, 6  ;;  %v482_v27 = vrot.slane %v480_v17, 7  ;;  %v496_v34 = vshrl.u32 %v4682_v19, 16  ;;  %v499_v35 = vshll.u32 %v4682_v19, 16  ;;  %v4465_v37 = vld [vmem:[%s5665_s15 + $0x2c] sm:$0x3] }
  0x82   : >> { %v464_v31 = vor.u32 %v463_v21, %v460_v20  ;;  %v473_v32 = vor.u32 %v472_v23, %v469_v22  ;;  %v488_v39 = vrot.slane %v486_v29, 6  ;;  %v491_v40 = vrot.slane %v489_v30, 7  ;;  %v4470_v55 = vld [vmem:[%s5665_s15 + $0x38] sm:$0x3]  ;;  %v4472_v56 = vld [vmem:[%s5665_s15 + $0x3c] sm:$0xe] }
  0x83   : >> { %v483_v38 = vor.u32 %v482_v27, %v479_v26  ;;  %v498_v45 = vrot.slane %v496_v34, 6  ;;  %v501_v50 = vrot.slane %v499_v35, 7  ;;  %v505_v57 = vshrl.u32 %v4683_v41, 16  ;;  %v4475_v13 = vld [vmem:[%s5665_s15 + $0x44] sm:$0x3]  ;;  %v400_v18 = vld [vmem:[%s5656_s6 + $0x50] sm:$0xff] }
  0x84   : >> { %v637_v42 = vsel %vm5601_vm5, %v464_v31, %v4462_v25  ;;  %v465_v43 = vrot.slane %v464_v31, 4  ;;  %v475_v44 = vrot.slane %v473_v32, 4  ;;  %v492_v49 = vor.u32 %v491_v40, %v488_v39  ;;  %v401_v23 = vld [vmem:[%s5656_s6 + $0x58] sm:$0xff]  ;;  %v4477_v24 = vld [vmem:[%s5665_s15 + $0x48] sm:$0xe] }
  0x85   : >> { %4463 = vst [vmem:[%s5665_s15 + $0x24] sm:$0xe] %v637_v42  ;;  %v644_v47 = vsel %vm5601_vm5, %v483_v38, %v4467_v33  ;;  %v484_v48 = vrot.slane %v483_v38, 4  ;;  %v508_v58 = vshll.u32 %v4683_v41, 16  ;;  %v502_v61 = vor.u32 %v501_v50, %v498_v45  ;;  %v4480_v42 = vld [vmem:[%s5665_s15 + $0x50] sm:$0x3] }
  0x86   : >> { %v474_v53 = vsel %vm5671_vm7, %v465_v43, %v473_v32  ;;  %v641_v54 = vsel %vm5571_vm2, %v475_v44, %v4465_v37  ;;  %4468 = vst [vmem:[%s5665_s15 + $0x30] sm:$0xe] %v644_v47  ;;  %v494_v60 = vrot.slane %v492_v49, 4  ;;  %v4684_v62 = vpack.c.bf16 %v396_v46, %v396_v46  ;;  %v4482_v32 = vld [vmem:[%s5665_s15 + $0x54] sm:$0xe]  ;;  %v402_v45 = vld [vmem:[%s5656_s6 + $0x60] sm:$0xff] }
  0x87   : >> { %4464 = vst [vmem:[%s5665_s15 + $0x28] sm:$0xf] %v474_v53  ;;  %4466 = vst [vmem:[%s5665_s15 + $0x2c] sm:$0x3] %v641_v54  ;;  %v493_v59 = vsel %vm5671_vm7, %v484_v48, %v492_v49  ;;  %v507_v63 = vrot.slane %v505_v57, 6  ;;  %v510_v0 = vrot.slane %v508_v58, 7  ;;  %v4685_v2 = vpack.c.bf16 %v397_v51, %v397_v51 }
  0x88   : >> { %4469 = vst [vmem:[%s5665_s15 + $0x34] sm:$0xf] %v493_v59  ;;  %v4686_v3 = vpack.c.bf16 %v398_v52, %v398_v52  ;;  %v648_v5 = vsel %vm5571_vm2, %v494_v60, %v4470_v55  ;;  %v651_v6 = vsel %vm5601_vm5, %v502_v61, %v4472_v56  ;;  %v503_v7 = vrot.slane %v502_v61, 4  ;;  %v403_v50 = vld [vmem:[%s5656_s6 + $0x68] sm:$0xff]  ;;  %v4485_v56 = vld [vmem:[%s5665_s15 + $0x5c] sm:$0x3] }
  0x89   : >> { %v515_v8 = vshrl.u32 %v4684_v62, 16  ;;  %4471 = vst [vmem:[%s5665_s15 + $0x38] sm:$0x3] %v648_v5  ;;  %4473 = vst [vmem:[%s5665_s15 + $0x3c] sm:$0xe] %v651_v6  ;;  %v511_v9 = vor.u32 %v510_v0, %v507_v63  ;;  %v518_v10 = vshll.u32 %v4684_v62, 16  ;;  %v4687_v17 = vpack.c.bf16 %v399_v4, %v399_v4 }
  0x8a   : >> { %v524_v11 = vshrl.u32 %v4685_v2, 16  ;;  %v527_v12 = vshll.u32 %v4685_v2, 16  ;;  %v534_v15 = vshrl.u32 %v4686_v3, 16  ;;  %v537_v16 = vshll.u32 %v4686_v3, 16  ;;  %v404_v60 = vld [vmem:[%s5656_s6 + $0x70] sm:$0xff] }
  0x8b   : >> { %v517_v14 = vrot.slane %v515_v8, 6  ;;  %v512_v19 = vsel %vm5671_vm7, %v503_v7, %v511_v9  ;;  %v513_v20 = vrot.slane %v511_v9, 4  ;;  %v520_v21 = vrot.slane %v518_v10, 7  ;;  %v4487_v63 = vld [vmem:[%s5665_s15 + $0x60] sm:$0xe] }
  0x8c   : >> { %v526_v22 = vrot.slane %v524_v11, 6  ;;  %4474 = vst [vmem:[%s5665_s15 + $0x40] sm:$0xf] %v512_v19  ;;  %v529_v25 = vrot.slane %v527_v12, 7  ;;  %v536_v26 = vrot.slane %v534_v15, 6  ;;  %v539_v27 = vrot.slane %v537_v16, 7 }
  0x8d   : >> { %v543_v29 = vshrl.u32 %v4687_v17, 16  ;;  %v655_v30 = vsel %vm5571_vm2, %v513_v20, %v4475_v13  ;;  %v521_v31 = vor.u32 %v520_v21, %v517_v14  ;;  %v546_v33 = vshll.u32 %v4687_v17, 16  ;;  %v405_v11 = vld [vmem:[%s5656_s6 + $0x78] sm:$0xff]  ;;  %v4490_v16 = vld [vmem:[%s5665_s15 + $0x68] sm:$0x3] }
  0x8e   : >> { %v4688_v34 = vpack.c.bf16 %v400_v18, %v400_v18  ;;  %4476 = vst [vmem:[%s5665_s15 + $0x44] sm:$0x3] %v655_v30  ;;  %v530_v35 = vor.u32 %v529_v25, %v526_v22  ;;  %v540_v37 = vor.u32 %v539_v27, %v536_v26  ;;  %v4689_v39 = vpack.c.bf16 %v401_v23, %v401_v23  ;;  %v4492_v23 = vld [vmem:[%s5665_s15 + $0x6c] sm:$0xe] }
  0x8f   : >> { %v545_v38 = vrot.slane %v543_v29, 6  ;;  %v658_v40 = vsel %vm5601_vm5, %v521_v31, %v4477_v24  ;;  %v522_v41 = vrot.slane %v521_v31, 4  ;;  %v548_v43 = vrot.slane %v546_v33, 7  ;;  %v4495_v31 = vld [vmem:[%s5665_s15 + $0x74] sm:$0x3] }
  0x90   : >> { %v553_v44 = vshrl.u32 %v4688_v34, 16  ;;  %4478 = vst [vmem:[%s5665_s15 + $0x48] sm:$0xe] %v658_v40  ;;  %v532_v46 = vrot.slane %v530_v35, 4  ;;  %v665_v47 = vsel %vm5601_vm5, %v540_v37, %v4482_v32  ;;  %v541_v48 = vrot.slane %v540_v37, 4 }
  0x91   : >> { %v556_v49 = vshll.u32 %v4688_v34, 16  ;;  %v531_v51 = vsel %vm5671_vm7, %v522_v41, %v530_v35  ;;  %4483 = vst [vmem:[%s5665_s15 + $0x54] sm:$0xe] %v665_v47  ;;  %v549_v52 = vor.u32 %v548_v43, %v545_v38  ;;  %v562_v54 = vshrl.u32 %v4689_v39, 16 }
  0x92   : >> { %v555_v53 = vrot.slane %v553_v44, 6  ;;  %4479 = vst [vmem:[%s5665_s15 + $0x4c] sm:$0xf] %v531_v51  ;;  %v662_v55 = vsel %vm5571_vm2, %v532_v46, %v4480_v42  ;;  %v565_v58 = vshll.u32 %v4689_v39, 16  ;;  %v4690_v59 = vpack.c.bf16 %v402_v45, %v402_v45  ;;  %v4497_v39 = vld [vmem:[%s5665_s15 + $0x78] sm:$0xe] }
  0x93   : >> { %v558_v57 = vrot.slane %v556_v49, 7  ;;  %4481 = vst [vmem:[%s5665_s15 + $0x50] sm:$0x3] %v662_v55  ;;  %v550_v61 = vsel %vm5671_vm7, %v541_v48, %v549_v52  ;;  %v551_v62 = vrot.slane %v549_v52, 4  ;;  %v564_v0 = vrot.slane %v562_v54, 6 }
  0x94   : >> { %v4691_v2 = vpack.c.bf16 %v403_v50, %v403_v50  ;;  %4484 = vst [vmem:[%s5665_s15 + $0x58] sm:$0xf] %v550_v61  ;;  %v567_v4 = vrot.slane %v565_v58, 7  ;;  %v572_v5 = vshrl.u32 %v4690_v59, 16  ;;  %v575_v6 = vshll.u32 %v4690_v59, 16 }
  0x95   : >> { %v559_v3 = vor.u32 %v558_v57, %v555_v53  ;;  %v669_v7 = vsel %vm5571_vm2, %v551_v62, %v4485_v56  ;;  %v4692_v10 = vpack.c.bf16 %v404_v60, %v404_v60  ;;  %v4693_v25 = vpack.c.bf16 %v405_v11, %v405_v11  ;;  %v4500_v48 = vld [vmem:[%s5665_s15 + $0x80] sm:$0x3] }
  0x96   : >> { %v581_v8 = vshrl.u32 %v4691_v2, 16  ;;  %v584_v9 = vshll.u32 %v4691_v2, 16  ;;  %4486 = vst [vmem:[%s5665_s15 + $0x5c] sm:$0x3] %v669_v7  ;;  %v568_v14 = vor.u32 %v567_v4, %v564_v0  ;;  %v574_v15 = vrot.slane %v572_v5, 6 }
  0x97   : >> { %v672_v12 = vsel %vm5601_vm5, %v559_v3, %v4487_v63  ;;  %v560_v13 = vrot.slane %v559_v3, 4  ;;  %v577_v17 = vrot.slane %v575_v6, 7  ;;  %v591_v20 = vshrl.u32 %v4692_v10, 16 }
  0x98   : >> { %4488 = vst [vmem:[%s5665_s15 + $0x60] sm:$0xe] %v672_v12  ;;  %v583_v18 = vrot.slane %v581_v8, 6  ;;  %v586_v19 = vrot.slane %v584_v9, 7  ;;  %v570_v22 = vrot.slane %v568_v14, 4  ;;  %v594_v24 = vshll.u32 %v4692_v10, 16 }
  0x99   : >> { %v569_v21 = vsel %vm5671_vm7, %v560_v13, %v568_v14  ;;  %v578_v26 = vor.u32 %v577_v17, %v574_v15  ;;  %v593_v29 = vrot.slane %v591_v20, 6  ;;  %v600_v33 = vshrl.u32 %v4693_v25, 16 }
  0x9a   : >> { %4489 = vst [vmem:[%s5665_s15 + $0x64] sm:$0xf] %v569_v21  ;;  %v587_v27 = vor.u32 %v586_v19, %v583_v18  ;;  %v676_v30 = vsel %vm5571_vm2, %v570_v22, %v4490_v16  ;;  %v596_v32 = vrot.slane %v594_v24, 7  ;;  %v603_v34 = vshll.u32 %v4693_v25, 16 }
  0x9b   : >> { %4491 = vst [vmem:[%s5665_s15 + $0x68] sm:$0x3] %v676_v30  ;;  %v679_v35 = vsel %vm5601_vm5, %v578_v26, %v4492_v23  ;;  %v579_v37 = vrot.slane %v578_v26, 4  ;;  %v602_v41 = vrot.slane %v600_v33, 6  ;;  %v8125_v52 = vmov (%p383_p4), 0.0  }
  0x9c   : >> { %v589_v38 = vrot.slane %v587_v27, 4  ;;  %4493 = vst [vmem:[%s5665_s15 + $0x6c] sm:$0xe] %v679_v35  ;;  %v597_v40 = vor.u32 %v596_v32, %v593_v29  ;;  %v605_v42 = vrot.slane %v603_v34, 7  ;;  %692 = vst [vmem:[#allocation4] sm:$0x1] (%p383_p4), %v8125_v52 }
  0x9d   : >> { %v588_v43 = vsel %vm5671_vm7, %v579_v37, %v587_v27  ;;  %385 = sbr.rel (!%p383_p4) target bundleno = 121 (0x79), region = 118 }
  0x9e   : >> { %v683_v44 = vsel %vm5571_vm2, %v589_v38, %v4495_v31  ;;  %4494 = vst [vmem:[%s5665_s15 + $0x70] sm:$0xf] %v588_v43  ;;  %v686_v45 = vsel %vm5601_vm5, %v597_v40, %v4497_v39  ;;  %v598_v46 = vrot.slane %v597_v40, 4  ;;  %v606_v47 = vor.u32 %v605_v42, %v602_v41 }
  0x9f   : >> { %4496 = vst [vmem:[%s5665_s15 + $0x74] sm:$0x3] %v683_v44  ;;  %4498 = vst [vmem:[%s5665_s15 + $0x78] sm:$0xe] %v686_v45 }
  0xa0   : >> { %v607_v49 = vsel %vm5671_vm7, %v598_v46, %v606_v47  ;;  %v608_v50 = vrot.slane %v606_v47, 4 }
  0xa1   : >> { %4499 = vst [vmem:[%s5665_s15 + $0x7c] sm:$0xf] %v607_v49 }
  0xa2   : >> { %v690_v51 = vsel %vm5571_vm2, %v608_v50, %v4500_v48 }
  0xa3   : >> { %4501 = vst [vmem:[%s5665_s15 + $0x80] sm:$0x3] %v690_v51 }
  0xa4 LB: >> { %s4694_s29 = smul.u32 96, %s5359_s10  ;;  %s5373_s28 = smov 16   ;;  %vm879_vm8 = vsmask.f32 7424  ;;  %vm1108_vm9 = vcmask 1046528   ;;  %vm1171_vm10 = vcmask 130048   ;;  %s5359_s10 = sphi %s5775_s10, %s698_s10  }
  0xa5   : >> { %s5374_s16 = smov 32   ;;  %s5375_s17 = smov 48   ;;  %vm1189_vm11 = vcmask 261120   ;;  %vm1206_vm12 = vcmask 392192   ;;  %vm1223_vm13 = vcmask 523264   ;;  %vm1240_vm14 = vcmask 654336  }
  0xa6   : >> { %s5781_s13 = scalar_lea.vmem [#allocation2], %s4694_s29  ;;  %s5376_s27 = smov 64   ;;  %vm1257_vm15 = vcmask 785408   ;;  %vm1274_vm0 = vcmask 916480   ;;  %vm2977_vm1 = vsmask.f32 6400 }
  0xa7   : >> { %s5377_s11 = smov 80   ;;  %s5378_s26 = smov 96   ;;  %vm3445_vm2 = vcmask 1044480  }
  0xa8   : >> { %s5379_s14 = smov 112   ;;  %s4695_s6 = sshll.u32 %s5359_s10, 7 }
  0xa9   : >> { %s7712_s7 = scalar_lea.vmem %s5560_s12, %s4695_s6 [#allocation5]  ;;  %s698_s10 = sadd.s32 1, %s5359_s10  }
  0xaa   : >> { %v713_v1 = vld [vmem:[%s5781_s13 + $0x3c] sm:$0xf]  ;;  %v5785_v28 = vld [vmem:[%s5781_s13 + $0x40] sm:$0xf]  ;;  %v709_v36 = vld [vmem:[%s5781_s13 + $0x24] sm:$0xf] }
  0xab   : >> { %v5789_v53 = vcombine.low %v713_v1, %v5785_v28  ;;  %v5792_v54 = vld [vmem:[%s5781_s13 + $0x28] sm:$0xf]  ;;  %v5796_v56 = vld [vmem:[%s5781_s13 + $0x4c] sm:$0xf]  ;;  %v711_v58 = vld [vmem:[%s5781_s13 + $0x30] sm:$0xf] }
  0xac   : >> { %v715_v55 = vld [vmem:[%s5781_s13 + $0x48] sm:$0xf]  ;;  %v5799_v57 = vcombine.low %v709_v36, %v5792_v54  ;;  %v5803_v59 = vld [vmem:[%s5781_s13 + $0x34] sm:$0xf]  ;;  %v719_v62 = vld [vmem:[%s5781_s13 + $0x60] sm:$0xf] }
  0xad   : >> { %8180 = vst [vmem:[#allocation14_spill] sm:$0xff] %v5789_v53  ;;  %812 = vrot.lane.b32.xlu1 %v5789_v53, %s5373_s28  ;;  %v5808_v60 = vcombine.low %v715_v55, %v5796_v56  ;;  %v5813_v61 = vcombine.low %v711_v58, %v5803_v59  ;;  %v5817_v63 = vld [vmem:[%s5781_s13 + $0x64] sm:$0xf]  ;;  %v717_v0 = vld [vmem:[%s5781_s13 + $0x54] sm:$0xf]  ;;  %v5021_v14 = vld [vmem:[%s5781_s13 + $0xc] sm:$0xff]  }
  0xae   : >> { %8181 = vst [vmem:[#allocation15_spill] sm:$0xff] %v5799_v57  ;;  %808 = vrot.lane.b32.xlu0 %v5799_v57, %s5373_s28  ;;  %v5821_v2 = vld [vmem:[%s5781_s13 + $0x58] sm:$0xf]  ;;  %v5826_v3 = vcombine.low %v719_v62, %v5817_v63  ;;  %v5835_v6 = vld [vmem:[%s5781_s13 + $0x7c] sm:$0xf]  ;;  %v883_v20 = vshll.u32 %v5021_v14, 16 }
  0xaf   : >> { %8182 = vst [vmem:[#allocation16_spill] sm:$0xff] %v5808_v60  ;;  %8183 = vst [vmem:[#allocation17_spill] sm:$0xff] %v5813_v61  ;;  %v5831_v4 = vcombine.low %v717_v0, %v5821_v2  ;;  %v723_v5 = vld [vmem:[%s5781_s13 + $0x78] sm:$0xf]  ;;  %v721_v7 = vld [vmem:[%s5781_s13 + $0x6c] sm:$0xf] }
  0xb0   : >> { %v5839_v8 = vld [vmem:[%s5781_s13 + $0x70] sm:$0xf]  ;;  %v5844_v9 = vcombine.low %v723_v5, %v5835_v6  ;;  %v707_v11 = vld [vmem:[%s5781_s13 + $0x18] sm:$0xf]  ;;  %v5853_v12 = vld [vmem:[%s5781_s13 + $0x1c] sm:$0xf] }
  0xb1   : >> { %814 = vrot.lane.b32.xlu1 %v5808_v60, %s5373_s28  ;;  %8184 = vst [vmem:[#allocation18_spill] sm:$0xff] %v5831_v4  ;;  %v5849_v10 = vcombine.low %v721_v7, %v5839_v8  ;;  %v5858_v13 = vcombine.low %v707_v11, %v5853_v12  ;;  %v725_v15 = vld [vmem:[%s5781_s13 + $0x84] sm:$0xf]  ;;  %v5867_v16 = vld [vmem:[%s5781_s13 + $0x20] ss:$0 sps:$4 sm:$0x11]  }
  0xb2   : >> { %810 = vrot.lane.b32.xlu0 %v5813_v61, %s5373_s28  ;;  %v726_v18 = vld [vmem:[%s5781_s13 + $0x88] sm:$0xf]  ;;  %v5022_v19 = vld [vmem:[%s5781_s13 + $0x14] ss:$0 sps:$4 sm:$0x11]   ;;  %v919_v21 = vshll.u32 %v5813_v61, 16 }
  0xb3   : >> { %8185 = vst [vmem:[#allocation19_spill] sm:$0xff] %v5858_v13  ;;  %v895_v17 = vshll.u32 %v5858_v13, 16  ;;  %v5877_v22 = vcombine.low %v725_v15, %v726_v18  ;;  %v893_v23 = vshrl.u32 %v5858_v13, 16  ;;  %v900_v25 = vshll.u32 %v5867_v16, 16  ;;  %v5017_v33 = vld [vmem:[%s5781_s13 + $0x9c] sm:$0xff]   ;;  %v5892_v34 = vld [vmem:[%s5781_s13 + $0x90] sm:$0xff]  }
  0xb4   : >> { %v5882_v26 = vld [vmem:[%s5781_s13 + $0x38] ss:$0 sps:$4 sm:$0x11]   ;;  %v881_v27 = vshrl.u32 %v5021_v14, 16  ;;  %v885_v29 = vrot.slane %v883_v20, 1  ;;  %v888_v30 = vshll.u32 %v5022_v19, 16 }
  0xb5   : >> { %818 = vrot.lane.b32.xlu1 %v5826_v3, %s5373_s28  ;;  %v897_v24 = vrot.slane %v895_v17, 1  ;;  %v5887_v31 = vld [vmem:[%s5781_s13 + $0x2c] ss:$0 sps:$4 sm:$0x11]   ;;  %v907_v32 = vshll.u32 %v5799_v57, 16  ;;  %v917_v35 = vshrl.u32 %v5813_v61, 16 }
  0xb6   : >> { %816 = vrot.lane.b32.xlu0 %v5831_v4, %s5373_s28  ;;  %v921_v37 = vrot.slane %v919_v21, 1  ;;  %v902_v39 = vrot.slane %v900_v25, 1  ;;  %v924_v40 = vshll.u32 %v5882_v26, 16  ;;  %v5899_v41 = vld [vmem:[%s5781_s13 + $0x50] ss:$0 sps:$4 sm:$0x11]   ;;  %v886_v43 = vor.u32 %v885_v29, %v881_v27 }
  0xb7   : >> { %v898_v38 = vor.u32 %v897_v24, %v893_v23  ;;  %v943_v42 = vshll.u32 %v5808_v60, 16  ;;  %v890_v44 = vrot.slane %v888_v30, 1  ;;  %v5905_v45 = vld [vmem:[%s5781_s13 + $0x44] ss:$0 sps:$4 sm:$0x11]   ;;  %v905_v46 = vshrl.u32 %v5799_v57, 16 }
  0xb8   : >> { %v909_v47 = vrot.slane %v907_v32, 1  ;;  %v912_v48 = vshll.u32 %v5887_v31, 16  ;;  %v931_v49 = vshll.u32 %v5789_v53, 16  ;;  %v922_v50 = vor.u32 %v921_v37, %v917_v35  ;;  %v5920_v7 = vld [vmem:[%s5781_s13 + $0x68] ss:$0 sps:$4 sm:$0x11]  }
  0xb9   : >> { %822 = vrot.lane.b32.xlu1 %v5844_v9, %s5373_s28  ;;  %v941_v51 = vshrl.u32 %v5808_v60, 16  ;;  %v903_v1 = vsel %vm879_vm8, %v898_v38, %v902_v39  ;;  %v926_v36 = vrot.slane %v924_v40, 1  ;;  %v945_v55 = vrot.slane %v943_v42, 1  ;;  %v5924_v18 = vld [vmem:[%s5781_s13 + $0x5c] ss:$0 sps:$4 sm:$0x11]  }
  0xba   : >> { %820 = vrot.lane.b32.xlu0 %v5849_v10, %s5373_s28  ;;  %v948_v58 = vshll.u32 %v5899_v41, 16  ;;  %v891_v62 = vsel %vm879_vm8, %v886_v43, %v890_v44  ;;  %v929_v0 = vshrl.u32 %v5789_v53, 16  ;;  %v936_v5 = vshll.u32 %v5905_v45, 16  ;;  %v5944_v44 = vld [vmem:[%s5781_s13 + $0x80] ss:$0 sps:$4 sm:$0x11]  }
  0xbb   : >> { %v967_v11 = vshll.u32 %v5826_v3, 16  ;;  %v910_v14 = vor.u32 %v909_v47, %v905_v46  ;;  %v914_v15 = vrot.slane %v912_v48, 1  ;;  %v933_v17 = vrot.slane %v931_v49, 1  ;;  %v5947_v46 = vld [vmem:[%s5781_s13 + $0x74] ss:$0 sps:$4 sm:$0x11]  }
  0xbc   : >> { %v955_v19 = vshll.u32 %v5831_v4, 16  ;;  %v927_v20 = vsel %vm879_vm8, %v922_v50, %v926_v36  ;;  %v946_v21 = vor.u32 %v945_v55, %v941_v51  ;;  %v950_v23 = vrot.slane %v948_v58, 1  ;;  %v5031_v49 = vld [vmem:[%s5781_s13 + $0x98] ss:$0 sps:$4 sm:$0x11]   ;;  %p695_p6 = scmp.ge.s32.totalorder %s698_s10, 2  }
  0xbd   : >> { %841 = vrot.lane.b32.xlu1 %v5831_v4, %s5374_s16  ;;  %v965_v24 = vshrl.u32 %v5826_v3, 16  ;;  %v938_v25 = vrot.slane %v936_v5, 1  ;;  %v969_v27 = vrot.slane %v967_v11, 1  ;;  %v972_v29 = vshll.u32 %v5920_v7, 16  ;;  %v5064_v53 = vld [vmem:[%s5781_s13 + $0xc] sm:$0xfe]  }
  0xbe   : >> { %839 = vrot.lane.b32.xlu0 %v5808_v60, %s5374_s16  ;;  %v953_v30 = vshrl.u32 %v5831_v4, 16  ;;  %v915_v32 = vsel %vm879_vm8, %v910_v14, %v914_v15  ;;  %v957_v35 = vrot.slane %v955_v19, 1  ;;  %v960_v37 = vshll.u32 %v5924_v18, 16  ;;  %v5032_v11 = vld [vmem:[%s5781_s13 + $0x8c] ss:$0 sps:$4 sm:$0x11]  }
  0xbf   : >> { %v970_v38 = vor.u32 %v969_v27, %v965_v24  ;;  %v974_v39 = vrot.slane %v972_v29, 1  ;;  %v1013_v47 = vshll.u32 %v5844_v9, 16  ;;  %v1018_v51 = vshll.u32 %v5944_v44, 16  ;;  %v743_v27 = vld [vmem:[%s5781_s13 + $0x18] sm:$0xe] }
  0xc0   : >> { %v958_v42 = vor.u32 %v957_v35, %v953_v30  ;;  %v962_v43 = vrot.slane %v960_v37, 1  ;;  %v1047_v36 = vshll.u32 %v5877_v22, 16  ;;  %v1059_v55 = vshll.u32 %v5892_v34, 16  ;;  %v746_v30 = vld [vmem:[%s5781_s13 + $0x3c] sm:$0xe] }
  0xc1   : >> { %845 = vrot.lane.b32.xlu1 %v5849_v10, %s5374_s16  ;;  %v5955_v48 = vsel %vm879_vm8, %v970_v38, %v974_v39  ;;  %v1006_v58 = vshll.u32 %v5947_v46, 16  ;;  %v1064_v5 = vshll.u32 %v5031_v49, 16  ;;  %v1020_v14 = vrot.slane %v1018_v51, 1  ;;  %v745_v35 = vld [vmem:[%s5781_s13 + $0x30] sm:$0xe] }
  0xc2   : >> { %843 = vrot.lane.b32.xlu0 %v5826_v3, %s5374_s16  ;;  %v5938_v3 = vsel %vm879_vm8, %v946_v21, %v950_v23  ;;  %v5959_v50 = vsel %vm879_vm8, %v958_v42, %v962_v43  ;;  %v999_v15 = vshrl.u32 %v5849_v10, 16  ;;  %v1057_v19 = vshrl.u32 %v5892_v34, 16  ;;  %v748_v37 = vld [vmem:[%s5781_s13 + $0x54] sm:$0xe]  ;;  %v747_v43 = vld [vmem:[%s5781_s13 + $0x48] sm:$0xe] }
  0xc3   : >> { %v1008_v21 = vrot.slane %v1006_v58, 1  ;;  %v5974_v23 = vrot.slane %v1059_v55, 1  ;;  %v5977_v24 = vrot.slane %v1047_v36, 1  ;;  %v1052_v29 = vshll.u32 %v5032_v11, 16  ;;  %v751_v51 = vld [vmem:[%s5781_s13 + $0x78] sm:$0xe] }
  0xc4   : >> { %v4531_v39 = vcombine.low %v743_v27, %v5853_v12  ;;  %v1110_v42 = vrot.slane %v5867_v16, 1  ;;  %v6005_v49 = vcombine.low %v748_v37, %v5821_v2  ;;  %v749_v12 = vld [vmem:[%s5781_s13 + $0x60] sm:$0xe]  ;;  %v6021_v2 = vcombine.low %v747_v43, %v5796_v56  ;;  %v6068_v52 = vld [vmem:[%s5781_s13 + $0x38] ss:$0 sps:$4 sm:$0x33]  }
  0xc5   : >> { %849 = vrot.lane.b32.xlu1 %v5877_v22, %s5374_s16  ;;  %v6010_v55 = vrot.slane %v1052_v29, 1  ;;  %v6044_v29 = vld [vmem:[%s5781_s13 + $0x18] sm:$0xfe]   ;;  %v1689_v61 = vshll.u32 %v5064_v53, 16  ;;  %vm5381_vm3 = vmmov (%p695_p6), 0   ;;  %vm4160_vm4 = vcmask (%p695_p6), 1043456  }
  0xc6   : >> { %847 = vrot.lane.b32.xlu0 %v5844_v9, %s5374_s16  ;;  %8186 = vst [vmem:[#allocation20_spill] sm:$0xff] %v6005_v49  ;;  %8187 = vst [vmem:[#allocation21_spill] sm:$0xff] %v6021_v2  ;;  %vm4156_vm5 = vcmask (%p695_p6), 31744  }
  0xc9   : >> { %853 = vrot.lane.b32.xlu1 %v5017_v33, %s5374_s16  ;;  %v934_v33 = vor.u32 %v933_v17, %v929_v0  ;;  %v1015_v0 = vrot.slane %v1013_v47, 1  ;;  %v750_v47 = vld [vmem:[%s5781_s13 + $0x6c] sm:$0xe] }
  0xca   : >> { %851 = vrot.lane.b32.xlu0 %v5892_v34, %s5374_s16  ;;  %v6028_v11 = vcombine.low %v750_v47, %v5839_v8  ;;  %v6086_v47 = vld [vmem:[%s5781_s13 + $0x50] ss:$0 sps:$4 sm:$0x33]  }
  0xcb   : >> { %v5941_v40 = vsel %vm879_vm8, %v934_v33, %v938_v25  ;;  %v744_v25 = vld [vmem:[%s5781_s13 + $0x24] sm:$0xe] }
  0xcc   : >> { %v4532_v38 = vcombine.low %v744_v25, %v5792_v54  ;;  %v6002_v54 = vcombine.low %v745_v35, %v5803_v59  ;;  %v1119_v59 = vrot.slane %v5905_v45, 1  ;;  %8188 = vst [vmem:[#allocation22_spill] sm:$0xff] %v6028_v11  ;;  %v6039_v25 = vcombine.low %v751_v51, %v5835_v6  ;;  %v6052_v35 = vld [vmem:[%s5781_s13 + $0x24] sm:$0xfe]   ;;  %v6073_v6 = vld [vmem:[%s5781_s13 + $0x30] sm:$0xfe]  }
  0xcd   : >> { %978 = vrot.lane.b32.xlu1 %v903_v1, %s5375_s17  ;;  %v1001_v1 = vshll.u32 %v5849_v10, 16  ;;  %v5983_v10 = vrot.slane %v1064_v5, 1  ;;  %v1116_v5 = vrot.slane %v5882_v26, 1 }
  0xce   : >> { %976 = vrot.lane.b32.xlu0 %v891_v62, %s5375_s17  ;;  %v1011_v62 = vshrl.u32 %v5844_v9, 16  ;;  %v1045_v9 = vshrl.u32 %v5877_v22, 16  ;;  %v6015_v58 = vrot.slane %v4532_v38, 1  ;;  %v1115_v56 = vrot.slane %v6002_v54, 1  ;;  %8190 = vst [vmem:[#allocation24_spill] sm:$0xff] %v6039_v25 }
  0xcf   : >> { %v1003_v17 = vrot.slane %v1001_v1, 1  ;;  %v1434_v38 = vshll.u32 %v6052_v35, 16 }
  0xd0   : >> { %v1016_v33 = vor.u32 %v1015_v0, %v1011_v62  ;;  %v6017_v62 = vrot.slane %v4531_v39, 1  ;;  %v6078_v39 = vld [vmem:[%s5781_s13 + $0x44] ss:$0 sps:$4 sm:$0x33]   ;;  %v1050_v34 = vor.u32 %v5977_v24, %v1045_v9  ;;  %v6117_v24 = vld [vmem:[%s5781_s13 + $0x48] sm:$0xfe]   ;;  %v1117_v16 = vsel %vm1108_vm9, %v1115_v56, %v1116_v5 }
  0xd1   : >> { %982 = vrot.lane.b32.xlu1 %v927_v20, %s5375_s17  ;;  %v1004_v36 = vor.u32 %v1003_v17, %v999_v15  ;;  %v1124_v15 = vrot.slane %v6005_v49, 1  ;;  %v1125_v17 = vrot.slane %v5924_v18, 1  ;;  %v1436_v43 = vrot.slane %v1434_v38, 1  ;;  %v6120_v38 = vld [vmem:[%s5781_s13 + $0x5c] ss:$0 sps:$4 sm:$0x33]  }
  0xd2   : >> { %980 = vrot.lane.b32.xlu0 %v915_v32, %s5375_s17  ;;  %v1021_v1 = vsel %vm879_vm8, %v1016_v33, %v1020_v14  ;;  %v6031_v14 = vcombine.low %v749_v12, %v5817_v63  ;;  %v6047_v63 = vld [vmem:[%s5781_s13 + $0x2c] ss:$0 sps:$4 sm:$0x33]   ;;  %v1062_v12 = vor.u32 %v5974_v23, %v1057_v19  ;;  %v1469_v23 = vshll.u32 %v6078_v39, 16  ;;  %v6579_v49 = vld [vmem:[%s5781_s13 + $0x24] sm:$0xfc]  }
  0xd3   : >> { %v1009_v27 = vsel %vm879_vm8, %v1004_v36, %v1008_v21  ;;  %v1419_v36 = vshll.u32 %v6044_v29, 16  ;;  %v1439_v37 = vshll.u32 %v6047_v63, 16  ;;  %v1484_v33 = vshll.u32 %v6086_v47, 16 }
  0xd4   : >> { %8189 = vst [vmem:[#allocation23_spill] sm:$0xff] %v6031_v14  ;;  %v1067_v22 = vsel %vm879_vm8, %v1062_v12, %v5983_v10  ;;  %v1488_v19 = vshrl.u32 %v6086_v47, 16  ;;  %v1477_v10 = vshrl.u32 %v6117_v24, 16  ;;  %v1479_v12 = vshll.u32 %v6117_v24, 16 }
  0xd5   : >> { %986 = vrot.lane.b32.xlu1 %v5938_v3, %s5375_s17  ;;  %v6097_v21 = vrot.slane %v1439_v37, 1  ;;  %v1126_v45 = vsel %vm1108_vm9, %v1124_v15, %v1125_v17  ;;  %v8194_v18 = vrot.slane %v6028_v11, 1  ;;  %v8195_v56 = vrot.slane %v5920_v7, 1 }
  0xd6   : >> { %984 = vrot.lane.b32.xlu0 %v5941_v40, %s5375_s17  ;;  %v8197_v7 = vrot.slane %v5944_v44, 1 }
  0xd9   : >> { %990 = vrot.lane.b32.xlu1 %v5955_v48, %s5375_s17 }
  0xda   : >> { %988 = vrot.lane.b32.xlu0 %v5959_v50, %s5375_s17 }
  0xdd   : >> { %1024 = vrot.lane.b32.xlu1 %v927_v20, %s5376_s27  ;;  %v1113_v20 = vrot.slane %v5887_v31, 1 }
  0xde   : >> { %1022 = vrot.lane.b32.xlu0 %v915_v32, %s5376_s27  ;;  %v5995_v32 = vcombine.low %v746_v30, %v5785_v28  ;;  %v6013_v28 = vld [vmem:[%s5781_s13 + $0x20] ss:$0 sps:$4 sm:$0x33]   ;;  %v1432_v30 = vshrl.u32 %v6052_v35, 16  ;;  %v1447_v35 = vshrl.u32 %v6073_v6, 16 }
  0xdf   : >> { %v1424_v8 = vshll.u32 %v6013_v28, 16 }
  0xe0   : >> { %v1118_v0 = vrot.slane %v5995_v32, 1 }
  0xe1   : >> { %1028 = vrot.lane.b32.xlu1 %v5938_v3, %s5376_s27  ;;  %v6064_v51 = vrot.slane %v1424_v8, 1  ;;  %v6083_v8 = vld [vmem:[%s5781_s13 + $0x3c] sm:$0xfe]  }
  0xe2   : >> { %1026 = vrot.lane.b32.xlu0 %v5941_v40, %s5376_s27  ;;  %v1120_v31 = vsel %vm1108_vm9, %v1118_v0, %v1119_v59  ;;  %v8193_v0 = vrot.slane %v5947_v46, 1  ;;  %v8198_v46 = vrot.slane %v6039_v25, 1 }
  0xe4   : >> { %v1132_v5 = vsel %vm1108_vm9, %v8194_v18, %v8193_v0  ;;  %v1154_v17 = vsel %vm1108_vm9, %v8198_v46, %v8197_v7 }
  0xe5   : >> { %1032 = vrot.lane.b32.xlu1 %v5955_v48, %s5376_s27 }
  0xe6   : >> { %1030 = vrot.lane.b32.xlu0 %v5959_v50, %s5376_s27 }
  0xe9   : >> { %1036 = vrot.lane.b32.xlu1 %v1021_v1, %s5376_s27 }
  0xea   : >> { %1034 = vrot.lane.b32.xlu0 %v1009_v27, %s5376_s27 }
  0xed   : >> { %1070 = vrot.lane.b32.xlu1 %v5938_v3, %s5377_s11  ;;  %v1454_v3 = vshll.u32 %v6068_v52, 16 }
  0xee   : >> { %1068 = vrot.lane.b32.xlu0 %v5941_v40, %s5377_s11  ;;  %v1421_v40 = vrot.slane %v1419_v36, 1 }
  0xef   : >> { %v6108_v37 = vrot.slane %v1454_v3, 1  ;;  %v6124_v3 = vrot.slane %v1469_v23, 1  ;;  %v8200_v23 = vshrl.u32 %v6013_v28, 16 }
  0xf1   : >> { %1074 = vrot.lane.b32.xlu1 %v5955_v48, %s5377_s11  ;;  %v1449_v48 = vshll.u32 %v6073_v6, 16  ;;  %v1462_v6 = vshrl.u32 %v6083_v8, 16 }
  0xf2   : >> { %1072 = vrot.lane.b32.xlu0 %v5959_v50, %s5377_s11  ;;  %v1464_v50 = vshll.u32 %v6083_v8, 16  ;;  %v1499_v8 = vshll.u32 %v6120_v38, 16 }
  0xf3   : >> { %v1451_v9 = vrot.slane %v1449_v48, 1  ;;  %v1111_v48 = vsel %vm1108_vm9, %v6017_v62, %v1110_v42  ;;  %v8191_v42 = vrot.slane %v5899_v41, 1  ;;  %v1481_v62 = vrot.slane %v1479_v12, 1 }
  0xf4   : >> { %v1466_v36 = vrot.slane %v1464_v50, 1  ;;  %v8196_v41 = vrot.slane %v6031_v14, 1  ;;  %v6202_v50 = vor.u32 %v8200_v23, %v6064_v51 }
  0xf5   : >> { %1078 = vrot.lane.b32.xlu1 %v1021_v1, %s5377_s11  ;;  %v1055_v1 = vsel %vm879_vm8, %v1050_v34, %v6010_v55  ;;  %v1114_v55 = vsel %vm1108_vm9, %v6015_v58, %v1113_v20  ;;  %v6151_v20 = vld [vmem:[%s5781_s13 + $0x54] sm:$0xfe]   ;;  %v8192_v58 = vrot.slane %v6021_v2, 1 }
  0xf6   : >> { %1076 = vrot.lane.b32.xlu0 %v1009_v27, %s5377_s11  ;;  %v6129_v27 = vrot.slane %v1484_v33, 1  ;;  %v1494_v59 = vshll.u32 %v6151_v20, 16  ;;  %v1129_v15 = vsel %vm1108_vm9, %v8196_v41, %v8195_v56  ;;  %v8199_v33 = vshrl.u32 %v6044_v29, 16 }
  0xf7   : >> { %v1123_v26 = vsel %vm1108_vm9, %v8192_v58, %v8191_v42  ;;  %v8201_v29 = vshrl.u32 %v6047_v63, 16  ;;  %v8203_v63 = vshrl.u32 %v6068_v52, 16  ;;  %v8208_v52 = vshrl.u32 %v6078_v39, 16  ;;  %v6267_v58 = vld [vmem:[%s5781_s13 + $0x6c] sm:$0xfe]  }
  0xf8   : >> { %v1422_v34 = vor.u32 %v1421_v40, %v8199_v33  ;;  %v1522_v33 = vshrl.u32 %v6267_v58, 16 }
  0xf9   : >> { %1082 = vrot.lane.b32.xlu1 %v1067_v22, %s5377_s11  ;;  %v1437_v22 = vor.u32 %v1436_v43, %v1432_v30  ;;  %v6214_v40 = vor.u32 %v8201_v29, %v6097_v21  ;;  %v6231_v30 = vor.u32 %v8203_v63, %v6108_v37  ;;  %v6234_v43 = vld [vmem:[%s5781_s13 + $0x60] sm:$0xfe]  }
  0xfa   : >> { %1080 = vrot.lane.b32.xlu0 %v1055_v1, %s5377_s11  ;;  %v6207_v44 = vsel %vm879_vm8, %v1422_v34, %v6064_v51  ;;  %v1452_v51 = vor.u32 %v1451_v9, %v1447_v35  ;;  %v1467_v35 = vor.u32 %v1466_v36, %v1462_v6  ;;  %v6245_v9 = vld [vmem:[%s5781_s13 + $0x68] ss:$0 sps:$4 sm:$0x33]   ;;  %v1492_v6 = vshrl.u32 %v6151_v20, 16 }
  0xfb   : >> { %v6222_v1 = vsel %vm879_vm8, %v1437_v22, %v6097_v21  ;;  %8204 = vst [vmem:[#allocation26_spill] sm:$0xff] %v6231_v30  ;;  %v1509_v42 = vshll.u32 %v6234_v43, 16  ;;  %v1503_v20 = vshrl.u32 %v6120_v38, 16  ;;  %v1507_v18 = vshrl.u32 %v6234_v43, 16 }
  0xfc   : >> { %v6242_v21 = vsel %vm879_vm8, %v1452_v51, %v6108_v37  ;;  %v6262_v36 = vsel %vm879_vm8, %v1467_v35, %v6124_v3 }
  0xfd   : >> { %1135 = vrot.lane.b32.xlu1 %v1114_v55, %s5378_s26  ;;  %8206 = vst [vmem:[#allocation28_spill] sm:$0xff] %v6242_v21  ;;  %8211 = vst [vmem:[#allocation32_spill] sm:$0xff] %v6262_v36 }
  0xfe   : >> { %1133 = vrot.lane.b32.xlu0 %v1111_v48, %s5378_s26 }
 0x101   : >> { %1139 = vrot.lane.b32.xlu1 %v1120_v31, %s5378_s26 }
 0x102   : >> { %1137 = vrot.lane.b32.xlu0 %v1117_v16, %s5378_s26 }
 0x105   : >> { %1143 = vrot.lane.b32.xlu1 %v1126_v45, %s5378_s26 }
 0x106   : >> { %1141 = vrot.lane.b32.xlu0 %v1123_v26, %s5378_s26 }
 0x109   : >> { %1147 = vrot.lane.b32.xlu1 %v1132_v5, %s5378_s26 }
 0x10a   : >> { %1145 = vrot.lane.b32.xlu0 %v1129_v15, %s5378_s26 }
 0x10d   : >> { %1157 = vrot.lane.b32.xlu1 %v1117_v16, %s5379_s14  ;;  %v1482_v16 = vor.u32 %v1481_v62, %v1477_v10  ;;  %v6276_v10 = vor.u32 %v1488_v19, %v6129_v27  ;;  %v6283_v62 = vld [vmem:[%s5781_s13 + $0x74] ss:$0 sps:$4 sm:$0x33]  }
 0x10e   : >> { %1155 = vrot.lane.b32.xlu0 %v1114_v55, %s5379_s14  ;;  %v1533_v51 = vshrl.u32 %v6283_v62, 16 }
 0x10f   : >> { %8213 = vst [vmem:[#allocation34_spill] sm:$0xff] %v6276_v10 }
 0x111   : >> { %1161 = vrot.lane.b32.xlu1 %v1123_v26, %s5379_s14  ;;  %v1514_v26 = vshll.u32 %v6245_v9, 16 }
 0x112   : >> { %1159 = vrot.lane.b32.xlu0 %v1120_v31, %s5379_s14  ;;  %v6254_v31 = vor.u32 %v8208_v52, %v6124_v3  ;;  %v1501_v3 = vrot.slane %v1499_v8, 1  ;;  %v1524_v8 = vshll.u32 %v6267_v58, 16 }
 0x113   : >> { %v1516_v41 = vrot.slane %v1514_v26, 1 }
 0x114   : >> { %8209 = vst [vmem:[#allocation30_spill] sm:$0xff] %v6254_v31  ;;  %v6299_v56 = vor.u32 %v1503_v20, %v1501_v3  ;;  %v1526_v34 = vrot.slane %v1524_v8, 1 }
 0x115   : >> { %1165 = vrot.lane.b32.xlu1 %v1129_v15, %s5379_s14  ;;  %v1518_v15 = vshrl.u32 %v6245_v9, 16 }
 0x116   : >> { %1163 = vrot.lane.b32.xlu0 %v1126_v45, %s5379_s14  ;;  %v1496_v45 = vrot.slane %v1494_v59, 1  ;;  %v6289_v59 = vsel %vm879_vm8, %v1482_v16, %v6129_v27  ;;  %8217 = vst [vmem:[#allocation38_spill] sm:$0xff] %v6299_v56  ;;  %v1529_v27 = vshll.u32 %v6283_v62, 16  ;;  %v1527_v52 = vor.u32 %v1526_v34, %v1522_v33 }
 0x117   : >> { %8214 = vst [vmem:[#allocation35_spill] sm:$0xff] %v6289_v59  ;;  %v6315_v22 = vor.u32 %v1518_v15, %v1516_v41  ;;  %v5060_v15 = vld [vmem:[%s5781_s13 + $0x78] sm:$0xfe]  }
 0x118   : >> { %v1497_v19 = vor.u32 %v1496_v45, %v1492_v6  ;;  %v1531_v29 = vrot.slane %v1529_v27, 1  ;;  %v1579_v34 = vshll.u32 %v5060_v15, 16 }
 0x119   : >> { %1169 = vrot.lane.b32.xlu1 %v1154_v17, %s5379_s14 }
 0x11a   : >> { %1167 = vrot.lane.b32.xlu0 %v1132_v5, %s5379_s14  ;;  %v1511_v5 = vrot.slane %v1509_v42, 1  ;;  %v6308_v46 = vsel %vm879_vm8, %v1497_v19, %v1501_v3  ;;  %v6329_v6 = vor.u32 %v1533_v51, %v1531_v29  ;;  %v6336_v42 = vsel %vm879_vm8, %v1527_v52, %v1531_v29 }
 0x11b   : >> { %8219 = vst [vmem:[#allocation40_spill] sm:$0xff] %v6308_v46  ;;  %8224 = vst [vmem:[#allocation45_spill] sm:$0xff] %v6336_v42  ;;  %v1581_v4 = vrot.slane %v1579_v34, 1 }
 0x11c   : >> { %v1512_v17 = vor.u32 %v1511_v5, %v1507_v18  ;;  %8222 = vst [vmem:[#allocation43_spill] sm:$0xff] %v6329_v6 }
 0x11d   : >> { %1538 = vrot.lane.b32.xlu1 %v6202_v50, %s5373_s28 }
 0x11e   : >> { %1536 = vrot.lane.b32.xlu0 %v6207_v44, %s5373_s28  ;;  %v6323_v35 = vsel %vm879_vm8, %v1512_v17, %v1516_v41  ;;  %v5059_v17 = vld [vmem:[%s5781_s13 + $0x80] ss:$0 sps:$4 sm:$0x33]  }
 0x11f   : >> { %v6218_v28 = vpop.permute.xlu1 %812  ;;  %v1584_v51 = vshll.u32 %v5059_v17, 16  ;;  %v1588_v25 = vshrl.u32 %v5059_v17, 16 }
 0x120   : >> { %8202 = vst [vmem:[#allocation25_spill] sm:$0xff] %v6218_v28  ;;  %v6224_v55 = vpop.permute.xlu0 %808 }
 0x121   : >> { %1542 = vrot.lane.b32.xlu1 %v6214_v40, %s5373_s28 }
 0x122   : >> { %1540 = vrot.lane.b32.xlu0 %v6222_v1, %s5373_s28 }
 0x123   : >> { %v6238_v12 = vpop.permute.xlu1 %814 }
 0x124   : >> { %8205 = vst [vmem:[#allocation27_spill] sm:$0xff] %v6238_v12  ;;  %v6247_v48 = vpop.permute.xlu0 %810 }
 0x125   : >> { %8207 = vst [vmem:[#allocation29_spill] sm:$0xff] %v6247_v48  ;;  %1546 = vrot.lane.b32.xlu1 %v6231_v30, %s5373_s28 }
 0x126   : >> { %1544 = vrot.lane.b32.xlu0 %v6242_v21, %s5373_s28 }
 0x127   : >> { %v6258_v37 = vpop.permute.xlu1 %818 }
 0x128   : >> { %8210 = vst [vmem:[#allocation31_spill] sm:$0xff] %v6258_v37  ;;  %v6269_v39 = vpop.permute.xlu0 %816 }
 0x129   : >> { %8212 = vst [vmem:[#allocation33_spill] sm:$0xff] %v6269_v39  ;;  %1550 = vrot.lane.b32.xlu1 %v6254_v31, %s5373_s28 }
 0x12a   : >> { %1548 = vrot.lane.b32.xlu0 %v6262_v36, %s5373_s28 }
 0x12b   : >> { %v6291_v0 = vpop.permute.xlu1 %822 }
 0x12c   : >> { %8215 = vst [vmem:[#allocation36_spill] sm:$0xff] %v6291_v0  ;;  %v6295_v38 = vpop.permute.xlu0 %820 }
 0x12d   : >> { %8216 = vst [vmem:[#allocation37_spill] sm:$0xff] %v6295_v38  ;;  %1554 = vrot.lane.b32.xlu1 %v6276_v10, %s5373_s28  ;;  %v5062_v38 = vld [vmem:[%s5781_s13 + $0x84] sm:$0xfe]  }
 0x12e   : >> { %1552 = vrot.lane.b32.xlu0 %v6289_v59, %s5373_s28  ;;  %v1634_v11 = vshll.u32 %v5062_v38, 16 }
 0x12f   : >> { %v6305_v7 = vpop.permute.xlu1 %841 }
 0x130   : >> { %8218 = vst [vmem:[#allocation39_spill] sm:$0xff] %v6305_v7  ;;  %v6311_v23 = vpop.permute.xlu0 %839 }
 0x131   : >> { %1558 = vrot.lane.b32.xlu1 %v6299_v56, %s5373_s28 }
 0x132   : >> { %1556 = vrot.lane.b32.xlu0 %v6308_v46, %s5373_s28 }
 0x133   : >> { %v6320_v63 = vpop.permute.xlu1 %845 }
 0x134   : >> { %8220 = vst [vmem:[#allocation41_spill] sm:$0xff] %v6320_v63  ;;  %v6325_v16 = vpop.permute.xlu0 %843  ;;  %v1691_v63 = vrot.slane %v1689_v61, 1 }
 0x135   : >> { %8221 = vst [vmem:[#allocation42_spill] sm:$0xff] %v6325_v16  ;;  %1562 = vrot.lane.b32.xlu1 %v6315_v22, %s5373_s28  ;;  %v5070_v16 = vld [vmem:[%s5781_s13 + $0x38] ss:$0 sps:$4 sm:$0x33]  }
 0x136   : >> { %1560 = vrot.lane.b32.xlu0 %v6323_v35, %s5373_s28 }
 0x137   : >> { %v6333_v45 = vpop.permute.xlu1 %849 }
 0x138   : >> { %8223 = vst [vmem:[#allocation44_spill] sm:$0xff] %v6333_v45  ;;  %v6338_v3 = vpop.permute.xlu0 %847 }
 0x139   : >> { %8225 = vst [vmem:[#allocation46_spill] sm:$0xff] %v6338_v3  ;;  %1566 = vrot.lane.b32.xlu1 %v6329_v6, %s5373_s28  ;;  %v1636_v3 = vrot.slane %v1634_v11, 1 }
 0x13a   : >> { %1564 = vrot.lane.b32.xlu0 %v6336_v42, %s5373_s28 }
 0x13b   : >> { %v6344_v20 = vpop.permute.xlu1 %853 }
 0x13c   : >> { %8226 = vst [vmem:[#allocation47_spill] sm:$0xff] %v6344_v20  ;;  %v6346_v26 = vpop.permute.xlu0 %851  ;;  %v1577_v20 = vshrl.u32 %v5060_v15, 16 }
 0x13d   : >> { %8227 = vst [vmem:[#allocation48_spill] sm:$0xff] %v6346_v26  ;;  %1593 = vrot.lane.b32.xlu1 %v6214_v40, %s5374_s16 }
 0x13e   : >> { %1591 = vrot.lane.b32.xlu0 %v6222_v1, %s5374_s16  ;;  %v1582_v26 = vor.u32 %v1581_v4, %v1577_v20 }
 0x13f   : >> { %v6352_v19 = vpop.permute.xlu1 %978 }
 0x140   : >> { %8228 = vst [vmem:[#allocation49_spill] sm:$0xff] %v6352_v19  ;;  %v6354_v18 = vpop.permute.xlu0 %976 }
 0x141   : >> { %1597 = vrot.lane.b32.xlu1 %v6231_v30, %s5374_s16 }
 0x142   : >> { %1595 = vrot.lane.b32.xlu0 %v6242_v21, %s5374_s16 }
 0x143   : >> { %v6360_v5 = vpop.permute.xlu1 %982 }
 0x144   : >> { %8229 = vst [vmem:[#allocation50_spill] sm:$0xff] %v6360_v5  ;;  %v6362_v8 = vpop.permute.xlu0 %980  ;;  %v1687_v5 = vshrl.u32 %v5064_v53, 16 }
 0x145   : >> { %8230 = vst [vmem:[#allocation51_spill] sm:$0xff] %v6362_v8  ;;  %1601 = vrot.lane.b32.xlu1 %v6254_v31, %s5374_s16 }
 0x146   : >> { %1599 = vrot.lane.b32.xlu0 %v6262_v36, %s5374_s16 }
 0x147   : >> { %v6368_v41 = vpop.permute.xlu1 %986 }
 0x148   : >> { %8231 = vst [vmem:[#allocation52_spill] sm:$0xff] %v6368_v41  ;;  %v6371_v27 = vpop.permute.xlu0 %984  ;;  %v5061_v41 = vld [vmem:[%s5781_s13 + $0x8c] ss:$0 sps:$4 sm:$0x33]  }
 0x149   : >> { %8232 = vst [vmem:[#allocation53_spill] sm:$0xff] %v6371_v27  ;;  %1605 = vrot.lane.b32.xlu1 %v6276_v10, %s5374_s16  ;;  %v1632_v27 = vshrl.u32 %v5062_v38, 16 }
 0x14a   : >> { %1603 = vrot.lane.b32.xlu0 %v6289_v59, %s5374_s16 }
 0x14b   : >> { %v6378_v33 = vpop.permute.xlu1 %990 }
 0x14c   : >> { %8233 = vst [vmem:[#allocation54_spill] sm:$0xff] %v6378_v33  ;;  %v6380_v29 = vpop.permute.xlu0 %988  ;;  %v1586_v33 = vrot.slane %v1584_v51, 1 }
 0x14d   : >> { %8234 = vst [vmem:[#allocation55_spill] sm:$0xff] %v6380_v29  ;;  %1609 = vrot.lane.b32.xlu1 %v6299_v56, %s5374_s16 }
 0x14e   : >> { %1607 = vrot.lane.b32.xlu0 %v6308_v46, %s5374_s16  ;;  %v6400_v15 = vor.u32 %v1588_v25, %v1586_v33  ;;  %v6407_v17 = vsel %vm879_vm8, %v1582_v26, %v1586_v33 }
 0x14f   : >> { %v6386_v52 = vpop.permute.xlu1 %1024  ;;  %8240 = vst [vmem:[#allocation61_spill] sm:$0xff] %v6407_v17 }
 0x150   : >> { %8235 = vst [vmem:[#allocation56_spill] sm:$0xff] %v6386_v52  ;;  %v6388_v0 = vpop.permute.xlu0 %1022  ;;  %8238 = vst [vmem:[#allocation59_spill] sm:$0xff] %v6400_v15 }
 0x151   : >> { %1613 = vrot.lane.b32.xlu1 %v6315_v22, %s5374_s16 }
 0x152   : >> { %1611 = vrot.lane.b32.xlu0 %v6323_v35, %s5374_s16 }
 0x153   : >> { %v6394_v29 = vpop.permute.xlu1 %1028 }
 0x154   : >> { %8236 = vst [vmem:[#allocation57_spill] sm:$0xff] %v6394_v29  ;;  %v6396_v60 = vpop.permute.xlu0 %1026  ;;  %v1637_v29 = vor.u32 %v1636_v3, %v1632_v27  ;;  %v1692_v3 = vor.u32 %v1691_v63, %v1687_v5 }
 0x155   : >> { %8237 = vst [vmem:[#allocation58_spill] sm:$0xff] %v6396_v60  ;;  %1617 = vrot.lane.b32.xlu1 %v6329_v6, %s5374_s16 }
 0x156   : >> { %1615 = vrot.lane.b32.xlu0 %v6336_v42, %s5374_s16 }
 0x157   : >> { %v6404_v34 = vpop.permute.xlu1 %1032 }
 0x158   : >> { %8239 = vst [vmem:[#allocation60_spill] sm:$0xff] %v6404_v34  ;;  %v6409_v51 = vpop.permute.xlu0 %1030 }
 0x159   : >> { %8241 = vst [vmem:[#allocation62_spill] sm:$0xff] %v6409_v51  ;;  %1621 = vrot.lane.b32.xlu1 %v6400_v15, %s5374_s16  ;;  %v5063_v51 = vld [vmem:[%s5781_s13 + $0x14] ss:$0 sps:$4 sm:$0x33]  }
 0x15a   : >> { %1619 = vrot.lane.b32.xlu0 %v6407_v17, %s5374_s16  ;;  %v1694_v14 = vshll.u32 %v5063_v51, 16  ;;  %v1698_v12 = vshrl.u32 %v5063_v51, 16 }
 0x15b   : >> { %v6415_v4 = vpop.permute.xlu1 %1036 }
 0x15c   : >> { %8242 = vst [vmem:[#allocation63_spill] sm:$0xff] %v6415_v4  ;;  %v6417_v25 = vpop.permute.xlu0 %1034  ;;  %v1696_v38 = vrot.slane %v1694_v14, 1 }
 0x15d   : >> { %8243 = vst [vmem:[#allocation64_spill] sm:$0xff] %v6417_v25  ;;  %1648 = vrot.lane.b32.xlu1 %v6231_v30, %s5375_s17 }
 0x15e   : >> { %1646 = vrot.lane.b32.xlu0 %v6242_v21, %s5375_s17  ;;  %v6486_v61 = vor.u32 %v1698_v12, %v1696_v38 }
 0x15f   : >> { %v6423_v20 = vpop.permute.xlu1 %1070 }
 0x160   : >> { %8244 = vst [vmem:[#allocation65_spill] sm:$0xff] %v6423_v20  ;;  %v6425_v26 = vpop.permute.xlu0 %1068 }
 0x161   : >> { %1652 = vrot.lane.b32.xlu1 %v6254_v31, %s5375_s17 }
 0x162   : >> { %1650 = vrot.lane.b32.xlu0 %v6262_v36, %s5375_s17 }
 0x163   : >> { %v6431_v33 = vpop.permute.xlu1 %1074 }
 0x164   : >> { %8245 = vst [vmem:[#allocation66_spill] sm:$0xff] %v6431_v33  ;;  %v6433_v4 = vpop.permute.xlu0 %1072 }
 0x165   : >> { %8246 = vst [vmem:[#allocation67_spill] sm:$0xff] %v6433_v4  ;;  %1656 = vrot.lane.b32.xlu1 %v6276_v10, %s5375_s17  ;;  %v6593_v4 = vld [vmem:[%s5781_s13 + $0x30] sm:$0xfc]  }
 0x166   : >> { %1654 = vrot.lane.b32.xlu0 %v6289_v59, %s5375_s17 }
 0x167   : >> { %v6439_v25 = vpop.permute.xlu1 %1078 }
 0x168   : >> { %8247 = vst [vmem:[#allocation68_spill] sm:$0xff] %v6439_v25  ;;  %v6442_v34 = vpop.permute.xlu0 %1076  ;;  %v1639_v25 = vshll.u32 %v5061_v41, 16 }
 0x169   : >> { %8248 = vst [vmem:[#allocation69_spill] sm:$0xff] %v6442_v34  ;;  %1660 = vrot.lane.b32.xlu1 %v6299_v56, %s5375_s17 }
 0x16a   : >> { %1658 = vrot.lane.b32.xlu0 %v6308_v46, %s5375_s17 }
 0x16b   : >> { %v6449_v45 = vpop.permute.xlu1 %1082 }
 0x16c   : >> { %8249 = vst [vmem:[#allocation70_spill] sm:$0xff] %v6449_v45  ;;  %v6452_v37 = vpop.permute.xlu0 %1080  ;;  %v1641_v45 = vrot.slane %v1639_v25, 1 }
 0x16d   : >> { %8250 = vst [vmem:[#allocation71_spill] sm:$0xff] %v6452_v37  ;;  %1664 = vrot.lane.b32.xlu1 %v6315_v22, %s5375_s17  ;;  %v1643_v37 = vshrl.u32 %v5061_v41, 16 }
 0x16e   : >> { %1662 = vrot.lane.b32.xlu0 %v6323_v35, %s5375_s17  ;;  %v6480_v25 = vsel %vm879_vm8, %v1637_v29, %v1641_v45 }
 0x16f   : >> { %v6459_v34 = vpop.permute.xlu1 %1135  ;;  %v6473_v11 = vor.u32 %v1643_v37, %v1641_v45  ;;  %8256 = vst [vmem:[#allocation77_spill] sm:$0xff] %v6480_v25  ;;  %v6493_v37 = vsel %vm879_vm8, %v1692_v3, %v1696_v38 }
 0x170   : >> { %8251 = vst [vmem:[#allocation72_spill] sm:$0xff] %v6459_v34  ;;  %v6461_v39 = vpop.permute.xlu0 %1133  ;;  %v5112_v34 = vld [vmem:[#allocation8 + $0xd8] sm:$0xff]  }
 0x171   : >> { %1668 = vrot.lane.b32.xlu1 %v6329_v6, %s5375_s17  ;;  %8254 = vst [vmem:[#allocation75_spill] sm:$0xff] %v6473_v11 }
 0x172   : >> { %1666 = vrot.lane.b32.xlu0 %v6336_v42, %s5375_s17  ;;  %v5099_v42 = vld [vmem:[#allocation8 + $0x80] sm:$0xff]  }
 0x173   : >> { %v6467_v33 = vpop.permute.xlu1 %1139 }
 0x174   : >> { %8252 = vst [vmem:[#allocation73_spill] sm:$0xff] %v6467_v33  ;;  %v6469_v57 = vpop.permute.xlu0 %1137  ;;  %v5066_v33 = vld [vmem:[%s5781_s13 + $0x20] ss:$0 sps:$4 sm:$0x33]  }
 0x175   : >> { %8253 = vst [vmem:[#allocation74_spill] sm:$0xff] %v6469_v57  ;;  %1672 = vrot.lane.b32.xlu1 %v6400_v15, %s5375_s17  ;;  %v2321_v15 = vshll.u32 %v5066_v33, 16  ;;  %v2331_v57 = vshll.u32 %v6579_v49, 16 }
 0x176   : >> { %1670 = vrot.lane.b32.xlu0 %v6407_v17, %s5375_s17 }
 0x177   : >> { %v6477_v41 = vpop.permute.xlu1 %1143  ;;  %v2323_v8 = vrot.slane %v2321_v15, 1  ;;  %v2333_v13 = vrot.slane %v2331_v57, 1  ;;  %v2325_v15 = vshrl.u32 %v5066_v33, 16  ;;  %v5098_v33 = vld [vmem:[#allocation8 + $0xc0] sm:$0xff]  }
 0x178   : >> { %8255 = vst [vmem:[#allocation76_spill] sm:$0xff] %v6477_v41  ;;  %v6482_v53 = vpop.permute.xlu0 %1141  ;;  %4762 = vmatprep.subr.bf16.mxu1 %v5098_v33 }
 0x179   : >> { %8257 = vst [vmem:[#allocation78_spill] sm:$0xff] %v6482_v53  ;;  %1676 = vrot.lane.b32.xlu1 %v6473_v11, %s5375_s17  ;;  %4763 = vmatpush3.bf16.msra.mxu1 %v5099_v42  ;;  %v5103_v42 = vld [vmem:[#allocation8 + $0x88] sm:$0xff]  }
 0x17a   : >> { %1674 = vrot.lane.b32.xlu0 %v6480_v25, %s5375_s17  ;;  %v6564_v25 = vld [vmem:[%s5781_s13 + $0x18] sm:$0xfc]  }
 0x17b   : >> { %v6490_v14 = vpop.permute.xlu1 %1147 }
 0x17c   : >> { %8258 = vst [vmem:[#allocation79_spill] sm:$0xff] %v6490_v14  ;;  %v6495_v27 = vpop.permute.xlu0 %1145 }
 0x17d   : >> { %8259 = vst [vmem:[#allocation80_spill] sm:$0xff] %v6495_v27  ;;  %1703 = vrot.lane.b32.xlu1 %v6486_v61, %s5376_s27 }
 0x17e   : >> { %1701 = vrot.lane.b32.xlu0 %v6493_v37, %s5376_s27 }
 0x17f   : >> { %v6501_v63 = vpop.permute.xlu1 %1157 }
 0x180   : >> { %8260 = vst [vmem:[#allocation81_spill] sm:$0xff] %v6501_v63  ;;  %v6503_v12 = vpop.permute.xlu0 %1155 }
 0x181   : >> { %1707 = vrot.lane.b32.xlu1 %v6202_v50, %s5376_s27 }
 0x182   : >> { %1705 = vrot.lane.b32.xlu0 %v6207_v44, %s5376_s27 }
 0x183   : >> { %v6509_v45 = vpop.permute.xlu1 %1161 }
 0x184   : >> { %8261 = vst [vmem:[#allocation82_spill] sm:$0xff] %v6509_v45  ;;  %v6511_v5 = vpop.permute.xlu0 %1159 }
 0x185   : >> { %8262 = vst [vmem:[#allocation83_spill] sm:$0xff] %v6511_v5  ;;  %1711 = vrot.lane.b32.xlu1 %v6214_v40, %s5376_s27  ;;  %v5068_v5 = vld [vmem:[%s5781_s13 + $0x2c] ss:$0 sps:$4 sm:$0x33]  }
 0x186   : >> { %1709 = vrot.lane.b32.xlu0 %v6222_v1, %s5376_s27  ;;  %v2336_v28 = vshll.u32 %v5068_v5, 16 }
 0x187   : >> { %v6517_v29 = vpop.permute.xlu1 %1165 }
 0x188   : >> { %8263 = vst [vmem:[#allocation84_spill] sm:$0xff] %v6517_v29  ;;  %v6519_v51 = vpop.permute.xlu0 %1163 }
 0x189   : >> { %8264 = vst [vmem:[#allocation85_spill] sm:$0xff] %v6519_v51  ;;  %1715 = vrot.lane.b32.xlu1 %v6231_v30, %s5376_s27 }
 0x18a   : >> { %1713 = vrot.lane.b32.xlu0 %v6242_v21, %s5376_s27 }
 0x18b   : >> { %v6525_v38 = vpop.permute.xlu1 %1169 }
 0x18c   : >> { %8265 = vst [vmem:[#allocation86_spill] sm:$0xff] %v6525_v38  ;;  %v6527_v3 = vpop.permute.xlu0 %1167 }
 0x18d   : >> { %8266 = vst [vmem:[#allocation87_spill] sm:$0xff] %v6527_v3  ;;  %1719 = vrot.lane.b32.xlu1 %v6254_v31, %s5376_s27 }
 0x18e   : >> { %1717 = vrot.lane.b32.xlu0 %v6262_v36, %s5376_s27 }
 0x18f   : >> { %v6533_v14 = vpop.permute.xlu1 %1538 }
 0x190   : >> { %v6535_v27 = vpop.permute.xlu0 %1536 }
 0x191   : >> { %1723 = vrot.lane.b32.xlu1 %v6276_v10, %s5376_s27 }
 0x192   : >> { %1721 = vrot.lane.b32.xlu0 %v6289_v59, %s5376_s27 }
 0x193   : >> { %v6541_v38 = vpop.permute.xlu1 %1542 }
 0x194   : >> { %v6543_v3 = vpop.permute.xlu0 %1540 }
 0x195   : >> { %1727 = vrot.lane.b32.xlu1 %v6299_v56, %s5376_s27 }
 0x196   : >> { %1725 = vrot.lane.b32.xlu0 %v6308_v46, %s5376_s27 }
 0x197   : >> { %v6549_v29 = vpop.permute.xlu1 %1546 }
 0x198   : >> { %8267 = vst [vmem:[#allocation88_spill] sm:$0xff] %v6549_v29  ;;  %v6551_v41 = vpop.permute.xlu0 %1544  ;;  %v2346_v29 = vshll.u32 %v6593_v4, 16 }
 0x199   : >> { %8268 = vst [vmem:[#allocation89_spill] sm:$0xff] %v6551_v41  ;;  %1731 = vrot.lane.b32.xlu1 %v6315_v22, %s5376_s27  ;;  %v2344_v41 = vshrl.u32 %v6593_v4, 16 }
 0x19a   : >> { %1729 = vrot.lane.b32.xlu0 %v6323_v35, %s5376_s27 }
 0x19b   : >> { %v6557_v51 = vpop.permute.xlu1 %1550 }
 0x19c   : >> { %8269 = vst [vmem:[#allocation90_spill] sm:$0xff] %v6557_v51  ;;  %v6559_v53 = vpop.permute.xlu0 %1548  ;;  %v2316_v51 = vshll.u32 %v6564_v25, 16 }
 0x19d   : >> { %8270 = vst [vmem:[#allocation91_spill] sm:$0xff] %v6559_v53  ;;  %1735 = vrot.lane.b32.xlu1 %v6214_v40, %s5377_s11 }
 0x19e   : >> { %1733 = vrot.lane.b32.xlu0 %v6222_v1, %s5377_s11 }
 0x19f   : >> { %v6568_v11 = vpop.permute.xlu1 %1554 }
 0x1a0   : >> { %8271 = vst [vmem:[#allocation92_spill] sm:$0xff] %v6568_v11  ;;  %v6570_v45 = vpop.permute.xlu0 %1552  ;;  %v2314_v11 = vshrl.u32 %v6564_v25, 16 }
 0x1a1   : >> { %8272 = vst [vmem:[#allocation93_spill] sm:$0xff] %v6570_v45  ;;  %1739 = vrot.lane.b32.xlu1 %v6231_v30, %s5377_s11  ;;  %v2318_v45 = vrot.slane %v2316_v51, 1  ;;  %v2329_v51 = vshrl.u32 %v6579_v49, 16 }
 0x1a2   : >> { %1737 = vrot.lane.b32.xlu0 %v6242_v21, %s5377_s11  ;;  %v2348_v21 = vrot.slane %v2346_v29, 1  ;;  %v5072_v29 = vld [vmem:[%s5781_s13 + $0x14] ss:$0 sps:$4 sm:$0x77]  }
 0x1a3   : >> { %v6581_v53 = vpop.permute.xlu1 %1558  ;;  %v2334_v57 = vor.u32 %v2333_v13, %v2329_v51  ;;  %v2327_v13 = vor.u32 %v2325_v15, %v2323_v8  ;;  %v5071_v51 = vld [vmem:[%s5781_s13 + $0xc] sm:$0xfc]   ;;  %v2355_v15 = vshrl.u32 %v5070_v16, 16 }
 0x1a4   : >> { %8273 = vst [vmem:[#allocation94_spill] sm:$0xff] %v6581_v53  ;;  %v6583_v17 = vpop.permute.xlu0 %1556 }
 0x1a5   : >> { %8274 = vst [vmem:[#allocation95_spill] sm:$0xff] %v6583_v17  ;;  %1743 = vrot.lane.b32.xlu1 %v6254_v31, %s5377_s11  ;;  %v2319_v17 = vor.u32 %v2318_v45, %v2314_v11  ;;  %v2351_v45 = vshll.u32 %v5070_v16, 16  ;;  %v5105_v16 = vld [vmem:[#allocation8 + $0x8] sm:$0xff]  }
 0x1a6   : >> { %1741 = vrot.lane.b32.xlu0 %v6262_v36, %s5377_s11 }
 0x1a7   : >> { %v6595_v60 = vpop.permute.xlu1 %1562  ;;  %v2324_v11 = vsel %vm879_vm8, %v2319_v17, %v2323_v8  ;;  %v2340_v17 = vshrl.u32 %v5068_v5, 16  ;;  %v5100_v5 = vld [vmem:[#allocation8 + $0x40] sm:$0xff]   ;;  %v2604_v8 = vrot.slane %v5071_v51, 1  ;;  %v5106_v51 = vld [vmem:[#allocation8 + $0xd0] sm:$0xff]  }
 0x1a8   : >> { %8275 = vst [vmem:[#allocation96_spill] sm:$0xff] %v6595_v60  ;;  %v6597_v53 = vpop.permute.xlu0 %1560  ;;  %4698 = vmatprep.subr.bf16.mxu0 %v5100_v5 }
 0x1a9   : >> { %8276 = vst [vmem:[#allocation97_spill] sm:$0xff] %v6597_v53  ;;  %1747 = vrot.lane.b32.xlu1 %v6276_v10, %s5377_s11  ;;  %v2338_v53 = vrot.slane %v2336_v28, 1  ;;  %v2349_v28 = vor.u32 %v2348_v21, %v2344_v41  ;;  %v2605_v41 = vrot.slane %v5072_v29, 1 }
 0x1aa   : >> { %1745 = vrot.lane.b32.xlu0 %v6289_v59, %s5377_s11 }
 0x1ab   : >> { %v6606_v2 = vpop.permute.xlu1 %1566  ;;  %v6624_v30 = vsel %vm879_vm8, %v2334_v57, %v2338_v53  ;;  %v5102_v57 = vld [vmem:[#allocation8 + $0xc8] sm:$0xff]   ;;  %v2606_v29 = vsel %vm1108_vm9, %v2604_v8, %v2605_v41 }
 0x1ac   : >> { %8277 = vst [vmem:[#allocation98_spill] sm:$0xff] %v6606_v2  ;;  %v6608_v60 = vpop.permute.xlu0 %1564  ;;  %4764 = vmatprep.subr.bf16.mxu1 %v5102_v57  ;;  %v5075_v57 = vld [vmem:[%s5781_s13 + $0x44] ss:$0 sps:$4 sm:$0x77]  }
 0x1ad   : >> { %8278 = vst [vmem:[#allocation99_spill] sm:$0xff] %v6608_v60  ;;  %2217 = vrot.lane.b32.xlu1 %v6117_v24, %s5373_s28  ;;  %v2353_v24 = vrot.slane %v2351_v45, 1  ;;  %v5101_v45 = vld [vmem:[#allocation8] sm:$0xff]   ;;  %4765 = vmatpush3.bf16.msra.mxu1 %v5103_v42  ;;  %v5107_v42 = vld [vmem:[#allocation8 + $0x90] sm:$0xff]  }
 0x1ae   : >> { %1749 = vrot.lane.b32.xlu0 %v6308_v46, %s5377_s11  ;;  %4699 = vmatpush3.bf16.msra.mxu0 %v5101_v45  ;;  %v6656_v45 = vld [vmem:[%s5781_s13 + $0x3c] sm:$0xfc]  }
 0x1af   : >> { %v6616_v2 = vpop.permute.xlu1 %1593  ;;  %v6639_v21 = vsel %vm879_vm8, %v2349_v28, %v2353_v24  ;;  %v6653_v5 = vor.u32 %v2355_v15, %v2353_v24  ;;  %4766 = vmatprep.subr.bf16.mxu1 %v5106_v51  ;;  %v2616_v8 = vrot.slane %v6656_v45, 1  ;;  %v6671_v15 = vrot.slane %v5075_v57, 1 }
 0x1b0   : >> { %v6618_v60 = vpop.permute.xlu0 %1591 }
 0x1b1   : >> { %2433 = vrot.lane.b32.xlu1 %v2324_v11, %s5374_s16  ;;  %v6634_v11 = vor.u32 %v2340_v17, %v2338_v53  ;;  %v5104_v17 = vld [vmem:[#allocation8 + $0x48] sm:$0xff]   ;;  %4767 = vmatpush3.bf16.msra.mxu1 %v5107_v42  ;;  %v5117_v42 = vld [vmem:[#allocation8 + $0xe0] sm:$0xff]   ;;  %v6682_v57 = vsel %vm1108_vm9, %v2616_v8, %v6671_v15  ;;  %v5079_v8 = vld [vmem:[%s5781_s13] sm:$0xfe]  }
 0x1b2   : >> { %2219 = vrot.lane.b32.xlu0 %v6086_v47, %s5373_s28  ;;  %v5073_v47 = vld [vmem:[%s5781_s13 + $0x2c] ss:$0 sps:$4 sm:$0x77]   ;;  %4700 = vmatprep.subr.bf16.mxu0 %v5104_v17  ;;  %v5113_v17 = vld [vmem:[#allocation8 + $0x98] sm:$0xff]   ;;  %v1831_v20 = vshll.u32 %v5079_v8, 16 }
 0x1b3   : >> { %v6628_v63 = vpop.permute.xlu1 %1597  ;;  %v6648_v28 = vrot.slane %v5073_v47, 1  ;;  %4701 = vmatpush3.bf16.msra.mxu0 %v5105_v16  ;;  %v5109_v47 = vld [vmem:[#allocation8 + $0x50] sm:$0xff]   ;;  %4768 = vmatprep.subr.bf16.mxu1 %v5112_v34 }
 0x1b4   : >> { %8279 = vst [vmem:[#allocation100_spill] sm:$0xff] %v6628_v63  ;;  %v6630_v6 = vpop.permute.xlu0 %1595  ;;  %4702 = vmatprep.subr.bf16.mxu0 %v5109_v47 }
 0x1b5   : >> { %2488 = vrot.lane.b32.xlu1 %v6624_v30, %s5375_s17  ;;  %4769 = vmatpush3.bf16.msra.mxu1 %v5113_v17  ;;  %v5119_v17 = vld [vmem:[#allocation8 + $0x60] sm:$0xff]  }
 0x1b6   : >> { %2435 = vrot.lane.b32.xlu0 %v2327_v13, %s5374_s16  ;;  %v2610_v13 = vrot.slane %v6579_v49, 1  ;;  %4770 = vmatprep.subr.bf16.mxu1 %v5117_v42 }
 0x1b7   : >> { %v6641_v33 = vpop.permute.xlu1 %1601 }
 0x1b8   : >> { %8280 = vst [vmem:[#allocation101_spill] sm:$0xff] %v6641_v33  ;;  %v6643_v53 = vpop.permute.xlu0 %1599  ;;  %v6668_v24 = vsel %vm1108_vm9, %v2610_v13, %v6648_v28  ;;  %v5116_v13 = vld [vmem:[#allocation8 + $0x18] sm:$0xff]  }
 0x1b9   : >> { %8281 = vst [vmem:[#allocation102_spill] sm:$0xff] %v6643_v53  ;;  %2543 = vrot.lane.b32.xlu1 %v6639_v21, %s5376_s27  ;;  %v5111_v53 = vld [vmem:[#allocation8 + $0x10] sm:$0xff]  }
 0x1ba   : >> { %2490 = vrot.lane.b32.xlu0 %v6634_v11, %s5375_s17  ;;  %4703 = vmatpush3.bf16.msra.mxu0 %v5111_v53  ;;  %v5118_v53 = vld [vmem:[#allocation8 + $0xa0] sm:$0xff]  }
 0x1bb   : >> { %v6659_v33 = vpop.permute.xlu1 %1605  ;;  %4771 = vmatpush3.bf16.msra.mxu1 %v5118_v53  ;;  %v5123_v53 = vld [vmem:[#allocation8 + $0x68] sm:$0xff]  }
 0x1bc   : >> { %8282 = vst [vmem:[#allocation103_spill] sm:$0xff] %v6659_v33  ;;  %v6661_v49 = vpop.permute.xlu0 %1603  ;;  %v5127_v33 = vld [vmem:[#allocation8 + $0xf0] sm:$0xff]  }
 0x1bd   : >> { %8283 = vst [vmem:[#allocation104_spill] sm:$0xff] %v6661_v49  ;;  %2628 = vrot.lane.b32.xlu1 %v2606_v29, %s5377_s11  ;;  %v5115_v29 = vld [vmem:[#allocation8 + $0x58] sm:$0xff]  }
 0x1be   : >> { %2545 = vrot.lane.b32.xlu0 %v6653_v5, %s5376_s27  ;;  %4704 = vmatprep.subr.bf16.mxu0 %v5115_v29  ;;  %v5122_v29 = vld [vmem:[#allocation8 + $0xa8] sm:$0xff]   ;;  %v5080_v49 = vld [vmem:[%s5781_s13 + $0x8] ss:$0 sps:$4 sm:$0x33]  }
 0x1bf   : >> { %v6673_v16 = vpop.permute.xlu1 %1609  ;;  %4705 = vmatpush3.bf16.msra.mxu0 %v5116_v13  ;;  %v1840_v19 = vshrl.u32 %v5080_v49, 16 }
 0x1c0   : >> { %8284 = vst [vmem:[#allocation105_spill] sm:$0xff] %v6673_v16  ;;  %v6675_v51 = vpop.permute.xlu0 %1607  ;;  %v5076_v16 = vld [vmem:[%s5781_s13 + $0x24] sm:$0xf8]   ;;  %4706 = vmatprep.subr.bf16.mxu0 %v5119_v17  ;;  %v5128_v17 = vld [vmem:[#allocation8 + $0xb0] sm:$0xff]  }
 0x1c1   : >> { %8285 = vst [vmem:[#allocation106_spill] sm:$0xff] %v6675_v51  ;;  %2672 = vrot.lane.b32.xlu1 %v6668_v24, %s5378_s26  ;;  %v5121_v51 = vld [vmem:[#allocation8 + $0xe8] sm:$0xff]  }
 0x1c2   : >> { %2630 = vrot.lane.b32.xlu0 %v2605_v41, %s5377_s11  ;;  %v5120_v41 = vld [vmem:[#allocation8 + $0x20] sm:$0xff]   ;;  %4772 = vmatprep.subr.bf16.mxu1 %v5121_v51 }
 0x1c3   : >> { %v6684_v34 = vpop.permute.xlu1 %1613  ;;  %4707 = vmatpush3.bf16.msra.mxu0 %v5120_v41  ;;  %4773 = vmatpush3.bf16.msra.mxu1 %v5122_v29  ;;  %v5129_v41 = vld [vmem:[#allocation8 + $0x70] sm:$0xff]   ;;  %v5131_v29 = vld [vmem:[#allocation8 + $0xf8] sm:$0xff]  }
 0x1c4   : >> { %8286 = vst [vmem:[#allocation107_spill] sm:$0xff] %v6684_v34  ;;  %v6686_v47 = vpop.permute.xlu0 %1611  ;;  %v5126_v34 = vld [vmem:[#allocation8 + $0x28] sm:$0xff]   ;;  %4708 = vmatprep.subr.bf16.mxu0 %v5123_v53  ;;  %4774 = vmatprep.subr.bf16.mxu1 %v5127_v33  ;;  %v1833_v53 = vrot.slane %v1831_v20, 1  ;;  %v5134_v20 = vld [vmem:[#allocation8 + $0x38] sm:$0xff]  }
 0x1c5   : >> { %8287 = vst [vmem:[#allocation108_spill] sm:$0xff] %v6686_v47  ;;  %2721 = vrot.lane.b32.xlu1 %v6682_v57, %s5379_s14  ;;  %v5077_v47 = vld [vmem:[%s5781_s13 + $0x2c] ss:$0 sps:$4 sm:$0x77]  }
 0x1c6   : >> { %2674 = vrot.lane.b32.xlu0 %v6648_v28, %s5378_s26 }
 0x1c7   : >> { %v6694_v13 = vpop.permute.xlu1 %1617  ;;  %4709 = vmatpush3.bf16.msra.mxu0 %v5126_v34  ;;  %4775 = vmatpush3.bf16.msra.mxu1 %v5128_v17  ;;  %v5133_v17 = vld [vmem:[#allocation8 + $0x78] sm:$0xff]  }
 0x1c8   : >> { %8288 = vst [vmem:[#allocation109_spill] sm:$0xff] %v6694_v13  ;;  %v6696_v42 = vpop.permute.xlu0 %1615  ;;  %v1836_v13 = vshll.u32 %v5080_v49, 16  ;;  %4710 = vmatprep.subr.bf16.mxu0 %v5129_v41  ;;  %4776 = vmatprep.subr.bf16.mxu1 %v5131_v29 }
 0x1c9   : >> { %8289 = vst [vmem:[#allocation110_spill] sm:$0xff] %v6696_v42  ;;  %3244 = vrot.lane.b32.xlu1 %v5076_v16, %s5373_s28  ;;  %v5130_v16 = vld [vmem:[#allocation8 + $0x30] sm:$0xff]   ;;  %v1829_v42 = vshrl.u32 %v5079_v8, 16 }
 0x1ca   : >> { %2723 = vrot.lane.b32.xlu0 %v6671_v15, %s5379_s14  ;;  %v1838_v41 = vrot.slane %v1836_v13, 1  ;;  %v2361_v13 = vshll.u32 %v6656_v45, 16 }
 0x1cb   : >> { %v6703_v52 = vpop.permute.xlu1 %1621  ;;  %4711 = vmatpush3.bf16.msra.mxu0 %v5130_v16  ;;  %v1834_v8 = vor.u32 %v1833_v53, %v1829_v42 }
 0x1cc   : >> { %8290 = vst [vmem:[#allocation111_spill] sm:$0xff] %v6703_v52  ;;  %v6705_v51 = vpop.permute.xlu0 %1619  ;;  %v5132_v52 = vld [vmem:[#allocation8 + $0xb8] sm:$0xff]   ;;  %4712 = vmatprep.subr.bf16.mxu0 %v5133_v17  ;;  %v1842_v17 = vor.u32 %v1840_v19, %v1838_v41 }
 0x1cd   : >> { %8291 = vst [vmem:[#allocation112_spill] sm:$0xff] %v6705_v51  ;;  %1788 = vrot.lane.b32.xlu1 %v6262_v36, %s5378_s26  ;;  %4777 = vmatpush3.bf16.msra.mxu1 %v5132_v52  ;;  %v5165_v51 = vld [vmem:[%s5781_s13 + $0x54] sm:$0xfe]   ;;  %v6728_v52 = vld [vmem:[%s5781_s13 + $0x50] ss:$0 sps:$4 sm:$0x77]   ;;  %v1839_v36 = vsel %vm879_vm8, %v1834_v8, %v1838_v41 }
 0x1ce   : >> { %3246 = vrot.lane.b32.xlu0 %v5077_v47, %s5373_s28  ;;  %v6717_v47 = vld [vmem:[%s5781_s13 + $0x48] sm:$0xf8]  }
 0x1cf   : >> { %v6710_v34 = vpop.permute.xlu1 %1648  ;;  %4713 = vmatpush3.bf16.msra.mxu0 %v5134_v20  ;;  %v2359_v20 = vshrl.u32 %v6656_v45, 16 }
 0x1d0   : >> { %v6712_v33 = vpop.permute.xlu0 %1646 }
 0x1d1   : >> { %2221 = vrot.lane.b32.xlu1 %v5165_v51, %s5373_s28  ;;  %v5166_v51 = vld [vmem:[%s5781_s13 + $0x5c] ss:$0 sps:$4 sm:$0x33]  }
 0x1d2   : >> { %1790 = vrot.lane.b32.xlu0 %v6254_v31, %s5378_s26  ;;  %v5082_v31 = vld [vmem:[%s5781_s13 + $0x44] ss:$0 sps:$4 sm:$0x33]  }
 0x1d3   : >> { %v6721_v16 = vpop.permute.xlu1 %1652  ;;  %v2366_v7 = vshll.u32 %v5082_v31, 16 }
 0x1d4   : >> { %8292 = vst [vmem:[#allocation113_spill] sm:$0xff] %v6721_v16  ;;  %v6723_v29 = vpop.permute.xlu0 %1650 }
 0x1d5   : >> { %8293 = vst [vmem:[#allocation114_spill] sm:$0xff] %v6723_v29  ;;  %3300 = vrot.lane.b32.xlu1 %v6717_v47, %s5374_s16 }
 0x1d6   : >> { %2223 = vrot.lane.b32.xlu0 %v5166_v51, %s5373_s28  ;;  %v2363_v51 = vrot.slane %v2361_v13, 1  ;;  %v5084_v13 = vld [vmem:[%s5781_s13 + $0x38] ss:$0 sps:$4 sm:$0x77]  }
 0x1d7   : >> { %v6735_v42 = vpop.permute.xlu1 %1656 }
 0x1d8   : >> { %8294 = vst [vmem:[#allocation115_spill] sm:$0xff] %v6735_v42  ;;  %v6737_v53 = vpop.permute.xlu0 %1654  ;;  %v2364_v42 = vor.u32 %v2363_v51, %v2359_v20  ;;  %v2613_v51 = vrot.slane %v6593_v4, 1 }
 0x1d9   : >> { %8295 = vst [vmem:[#allocation116_spill] sm:$0xff] %v6737_v53  ;;  %1843 = vrot.lane.b32.xlu1 %v1839_v36, %s5379_s14  ;;  %v2368_v36 = vrot.slane %v2366_v7, 1  ;;  %v5083_v53 = vld [vmem:[%s5781_s13 + $0x20] ss:$0 sps:$4 sm:$0x77]   ;;  %v2370_v7 = vshrl.u32 %v5082_v31, 16 }
 0x1da   : >> { %3302 = vrot.lane.b32.xlu0 %v6728_v52, %s5374_s16  ;;  %v2608_v41 = vrot.slane %v5083_v53, 1  ;;  %v5085_v31 = vld [vmem:[%s5781_s13 + $0x48] sm:$0xfc]   ;;  %v5086_v53 = vld [vmem:[%s5781_s13 + $0x50] ss:$0 sps:$4 sm:$0x77]  }
 0x1db   : >> { %v6743_v49 = vpop.permute.xlu1 %1660  ;;  %v6760_v45 = vsel %vm879_vm8, %v2364_v42, %v2368_v36  ;;  %v6774_v42 = vor.u32 %v2370_v7, %v2368_v36  ;;  %v2619_v36 = vrot.slane %v5085_v31, 1 }
 0x1dc   : >> { %8296 = vst [vmem:[#allocation117_spill] sm:$0xff] %v6743_v49  ;;  %v6745_v8 = vpop.permute.xlu0 %1658 }
 0x1dd   : >> { %8297 = vst [vmem:[#allocation118_spill] sm:$0xff] %v6745_v8  ;;  %2437 = vrot.lane.b32.xlu1 %v6624_v30, %s5374_s16  ;;  %v2607_v30 = vrot.slane %v6564_v25, 1  ;;  %v6776_v25 = vrot.slane %v5084_v13, 1 }
 0x1de   : >> { %1845 = vrot.lane.b32.xlu0 %v1842_v17, %s5379_s14 }
 0x1df   : >> { %v6751_v16 = vpop.permute.xlu1 %1664  ;;  %v6789_v4 = vsel %vm1108_vm9, %v2613_v51, %v6776_v25 }
 0x1e0   : >> { %8298 = vst [vmem:[#allocation119_spill] sm:$0xff] %v6751_v16  ;;  %v6753_v19 = vpop.permute.xlu0 %1662 }
 0x1e1   : >> { %8299 = vst [vmem:[#allocation120_spill] sm:$0xff] %v6753_v19  ;;  %2492 = vrot.lane.b32.xlu1 %v6639_v21, %s5375_s17 }
 0x1e2   : >> { %2439 = vrot.lane.b32.xlu0 %v6634_v11, %s5374_s16  ;;  %v2609_v11 = vsel %vm1108_vm9, %v2607_v30, %v2608_v41  ;;  %v6791_v30 = vrot.slane %v5086_v53, 1  ;;  %v5087_v53 = vld [vmem:[%s5781_s13 + $0x30] sm:$0xf8]  }
 0x1e3   : >> { %v6764_v17 = vpop.permute.xlu1 %1668 }
 0x1e4   : >> { %8300 = vst [vmem:[#allocation121_spill] sm:$0xff] %v6764_v17  ;;  %v6766_v20 = vpop.permute.xlu0 %1666 }
 0x1e5   : >> { %8301 = vst [vmem:[#allocation122_spill] sm:$0xff] %v6766_v20  ;;  %2547 = vrot.lane.b32.xlu1 %v6760_v45, %s5376_s27 }
 0x1e6   : >> { %2494 = vrot.lane.b32.xlu0 %v6653_v5, %s5375_s17 }
 0x1e7   : >> { %v6780_v17 = vpop.permute.xlu1 %1672 }
 0x1e8   : >> { %8302 = vst [vmem:[#allocation123_spill] sm:$0xff] %v6780_v17  ;;  %v6782_v20 = vpop.permute.xlu0 %1670 }
 0x1e9   : >> { %8303 = vst [vmem:[#allocation124_spill] sm:$0xff] %v6782_v20  ;;  %2632 = vrot.lane.b32.xlu1 %v2609_v11, %s5377_s11  ;;  %v6802_v11 = vsel %vm1108_vm9, %v2619_v36, %v6791_v30 }
 0x1ea   : >> { %2549 = vrot.lane.b32.xlu0 %v6774_v42, %s5376_s27 }
 0x1eb   : >> { %v6793_v7 = vpop.permute.xlu1 %1676 }
 0x1ec   : >> { %8304 = vst [vmem:[#allocation125_spill] sm:$0xff] %v6793_v7  ;;  %v6795_v13 = vpop.permute.xlu0 %1674 }
 0x1ed   : >> { %8305 = vst [vmem:[#allocation126_spill] sm:$0xff] %v6795_v13  ;;  %2676 = vrot.lane.b32.xlu1 %v6789_v4, %s5378_s26 }
 0x1ee   : >> { %2634 = vrot.lane.b32.xlu0 %v2608_v41, %s5377_s11  ;;  %v5088_v41 = vld [vmem:[%s5781_s13 + $0x38] ss:$0 sps:$4 sm:$0x77]  }
 0x1ef   : >> { %v6804_v20 = vpop.permute.xlu1 %1703 }
 0x1f0   : >> { %v6806_v51 = vpop.permute.xlu0 %1701 }
 0x1f1   : >> { %2725 = vrot.lane.b32.xlu1 %v6802_v11, %s5379_s14 }
 0x1f2   : >> { %2678 = vrot.lane.b32.xlu0 %v6776_v25, %s5378_s26 }
 0x1f3   : >> { %v6813_v13 = vpop.permute.xlu1 %1707 }
 0x1f4   : >> { %8306 = vst [vmem:[#allocation127_spill] sm:$0xff] %v6813_v13  ;;  %v6815_v7 = vpop.permute.xlu0 %1705 }
 0x1f5   : >> { %8307 = vst [vmem:[#allocation128_spill] sm:$0xff] %v6815_v7  ;;  %3248 = vrot.lane.b32.xlu1 %v5087_v53, %s5373_s28  ;;  %v6835_v53 = vld [vmem:[%s5781_s13 + $0x54] sm:$0xf8]  }
 0x1f6   : >> { %2727 = vrot.lane.b32.xlu0 %v6791_v30, %s5379_s14  ;;  %8312 = vst [vmem:[#allocation133_spill] sm:$0xff] %v6835_v53 }
 0x1f7   : >> { %v6821_v36 = vpop.permute.xlu1 %1711 }
 0x1f8   : >> { %8308 = vst [vmem:[#allocation129_spill] sm:$0xff] %v6821_v36  ;;  %v6823_v17 = vpop.permute.xlu0 %1709 }
 0x1f9   : >> { %8309 = vst [vmem:[#allocation130_spill] sm:$0xff] %v6823_v17  ;;  %1792 = vrot.lane.b32.xlu1 %v6289_v59, %s5378_s26  ;;  %v5091_v59 = vld [vmem:[%s5781_s13 + $0x50] ss:$0 sps:$4 sm:$0x33]  }
 0x1fa   : >> { %3250 = vrot.lane.b32.xlu0 %v5088_v41, %s5373_s28  ;;  %v6846_v41 = vld [vmem:[%s5781_s13 + $0x5c] ss:$0 sps:$4 sm:$0x77]  }
 0x1fb   : >> { %v6828_v16 = vpop.permute.xlu1 %1715  ;;  %8315 = vst [vmem:[#allocation136_spill] sm:$0xff] %v6846_v41 }
 0x1fc   : >> { %8310 = vst [vmem:[#allocation131_spill] sm:$0xff] %v6828_v16  ;;  %v6830_v19 = vpop.permute.xlu0 %1713  ;;  %v2376_v16 = vshll.u32 %v5085_v31, 16 }
 0x1fd   : >> { %8311 = vst [vmem:[#allocation132_spill] sm:$0xff] %v6830_v19  ;;  %2225 = vrot.lane.b32.xlu1 %v6234_v43, %s5373_s28 }
 0x1fe   : >> { %1794 = vrot.lane.b32.xlu0 %v6276_v10, %s5378_s26  ;;  %v2381_v10 = vshll.u32 %v5091_v59, 16 }
 0x1ff   : >> { %v6839_v49 = vpop.permute.xlu1 %1719 }
 0x200   : >> { %8313 = vst [vmem:[#allocation134_spill] sm:$0xff] %v6839_v49  ;;  %v6841_v8 = vpop.permute.xlu0 %1717  ;;  %v2374_v49 = vshrl.u32 %v5085_v31, 16 }
 0x201   : >> { %8314 = vst [vmem:[#allocation135_spill] sm:$0xff] %v6841_v8  ;;  %3304 = vrot.lane.b32.xlu1 %v6835_v53, %s5374_s16  ;;  %v2378_v8 = vrot.slane %v2376_v16, 1 }
 0x202   : >> { %2227 = vrot.lane.b32.xlu0 %v6245_v9, %s5373_s28 }
 0x203   : >> { %v6851_v43 = vpop.permute.xlu1 %1723  ;;  %v2379_v9 = vor.u32 %v2378_v8, %v2374_v49  ;;  %v5093_v49 = vld [vmem:[%s5781_s13 + $0x5c] ss:$0 sps:$4 sm:$0x77]  }
 0x204   : >> { %8316 = vst [vmem:[#allocation137_spill] sm:$0xff] %v6851_v43  ;;  %v6853_v19 = vpop.permute.xlu0 %1721 }
 0x205   : >> { %8317 = vst [vmem:[#allocation138_spill] sm:$0xff] %v6853_v19  ;;  %1847 = vrot.lane.b32.xlu1 %v6493_v37, %s5379_s14  ;;  %v2383_v37 = vrot.slane %v2381_v10, 1 }
 0x206   : >> { %3306 = vrot.lane.b32.xlu0 %v6846_v41, %s5374_s16  ;;  %v6940_v41 = vld [vmem:[%s5781_s13 + $0x68] ss:$0 sps:$4 sm:$0x77]  }
 0x207   : >> { %v6859_v36 = vpop.permute.xlu1 %1727  ;;  %v6876_v16 = vsel %vm879_vm8, %v2379_v9, %v2383_v37  ;;  %v6898_v9 = vrot.slane %v5093_v49, 1  ;;  %v5094_v49 = vld [vmem:[%s5781_s13 + $0x3c] sm:$0xf8]   ;;  %8331 = vst [vmem:[#allocation152_spill] sm:$0xff] %v6940_v41 }
 0x208   : >> { %8318 = vst [vmem:[#allocation139_spill] sm:$0xff] %v6859_v36  ;;  %v6861_v17 = vpop.permute.xlu0 %1725 }
 0x209   : >> { %8319 = vst [vmem:[#allocation140_spill] sm:$0xff] %v6861_v17  ;;  %2441 = vrot.lane.b32.xlu1 %v6639_v21, %s5374_s16  ;;  %v2385_v21 = vshrl.u32 %v5091_v59, 16  ;;  %8324 = vst [vmem:[#allocation145_spill] sm:$0xff] %v6898_v9 }
 0x20a   : >> { %1849 = vrot.lane.b32.xlu0 %v6486_v61, %s5379_s14  ;;  %v5092_v61 = vld [vmem:[%s5781_s13 + $0x54] sm:$0xfc]  }
 0x20b   : >> { %v6867_v19 = vpop.permute.xlu1 %1731  ;;  %v6886_v10 = vor.u32 %v2385_v21, %v2383_v37  ;;  %v2622_v59 = vrot.slane %v5092_v61, 1 }
 0x20c   : >> { %8320 = vst [vmem:[#allocation141_spill] sm:$0xff] %v6867_v19  ;;  %v6869_v43 = vpop.permute.xlu0 %1729 }
 0x20d   : >> { %8321 = vst [vmem:[#allocation142_spill] sm:$0xff] %v6869_v43  ;;  %2496 = vrot.lane.b32.xlu1 %v6760_v45, %s5375_s17 }
 0x20e   : >> { %2443 = vrot.lane.b32.xlu0 %v6653_v5, %s5374_s16 }
 0x20f   : >> { %v6878_v31 = vpop.permute.xlu1 %1735 }
 0x210   : >> { %v6880_v17 = vpop.permute.xlu0 %1733 }
 0x211   : >> { %2551 = vrot.lane.b32.xlu1 %v6876_v16, %s5376_s27 }
 0x212   : >> { %2498 = vrot.lane.b32.xlu0 %v6774_v42, %s5375_s17 }
 0x213   : >> { %v6890_v5 = vpop.permute.xlu1 %1739 }
 0x214   : >> { %8322 = vst [vmem:[#allocation143_spill] sm:$0xff] %v6890_v5  ;;  %v6892_v8 = vpop.permute.xlu0 %1737 }
 0x215   : >> { %8323 = vst [vmem:[#allocation144_spill] sm:$0xff] %v6892_v8  ;;  %2636 = vrot.lane.b32.xlu1 %v6668_v24, %s5377_s11  ;;  %v6910_v24 = vsel %vm1108_vm9, %v2622_v59, %v6898_v9 }
 0x216   : >> { %2553 = vrot.lane.b32.xlu0 %v6886_v10, %s5376_s27 }
 0x217   : >> { %v6900_v43 = vpop.permute.xlu1 %1743 }
 0x218   : >> { %8325 = vst [vmem:[#allocation146_spill] sm:$0xff] %v6900_v43  ;;  %v6902_v37 = vpop.permute.xlu0 %1741 }
 0x219   : >> { %8326 = vst [vmem:[#allocation147_spill] sm:$0xff] %v6902_v37  ;;  %2680 = vrot.lane.b32.xlu1 %v6682_v57, %s5378_s26 }
 0x21a   : >> { %2638 = vrot.lane.b32.xlu0 %v6648_v28, %s5377_s11  ;;  %v5095_v28 = vld [vmem:[%s5781_s13 + $0x44] ss:$0 sps:$4 sm:$0x77]  }
 0x21b   : >> { %v6912_v21 = vpop.permute.xlu1 %1747 }
 0x21c   : >> { %8327 = vst [vmem:[#allocation148_spill] sm:$0xff] %v6912_v21  ;;  %v6914_v19 = vpop.permute.xlu0 %1745 }
 0x21d   : >> { %8328 = vst [vmem:[#allocation149_spill] sm:$0xff] %v6914_v19  ;;  %2729 = vrot.lane.b32.xlu1 %v6910_v24, %s5379_s14 }
 0x21e   : >> { %2682 = vrot.lane.b32.xlu0 %v6671_v15, %s5378_s26 }
 0x21f   : >> { %v2218_v36 = vpop.permute.xlu1 %2217 }
 0x220   : >> { %v6921_v43 = vpop.permute.xlu0 %1749 }
 0x221   : >> { %8329 = vst [vmem:[#allocation150_spill] sm:$0xff] %v6921_v43  ;;  %3252 = vrot.lane.b32.xlu1 %v5094_v49, %s5373_s28  ;;  %v6933_v43 = vld [vmem:[%s5781_s13 + $0x60] sm:$0xf8]  }
 0x222   : >> { %2731 = vrot.lane.b32.xlu0 %v6898_v9, %s5379_s14  ;;  %8330 = vst [vmem:[#allocation151_spill] sm:$0xff] %v6933_v43 }
 0x223   : >> { %v2434_v59 = vpop.permute.xlu1 %2433 }
 0x224   : >> { %v2220_v21 = vpop.permute.xlu0 %2219 }
 0x225   : >> { %1796 = vrot.lane.b32.xlu1 %v6308_v46, %s5378_s26  ;;  %v2391_v46 = vshll.u32 %v5092_v61, 16 }
 0x226   : >> { %3254 = vrot.lane.b32.xlu0 %v5095_v28, %s5373_s28  ;;  %v5110_v28 = vld [vmem:[%s5781_s13 + $0x5c] ss:$0 sps:$4 sm:$0x33]  }
 0x227   : >> { %v2489_v19 = vpop.permute.xlu1 %2488  ;;  %v2396_v8 = vshll.u32 %v5110_v28, 16 }
 0x228   : >> { %v2436_v37 = vpop.permute.xlu0 %2435 }
 0x229   : >> { %2229 = vrot.lane.b32.xlu1 %v6267_v58, %s5373_s28  ;;  %v2389_v58 = vshrl.u32 %v5092_v61, 16  ;;  %v2398_v7 = vrot.slane %v2396_v8, 1 }
 0x22a   : >> { %1798 = vrot.lane.b32.xlu0 %v6299_v56, %s5378_s26  ;;  %v2393_v56 = vrot.slane %v2391_v46, 1  ;;  %v2400_v46 = vshrl.u32 %v5110_v28, 16  ;;  %v5125_v28 = vld [vmem:[%s5781_s13 + $0x68] ss:$0 sps:$4 sm:$0x77]  }
 0x22b   : >> { %v2544_v49 = vpop.permute.xlu1 %2543 }
 0x22c   : >> { %v2491_v53 = vpop.permute.xlu0 %2490 }
 0x22d   : >> { %3308 = vrot.lane.b32.xlu1 %v6933_v43, %s5374_s16 }
 0x22e   : >> { %2231 = vrot.lane.b32.xlu0 %v6283_v62, %s5373_s28  ;;  %v2394_v62 = vor.u32 %v2393_v56, %v2389_v58  ;;  %v5167_v56 = vld [vmem:[%s5781_s13 + $0x2c] ss:$0 sps:$4 sm:$0x33]   ;;  %v6970_v58 = vld [vmem:[%s5781_s13 + $0x60] sm:$0xfc]  }
 0x22f   : >> { %v2629_v5 = vpop.permute.xlu1 %2628  ;;  %v2756_v61 = vsel %vm1171_vm10, %v5167_v56, %v2220_v21 }
 0x230   : >> { %v2546_v13 = vpop.permute.xlu0 %2545  ;;  %v2788_v8 = vsel %vm1189_vm11, %v2756_v61, %v2436_v37 }
 0x231   : >> { %1851 = vrot.lane.b32.xlu1 %v6207_v44, %s5379_s14  ;;  %v6958_v44 = vsel %vm879_vm8, %v2394_v62, %v2398_v7  ;;  %v5168_v62 = vld [vmem:[%s5781_s13 + $0x24] sm:$0xfe]   ;;  %v2820_v21 = vsel %vm1206_vm12, %v2788_v8, %v2491_v53 }
 0x232   : >> { %3310 = vrot.lane.b32.xlu0 %v6940_v41, %s5374_s16  ;;  %v2754_v41 = vsel %vm1171_vm10, %v5168_v62, %v2218_v36  ;;  %v2852_v37 = vsel %vm1223_vm13, %v2820_v21, %v2546_v13  ;;  %v2625_v13 = vrot.slane %v6970_v58, 1 }
 0x233   : >> { %v2673_v48 = vpop.permute.xlu1 %2672  ;;  %v2786_v29 = vsel %vm1189_vm11, %v2754_v41, %v2434_v59  ;;  %v6987_v41 = vrot.slane %v5125_v28, 1  ;;  %v5108_v59 = vld [vmem:[%s5781_s13] sm:$0xf8]  }
 0x234   : >> { %v2631_v43 = vpop.permute.xlu0 %2630 }
 0x235   : >> { %2445 = vrot.lane.b32.xlu1 %v6760_v45, %s5374_s16 }
 0x236   : >> { %1853 = vrot.lane.b32.xlu0 %v6202_v50, %s5379_s14 }
 0x237   : >> { %v2722_v63 = vpop.permute.xlu1 %2721 }
 0x238   : >> { %v2675_v9 = vpop.permute.xlu0 %2674 }
 0x239   : >> { %2500 = vrot.lane.b32.xlu1 %v6876_v16, %s5375_s17 }
 0x23a   : >> { %2447 = vrot.lane.b32.xlu0 %v6774_v42, %s5374_s16  ;;  %v6967_v42 = vor.u32 %v2400_v46, %v2398_v7  ;;  %v2818_v7 = vsel %vm1206_vm12, %v2786_v29, %v2489_v19  ;;  %v2884_v46 = vsel %vm1240_vm14, %v2852_v37, %v2631_v43 }
 0x23b   : >> { %v3245_v45 = vpop.permute.xlu1 %3244  ;;  %v2850_v36 = vsel %vm1223_vm13, %v2818_v7, %v2544_v49  ;;  %v2916_v53 = vsel %vm1257_vm15, %v2884_v46, %v2675_v9  ;;  %v5114_v7 = vld [vmem:[%s5781_s13 + $0x8] ss:$0 sps:$4 sm:$0x77]  }
 0x23c   : >> { %v2724_v50 = vpop.permute.xlu0 %2723  ;;  %v2882_v29 = vsel %vm1240_vm14, %v2850_v36, %v2629_v5  ;;  %v7002_v5 = vsel %vm1108_vm9, %v2625_v13, %v6987_v41  ;;  %v3334_v37 = vsel %vm1171_vm10, %v5108_v59, %v3245_v45 }
 0x23d   : >> { %2555 = vrot.lane.b32.xlu1 %v6958_v44, %s5376_s27  ;;  %v2948_v19 = vsel %vm1274_vm0, %v2916_v53, %v2724_v50  ;;  %v5044_v50 = vld [vmem:[%s5781_s13] sm:$0xff]   ;;  %v5169_v53 = vld [vmem:[%s5781_s13 + $0x38] ss:$0 sps:$4 sm:$0x11]  }
 0x23e   : >> { %2502 = vrot.lane.b32.xlu0 %v6886_v10, %s5375_s17  ;;  %v2985_v8 = vshrl.u32 %v2948_v19, 16  ;;  %v2988_v28 = vshll.u32 %v2948_v19, 16  ;;  %v1879_v13 = vsel %vm1171_vm10, %v5169_v53, %v6533_v14 }
 0x23f   : >> { %v1789_v56 = vpop.permute.xlu1 %1788 }
 0x240   : >> { %v3247_v61 = vpop.permute.xlu0 %3246  ;;  %v2990_v45 = vrot.slane %v2988_v28, 2 }
 0x241   : >> { %2640 = vrot.lane.b32.xlu1 %v6789_v4, %s5377_s11  ;;  %v2914_v4 = vsel %vm1257_vm15, %v2882_v29, %v2673_v48  ;;  %v1877_v48 = vsel %vm1171_vm10, %v6002_v54, %v6535_v27  ;;  %v2987_v27 = vrot.slane %v2985_v8, 1  ;;  %v1918_v29 = vsel %vm1189_vm11, %v1879_v13, %v6616_v2 }
 0x242   : >> { %2557 = vrot.lane.b32.xlu0 %v6967_v42, %s5376_s27  ;;  %v2946_v9 = vsel %vm1274_vm0, %v2914_v4, %v2722_v63  ;;  %v1950_v28 = vsel %vm1206_vm12, %v1918_v29, %v6710_v34 }
 0x243   : >> { %v6991_v43 = vpop.permute.xlu1 %2221  ;;  %v2978_v63 = vshrl.u32 %v2946_v9, 16  ;;  %v2981_v21 = vshll.u32 %v2946_v9, 16 }
 0x244   : >> { %v1791_v49 = vpop.permute.xlu0 %1790 }
 0x245   : >> { %2684 = vrot.lane.b32.xlu1 %v6802_v11, %s5378_s26  ;;  %v2980_v14 = vrot.slane %v2978_v63, 1  ;;  %v2983_v59 = vrot.slane %v2981_v21, 2 }
 0x246   : >> { %2642 = vrot.lane.b32.xlu0 %v6776_v25, %s5377_s11  ;;  %v1916_v25 = vsel %vm1189_vm11, %v1877_v48, %v6618_v60  ;;  %v1174_v60 = vsel %vm1171_vm10, %v5044_v50, %v6224_v55  ;;  %v2991_v50 = vor.u32 %v2990_v45, %v2987_v27  ;;  %v5170_v45 = vld [vmem:[%s5781_s13 + $0x78] sm:$0xfe]  }
 0x247   : >> { %v3301_v62 = vpop.permute.xlu1 %3300  ;;  %v1948_v54 = vsel %vm1206_vm12, %v1916_v25, %v6712_v33  ;;  %v3337_v33 = vsel %vm1171_vm10, %v5114_v7, %v3247_v61  ;;  %v2984_v21 = vor.u32 %v2983_v59, %v2980_v14  ;;  %v2406_v14 = vshll.u32 %v6970_v58, 16 }
 0x248   : >> { %v7010_v46 = vpop.permute.xlu0 %2223  ;;  %v3381_v36 = vsel %vm1189_vm11, %v3334_v37, %v3301_v62  ;;  %v1980_v19 = vsel %vm1223_vm13, %v1948_v54, %v6806_v51  ;;  %v1982_v51 = vsel %vm1223_vm13, %v1950_v28, %v6804_v20  ;;  %v1191_v20 = vsel %vm1189_vm11, %v1174_v60, %v6311_v23  ;;  %v7074_v60 = vld [vmem:[%s5781_s13 + $0x6c] sm:$0xf8]  }
 0x249   : >> { %2733 = vrot.lane.b32.xlu1 %v7002_v5, %s5379_s14  ;;  %v3413_v9 = vsel %vm1206_vm12, %v3381_v36, 0  ;;  %v2012_v55 = vsel %vm1240_vm14, %v1980_v19, %v6880_v17  ;;  %v2014_v34 = vsel %vm1240_vm14, %v1982_v51, %v6878_v31  ;;  %v1208_v7 = vsel %vm1206_vm12, %v1191_v20, %v6354_v18  ;;  %v5171_v19 = vld [vmem:[%s5781_s13 + $0x80] ss:$0 sps:$4 sm:$0x33]   ;;  %v5173_v20 = vld [vmem:[%s5781_s13 + $0x30] sm:$0xfe]  }
 0x24a   : >> { %2686 = vrot.lane.b32.xlu0 %v6791_v30, %s5378_s26  ;;  %v2044_v61 = vsel %vm1257_vm15, %v2012_v55, %v1789_v56  ;;  %v3446_v17 = vrot.slane %v3413_v9, 3  ;;  %v2046_v56 = vsel %vm1257_vm15, %v2014_v34, %v1791_v49  ;;  %v1225_v36 = vsel %vm1223_vm13, %v1208_v7, %v6388_v0 }
 0x24b   : >> { %v1844_v4 = vpop.permute.xlu1 %1843  ;;  %v2992_v18 = vsel %vm2977_vm1, %v2984_v21, %v2991_v50  ;;  %v1242_v49 = vsel %vm1240_vm14, %v1225_v36, %v6425_v26  ;;  %v2408_v9 = vrot.slane %v2406_v14, 1  ;;  %v2758_v21 = vsel %vm1171_vm10, %v5173_v20, %v6991_v43  ;;  %v8336_v20 = vld [vmem:[#allocation29_spill] sm:$0xff] }
 0x24c   : >> { %v3303_v8 = vpop.permute.xlu0 %3302  ;;  %v2076_v48 = vsel %vm1274_vm0, %v2044_v61, %v1844_v4  ;;  %v1259_v54 = vsel %vm1257_vm15, %v1242_v49, %v6461_v39  ;;  %v7081_v39 = vld [vmem:[%s5781_s13 + $0x74] ss:$0 sps:$4 sm:$0x77]   ;;  %v5138_v4 = vld [vmem:[%s5781_s13 + $0x68] ss:$0 sps:$4 sm:$0x33]  }
 0x24d   : >> { %v3383_v2 = vsel %vm1189_vm11, %v3337_v33, %v3303_v8  ;;  %3256 = vrot.lane.b32.xlu1 %v6717_v47, %s5373_s28  ;;  %v2123_v23 = vrot.slane %v2076_v48, 1  ;;  %v2404_v33 = vshrl.u32 %v6970_v58, 16  ;;  %v2411_v8 = vshll.u32 %v5138_v4, 16 }
 0x24e   : >> { %v3414_v62 = vsel %vm1206_vm12, %v3383_v2, 0  ;;  %2735 = vrot.lane.b32.xlu0 %v6987_v41, %s5379_s14 }
 0x24f   : >> { %v3447_v63 = vrot.slane %v3414_v62, 3  ;;  %v7048_v47 = vpop.permute.xlu1 %2437  ;;  %v2409_v2 = vor.u32 %v2408_v9, %v2404_v33  ;;  %v2413_v51 = vrot.slane %v2411_v8, 1  ;;  %v5174_v8 = vld [vmem:[%s5781_s13 + $0x44] ss:$0 sps:$4 sm:$0x11]  }
 0x250   : >> { %v1846_v37 = vpop.permute.xlu0 %1845 }
 0x251   : >> { %v2078_v25 = vsel %vm1274_vm0, %v2046_v56, %v1846_v37  ;;  %1800 = vrot.lane.b32.xlu1 %v6323_v35, %s5378_s26  ;;  %v3448_v31 = vsel %vm3445_vm2, %v3446_v17, %v3447_v63  ;;  %v7101_v58 = vsel %vm879_vm8, %v2409_v2, %v2413_v51  ;;  %v5141_v63 = vld [vmem:[%s5781_s13 + $0x74] ss:$0 sps:$4 sm:$0x77]   ;;  %v2790_v37 = vsel %vm1189_vm11, %v2758_v21, %v7048_v47 }
 0x252   : >> { %v2124_v53 = vrot.slane %v2078_v25, 1  ;;  %3258 = vrot.lane.b32.xlu0 %v6728_v52, %s5373_s28  ;;  %3903 = vmatprep.mubr.bf16.mxu1 %v3448_v31  ;;  %v1276_v52 = vsel %vm1274_vm0, %v1259_v54, %v6503_v12  ;;  %v7133_v47 = vrot.slane %v5141_v63, 1  ;;  %v5137_v54 = vld [vmem:[%s5781_s13 + $0xc] sm:$0xf8]  }
 0x253   : >> { %3904 = vmatmul.mubr.bf16.vlgmr.msra.gmra.mrb[0].mxu1 %v2992_v18  ;;  %v2493_v13 = vpop.permute.xlu1 %2492  ;;  %v5175_v63 = vld [vmem:[%s5781_s13 + $0xc] sm:$0xff]  }
 0x254   : >> { %v2440_v0 = vpop.permute.xlu0 %2439  ;;  %v2125_v27 = vsel %vm1108_vm9, %v2123_v23, %v2124_v53  ;;  %v2822_v31 = vsel %vm1206_vm12, %v2790_v37, %v2493_v13  ;;  %v1176_v21 = vsel %vm1171_vm10, %v5175_v63, %v8336_v20  ;;  %v8351_v20 = vld [vmem:[#allocation45_spill] sm:$0xff] }
 0x255   : >> { %3806 = vmatprep.mubr.bf16.mxu0 %v2125_v27  ;;  %2233 = vrot.lane.b32.xlu1 %v5170_v45, %s5373_s28 }
 0x256   : >> { %1802 = vrot.lane.b32.xlu0 %v6315_v22, %s5378_s26  ;;  %3807 = vmatmul.mubr.bf16.vlgmr.msra.gmra.mrb[0].mxu0 %v1276_v52 }
 0x257   : >> { %v2548_v26 = vpop.permute.xlu1 %2547 }
 0x258   : >> { %v2495_v29 = vpop.permute.xlu0 %2494  ;;  %v2854_v23 = vsel %vm1223_vm13, %v2822_v31, %v2548_v26 }
 0x259   : >> { %3312 = vrot.lane.b32.xlu1 %v7074_v60, %s5374_s16 }
 0x25a   : >> { %2235 = vrot.lane.b32.xlu0 %v5171_v19, %s5373_s28  ;;  %v1882_v19 = vsel %vm1171_vm10, %v5995_v32, %v6543_v3  ;;  %v1884_v32 = vsel %vm1171_vm10, %v5174_v8, %v6541_v38  ;;  %v8332_v3 = vld [vmem:[#allocation114_spill] sm:$0xff]  ;;  %v8344_v8 = vld [vmem:[#allocation136_spill] sm:$0xff] }
 0x25b   : >> { %v2633_v12 = vpop.permute.xlu1 %2632  ;;  %v1920_v9 = vsel %vm1189_vm11, %v1882_v19, %v6630_v6  ;;  %v8342_v19 = vld [vmem:[#allocation39_spill] sm:$0xff] }
 0x25c   : >> { %v2550_v59 = vpop.permute.xlu0 %2549  ;;  %v2886_v18 = vsel %vm1240_vm14, %v2854_v23, %v2633_v12  ;;  %v8339_v23 = vld [vmem:[#allocation38_spill] sm:$0xff] }
 0x25d   : >> { %1855 = vrot.lane.b32.xlu1 %v6222_v1, %s5379_s14 }
 0x25e   : >> { %3314 = vrot.lane.b32.xlu0 %v7081_v39, %s5374_s16 }
 0x25f   : >> { %v2677_v28 = vpop.permute.xlu1 %2676 }
 0x260   : >> { %v2635_v55 = vpop.permute.xlu0 %2634 }
 0x261   : >> { %2449 = vrot.lane.b32.xlu1 %v6876_v16, %s5374_s16  ;;  %v2415_v16 = vshrl.u32 %v5138_v4, 16 }
 0x262   : >> { %1857 = vrot.lane.b32.xlu0 %v6214_v40, %s5379_s14  ;;  %v5172_v40 = vld [vmem:[%s5781_s13 + $0x38] ss:$0 sps:$4 sm:$0x33]  }
 0x263   : >> { %v2726_v1 = vpop.permute.xlu1 %2725  ;;  %v2760_v34 = vsel %vm1171_vm10, %v5172_v40, %v7010_v46  ;;  %v7111_v48 = vor.u32 %v2415_v16, %v2413_v51  ;;  %v8333_v51 = vld [vmem:[#allocation145_spill] sm:$0xff] }
 0x264   : >> { %v2679_v50 = vpop.permute.xlu0 %2678  ;;  %v2792_v17 = vsel %vm1189_vm11, %v2760_v34, %v2440_v0 }
 0x265   : >> { %2504 = vrot.lane.b32.xlu1 %v6958_v44, %s5375_s17  ;;  %v2824_v56 = vsel %vm1206_vm12, %v2792_v17, %v2495_v29 }
 0x266   : >> { %2451 = vrot.lane.b32.xlu0 %v6886_v10, %s5374_s16  ;;  %v7114_v10 = vld [vmem:[%s5781_s13 + $0x6c] sm:$0xfc]   ;;  %v2856_v7 = vsel %vm1223_vm13, %v2824_v56, %v2550_v59  ;;  %v5139_v59 = vld [vmem:[%s5781_s13 + $0x14] ss:$0 sps:$4 sm:$0x77]   ;;  %v8337_v56 = vld [vmem:[#allocation113_spill] sm:$0xff] }
 0x267   : >> { %v3249_v61 = vpop.permute.xlu1 %3248  ;;  %v2888_v36 = vsel %vm1240_vm14, %v2856_v7, %v2635_v55  ;;  %v2666_v53 = vrot.slane %v7114_v10, 1  ;;  %v8338_v7 = vld [vmem:[#allocation144_spill] sm:$0xff] }
 0x268   : >> { %v2728_v62 = vpop.permute.xlu0 %2727  ;;  %v2920_v43 = vsel %vm1257_vm15, %v2888_v36, %v2679_v50  ;;  %v3340_v12 = vsel %vm1171_vm10, %v5137_v54, %v3249_v61  ;;  %v8335_v50 = vld [vmem:[#allocation128_spill] sm:$0xff] }
 0x269   : >> { %2559 = vrot.lane.b32.xlu1 %v7101_v58, %s5376_s27  ;;  %v2952_v49 = vsel %vm1274_vm0, %v2920_v43, %v2728_v62  ;;  %v7148_v26 = vsel %vm1108_vm9, %v2666_v53, %v7133_v47  ;;  %v8340_v43 = vld [vmem:[#allocation127_spill] sm:$0xff] }
 0x26a   : >> { %2506 = vrot.lane.b32.xlu0 %v6967_v42, %s5375_s17  ;;  %v3000_v45 = vshrl.u32 %v2952_v49, 16  ;;  %v3003_v52 = vshll.u32 %v2952_v49, 16 }
 0x26b   : >> { %v1793_v46 = vpop.permute.xlu1 %1792 }
 0x26c   : >> { %v3251_v25 = vpop.permute.xlu0 %3250  ;;  %v3002_v55 = vrot.slane %v3000_v45, 1  ;;  %v3005_v2 = vrot.slane %v3003_v52, 2 }
 0x26d   : >> { %2644 = vrot.lane.b32.xlu1 %v6682_v57, %s5377_s11  ;;  %v2918_v57 = vsel %vm1257_vm15, %v2886_v18, %v2677_v28  ;;  %v1952_v28 = vsel %vm1206_vm12, %v1920_v9, %v8332_v3  ;;  %v3343_v34 = vsel %vm1171_vm10, %v5139_v59, %v3251_v25  ;;  %v8343_v59 = vld [vmem:[#allocation49_spill] sm:$0xff]  ;;  %v8345_v3 = vld [vmem:[#allocation56_spill] sm:$0xff] }
 0x26e   : >> { %2561 = vrot.lane.b32.xlu0 %v7111_v48, %s5376_s27  ;;  %v2950_v27 = vsel %vm1274_vm0, %v2918_v57, %v2726_v1  ;;  %v8334_v1 = vld [vmem:[#allocation100_spill] sm:$0xff]  ;;  %v1984_v16 = vsel %vm1223_vm13, %v1952_v28, %v8335_v50  ;;  %v3006_v53 = vor.u32 %v3005_v2, %v3002_v55  ;;  %v8341_v57 = vld [vmem:[#allocation143_spill] sm:$0xff] }
 0x26f   : >> { %v7137_v13 = vpop.permute.xlu1 %2225  ;;  %v2993_v4 = vshrl.u32 %v2950_v27, 16  ;;  %v2996_v14 = vshll.u32 %v2950_v27, 16  ;;  %v1922_v6 = vsel %vm1189_vm11, %v1884_v32, %v8334_v1  ;;  %v2016_v31 = vsel %vm1240_vm14, %v1984_v16, %v8338_v7  ;;  %v8346_v1 = vld [vmem:[#allocation133_spill] sm:$0xff]  ;;  %v7226_v7 = vld [vmem:[%s5781_s13 + $0x80] ss:$0 sps:$4 sm:$0x77]  }
 0x270   : >> { %v1795_v0 = vpop.permute.xlu0 %1794  ;;  %v1954_v37 = vsel %vm1206_vm12, %v1922_v6, %v8337_v56  ;;  %v2048_v18 = vsel %vm1257_vm15, %v2016_v31, %v1793_v46  ;;  %v8347_v6 = vld [vmem:[#allocation65_spill] sm:$0xff] }
 0x271   : >> { %2688 = vrot.lane.b32.xlu1 %v6910_v24, %s5378_s26  ;;  %v2995_v62 = vrot.slane %v2993_v4, 1  ;;  %v2998_v40 = vrot.slane %v2996_v14, 2  ;;  %v1986_v25 = vsel %vm1223_vm13, %v1954_v37, %v8340_v43  ;;  %v1193_v4 = vsel %vm1189_vm11, %v1176_v21, %v8342_v19  ;;  %v5176_v37 = vld [vmem:[%s5781_s13 + $0x8c] ss:$0 sps:$4 sm:$0x33]  }
 0x272   : >> { %2646 = vrot.lane.b32.xlu0 %v6671_v15, %s5377_s11  ;;  %v2018_v54 = vsel %vm1240_vm14, %v1986_v25, %v8341_v57  ;;  %v1210_v9 = vsel %vm1206_vm12, %v1193_v4, %v8343_v59  ;;  %v5177_v31 = vld [vmem:[%s5781_s13 + $0x84] sm:$0xfe]  }
 0x273   : >> { %v3305_v29 = vpop.permute.xlu1 %3304  ;;  %v2999_v14 = vor.u32 %v2998_v40, %v2995_v62  ;;  %v2050_v46 = vsel %vm1257_vm15, %v2018_v54, %v1795_v0  ;;  %v1227_v28 = vsel %vm1223_vm13, %v1210_v9, %v8345_v3  ;;  %v2421_v54 = vshll.u32 %v7114_v10, 16  ;;  %v8352_v19 = vld [vmem:[#allocation26_spill] sm:$0xff] }
 0x274   : >> { %v7155_v33 = vpop.permute.xlu0 %2227  ;;  %v3385_v15 = vsel %vm1189_vm11, %v3340_v12, %v3305_v29  ;;  %v1244_v50 = vsel %vm1240_vm14, %v1227_v28, %v8347_v6 }
 0x275   : >> { %2737 = vrot.lane.b32.xlu1 %v7148_v26, %s5379_s14  ;;  %v3415_v38 = vsel %vm1206_vm12, %v3385_v15, 0  ;;  %v3007_v0 = vsel %vm2977_vm1, %v2999_v14, %v3006_v53  ;;  %v5146_v53 = vld [vmem:[%s5781_s13 + $0x74] ss:$0 sps:$4 sm:$0x33]  }
 0x276   : >> { %2690 = vrot.lane.b32.xlu0 %v8333_v51, %s5378_s26  ;;  %v3449_v27 = vrot.slane %v3415_v38, 3  ;;  %v8349_v38 = vld [vmem:[#allocation43_spill] sm:$0xff]  ;;  %v2426_v4 = vshll.u32 %v5146_v53, 16 }
 0x277   : >> { %v1848_v61 = vpop.permute.xlu1 %1847 }
 0x278   : >> { %v3307_v17 = vpop.permute.xlu0 %3306  ;;  %v2080_v45 = vsel %vm1274_vm0, %v2048_v18, %v1848_v61  ;;  %v8348_v61 = vld [vmem:[#allocation72_spill] sm:$0xff]  ;;  %v7237_v18 = vld [vmem:[%s5781_s13 + $0x90] sm:$0xfe]   ;;  %v2428_v28 = vrot.slane %v2426_v4, 1 }
 0x279   : >> { %v3387_v36 = vsel %vm1189_vm11, %v3343_v34, %v3307_v17  ;;  %1751 = vrot.lane.b32.xlu1 %v8339_v23, %s5377_s11  ;;  %v2126_v55 = vrot.slane %v2080_v45, 1  ;;  %v1261_v62 = vsel %vm1257_vm15, %v1244_v50, %v8348_v61  ;;  %v8350_v17 = vld [vmem:[#allocation81_spill] sm:$0xff]  ;;  %v1774_v14 = vshrl.u32 %v7237_v18, 16 }
 0x27a   : >> { %v3416_v49 = vsel %vm1206_vm12, %v3387_v36, 0  ;;  %2739 = vrot.lane.b32.xlu0 %v7133_v47, %s5379_s14  ;;  %v1279_v63 = vsel %vm1274_vm0, %v1261_v62, %v8350_v17  ;;  %v7231_v36 = vld [vmem:[%s5781_s13 + $0x78] sm:$0xf8]  }
 0x27b   : >> { %v3450_v52 = vrot.slane %v3416_v49, 3  ;;  %v7194_v29 = vpop.permute.xlu1 %2441  ;;  %v7242_v49 = vld [vmem:[%s5781_s13 + $0x98] ss:$0 sps:$4 sm:$0x33]   ;;  %v5179_v62 = vld [vmem:[%s5781_s13 + $0x3c] sm:$0xfe]  }
 0x27c   : >> { %v1850_v12 = vpop.permute.xlu0 %1849 }
 0x27d   : >> { %v2082_v15 = vsel %vm1274_vm0, %v2050_v46, %v1850_v12  ;;  %3262 = vrot.lane.b32.xlu1 %v8344_v8, %s5373_s28  ;;  %v3451_v32 = vsel %vm3445_vm2, %v3449_v27, %v3450_v52  ;;  %v1776_v27 = vshll.u32 %v7237_v18, 16  ;;  %v1781_v52 = vshll.u32 %v7242_v49, 16  ;;  %v8353_v12 = vld [vmem:[#allocation28_spill] sm:$0xff] }
 0x27e   : >> { %v2127_v2 = vrot.slane %v2082_v15, 1  ;;  %3260 = vrot.lane.b32.xlu0 %v8346_v1, %s5373_s28  ;;  %3911 = vmatprep.mubr.bf16.mxu1 %v3451_v32  ;;  %v2419_v15 = vshrl.u32 %v7114_v10, 16  ;;  %v2423_v8 = vrot.slane %v2421_v54, 1  ;;  %v5178_v10 = vld [vmem:[%s5781_s13 + $0x44] ss:$0 sps:$4 sm:$0x33]  }
 0x27f   : >> { %3912 = vmatmul.mubr.bf16.gmra.mrb[4].mxu1 %v3007_v0  ;;  %v7212_v16 = vpop.permute.xlu1 %2496  ;;  %v1778_v46 = vrot.slane %v1776_v27, 1  ;;  %v7252_v59 = vrot.slane %v1781_v52, 1  ;;  %v2764_v50 = vsel %vm1171_vm10, %v5178_v10, %v7155_v33  ;;  %v5147_v27 = vld [vmem:[%s5781_s13 + $0x80] ss:$0 sps:$4 sm:$0x77]  }
 0x280   : >> { %v2444_v40 = vpop.permute.xlu0 %2443  ;;  %v2128_v34 = vsel %vm1108_vm9, %v2126_v55, %v2127_v2  ;;  %v2430_v55 = vshrl.u32 %v5146_v53, 16  ;;  %v2424_v0 = vor.u32 %v2423_v8, %v2419_v15  ;;  %v5144_v52 = vld [vmem:[%s5781_s13 + $0x18] sm:$0xf8]   ;;  %v8354_v15 = vld [vmem:[#allocation89_spill] sm:$0xff] }
 0x281   : >> { %3814 = vmatprep.mubr.bf16.mxu0 %v2128_v34  ;;  %1806 = vrot.lane.b32.xlu1 %v8349_v38, %s5378_s26  ;;  %v1779_v32 = vor.u32 %v1778_v46, %v1774_v14  ;;  %v2796_v61 = vsel %vm1189_vm11, %v2764_v50, %v2444_v40  ;;  %v7307_v46 = vrot.slane %v5147_v27, 1  ;;  %v8357_v10 = vld [vmem:[#allocation88_spill] sm:$0xff] }
 0x282   : >> { %1804 = vrot.lane.b32.xlu0 %v8351_v20, %s5378_s26  ;;  %3815 = vmatmul.mubr.bf16.gmra.mrb[4].mxu0 %v1279_v63  ;;  %v7278_v33 = vsel %vm879_vm8, %v2424_v0, %v2428_v28 }
 0x283   : >> { %v2552_v21 = vpop.permute.xlu1 %2551  ;;  %v7259_v2 = vsel %vm879_vm8, %v1779_v32, %v7252_v59 }
 0x284   : >> { %v2499_v56 = vpop.permute.xlu0 %2498 }
 0x285   : >> { %2239 = vrot.lane.b32.xlu1 %v5176_v37, %s5373_s28  ;;  %v2828_v34 = vsel %vm1206_vm12, %v2796_v61, %v2499_v56  ;;  %v8358_v61 = vld [vmem:[#allocation116_spill] sm:$0xff] }
 0x286   : >> { %2237 = vrot.lane.b32.xlu0 %v5177_v31, %s5373_s28 }
 0x287   : >> { %v2637_v43 = vpop.permute.xlu1 %2636 }
 0x288   : >> { %v2554_v25 = vpop.permute.xlu0 %2553 }
 0x289   : >> { %3318 = vrot.lane.b32.xlu1 %v7226_v7, %s5374_s16  ;;  %v2860_v40 = vsel %vm1223_vm13, %v2828_v34, %v2554_v25  ;;  %v8359_v34 = vld [vmem:[#allocation101_spill] sm:$0xff] }
 0x28a   : >> { %3316 = vrot.lane.b32.xlu0 %v7231_v36, %s5374_s16 }
 0x28b   : >> { %v2681_v57 = vpop.permute.xlu1 %2680 }
 0x28c   : >> { %v2639_v45 = vpop.permute.xlu0 %2638 }
 0x28d   : >> { %1861 = vrot.lane.b32.xlu1 %v8352_v19, %s5379_s14 }
 0x28e   : >> { %1859 = vrot.lane.b32.xlu0 %v8353_v12, %s5379_s14 }
 0x28f   : >> { %v2730_v9 = vpop.permute.xlu1 %2729 }
 0x290   : >> { %v2683_v3 = vpop.permute.xlu0 %2682 }
 0x291   : >> { %2455 = vrot.lane.b32.xlu1 %v6967_v42, %s5374_s16  ;;  %v7268_v42 = vor.u32 %v2430_v55, %v2428_v28  ;;  %v8356_v55 = vld [vmem:[#allocation102_spill] sm:$0xff] }
 0x292   : >> { %2453 = vrot.lane.b32.xlu0 %v6958_v44, %s5374_s16  ;;  %v2762_v44 = vsel %vm1171_vm10, %v5179_v62, %v7137_v13  ;;  %v2892_v13 = vsel %vm1240_vm14, %v2860_v40, %v2639_v45  ;;  %v8360_v40 = vld [vmem:[#allocation130_spill] sm:$0xff] }
 0x293   : >> { %v3253_v1 = vpop.permute.xlu1 %3252  ;;  %v2794_v63 = vsel %vm1189_vm11, %v2762_v44, %v7194_v29  ;;  %v2924_v53 = vsel %vm1257_vm15, %v2892_v13, %v2683_v3 }
 0x294   : >> { %v2732_v6 = vpop.permute.xlu0 %2731  ;;  %v2826_v31 = vsel %vm1206_vm12, %v2794_v63, %v7212_v16  ;;  %v7298_v16 = vld [vmem:[%s5781_s13 + $0x78] sm:$0xfc]   ;;  %v3346_v3 = vsel %vm1171_vm10, %v5144_v52, %v3253_v1  ;;  %v8361_v52 = vld [vmem:[#allocation25_spill] sm:$0xff] }
 0x295   : >> { %2510 = vrot.lane.b32.xlu1 %v7111_v48, %s5375_s17  ;;  %v2858_v56 = vsel %vm1223_vm13, %v2826_v31, %v2552_v21  ;;  %v2956_v25 = vsel %vm1274_vm0, %v2924_v53, %v2732_v6  ;;  %v2669_v12 = vrot.slane %v7298_v16, 1  ;;  %v5180_v6 = vld [vmem:[%s5781_s13 + $0x50] ss:$0 sps:$4 sm:$0x11]  }
 0x296   : >> { %2508 = vrot.lane.b32.xlu0 %v7101_v58, %s5375_s17  ;;  %v2890_v29 = vsel %vm1240_vm14, %v2858_v56, %v2637_v43  ;;  %v3015_v4 = vshrl.u32 %v2956_v25, 16  ;;  %v3018_v43 = vshll.u32 %v2956_v25, 16  ;;  %v1889_v50 = vsel %vm1171_vm10, %v5180_v6, %v8357_v10 }
 0x297   : >> { %v1797_v17 = vpop.permute.xlu1 %1796  ;;  %v2922_v45 = vsel %vm1257_vm15, %v2890_v29, %v2681_v57  ;;  %v8355_v57 = vld [vmem:[#allocation21_spill] sm:$0xff]  ;;  %v1926_v63 = vsel %vm1189_vm11, %v1889_v50, %v8359_v34  ;;  %v7335_v56 = vsel %vm1108_vm9, %v2669_v12, %v7307_v46  ;;  %v8367_v50 = vld [vmem:[#allocation42_spill] sm:$0xff] }
 0x298   : >> { %v3255_v37 = vpop.permute.xlu0 %3254  ;;  %v2954_v21 = vsel %vm1274_vm0, %v2922_v45, %v2730_v9  ;;  %v1887_v8 = vsel %vm1171_vm10, %v8355_v57, %v8354_v15  ;;  %v3017_v44 = vrot.slane %v3015_v4, 1  ;;  %v3020_v1 = vrot.slane %v3018_v43, 2  ;;  %v8363_v43 = vld [vmem:[#allocation115_spill] sm:$0xff] }
 0x299   : >> { %2565 = vrot.lane.b32.xlu1 %v7268_v42, %s5376_s27  ;;  %v3008_v32 = vshrl.u32 %v2954_v21, 16  ;;  %v3011_v9 = vshll.u32 %v2954_v21, 16  ;;  %v1924_v0 = vsel %vm1189_vm11, %v1887_v8, %v8356_v55  ;;  %v8362_v21 = vld [vmem:[#allocation19_spill] sm:$0xff]  ;;  %v8365_v8 = vld [vmem:[#allocation129_spill] sm:$0xff] }
 0x29a   : >> { %2563 = vrot.lane.b32.xlu0 %v7278_v33, %s5376_s27  ;;  %v1956_v62 = vsel %vm1206_vm12, %v1924_v0, %v8358_v61  ;;  %v1178_v4 = vsel %vm1171_vm10, %v8362_v21, %v8361_v52  ;;  %v8364_v15 = vld [vmem:[#allocation147_spill] sm:$0xff]  ;;  %v8371_v52 = vld [vmem:[#allocation74_spill] sm:$0xff] }
 0x29b   : >> { %v7294_v54 = vpop.permute.xlu1 %2229  ;;  %v1988_v31 = vsel %vm1223_vm13, %v1956_v62, %v8360_v40  ;;  %v3010_v53 = vrot.slane %v3008_v32, 1  ;;  %v3013_v29 = vrot.slane %v3011_v9, 2  ;;  %v3021_v32 = vor.u32 %v3020_v1, %v3017_v44  ;;  %v8368_v1 = vld [vmem:[#allocation51_spill] sm:$0xff] }
 0x29c   : >> { %v1799_v19 = vpop.permute.xlu0 %1798  ;;  %v2020_v57 = vsel %vm1240_vm14, %v1988_v31, %v8364_v15  ;;  %v1195_v61 = vsel %vm1189_vm11, %v1178_v4, %v8367_v50  ;;  %v8369_v31 = vld [vmem:[#allocation58_spill] sm:$0xff]  ;;  %v8374_v15 = vld [vmem:[#allocation151_spill] sm:$0xff]  ;;  %v2476_v50 = vshll.u32 %v7298_v16, 16 }
 0x29d   : >> { %2650 = vrot.lane.b32.xlu1 %v6791_v30, %s5377_s11  ;;  %v5145_v30 = vld [vmem:[%s5781_s13 + $0x20] ss:$0 sps:$4 sm:$0x77]   ;;  %v2052_v9 = vsel %vm1257_vm15, %v2020_v57, %v1797_v17  ;;  %v3014_v62 = vor.u32 %v3013_v29, %v3010_v53  ;;  %v1212_v34 = vsel %vm1206_vm12, %v1195_v61, %v8368_v1  ;;  %v8370_v53 = vld [vmem:[#allocation67_spill] sm:$0xff]  ;;  %v2474_v1 = vshrl.u32 %v7298_v16, 16 }
 0x29e   : >> { %2648 = vrot.lane.b32.xlu0 %v6802_v11, %s5377_s11  ;;  %v3349_v25 = vsel %vm1171_vm10, %v5145_v30, %v3255_v37  ;;  %v8366_v30 = vld [vmem:[#allocation146_spill] sm:$0xff] }
 0x29f   : >> { %v3309_v14 = vpop.permute.xlu1 %3308 }
 0x2a0   : >> { %v7315_v28 = vpop.permute.xlu0 %2231  ;;  %v3389_v11 = vsel %vm1189_vm11, %v3346_v3, %v3309_v14  ;;  %v1958_v14 = vsel %vm1206_vm12, %v1926_v63, %v8363_v43  ;;  %v8372_v43 = vld [vmem:[#allocation152_spill] sm:$0xff] }
 0x2a1   : >> { %2694 = vrot.lane.b32.xlu1 %v6987_v41, %s5378_s26  ;;  %v3417_v27 = vsel %vm1206_vm12, %v3389_v11, 0  ;;  %v1990_v37 = vsel %vm1223_vm13, %v1958_v14, %v8365_v8  ;;  %v8375_v8 = vld [vmem:[#allocation59_spill] sm:$0xff] }
 0x2a2   : >> { %2692 = vrot.lane.b32.xlu0 %v7002_v5, %s5378_s26  ;;  %v2022_v55 = vsel %vm1240_vm14, %v1990_v37, %v8366_v30  ;;  %v3452_v0 = vrot.slane %v3417_v27, 3  ;;  %v8376_v37 = vld [vmem:[#allocation61_spill] sm:$0xff] }
 0x2a3   : >> { %v1852_v13 = vpop.permute.xlu1 %1851  ;;  %v2054_v17 = vsel %vm1257_vm15, %v2022_v55, %v1799_v19  ;;  %v3022_v19 = vsel %vm2977_vm1, %v3014_v62, %v3021_v32  ;;  %v5152_v30 = vld [vmem:[%s5781_s13 + $0x84] sm:$0xf8]  }
 0x2a4   : >> { %v3311_v45 = vpop.permute.xlu0 %3310  ;;  %v2084_v11 = vsel %vm1274_vm0, %v2052_v9, %v1852_v13  ;;  %v1229_v13 = vsel %vm1223_vm13, %v1212_v34, %v8369_v31  ;;  %v8377_v62 = vld [vmem:[#allocation30_spill] sm:$0xff]  ;;  %v2478_v34 = vrot.slane %v2476_v50, 1  ;;  %v8380_v50 = vld [vmem:[#allocation20_spill] sm:$0xff] }
 0x2a5   : >> { %v3391_v12 = vsel %vm1189_vm11, %v3349_v25, %v3311_v45  ;;  %2743 = vrot.lane.b32.xlu1 %v7307_v46, %s5379_s14  ;;  %v2129_v25 = vrot.slane %v2084_v11, 1  ;;  %v1246_v29 = vsel %vm1240_vm14, %v1229_v13, %v8370_v53  ;;  %v5153_v11 = vld [vmem:[%s5781_s13 + $0x80] ss:$0 sps:$4 sm:$0x33]  }
 0x2a6   : >> { %v3418_v3 = vsel %vm1206_vm12, %v3391_v12, 0  ;;  %2741 = vrot.lane.b32.xlu0 %v7335_v56, %s5379_s14 }
 0x2a7   : >> { %v3453_v6 = vrot.slane %v3418_v3, 3  ;;  %v7358_v10 = vpop.permute.xlu1 %2445  ;;  %v5151_v3 = vld [vmem:[%s5781_s13 + $0x8c] ss:$0 sps:$4 sm:$0x77]  }
 0x2a8   : >> { %v1854_v44 = vpop.permute.xlu0 %1853 }
 0x2a9   : >> { %v2086_v63 = vsel %vm1274_vm0, %v2054_v17, %v1854_v44  ;;  %1755 = vrot.lane.b32.xlu1 %v6315_v22, %s5377_s11  ;;  %v3454_v40 = vsel %vm3445_vm2, %v3452_v0, %v3453_v6  ;;  %v1263_v22 = vsel %vm1257_vm15, %v1246_v29, %v8371_v52  ;;  %v2481_v17 = vshll.u32 %v5153_v11, 16 }
 0x2aa   : >> { %v2130_v27 = vrot.slane %v2086_v63, 1  ;;  %1753 = vrot.lane.b32.xlu0 %v6323_v35, %s5377_s11  ;;  %3919 = vmatprep.mubr.bf16.mxu1 %v3454_v40  ;;  %v8373_v35 = vld [vmem:[#allocation83_spill] sm:$0xff]  ;;  %v5181_v40 = vld [vmem:[%s5781_s13 + $0x50] ss:$0 sps:$4 sm:$0x33]   ;;  %v2479_v52 = vor.u32 %v2478_v34, %v2474_v1 }
 0x2ab   : >> { %3920 = vmatmul.mubr.bf16.gmra.mrb[8].mxu1 %v3022_v19  ;;  %v2501_v45 = vpop.permute.xlu1 %2500  ;;  %v1282_v14 = vsel %vm1274_vm0, %v1263_v22, %v8373_v35  ;;  %v2768_v31 = vsel %vm1171_vm10, %v5181_v40, %v7315_v28  ;;  %v2483_v13 = vrot.slane %v2481_v17, 1  ;;  %v5182_v19 = vld [vmem:[%s5781_s13 + $0x48] sm:$0xfe]   ;;  %v5184_v1 = vld [vmem:[%s5781_s13 + $0x5c] ss:$0 sps:$4 sm:$0x11]  }
 0x2ac   : >> { %v2448_v21 = vpop.permute.xlu0 %2447  ;;  %v2131_v4 = vsel %vm1108_vm9, %v2129_v25, %v2130_v27  ;;  %v2485_v25 = vshrl.u32 %v5153_v11, 16  ;;  %v2766_v16 = vsel %vm1171_vm10, %v5182_v19, %v7294_v54  ;;  %v8379_v11 = vld [vmem:[#allocation91_spill] sm:$0xff]  ;;  %v5183_v17 = vld [vmem:[%s5781_s13 + $0x24] sm:$0xf8]   ;;  %v8382_v40 = vld [vmem:[#allocation104_spill] sm:$0xff] }
 0x2ad   : >> { %3822 = vmatprep.mubr.bf16.mxu0 %v2131_v4  ;;  %3266 = vrot.lane.b32.xlu1 %v8372_v43, %s5373_s28  ;;  %v2800_v27 = vsel %vm1189_vm11, %v2768_v31, %v2448_v21  ;;  %v2798_v28 = vsel %vm1189_vm11, %v2766_v16, %v7358_v10  ;;  %v8381_v34 = vld [vmem:[#allocation90_spill] sm:$0xff] }
 0x2ae   : >> { %3264 = vrot.lane.b32.xlu0 %v8374_v15, %s5373_s28  ;;  %3823 = vmatmul.mubr.bf16.gmra.mrb[8].mxu0 %v1282_v14  ;;  %v2830_v4 = vsel %vm1206_vm12, %v2798_v28, %v2501_v45  ;;  %v7434_v14 = vsel %vm879_vm8, %v2479_v52, %v2483_v13  ;;  %v8384_v19 = vld [vmem:[#allocation118_spill] sm:$0xff]  ;;  %v8385_v52 = vld [vmem:[#allocation117_spill] sm:$0xff] }
 0x2af   : >> { %v2556_v57 = vpop.permute.xlu1 %2555 }
 0x2b0   : >> { %v2503_v12 = vpop.permute.xlu0 %2502  ;;  %v2862_v54 = vsel %vm1223_vm13, %v2830_v4, %v2556_v57 }
 0x2b1   : >> { %1810 = vrot.lane.b32.xlu1 %v8375_v8, %s5378_s26  ;;  %v2832_v53 = vsel %vm1206_vm12, %v2800_v27, %v2503_v12 }
 0x2b2   : >> { %1808 = vrot.lane.b32.xlu0 %v8376_v37, %s5378_s26 }
 0x2b3   : >> { %v2641_v32 = vpop.permute.xlu1 %2640 }
 0x2b4   : >> { %v2558_v9 = vpop.permute.xlu0 %2557  ;;  %v2894_v10 = vsel %vm1240_vm14, %v2862_v54, %v2641_v32 }
 0x2b5   : >> { %2243 = vrot.lane.b32.xlu1 %v7242_v49, %s5373_s28 }
 0x2b6   : >> { %2241 = vrot.lane.b32.xlu0 %v7237_v18, %s5373_s28  ;;  %v8378_v18 = vld [vmem:[#allocation32_spill] sm:$0xff] }
 0x2b7   : >> { %v2685_v55 = vpop.permute.xlu1 %2684 }
 0x2b8   : >> { %v2643_v0 = vpop.permute.xlu0 %2642  ;;  %v2926_v15 = vsel %vm1257_vm15, %v2894_v10, %v2685_v55  ;;  %v1892_v55 = vsel %vm1171_vm10, %v8380_v50, %v8379_v11  ;;  %v8389_v11 = vld [vmem:[#allocation131_spill] sm:$0xff] }
 0x2b9   : >> { %3322 = vrot.lane.b32.xlu1 %v5151_v3, %s5374_s16  ;;  %v1928_v31 = vsel %vm1189_vm11, %v1892_v55, %v8382_v40  ;;  %v8390_v55 = vld [vmem:[#allocation149_spill] sm:$0xff] }
 0x2ba   : >> { %3320 = vrot.lane.b32.xlu0 %v5152_v30, %s5374_s16  ;;  %v5154_v30 = vld [vmem:[%s5781_s13 + $0x8c] ss:$0 sps:$4 sm:$0x77]  }
 0x2bb   : >> { %v2734_v6 = vpop.permute.xlu1 %2733  ;;  %v2716_v54 = vrot.slane %v5154_v30, 1 }
 0x2bc   : >> { %v2687_v61 = vpop.permute.xlu0 %2686  ;;  %v2958_v12 = vsel %vm1274_vm0, %v2926_v15, %v2734_v6 }
 0x2bd   : >> { %1865 = vrot.lane.b32.xlu1 %v8377_v62, %s5379_s14  ;;  %v3026_v62 = vshll.u32 %v2958_v12, 16 }
 0x2be   : >> { %1863 = vrot.lane.b32.xlu0 %v8378_v18, %s5379_s14 }
 0x2bf   : >> { %v3257_v44 = vpop.permute.xlu1 %3256  ;;  %v3028_v10 = vrot.slane %v3026_v62, 2 }
 0x2c0   : >> { %v2736_v63 = vpop.permute.xlu0 %2735  ;;  %v3352_v6 = vsel %vm1171_vm10, %v5183_v17, %v3257_v44  ;;  %v1960_v44 = vsel %vm1206_vm12, %v1928_v31, %v8384_v19 }
 0x2c1   : >> { %2459 = vrot.lane.b32.xlu1 %v7111_v48, %s5374_s16  ;;  %v2864_v48 = vsel %vm1223_vm13, %v2832_v53, %v2558_v9 }
 0x2c2   : >> { %2457 = vrot.lane.b32.xlu0 %v7101_v58, %s5374_s16  ;;  %v2896_v21 = vsel %vm1240_vm14, %v2864_v48, %v2643_v0  ;;  %v7423_v58 = vor.u32 %v2485_v25, %v2483_v13  ;;  %v7444_v0 = vld [vmem:[%s5781_s13 + $0x84] sm:$0xfc]   ;;  %v8383_v25 = vld [vmem:[#allocation103_spill] sm:$0xff]  ;;  %v8386_v48 = vld [vmem:[#allocation132_spill] sm:$0xff] }
 0x2c3   : >> { %v1801_v29 = vpop.permute.xlu1 %1800  ;;  %v2928_v43 = vsel %vm1257_vm15, %v2896_v21, %v2687_v61  ;;  %v3023_v61 = vshrl.u32 %v2958_v12, 16  ;;  %v1992_v4 = vsel %vm1223_vm13, %v1960_v44, %v8386_v48  ;;  %v8393_v44 = vld [vmem:[#allocation50_spill] sm:$0xff] }
 0x2c4   : >> { %v3259_v22 = vpop.permute.xlu0 %3258  ;;  %v2960_v45 = vsel %vm1274_vm0, %v2928_v43, %v2736_v63  ;;  %v1894_v63 = vsel %vm1171_vm10, %v5184_v1, %v8381_v34  ;;  %v2024_v30 = vsel %vm1240_vm14, %v1992_v4, %v8390_v55  ;;  %v8399_v55 = vld [vmem:[#allocation77_spill] sm:$0xff] }
 0x2c5   : >> { %2514 = vrot.lane.b32.xlu1 %v7268_v42, %s5375_s17  ;;  %v3030_v9 = vshrl.u32 %v2960_v45, 16  ;;  %v3033_v3 = vshll.u32 %v2960_v45, 16  ;;  %v1930_v27 = vsel %vm1189_vm11, %v1894_v63, %v8383_v25  ;;  %v3025_v43 = vrot.slane %v3023_v61, 1  ;;  %v5185_v45 = vld [vmem:[%s5781_s13 + $0x2c] ss:$0 sps:$4 sm:$0x77]  }
 0x2c6   : >> { %2512 = vrot.lane.b32.xlu0 %v7278_v33, %s5375_s17  ;;  %v1962_v28 = vsel %vm1206_vm12, %v1930_v27, %v8385_v52  ;;  %v3355_v15 = vsel %vm1171_vm10, %v5185_v45, %v3259_v22  ;;  %v8391_v61 = vld [vmem:[#allocation148_spill] sm:$0xff]  ;;  %v8394_v52 = vld [vmem:[#allocation57_spill] sm:$0xff] }
 0x2c7   : >> { %v7431_v35 = vpop.permute.xlu1 %2233  ;;  %v3032_v16 = vrot.slane %v3030_v9, 1  ;;  %v3035_v53 = vrot.slane %v3033_v3, 2  ;;  %v8387_v3 = vld [vmem:[#allocation27_spill] sm:$0xff]  ;;  %v1994_v50 = vsel %vm1223_vm13, %v1962_v28, %v8389_v11  ;;  %v3029_v27 = vor.u32 %v3028_v10, %v3025_v43  ;;  %v8396_v10 = vld [vmem:[#allocation73_spill] sm:$0xff] }
 0x2c8   : >> { %v1803_v57 = vpop.permute.xlu0 %1802  ;;  %v2026_v22 = vsel %vm1240_vm14, %v1994_v50, %v8391_v61  ;;  %v8398_v11 = vld [vmem:[#allocation75_spill] sm:$0xff]  ;;  %v5156_v50 = vld [vmem:[%s5781_s13 + $0xa4] ss:$0 sps:$4 sm:$0x33]  }
 0x2c9   : >> { %2569 = vrot.lane.b32.xlu1 %v7423_v58, %s5376_s27  ;;  %v3036_v62 = vor.u32 %v3035_v53, %v3032_v16  ;;  %v2058_v19 = vsel %vm1257_vm15, %v2026_v22, %v1803_v57 }
 0x2ca   : >> { %2567 = vrot.lane.b32.xlu0 %v7434_v14, %s5376_s27 }
 0x2cb   : >> { %v3313_v32 = vpop.permute.xlu1 %3312  ;;  %v3037_v57 = vsel %vm2977_vm1, %v3029_v27, %v3036_v62  ;;  %v5160_v62 = vld [vmem:[%s5781_s13 + $0x8c] ss:$0 sps:$4 sm:$0x33]   ;;  %v8401_v27 = vld [vmem:[#allocation35_spill] sm:$0xff] }
 0x2cc   : >> { %v7451_v18 = vpop.permute.xlu0 %2235  ;;  %v3393_v13 = vsel %vm1189_vm11, %v3352_v6, %v3313_v32  ;;  %v2056_v6 = vsel %vm1257_vm15, %v2024_v30, %v1801_v29 }
 0x2cd   : >> { %2654 = vrot.lane.b32.xlu1 %v8333_v51, %s5377_s11  ;;  %v2715_v51 = vrot.slane %v7444_v0, 1  ;;  %v3419_v12 = vsel %vm1206_vm12, %v3393_v13, 0 }
 0x2ce   : >> { %2652 = vrot.lane.b32.xlu0 %v6910_v24, %s5377_s11  ;;  %v8388_v24 = vld [vmem:[#allocation15_spill] sm:$0xff]  ;;  %v3455_v34 = vrot.slane %v3419_v12, 3  ;;  %v8397_v12 = vld [vmem:[#allocation82_spill] sm:$0xff] }
 0x2cf   : >> { %v1856_v21 = vpop.permute.xlu1 %1855  ;;  %v1180_v32 = vsel %vm1171_vm10, %v8388_v24, %v8387_v3  ;;  %v2717_v13 = vsel %vm1108_vm9, %v2715_v51, %v2716_v54 }
 0x2d0   : >> { %v3315_v9 = vpop.permute.xlu0 %3314  ;;  %v2088_v63 = vsel %vm1274_vm0, %v2056_v6, %v1856_v21  ;;  %v8395_v21 = vld [vmem:[#allocation66_spill] sm:$0xff] }
 0x2d1   : >> { %v3395_v17 = vsel %vm1189_vm11, %v3355_v15, %v3315_v9  ;;  %2698 = vrot.lane.b32.xlu1 %v7133_v47, %s5378_s26  ;;  %v8392_v47 = vld [vmem:[#allocation41_spill] sm:$0xff]  ;;  %v2132_v48 = vrot.slane %v2088_v63, 1  ;;  %v5186_v63 = vld [vmem:[%s5781_s13 + $0x5c] ss:$0 sps:$4 sm:$0x33]  }
 0x2d2   : >> { %v3420_v1 = vsel %vm1206_vm12, %v3395_v17, 0  ;;  %2696 = vrot.lane.b32.xlu0 %v7148_v26, %s5378_s26  ;;  %v1197_v25 = vsel %vm1189_vm11, %v1180_v32, %v8392_v47  ;;  %v2536_v47 = vshll.u32 %v5160_v62, 16 }
 0x2d3   : >> { %v3456_v40 = vrot.slane %v3420_v1, 3  ;;  %v7492_v31 = vpop.permute.xlu1 %2449  ;;  %v1214_v16 = vsel %vm1206_vm12, %v1197_v25, %v8393_v44  ;;  %v2531_v1 = vshll.u32 %v7444_v0, 16 }
 0x2d4   : >> { %v1858_v29 = vpop.permute.xlu0 %1857  ;;  %v1231_v28 = vsel %vm1223_vm13, %v1214_v16, %v8394_v52 }
 0x2d5   : >> { %v2090_v26 = vsel %vm1274_vm0, %v2058_v19, %v1858_v29  ;;  %2747 = vrot.lane.b32.xlu1 %v2716_v54, %s5379_s14  ;;  %v3457_v53 = vsel %vm3445_vm2, %v3455_v34, %v3456_v40  ;;  %v1248_v51 = vsel %vm1240_vm14, %v1231_v28, %v8395_v21  ;;  %v2772_v40 = vsel %vm1171_vm10, %v5186_v63, %v7451_v18  ;;  %v5187_v19 = vld [vmem:[%s5781_s13 + $0x54] sm:$0xfe]   ;;  %v8409_v63 = vld [vmem:[#allocation17_spill] sm:$0xff] }
 0x2d6   : >> { %v2133_v4 = vrot.slane %v2090_v26, 1  ;;  %2745 = vrot.lane.b32.xlu0 %v2717_v13, %s5379_s14  ;;  %3927 = vmatprep.mubr.bf16.mxu1 %v3457_v53  ;;  %v1265_v54 = vsel %vm1257_vm15, %v1248_v51, %v8396_v10  ;;  %v8400_v13 = vld [vmem:[#allocation34_spill] sm:$0xff]  ;;  %v2770_v29 = vsel %vm1171_vm10, %v5187_v19, %v7431_v35  ;;  %v2529_v26 = vshrl.u32 %v7444_v0, 16  ;;  %v5189_v19 = vld [vmem:[%s5781_s13 + $0x38] ss:$0 sps:$4 sm:$0x77]  }
 0x2d7   : >> { %3928 = vmatmul.mubr.bf16.gmra.mrb[12].mxu1 %v3037_v57  ;;  %v2505_v43 = vpop.permute.xlu1 %2504  ;;  %v1285_v9 = vsel %vm1274_vm0, %v1265_v54, %v8397_v12  ;;  %v2533_v53 = vrot.slane %v2531_v1, 1  ;;  %v2802_v18 = vsel %vm1189_vm11, %v2770_v29, %v7492_v31  ;;  %v2538_v35 = vrot.slane %v2536_v47, 1 }
 0x2d8   : >> { %v2452_v45 = vpop.permute.xlu0 %2451  ;;  %v2134_v15 = vsel %vm1108_vm9, %v2132_v48, %v2133_v4  ;;  %v2834_v48 = vsel %vm1206_vm12, %v2802_v18, %v2505_v43  ;;  %v2540_v57 = vshrl.u32 %v5160_v62, 16 }
 0x2d9   : >> { %3830 = vmatprep.mubr.bf16.mxu0 %v2134_v15  ;;  %1759 = vrot.lane.b32.xlu1 %v8349_v38, %s5377_s11  ;;  %v2804_v25 = vsel %vm1189_vm11, %v2772_v40, %v2452_v45  ;;  %v2534_v43 = vor.u32 %v2533_v53, %v2529_v26  ;;  %v5161_v26 = vld [vmem:[%s5781_s13 + $0x98] ss:$0 sps:$4 sm:$0x77]   ;;  %v5162_v53 = vld [vmem:[%s5781_s13 + $0x90] sm:$0xfc]  }
 0x2da   : >> { %1757 = vrot.lane.b32.xlu0 %v8351_v20, %s5377_s11  ;;  %3831 = vmatmul.mubr.bf16.gmra.mrb[12].mxu0 %v1285_v9  ;;  %v5157_v20 = vld [vmem:[%s5781_s13 + $0x9c] sm:$0xfe]   ;;  %v2542_v15 = vor.u32 %v2540_v57, %v2538_v35 }
 0x2db   : >> { %v2560_v3 = vpop.permute.xlu1 %2559 }
 0x2dc   : >> { %v2507_v24 = vpop.permute.xlu0 %2506  ;;  %v2866_v21 = vsel %vm1223_vm13, %v2834_v48, %v2560_v3  ;;  %v2539_v3 = vsel %vm879_vm8, %v2534_v43, %v2538_v35  ;;  %v5190_v48 = vld [vmem:[%s5781_s13 + $0x30] sm:$0xf8]  }
 0x2dd   : >> { %3270 = vrot.lane.b32.xlu1 %v7081_v39, %s5373_s28  ;;  %v5158_v39 = vld [vmem:[%s5781_s13 + $0x98] ss:$0 sps:$4 sm:$0x77]   ;;  %v2836_v44 = vsel %vm1206_vm12, %v2804_v25, %v2507_v24  ;;  %v8402_v24 = vld [vmem:[#allocation93_spill] sm:$0xff] }
 0x2de   : >> { %3268 = vrot.lane.b32.xlu0 %v7074_v60, %s5373_s28  ;;  %v5159_v60 = vld [vmem:[%s5781_s13 + $0x90] sm:$0xf8]  }
 0x2df   : >> { %v2645_v32 = vpop.permute.xlu1 %2644  ;;  %v8411_v25 = vld [vmem:[#allocation135_spill] sm:$0xff] }
 0x2e0   : >> { %v2562_v38 = vpop.permute.xlu0 %2561  ;;  %v2898_v31 = vsel %vm1240_vm14, %v2866_v21, %v2645_v32  ;;  %v8403_v32 = vld [vmem:[#allocation23_spill] sm:$0xff]  ;;  %v8412_v21 = vld [vmem:[#allocation134_spill] sm:$0xff] }
 0x2e1   : >> { %1814 = vrot.lane.b32.xlu1 %v8398_v11, %s5378_s26  ;;  %v2868_v52 = vsel %vm1223_vm13, %v2836_v44, %v2562_v38  ;;  %v1897_v38 = vsel %vm1171_vm10, %v8403_v32, %v8402_v24  ;;  %v2719_v24 = vrot.slane %v5161_v26, 1  ;;  %v2718_v32 = vrot.slane %v5162_v53, 1 }
 0x2e2   : >> { %1812 = vrot.lane.b32.xlu0 %v8399_v55, %s5378_s26 }
 0x2e3   : >> { %v2689_v30 = vpop.permute.xlu1 %2688 }
 0x2e4   : >> { %v2647_v17 = vpop.permute.xlu0 %2646  ;;  %v2930_v54 = vsel %vm1257_vm15, %v2898_v31, %v2689_v30  ;;  %v8413_v31 = vld [vmem:[#allocation150_spill] sm:$0xff] }
 0x2e5   : >> { %2247 = vrot.lane.b32.xlu1 %v5156_v50, %s5373_s28  ;;  %v2900_v4 = vsel %vm1240_vm14, %v2868_v52, %v2647_v17 }
 0x2e6   : >> { %2245 = vrot.lane.b32.xlu0 %v5157_v20, %s5373_s28  ;;  %v8404_v20 = vld [vmem:[#allocation92_spill] sm:$0xff] }
 0x2e7   : >> { %v2738_v61 = vpop.permute.xlu1 %2737 }
 0x2e8   : >> { %v2691_v22 = vpop.permute.xlu0 %2690 }
 0x2e9   : >> { %3326 = vrot.lane.b32.xlu1 %v5158_v39, %s5374_s16  ;;  %v2932_v0 = vsel %vm1257_vm15, %v2900_v4, %v2691_v22  ;;  %v8406_v39 = vld [vmem:[#allocation105_spill] sm:$0xff] }
 0x2ea   : >> { %3324 = vrot.lane.b32.xlu0 %v5159_v60, %s5374_s16 }
 0x2eb   : >> { %v7535_v6 = vpop.permute.xlu1 %1751 }
 0x2ec   : >> { %v2740_v34 = vpop.permute.xlu0 %2739 }
 0x2ed   : >> { %1869 = vrot.lane.b32.xlu1 %v8400_v13, %s5379_s14  ;;  %v2964_v51 = vsel %vm1274_vm0, %v2932_v0, %v2740_v34  ;;  %v8408_v34 = vld [vmem:[#allocation33_spill] sm:$0xff]  ;;  %v8410_v13 = vld [vmem:[#allocation119_spill] sm:$0xff] }
 0x2ee   : >> { %1867 = vrot.lane.b32.xlu0 %v8401_v27, %s5379_s14  ;;  %v3045_v12 = vshrl.u32 %v2964_v51, 16  ;;  %v3048_v9 = vshll.u32 %v2964_v51, 16  ;;  %v1182_v40 = vsel %vm1171_vm10, %v8409_v63, %v8408_v34 }
 0x2ef   : >> { %v3263_v16 = vpop.permute.xlu1 %3262 }
 0x2f0   : >> { %v3261_v28 = vpop.permute.xlu0 %3260  ;;  %v3047_v62 = vrot.slane %v3045_v12, 1  ;;  %v3050_v1 = vrot.slane %v3048_v9, 2  ;;  %v3361_v29 = vsel %vm1171_vm10, %v5189_v19, %v3263_v16 }
 0x2f1   : >> { %2463 = vrot.lane.b32.xlu1 %v7268_v42, %s5374_s16  ;;  %v2962_v42 = vsel %vm1274_vm0, %v2930_v54, %v2738_v61  ;;  %v8407_v61 = vld [vmem:[#allocation120_spill] sm:$0xff]  ;;  %v3358_v4 = vsel %vm1171_vm10, %v5190_v48, %v3261_v28 }
 0x2f2   : >> { %2461 = vrot.lane.b32.xlu0 %v7278_v33, %s5374_s16  ;;  %v3038_v11 = vshrl.u32 %v2962_v42, 16  ;;  %v3041_v50 = vshll.u32 %v2962_v42, 16  ;;  %v3051_v28 = vor.u32 %v3050_v1, %v3047_v62  ;;  %v2720_v1 = vsel %vm1108_vm9, %v2718_v32, %v2719_v24 }
 0x2f3   : >> { %v1807_v10 = vpop.permute.xlu1 %1806 }
 0x2f4   : >> { %v1805_v45 = vpop.permute.xlu0 %1804  ;;  %v3040_v18 = vrot.slane %v3038_v11, 1  ;;  %v3043_v52 = vrot.slane %v3041_v50, 2 }
 0x2f5   : >> { %2518 = vrot.lane.b32.xlu1 %v7423_v58, %s5375_s17  ;;  %v5188_v58 = vld [vmem:[%s5781_s13 + $0x68] ss:$0 sps:$4 sm:$0x11]  }
 0x2f6   : >> { %2516 = vrot.lane.b32.xlu0 %v7434_v14, %s5375_s17  ;;  %v1899_v30 = vsel %vm1171_vm10, %v5188_v58, %v8404_v20  ;;  %v8405_v14 = vld [vmem:[#allocation106_spill] sm:$0xff]  ;;  %v8415_v20 = vld [vmem:[#allocation53_spill] sm:$0xff] }
 0x2f7   : >> { %v7570_v33 = vpop.permute.xlu1 %2239  ;;  %v1932_v17 = vsel %vm1189_vm11, %v1897_v38, %v8405_v14  ;;  %v1934_v60 = vsel %vm1189_vm11, %v1899_v30, %v8406_v39  ;;  %v8414_v38 = vld [vmem:[#allocation46_spill] sm:$0xff] }
 0x2f8   : >> { %v7576_v55 = vpop.permute.xlu0 %2237  ;;  %v1964_v22 = vsel %vm1206_vm12, %v1932_v17, %v8407_v61  ;;  %v1966_v47 = vsel %vm1206_vm12, %v1934_v60, %v8410_v13  ;;  %v1199_v11 = vsel %vm1189_vm11, %v1182_v40, %v8414_v38  ;;  %v8416_v17 = vld [vmem:[#allocation62_spill] sm:$0xff]  ;;  %v8417_v61 = vld [vmem:[#allocation69_spill] sm:$0xff] }
 0x2f9   : >> { %2573 = vrot.lane.b32.xlu1 %v2542_v15, %s5376_s27  ;;  %v1996_v27 = vsel %vm1223_vm13, %v1964_v22, %v8411_v25  ;;  %v1998_v0 = vsel %vm1223_vm13, %v1966_v47, %v8412_v21  ;;  %v1216_v30 = vsel %vm1206_vm12, %v1199_v11, %v8415_v20  ;;  %v5193_v20 = vld [vmem:[%s5781_s13 + $0x74] ss:$0 sps:$4 sm:$0x11]  }
 0x2fa   : >> { %2571 = vrot.lane.b32.xlu0 %v2539_v3, %s5376_s27  ;;  %v2028_v51 = vsel %vm1240_vm14, %v1996_v27, %v8413_v31  ;;  %v2030_v54 = vsel %vm1240_vm14, %v1998_v0, %v7535_v6  ;;  %v1233_v39 = vsel %vm1223_vm13, %v1216_v30, %v8416_v17  ;;  %v1785_v27 = vshrl.u32 %v7242_v49, 16  ;;  %v5164_v49 = vld [vmem:[%s5781_s13 + $0x9c] sm:$0xf8]   ;;  %v8423_v30 = vld [vmem:[#allocation94_spill] sm:$0xff] }
 0x2fb   : >> { %v3319_v44 = vpop.permute.xlu1 %3318  ;;  %v2062_v12 = vsel %vm1257_vm15, %v2030_v54, %v1807_v10  ;;  %v2060_v50 = vsel %vm1257_vm15, %v2028_v51, %v1805_v45  ;;  %v1250_v22 = vsel %vm1240_vm14, %v1233_v39, %v8417_v61 }
 0x2fc   : >> { %v3399_v35 = vsel %vm1189_vm11, %v3361_v29, %v3319_v44  ;;  %v3317_v57 = vpop.permute.xlu0 %3316  ;;  %v1787_v44 = vor.u32 %v1785_v27, %v7252_v59 }
 0x2fd   : >> { %v3422_v43 = vsel %vm1206_vm12, %v3399_v35, 0  ;;  %v3397_v16 = vsel %vm1189_vm11, %v3358_v4, %v3317_v57  ;;  %2658 = vrot.lane.b32.xlu1 %v6987_v41, %s5377_s11  ;;  %v3044_v41 = vor.u32 %v3043_v52, %v3040_v18  ;;  %v5191_v52 = vld [vmem:[%s5781_s13 + $0x68] ss:$0 sps:$4 sm:$0x33]   ;;  %v5192_v57 = vld [vmem:[%s5781_s13 + $0x60] sm:$0xfe]  }
 0x2fe   : >> { %v3459_v42 = vrot.slane %v3422_v43, 3  ;;  %v3421_v15 = vsel %vm1206_vm12, %v3397_v16, 0  ;;  %2656 = vrot.lane.b32.xlu0 %v7002_v5, %s5377_s11  ;;  %v2776_v48 = vsel %vm1171_vm10, %v5191_v52, %v7570_v33  ;;  %v2774_v21 = vsel %vm1171_vm10, %v5192_v57, %v7576_v55 }
 0x2ff   : >> { %v3458_v9 = vrot.slane %v3421_v15, 3  ;;  %v1862_v3 = vpop.permute.xlu1 %1861  ;;  %v3052_v45 = vsel %vm2977_vm1, %v3044_v41, %v3051_v28 }
 0x300   : >> { %v2094_v6 = vsel %vm1274_vm0, %v2062_v12, %v1862_v3  ;;  %v1860_v58 = vpop.permute.xlu0 %1859 }
 0x301   : >> { %v2136_v14 = vrot.slane %v2094_v6, 1  ;;  %v2092_v5 = vsel %vm1274_vm0, %v2060_v50, %v1860_v58  ;;  %2702 = vrot.lane.b32.xlu1 %v7307_v46, %s5378_s26  ;;  %v3460_v10 = vsel %vm3445_vm2, %v3458_v9, %v3459_v42  ;;  %v8418_v46 = vld [vmem:[#allocation78_spill] sm:$0xff]  ;;  %v8421_v50 = vld [vmem:[#allocation31_spill] sm:$0xff] }
 0x302   : >> { %v2135_v60 = vrot.slane %v2092_v5, 1  ;;  %2700 = vrot.lane.b32.xlu0 %v7335_v56, %s5378_s26  ;;  %3935 = vmatprep.mubr.bf16.mxu1 %v3460_v10  ;;  %v1267_v34 = vsel %vm1257_vm15, %v1250_v22, %v8418_v46  ;;  %v8419_v56 = vld [vmem:[#allocation85_spill] sm:$0xff]  ;;  %v8422_v6 = vld [vmem:[#allocation14_spill] sm:$0xff]  ;;  %v8424_v5 = vld [vmem:[#allocation95_spill] sm:$0xff] }
 0x303   : >> { %3936 = vmatmul.mubr.bf16.gmra.mrb[16].mxu1 %v3052_v45  ;;  %v2456_v62 = vpop.permute.xlu1 %2455  ;;  %v1288_v13 = vsel %vm1274_vm0, %v1267_v34, %v8419_v56  ;;  %v1184_v58 = vsel %vm1171_vm10, %v8422_v6, %v8421_v50  ;;  %v8425_v10 = vld [vmem:[#allocation22_spill] sm:$0xff]  ;;  %v8426_v45 = vld [vmem:[#allocation107_spill] sm:$0xff]  ;;  %v8428_v56 = vld [vmem:[#allocation108_spill] sm:$0xff] }
 0x304   : >> { %v2454_v63 = vpop.permute.xlu0 %2453  ;;  %v2137_v40 = vsel %vm1108_vm9, %v2135_v60, %v2136_v14  ;;  %v2808_v4 = vsel %vm1189_vm11, %v2776_v48, %v2456_v62  ;;  %v1904_v14 = vsel %vm1171_vm10, %v5193_v20, %v8423_v30  ;;  %v1902_v17 = vsel %vm1171_vm10, %v8425_v10, %v8424_v5  ;;  %v8433_v20 = vld [vmem:[#allocation52_spill] sm:$0xff] }
 0x305   : >> { %3838 = vmatprep.mubr.bf16.mxu0 %v2137_v40  ;;  %2751 = vrot.lane.b32.xlu1 %v2719_v24, %s5379_s14  ;;  %v1938_v61 = vsel %vm1189_vm11, %v1904_v14, %v8426_v45  ;;  %v8434_v45 = vld [vmem:[#allocation60_spill] sm:$0xff] }
 0x306   : >> { %2749 = vrot.lane.b32.xlu0 %v2720_v1, %s5379_s14  ;;  %3839 = vmatmul.mubr.bf16.gmra.mrb[16].mxu0 %v1288_v13  ;;  %v1936_v13 = vsel %vm1189_vm11, %v1902_v17, %v8428_v56  ;;  %v8436_v56 = vld [vmem:[#allocation76_spill] sm:$0xff] }
 0x307   : >> { %v2511_v47 = vpop.permute.xlu1 %2510 }
 0x308   : >> { %v2509_v25 = vpop.permute.xlu0 %2508  ;;  %v2840_v0 = vsel %vm1206_vm12, %v2808_v4, %v2511_v47  ;;  %v8429_v47 = vld [vmem:[#allocation121_spill] sm:$0xff] }
 0x309   : >> { %1763 = vrot.lane.b32.xlu1 %v8375_v8, %s5377_s11  ;;  %v5163_v8 = vld [vmem:[%s5781_s13 + $0xa4] ss:$0 sps:$4 sm:$0x77]  }
 0x30a   : >> { %1761 = vrot.lane.b32.xlu0 %v8376_v37, %s5377_s11 }
 0x30b   : >> { %v2566_v19 = vpop.permute.xlu1 %2565 }
 0x30c   : >> { %v2564_v29 = vpop.permute.xlu0 %2563  ;;  %v2872_v31 = vsel %vm1223_vm13, %v2840_v0, %v2566_v19 }
 0x30d   : >> { %3274 = vrot.lane.b32.xlu1 %v7226_v7, %s5373_s28 }
 0x30e   : >> { %3272 = vrot.lane.b32.xlu0 %v7231_v36, %s5373_s28  ;;  %v8420_v36 = vld [vmem:[#allocation40_spill] sm:$0xff]  ;;  %s7747_s28 = scalar_lea.vmem %s5647_s24, %s4695_s6 [#allocation10] }
 0x30f   : >> { %v2651_v26 = vpop.permute.xlu1 %2650 }
 0x310   : >> { %v2649_v53 = vpop.permute.xlu0 %2648  ;;  %v2904_v43 = vsel %vm1240_vm14, %v2872_v31, %v2651_v26 }
 0x311   : >> { %1818 = vrot.lane.b32.xlu1 %v1787_v44, %s5378_s26 }
 0x312   : >> { %1816 = vrot.lane.b32.xlu0 %v7259_v2, %s5378_s26 }
 0x313   : >> { %v2695_v37 = vpop.permute.xlu1 %2694 }
 0x314   : >> { %v2693_v18 = vpop.permute.xlu0 %2692  ;;  %v2936_v54 = vsel %vm1257_vm15, %v2904_v43, %v2695_v37  ;;  %v8431_v37 = vld [vmem:[#allocation137_spill] sm:$0xff] }
 0x315   : >> { %3330 = vrot.lane.b32.xlu1 %v5163_v8, %s5374_s16 }
 0x316   : >> { %3328 = vrot.lane.b32.xlu0 %v5164_v49, %s5374_s16 }
 0x317   : >> { %v2744_v7 = vpop.permute.xlu1 %2743 }
 0x318   : >> { %v2742_v59 = vpop.permute.xlu0 %2741  ;;  %v2968_v42 = vsel %vm1274_vm0, %v2936_v54, %v2744_v7  ;;  %v8432_v7 = vld [vmem:[#allocation138_spill] sm:$0xff] }
 0x319   : >> { %1873 = vrot.lane.b32.xlu1 %v8339_v23, %s5379_s14  ;;  %v2806_v23 = vsel %vm1189_vm11, %v2774_v21, %v2454_v63  ;;  %v3060_v3 = vshrl.u32 %v2968_v42, 16  ;;  %v3063_v24 = vshll.u32 %v2968_v42, 16  ;;  %v8427_v63 = vld [vmem:[#allocation44_spill] sm:$0xff] }
 0x31a   : >> { %1871 = vrot.lane.b32.xlu0 %v8420_v36, %s5379_s14  ;;  %v2838_v51 = vsel %vm1206_vm12, %v2806_v23, %v2509_v25  ;;  %v1201_v40 = vsel %vm1189_vm11, %v1184_v58, %v8427_v63  ;;  %v1970_v25 = vsel %vm1206_vm12, %v1938_v61, %v8429_v47  ;;  %v5194_v36 = vld [vmem:[%s5781_s13 + $0x44] ss:$0 sps:$4 sm:$0x77]   ;;  %v5195_v23 = vld [vmem:[%s5781_s13 + $0x3c] sm:$0xf8]   ;;  %s8021_s14 = smov (%p695_p6), 0  }
 0x31b   : >> { %v1756_v2 = vpop.permute.xlu1 %1755  ;;  %v2870_v16 = vsel %vm1223_vm13, %v2838_v51, %v2564_v29  ;;  %v7697_v22 = vrot.slane %v3060_v3, 1  ;;  %v7699_v62 = vrot.slane %v3063_v24, 2  ;;  %v8430_v29 = vld [vmem:[#allocation122_spill] sm:$0xff]  ;;  %v3970_v51 = vld [vmem:[%s7712_s7] sm:$0xff]  ;;  %v1218_v30 = vsel %vm1206_vm12, %v1201_v40, %v8433_v20 }
 0x31c   : >> { %v7667_v35 = vpop.permute.xlu0 %1753  ;;  %v2902_v55 = vsel %vm1240_vm14, %v2870_v16, %v2649_v53  ;;  %v1968_v44 = vsel %vm1206_vm12, %v1936_v13, %v8430_v29  ;;  %v1235_v61 = vsel %vm1223_vm13, %v1218_v30, %v8434_v45  ;;  %v8440_v45 = vld [vmem:[#allocation48_spill] sm:$0xff] }
 0x31d   : >> { %v2934_v15 = vsel %vm1257_vm15, %v2902_v55, %v2693_v18  ;;  %v2002_v18 = vsel %vm1223_vm13, %v1970_v25, %v8431_v37  ;;  %v3066_v21 = vor.u32 %v7699_v62, %v7697_v22  ;;  %v8435_v62 = vld [vmem:[#allocation68_spill] sm:$0xff] }
 0x31e   : >> { %v2966_v12 = vsel %vm1274_vm0, %v2934_v15, %v2742_v59  ;;  %v2000_v59 = vsel %vm1223_vm13, %v1968_v44, %v8432_v7  ;;  %v2034_v0 = vsel %vm1240_vm14, %v2002_v18, %v1756_v2 }
 0x31f   : >> { %v3267_v33 = vpop.permute.xlu1 %3266  ;;  %v3053_v38 = vshrl.u32 %v2966_v12, 16  ;;  %v3056_v11 = vshll.u32 %v2966_v12, 16  ;;  %v2032_v2 = vsel %vm1240_vm14, %v2000_v59, %v7667_v35 }
 0x320   : >> { %v3265_v28 = vpop.permute.xlu0 %3264  ;;  %v3367_v52 = vsel %vm1171_vm10, %v5194_v36, %v3267_v33 }
 0x321   : >> { %v3055_v26 = vrot.slane %v3053_v38, 1  ;;  %v3058_v53 = vrot.slane %v3056_v11, 2  ;;  %v3364_v31 = vsel %vm1171_vm10, %v5195_v23, %v3265_v28  ;;  %v7736_v28 = vld [vmem:[%s8118_s2] ss:$0 sm:$0xff]  ;;  %v3971_v38 = vld [vmem:[%s7712_s7 + $0x8] sm:$0xff] }
 0x323   : >> { %v1811_v9 = vpop.permute.xlu1 %1810  ;;  %v3059_v12 = vor.u32 %v3058_v53, %v3055_v26 }
 0x324   : >> { %v1809_v32 = vpop.permute.xlu0 %1808  ;;  %v2066_v11 = vsel %vm1257_vm15, %v2034_v0, %v1811_v9  ;;  %v5197_v0 = vld [vmem:[%s5781_s13 + $0x6c] sm:$0xfe]  }
 0x325   : >> { %v2064_v35 = vsel %vm1257_vm15, %v2032_v2, %v1809_v32  ;;  %v3067_v63 = vsel %vm2977_vm1, %v3059_v12, %v3066_v21 }
 0x326   : >> { %v4778_v41 = vpop.f32.mrb[0].mxu1 }
 0x327   : >> { %v4779_v39 = vpop.f32.mrb[1].mxu1  ;;  %v7693_v60 = vpop.permute.xlu1 %2243 }
 0x328   : >> { %v4780_v1 = vadd.f32 %v4779_v39, %v4778_v41  ;;  %v4781_v46 = vpop.f32.mrb[2].mxu1  ;;  %v7701_v34 = vpop.permute.xlu0 %2241 }
 0x329   : >> { %v4714_v27 = vpop.f32.mrb[0].mxu0  ;;  %v4782_v19 = vpop.f32.mrb[3].mxu1  ;;  %v2778_v23 = vsel %vm1171_vm10, %v5197_v0, %v7701_v34 }
 0x32a   : >> { %v4783_v8 = vadd.f32 %v4782_v19, %v4781_v46  ;;  %v4715_v49 = vpop.f32.mrb[1].mxu0  ;;  %v8437_v19 = vld [vmem:[#allocation84_spill] sm:$0xff] }
 0x32b   : >> { %v4716_v48 = vadd.f32 %v4715_v49, %v4714_v27  ;;  %v4717_v4 = vpop.f32.mrb[2].mxu0  ;;  %v3323_v57 = vpop.permute.xlu1 %3322 }
 0x32c   : >> { %v3403_v43 = vsel %vm1189_vm11, %v3367_v52, %v3323_v57  ;;  %v3321_v16 = vpop.permute.xlu0 %3320  ;;  %v4718_v54 = vpop.f32.mrb[3].mxu0  ;;  %v5196_v52 = vld [vmem:[%s5781_s13 + $0x74] ss:$0 sps:$4 sm:$0x33]  }
 0x32d   : >> { %v3906_v55 = vadd.f32 %v4780_v1, %v4716_v48  ;;  %v3424_v33 = vsel %vm1206_vm12, %v3403_v43, 0  ;;  %v3401_v42 = vsel %vm1189_vm11, %v3364_v31, %v3321_v16  ;;  %v4719_v15 = vadd.f32 %v4718_v54, %v4717_v4 }
 0x32e   : >> { %v3462_v3 = vrot.slane %v3424_v33, 3  ;;  %v3423_v24 = vsel %vm1206_vm12, %v3401_v42, 0  ;;  %v1252_v1 = vsel %vm1240_vm14, %v1235_v61, %v8435_v62  ;;  %v2780_v48 = vsel %vm1171_vm10, %v5196_v52, %v7693_v60 }
 0x32f   : >> { %v3986_v41 = vadd.f32 %v3970_v51, %v3906_v55  ;;  %v3461_v50 = vrot.slane %v3423_v24, 3  ;;  %v3909_v6 = vadd.f32 %v4783_v8, %v4719_v15  ;;  %v1866_v58 = vpop.permute.xlu1 %1865  ;;  %v1269_v13 = vsel %vm1257_vm15, %v1252_v1, %v8436_v56  ;;  %v8443_v56 = vld [vmem:[#allocation24_spill] sm:$0xff] }
 0x330   : >> { %v2098_v14 = vsel %vm1274_vm0, %v2066_v11, %v1866_v58  ;;  %v1864_v5 = vpop.permute.xlu0 %1863  ;;  %v1291_v29 = vsel %vm1274_vm0, %v1269_v13, %v8437_v19 }
 0x331   : >> { %v4009_v10 = vadd.f32 %v7736_v28, %v3986_v41  ;;  %v3987_v17 = vadd.f32 %v3971_v38, %v3909_v6  ;;  %v2139_v9 = vrot.slane %v2098_v14, 1  ;;  %v2096_v39 = vsel %vm1274_vm0, %v2064_v35, %v1864_v5  ;;  %v8438_v35 = vld [vmem:[#allocation37_spill] sm:$0xff]  ;;  %v8439_v14 = vld [vmem:[#allocation16_spill] sm:$0xff] }
 0x332   : >> { %v2138_v22 = vrot.slane %v2096_v39, 1  ;;  %v3463_v32 = vsel %vm3445_vm2, %v3461_v50, %v3462_v3  ;;  %v1186_v5 = vsel %vm1171_vm10, %v8439_v14, %v8438_v35 }
 0x333   : >> { %4026 = vst [vmem:[%s7747_s28] sm:$0xff] %v4009_v10  ;;  %v4010_v46 = vadd.f32 %v7736_v28, %v3987_v17  ;;  %3943 = vmatprep.mubr.bf16.mxu1 %v3463_v32  ;;  %v2460_v40 = vpop.permute.xlu1 %2459  ;;  %v1203_v61 = vsel %vm1189_vm11, %v1186_v5, %v8440_v45  ;;  %v8441_v32 = vld [vmem:[#allocation96_spill] sm:$0xff] }
 0x334   : >> { %3944 = vmatmul.mubr.bf16.gmra.mrb[20].mxu1 %v3067_v63  ;;  %v2458_v47 = vpop.permute.xlu0 %2457  ;;  %v2140_v25 = vsel %vm1108_vm9, %v2138_v22, %v2139_v9  ;;  %v2812_v57 = vsel %vm1189_vm11, %v2780_v48, %v2460_v40  ;;  %v5198_v22 = vld [vmem:[%s5781_s13 + $0x80] ss:$0 sps:$4 sm:$0x11]   ;;  %v8442_v40 = vld [vmem:[#allocation97_spill] sm:$0xff]  ;;  %v8448_v48 = vld [vmem:[#allocation139_spill] sm:$0xff] }
 0x335   : >> { %4027 = vst [vmem:[%s7747_s28 + $0x8] sm:$0xff] %v4010_v46  ;;  %v7764_v27 = vadd.f32 %v4010_v46, %v4009_v10  ;;  %3846 = vmatprep.mubr.bf16.mxu0 %v2140_v25  ;;  %v2810_v51 = vsel %vm1189_vm11, %v2778_v23, %v2458_v47  ;;  %v1909_v62 = vsel %vm1171_vm10, %v5198_v22, %v8441_v32  ;;  %v8444_v47 = vld [vmem:[#allocation109_spill] sm:$0xff] }
 0x336   : >> { %3847 = vmatmul.mubr.bf16.gmra.mrb[20].mxu0 %v1291_v29  ;;  %v1907_v13 = vsel %vm1171_vm10, %v8443_v56, %v8442_v40  ;;  %v1942_v25 = vsel %vm1189_vm11, %v1909_v62, %v8444_v47  ;;  %v8452_v56 = vld [vmem:[#allocation71_spill] sm:$0xff]  ;;  %v8453_v47 = vld [vmem:[#allocation80_spill] sm:$0xff] }
 0x337   : >> { %v2515_v44 = vpop.permute.xlu1 %2514 }
 0x338   : >> { %v2513_v26 = vpop.permute.xlu0 %2512  ;;  %v2844_v31 = vsel %vm1206_vm12, %v2812_v57, %v2515_v44  ;;  %v3972_v44 = vld [vmem:[%s7712_s7 + $0x10] sm:$0xff] }
 0x339   : >> { %v2842_v16 = vsel %vm1206_vm12, %v2810_v51, %v2513_v26  ;;  %v8449_v51 = vld [vmem:[#allocation140_spill] sm:$0xff] }
 0x33b   : >> { %v2570_v53 = vpop.permute.xlu1 %2569 }
 0x33c   : >> { %v2568_v8 = vpop.permute.xlu0 %2567  ;;  %v2876_v43 = vsel %vm1223_vm13, %v2844_v31, %v2570_v53  ;;  %v3973_v31 = vld [vmem:[%s7712_s7 + $0x18] sm:$0xff] }
 0x33d   : >> { %v2874_v55 = vsel %vm1223_vm13, %v2842_v16, %v2568_v8  ;;  %v8445_v8 = vld [vmem:[#allocation110_spill] sm:$0xff] }
 0x33e   : >> { %v5199_v16 = vld [vmem:[%s5781_s13 + $0x50] ss:$0 sps:$4 sm:$0x77]  }
 0x33f   : >> { %v2655_v49 = vpop.permute.xlu1 %2654 }
 0x340   : >> { %v2653_v37 = vpop.permute.xlu0 %2652  ;;  %v2908_v60 = vsel %vm1240_vm14, %v2876_v43, %v2655_v49  ;;  %v1940_v49 = vsel %vm1189_vm11, %v1907_v13, %v8445_v8 }
 0x341   : >> { %v2906_v15 = vsel %vm1240_vm14, %v2874_v55, %v2653_v37  ;;  %v8446_v37 = vld [vmem:[#allocation123_spill] sm:$0xff] }
 0x343   : >> { %v2699_v18 = vpop.permute.xlu1 %2698 }
 0x344   : >> { %v2697_v7 = vpop.permute.xlu0 %2696  ;;  %v2940_v33 = vsel %vm1257_vm15, %v2908_v60, %v2699_v18  ;;  %v1974_v18 = vsel %vm1206_vm12, %v1942_v25, %v8446_v37 }
 0x345   : >> { %v2938_v12 = vsel %vm1257_vm15, %v2906_v15, %v2697_v7  ;;  %v2006_v57 = vsel %vm1223_vm13, %v1974_v18, %v8448_v48  ;;  %v5201_v48 = vld [vmem:[%s5781_s13 + $0x80] ss:$0 sps:$4 sm:$0x33]  }
 0x347   : >> { %v2748_v59 = vpop.permute.xlu1 %2747 }
 0x348   : >> { %v2746_v36 = vpop.permute.xlu0 %2745  ;;  %v2972_v34 = vsel %vm1274_vm0, %v2940_v33, %v2748_v59 }
 0x349   : >> { %v2970_v3 = vsel %vm1274_vm0, %v2938_v12, %v2746_v36  ;;  %v3075_v11 = vshrl.u32 %v2972_v34, 16  ;;  %v3078_v41 = vshll.u32 %v2972_v34, 16  ;;  %v8447_v36 = vld [vmem:[#allocation124_spill] sm:$0xff] }
 0x34a   : >> { %v3068_v10 = vshrl.u32 %v2970_v3, 16  ;;  %v3071_v17 = vshll.u32 %v2970_v3, 16  ;;  %v1972_v52 = vsel %vm1206_vm12, %v1940_v49, %v8447_v36 }
 0x34b   : >> { %v7771_v4 = vpop.permute.xlu1 %1759  ;;  %v3077_v19 = vrot.slane %v3075_v11, 1  ;;  %v3080_v29 = vrot.slane %v3078_v41, 2  ;;  %v2004_v43 = vsel %vm1223_vm13, %v1972_v52, %v8449_v51  ;;  %v5202_v51 = vld [vmem:[%s5781_s13 + $0x78] sm:$0xfe]  }
 0x34c   : >> { %v7774_v21 = vpop.permute.xlu0 %1757  ;;  %v3070_v0 = vrot.slane %v3068_v10, 1  ;;  %v3073_v23 = vrot.slane %v3071_v17, 2  ;;  %v2038_v12 = vsel %vm1240_vm14, %v2006_v57, %v7771_v4 }
 0x34d   : >> { %v3081_v34 = vor.u32 %v3080_v29, %v3077_v19 }
 0x34f   : >> { %v3271_v54 = vpop.permute.xlu1 %3270 }
 0x350   : >> { %v3269_v42 = vpop.permute.xlu0 %3268  ;;  %v3373_v60 = vsel %vm1171_vm10, %v5199_v16, %v3271_v54 }
 0x352   : >> { %v4784_v2 = vpop.f32.mrb[4].mxu1 }
 0x353   : >> { %v4785_v24 = vpop.f32.mrb[5].mxu1  ;;  %v1815_v38 = vpop.permute.xlu1 %1814 }
 0x354   : >> { %v4786_v50 = vadd.f32 %v4785_v24, %v4784_v2  ;;  %v4787_v6 = vpop.f32.mrb[6].mxu1  ;;  %v1813_v58 = vpop.permute.xlu0 %1812  ;;  %v5200_v2 = vld [vmem:[%s5781_s13 + $0x48] sm:$0xf8]  }
 0x355   : >> { %v4720_v20 = vpop.f32.mrb[4].mxu0  ;;  %v4788_v30 = vpop.f32.mrb[7].mxu1  ;;  %v3370_v3 = vsel %vm1171_vm10, %v5200_v2, %v3269_v42  ;;  %v2070_v42 = vsel %vm1257_vm15, %v2038_v12, %v1815_v38 }
 0x356   : >> { %v4789_v9 = vadd.f32 %v4788_v30, %v4787_v6  ;;  %v4721_v39 = vpop.f32.mrb[5].mxu0  ;;  %v2036_v30 = vsel %vm1240_vm14, %v2004_v43, %v7774_v21 }
 0x357   : >> { %v4722_v1 = vadd.f32 %v4721_v39, %v4720_v20  ;;  %v4723_v46 = vpop.f32.mrb[6].mxu0  ;;  %v7798_v63 = vpop.permute.xlu1 %2247  ;;  %v3074_v20 = vor.u32 %v3073_v23, %v3070_v0  ;;  %v2068_v45 = vsel %vm1257_vm15, %v2036_v30, %v1813_v58 }
 0x358   : >> { %v7806_v26 = vpop.permute.xlu0 %2245  ;;  %v4724_v53 = vpop.f32.mrb[7].mxu0  ;;  %v2784_v57 = vsel %vm1171_vm10, %v5201_v48, %v7798_v63 }
 0x359   : >> { %v3914_v7 = vadd.f32 %v4786_v50, %v4722_v1  ;;  %v4725_v59 = vadd.f32 %v4724_v53, %v4723_v46  ;;  %v8451_v1 = vld [vmem:[#allocation64_spill] sm:$0xff]  ;;  %v2782_v43 = vsel %vm1171_vm10, %v5202_v51, %v7806_v26 }
 0x35b   : >> { %v3988_v55 = vadd.f32 %v3972_v44, %v3914_v7  ;;  %v3917_v33 = vadd.f32 %v4789_v9, %v4725_v59  ;;  %v3327_v15 = vpop.permute.xlu1 %3326  ;;  %v8450_v9 = vld [vmem:[#allocation55_spill] sm:$0xff] }
 0x35c   : >> { %v3407_v24 = vsel %vm1189_vm11, %v3373_v60, %v3327_v15  ;;  %v3325_v11 = vpop.permute.xlu0 %3324  ;;  %v1220_v39 = vsel %vm1206_vm12, %v1203_v61, %v8450_v9  ;;  %v3082_v61 = vsel %vm2977_vm1, %v3074_v20, %v3081_v34  ;;  %v8454_v44 = vld [vmem:[#allocation87_spill] sm:$0xff]  ;;  %v5203_v20 = vld [vmem:[%s5781_s13 + $0x88] sm:$0xf]  ;;  %v8455_v9 = vld [vmem:[#allocation36_spill] sm:$0xff] }
 0x35d   : >> { %v4011_v41 = vadd.f32 %v7736_v28, %v3988_v55  ;;  %v3989_v50 = vadd.f32 %v3973_v31, %v3917_v33  ;;  %v3426_v6 = vsel %vm1206_vm12, %v3407_v24, 0  ;;  %v3405_v54 = vsel %vm1189_vm11, %v3370_v3, %v3325_v11  ;;  %v752_v3 = vld [vmem:[%s5781_s13 + $0x84] sm:$0xe] }
 0x35e   : >> { %v3465_v35 = vrot.slane %v3426_v6, 3  ;;  %v3425_v4 = vsel %vm1206_vm12, %v3405_v54, 0  ;;  %v1237_v46 = vsel %vm1223_vm13, %v1220_v39, %v8451_v1  ;;  %v4540_v30 = vcombine.low %v752_v3, %v5203_v20  ;;  %v8456_v39 = vld [vmem:[#allocation18_spill] sm:$0xff] }
 0x35f   : >> { %4028 = vst [vmem:[%s7747_s28 + $0x10] sm:$0xff] %v4011_v41  ;;  %v4044_v14 = vadd.f32 %v7764_v27, %v4011_v41  ;;  %v4012_v5 = vadd.f32 %v7736_v28, %v3989_v50  ;;  %v3464_v10 = vrot.slane %v3425_v4, 3  ;;  %v1870_v17 = vpop.permute.xlu1 %1869  ;;  %v1254_v58 = vsel %vm1240_vm14, %v1237_v46, %v8452_v56  ;;  %v5204_v46 = vld [vmem:[%s5781_s13 + $0x8c] ss:$0 sps:$4 sm:$0x11]  }
 0x360   : >> { %v2102_v22 = vsel %vm1274_vm0, %v2070_v42, %v1870_v17  ;;  %v1868_v21 = vpop.permute.xlu0 %1867  ;;  %v1271_v25 = vsel %vm1257_vm15, %v1254_v58, %v8453_v47  ;;  %v8459_v47 = vld [vmem:[#allocation99_spill] sm:$0xff] }
 0x361   : >> { %4029 = vst [vmem:[%s7747_s28 + $0x18] sm:$0xff] %v4012_v5  ;;  %v7841_v32 = vadd.f32 %v4044_v14, %v4012_v5  ;;  %v2142_v62 = vrot.slane %v2102_v22, 1  ;;  %v2100_v38 = vsel %vm1274_vm0, %v2068_v45, %v1868_v21  ;;  %v3466_v27 = vsel %vm3445_vm2, %v3464_v10, %v3465_v35 }
 0x362   : >> { %v2141_v40 = vrot.slane %v2100_v38, 1  ;;  %3951 = vmatprep.mubr.bf16.mxu1 %v3466_v27  ;;  %v1294_v53 = vsel %vm1274_vm0, %v1271_v25, %v8454_v44  ;;  %v1188_v45 = vsel %vm1171_vm10, %v8456_v39, %v8455_v9  ;;  %v8457_v27 = vld [vmem:[#allocation47_spill] sm:$0xff]  ;;  %v1912_v25 = vsel %vm1171_vm10, %v4540_v30, %v8459_v47 }
 0x363   : >> { %3952 = vmatmul.mubr.bf16.gmra.mrb[24].mxu1 %v3082_v61  ;;  %v2464_v13 = vpop.permute.xlu1 %2463  ;;  %v1205_v1 = vsel %vm1189_vm11, %v1188_v45, %v8457_v27  ;;  %v8466_v45 = vld [vmem:[#allocation54_spill] sm:$0xff]  ;;  %v8469_v47 = vld [vmem:[#allocation79_spill] sm:$0xff] }
 0x364   : >> { %v2462_v19 = vpop.permute.xlu0 %2461  ;;  %v2143_v29 = vsel %vm1108_vm9, %v2141_v40, %v2142_v62  ;;  %v2816_v23 = vsel %vm1189_vm11, %v2784_v57, %v2464_v13  ;;  %v8458_v40 = vld [vmem:[#allocation98_spill] sm:$0xff] }
 0x365   : >> { %3854 = vmatprep.mubr.bf16.mxu0 %v2143_v29  ;;  %v2814_v60 = vsel %vm1189_vm11, %v2782_v43, %v2462_v19  ;;  %v1914_v61 = vsel %vm1171_vm10, %v5204_v46, %v8458_v40  ;;  %v8460_v19 = vld [vmem:[#allocation111_spill] sm:$0xff]  ;;  %v8463_v57 = vld [vmem:[#allocation126_spill] sm:$0xff] }
 0x366   : >> { %3855 = vmatmul.mubr.bf16.gmra.mrb[24].mxu0 %v1294_v53  ;;  %v1946_v29 = vsel %vm1189_vm11, %v1914_v61, %v8460_v19  ;;  %v8467_v40 = vld [vmem:[#allocation63_spill] sm:$0xff] }
 0x367   : >> { %v2519_v8 = vpop.permute.xlu1 %2518 }
 0x368   : >> { %v2517_v49 = vpop.permute.xlu0 %2516  ;;  %v2848_v16 = vsel %vm1206_vm12, %v2816_v23, %v2519_v8  ;;  %v3974_v8 = vld [vmem:[%s7712_s7 + $0x20] sm:$0xff] }
 0x369   : >> { %v2846_v33 = vsel %vm1206_vm12, %v2814_v60, %v2517_v49  ;;  %v8464_v23 = vld [vmem:[#allocation141_spill] sm:$0xff]  ;;  %v8465_v60 = vld [vmem:[#allocation142_spill] sm:$0xff] }
 0x36b   : >> { %v2574_v37 = vpop.permute.xlu1 %2573 }
 0x36c   : >> { %v2572_v18 = vpop.permute.xlu0 %2571  ;;  %v2880_v55 = vsel %vm1223_vm13, %v2848_v16, %v2574_v37  ;;  %v3975_v16 = vld [vmem:[%s7712_s7 + $0x28] sm:$0xff] }
 0x36d   : >> { %v2878_v34 = vsel %vm1223_vm13, %v2846_v33, %v2572_v18  ;;  %v8461_v18 = vld [vmem:[#allocation112_spill] sm:$0xff] }
 0x36e   : >> { %v5205_v33 = vld [vmem:[%s5781_s13 + $0x5c] ss:$0 sps:$4 sm:$0x77]  }
 0x36f   : >> { %v2659_v7 = vpop.permute.xlu1 %2658 }
 0x370   : >> { %v2657_v59 = vpop.permute.xlu0 %2656  ;;  %v2912_v15 = vsel %vm1240_vm14, %v2880_v55, %v2659_v7  ;;  %v1944_v7 = vsel %vm1189_vm11, %v1912_v25, %v8461_v18 }
 0x371   : >> { %v2910_v26 = vsel %vm1240_vm14, %v2878_v34, %v2657_v59  ;;  %v8462_v59 = vld [vmem:[#allocation125_spill] sm:$0xff] }
 0x373   : >> { %v2703_v36 = vpop.permute.xlu1 %2702 }
 0x374   : >> { %v2701_v52 = vpop.permute.xlu0 %2700  ;;  %v2944_v12 = vsel %vm1257_vm15, %v2912_v15, %v2703_v36  ;;  %v1978_v36 = vsel %vm1206_vm12, %v1946_v29, %v8462_v59  ;;  %v8470_v29 = vld [vmem:[#allocation86_spill] sm:$0xff] }
 0x375   : >> { %v2942_v11 = vsel %vm1257_vm15, %v2910_v26, %v2701_v52 }
 0x377   : >> { %v2752_v0 = vpop.permute.xlu1 %2751 }
 0x378   : >> { %v2750_v31 = vpop.permute.xlu0 %2749  ;;  %v2976_v24 = vsel %vm1274_vm0, %v2944_v12, %v2752_v0  ;;  %v1976_v0 = vsel %vm1206_vm12, %v1944_v7, %v8463_v57  ;;  %v3976_v57 = vld [vmem:[%s7712_s7 + $0x30] sm:$0xff] }
 0x379   : >> { %v2974_v50 = vsel %vm1274_vm0, %v2942_v11, %v2750_v31  ;;  %v3090_v35 = vshrl.u32 %v2976_v24, 16  ;;  %v3093_v4 = vshll.u32 %v2976_v24, 16  ;;  %v2010_v31 = vsel %vm1223_vm13, %v1978_v36, %v8464_v23  ;;  %v5206_v11 = vld [vmem:[%s5781_s13 + $0x54] sm:$0xf8]  }
 0x37a   : >> { %v3083_v22 = vshrl.u32 %v2974_v50, 16  ;;  %v3086_v21 = vshll.u32 %v2974_v50, 16  ;;  %v2008_v55 = vsel %vm1223_vm13, %v1976_v0, %v8465_v60 }
 0x37b   : >> { %v1764_v63 = vpop.permute.xlu1 %1763  ;;  %v3092_v44 = vrot.slane %v3090_v35, 1  ;;  %v3095_v53 = vrot.slane %v3093_v4, 2 }
 0x37c   : >> { %v7869_v2 = vpop.permute.xlu0 %1761  ;;  %v3085_v51 = vrot.slane %v3083_v22, 1  ;;  %v3088_v43 = vrot.slane %v3086_v21, 2  ;;  %v2042_v24 = vsel %vm1240_vm14, %v2010_v31, %v1764_v63  ;;  %v1222_v22 = vsel %vm1206_vm12, %v1205_v1, %v8466_v45  ;;  %v8468_v1 = vld [vmem:[#allocation70_spill] sm:$0xff] }
 0x37d   : >> { %v3096_v26 = vor.u32 %v3095_v53, %v3092_v44  ;;  %v1239_v61 = vsel %vm1223_vm13, %v1222_v22, %v8467_v40 }
 0x37e   : >> { %v4790_v41 = vpop.f32.mrb[8].mxu1  ;;  %v3089_v4 = vor.u32 %v3088_v43, %v3085_v51  ;;  %v3977_v51 = vld [vmem:[%s7712_s7 + $0x38] sm:$0xff] }
 0x37f   : >> { %v4791_v6 = vpop.f32.mrb[9].mxu1  ;;  %v3275_v54 = vpop.permute.xlu1 %3274 }
 0x380   : >> { %v4792_v42 = vadd.f32 %v4791_v6, %v4790_v41  ;;  %v4793_v14 = vpop.f32.mrb[10].mxu1  ;;  %v3273_v5 = vpop.permute.xlu0 %3272  ;;  %v3379_v15 = vsel %vm1171_vm10, %v5205_v33, %v3275_v54 }
 0x381   : >> { %v4726_v10 = vpop.f32.mrb[8].mxu0  ;;  %v4794_v17 = vpop.f32.mrb[11].mxu1  ;;  %v3376_v41 = vsel %vm1171_vm10, %v5206_v11, %v3273_v5 }
 0x382   : >> { %v4795_v62 = vadd.f32 %v4794_v17, %v4793_v14  ;;  %v4727_v38 = vpop.f32.mrb[9].mxu0 }
 0x383   : >> { %v4728_v56 = vadd.f32 %v4727_v38, %v4726_v10  ;;  %v4729_v58 = vpop.f32.mrb[10].mxu0  ;;  %v1819_v13 = vpop.permute.xlu1 %1818 }
 0x384   : >> { %v1817_v49 = vpop.permute.xlu0 %1816  ;;  %v4730_v37 = vpop.f32.mrb[11].mxu0  ;;  %v2074_v10 = vsel %vm1257_vm15, %v2042_v24, %v1819_v13  ;;  %v1256_v13 = vsel %vm1240_vm14, %v1239_v61, %v8468_v1 }
 0x385   : >> { %v3922_v52 = vadd.f32 %v4792_v42, %v4728_v56  ;;  %v4731_v48 = vadd.f32 %v4730_v37, %v4729_v58  ;;  %v2040_v42 = vsel %vm1240_vm14, %v2008_v55, %v7869_v2  ;;  %v3097_v58 = vsel %vm2977_vm1, %v3089_v4, %v3096_v26 }
 0x386   : >> { %v2072_v21 = vsel %vm1257_vm15, %v2040_v42, %v1817_v49  ;;  %v1273_v25 = vsel %vm1257_vm15, %v1256_v13, %v8469_v47  ;;  %v3981_v47 = vld [vmem:[%s7712_s7 + $0x58] sm:$0xff] }
 0x387   : >> { %v3990_v34 = vadd.f32 %v3974_v8, %v3922_v52  ;;  %v3925_v12 = vadd.f32 %v4795_v62, %v4731_v48  ;;  %v3331_v3 = vpop.permute.xlu1 %3330  ;;  %v1297_v44 = vsel %vm1274_vm0, %v1273_v25, %v8470_v29 }
 0x388   : >> { %v3411_v50 = vsel %vm1189_vm11, %v3379_v15, %v3331_v3  ;;  %v3329_v6 = vpop.permute.xlu0 %3328 }
 0x389   : >> { %v4013_v20 = vadd.f32 %v7736_v28, %v3990_v34  ;;  %v3991_v30 = vadd.f32 %v3975_v16, %v3925_v12  ;;  %v3428_v35 = vsel %vm1206_vm12, %v3411_v50, 0  ;;  %v3409_v54 = vsel %vm1189_vm11, %v3376_v41, %v3329_v6 }
 0x38a   : >> { %v3468_v14 = vrot.slane %v3428_v35, 3  ;;  %v3427_v63 = vsel %vm1206_vm12, %v3409_v54, 0  ;;  %v3978_v35 = vld [vmem:[%s7712_s7 + $0x40] sm:$0xff] }
 0x38b   : >> { %4030 = vst [vmem:[%s7747_s28 + $0x20] sm:$0xff] %v4013_v20  ;;  %v4046_v5 = vadd.f32 %v7841_v32, %v4013_v20  ;;  %v4014_v17 = vadd.f32 %v7736_v28, %v3991_v30  ;;  %v3467_v9 = vrot.slane %v3427_v63, 3  ;;  %v1874_v39 = vpop.permute.xlu1 %1873 }
 0x38c   : >> { %v2106_v62 = vsel %vm1274_vm0, %v2074_v10, %v1874_v39  ;;  %v1872_v2 = vpop.permute.xlu0 %1871 }
 0x38d   : >> { %4031 = vst [vmem:[%s7747_s28 + $0x28] sm:$0xff] %v4014_v17  ;;  %v4047_v38 = vadd.f32 %v4046_v5, %v4014_v17  ;;  %v2145_v27 = vrot.slane %v2106_v62, 1  ;;  %v2104_v46 = vsel %vm1274_vm0, %v2072_v21, %v1872_v2  ;;  %v3469_v32 = vsel %vm3445_vm2, %v3467_v9, %v3468_v14  ;;  %v3979_v14 = vld [vmem:[%s7712_s7 + $0x48] sm:$0xff] }
 0x38e   : >> { %v2144_v56 = vrot.slane %v2104_v46, 1  ;;  %3959 = vmatprep.mubr.bf16.mxu1 %v3469_v32 }
 0x38f   : >> { %3960 = vmatmul.mubr.bf16.gmra.mrb[28].mxu1 %v3097_v58 }
 0x390   : >> { %v2146_v19 = vsel %vm1108_vm9, %v2144_v56, %v2145_v27  ;;  %v3980_v56 = vld [vmem:[%s7712_s7 + $0x50] sm:$0xff] }
 0x391   : >> { %3862 = vmatprep.mubr.bf16.mxu0 %v2146_v19 }
 0x392   : >> { %3863 = vmatmul.mubr.bf16.gmra.mrb[28].mxu0 %v1297_v44 }
 0x3aa   : >> { %v4796_v53 = vpop.f32.mrb[12].mxu1 }
 0x3ab   : >> { %v4797_v8 = vpop.f32.mrb[13].mxu1 }
 0x3ac   : >> { %v4798_v49 = vadd.f32 %v4797_v8, %v4796_v53  ;;  %v4799_v37 = vpop.f32.mrb[14].mxu1 }
 0x3ad   : >> { %v4732_v18 = vpop.f32.mrb[12].mxu0  ;;  %v4800_v7 = vpop.f32.mrb[15].mxu1 }
 0x3ae   : >> { %v4801_v59 = vadd.f32 %v4800_v7, %v4799_v37  ;;  %v4733_v36 = vpop.f32.mrb[13].mxu0 }
 0x3af   : >> { %v4734_v52 = vadd.f32 %v4733_v36, %v4732_v18  ;;  %v4735_v48 = vpop.f32.mrb[14].mxu0 }
 0x3b0   : >> { %v4736_v0 = vpop.f32.mrb[15].mxu0 }
 0x3b1   : >> { %v3930_v23 = vadd.f32 %v4798_v49, %v4734_v52  ;;  %v4737_v31 = vadd.f32 %v4736_v0, %v4735_v48 }
 0x3b3   : >> { %v3992_v43 = vadd.f32 %v3976_v57, %v3930_v23  ;;  %v3933_v16 = vadd.f32 %v4801_v59, %v4737_v31  ;;  %v3982_v31 = vld [vmem:[%s7712_s7 + $0x60] sm:$0xff] }
 0x3b5   : >> { %v4015_v60 = vadd.f32 %v7736_v28, %v3992_v43  ;;  %v3993_v55 = vadd.f32 %v3977_v51, %v3933_v16 }
 0x3b7   : >> { %4032 = vst [vmem:[%s7747_s28 + $0x30] sm:$0xff] %v4015_v60  ;;  %v4048_v33 = vadd.f32 %v4047_v38, %v4015_v60  ;;  %v4016_v15 = vadd.f32 %v7736_v28, %v3993_v55  ;;  %v3983_v60 = vld [vmem:[%s7712_s7 + $0x68] sm:$0xff] }
 0x3b9   : >> { %4033 = vst [vmem:[%s7747_s28 + $0x38] sm:$0xff] %v4016_v15  ;;  %v4049_v34 = vadd.f32 %v4048_v33, %v4016_v15 }
 0x3d6   : >> { %v4802_v12 = vpop.f32.mrb[16].mxu1 }
 0x3d7   : >> { %v4803_v3 = vpop.f32.mrb[17].mxu1 }
 0x3d8   : >> { %v4804_v26 = vadd.f32 %v4803_v3, %v4802_v12  ;;  %v4805_v24 = vpop.f32.mrb[18].mxu1 }
 0x3d9   : >> { %v4738_v11 = vpop.f32.mrb[16].mxu0  ;;  %v4806_v41 = vpop.f32.mrb[19].mxu1 }
 0x3da   : >> { %v4807_v50 = vadd.f32 %v4806_v41, %v4805_v24  ;;  %v4739_v6 = vpop.f32.mrb[17].mxu0 }
 0x3db   : >> { %v4740_v20 = vadd.f32 %v4739_v6, %v4738_v11  ;;  %v4741_v30 = vpop.f32.mrb[18].mxu0 }
 0x3dc   : >> { %v4742_v54 = vpop.f32.mrb[19].mxu0 }
 0x3dd   : >> { %v3938_v4 = vadd.f32 %v4804_v26, %v4740_v20  ;;  %v4743_v42 = vadd.f32 %v4742_v54, %v4741_v30 }
 0x3df   : >> { %v3994_v63 = vadd.f32 %v3978_v35, %v3938_v4  ;;  %v3941_v5 = vadd.f32 %v4807_v50, %v4743_v42  ;;  %v3984_v42 = vld [vmem:[%s7712_s7 + $0x70] sm:$0xff] }
 0x3e1   : >> { %v4017_v10 = vadd.f32 %v7736_v28, %v3994_v63  ;;  %v3995_v17 = vadd.f32 %v3979_v14, %v3941_v5 }
 0x3e3   : >> { %4034 = vst [vmem:[%s7747_s28 + $0x40] sm:$0xff] %v4017_v10  ;;  %v4050_v9 = vadd.f32 %v4049_v34, %v4017_v10  ;;  %v4018_v39 = vadd.f32 %v7736_v28, %v3995_v17  ;;  %v3985_v10 = vld [vmem:[%s7712_s7 + $0x78] sm:$0xff] }
 0x3e5   : >> { %4035 = vst [vmem:[%s7747_s28 + $0x48] sm:$0xff] %v4018_v39  ;;  %v4051_v45 = vadd.f32 %v4050_v9, %v4018_v39 }
 0x407   : >> { %v4808_v22 = vpop.f32.mrb[20].mxu1 }
 0x408   : >> { %v4809_v21 = vpop.f32.mrb[21].mxu1 }
 0x409   : >> { %v4810_v62 = vadd.f32 %v4809_v21, %v4808_v22  ;;  %v4811_v2 = vpop.f32.mrb[22].mxu1  ;;  %v4744_v38 = vpop.f32.mrb[20].mxu0 }
 0x40a   : >> { %v4812_v27 = vpop.f32.mrb[23].mxu1  ;;  %v4745_v46 = vpop.f32.mrb[21].mxu0 }
 0x40b   : >> { %v4813_v32 = vadd.f32 %v4812_v27, %v4811_v2  ;;  %v4746_v40 = vadd.f32 %v4745_v46, %v4744_v38  ;;  %v4747_v61 = vpop.f32.mrb[22].mxu0 }
 0x40c   : >> { %v4748_v58 = vpop.f32.mrb[23].mxu0 }
 0x40d   : >> { %v3946_v1 = vadd.f32 %v4810_v62, %v4746_v40  ;;  %v4749_v13 = vadd.f32 %v4748_v58, %v4747_v61  ;;  %v4042_v40 = vld [vmem:[#allocation4] sm:$0x1] }
 0x40e   : > { %v4069_v58 = vld [vmem:[%s8119_s3 + $0x8] sm:$0xff] (%p695_p6) }
 0x40f   : >> { %v3996_v25 = vadd.f32 %v3980_v56, %v3946_v1  ;;  %v3949_v19 = vadd.f32 %v4813_v32, %v4749_v13  ;;  %v4070_v1 = vld [vmem:[%s8119_s3 + $0x10] sm:$0xff] (%p695_p6)  ;;  %v8471_v13 = vmov (%p695_p6), 0.0  }
 0x410   : > { %4880 = vmatprep.subr.mxu1 (%p695_p6), %v8471_v13  ;;  %4877 = vmatprep.mubr.msk.f32.mxu0 (%p695_p6), %vm5381_vm3, %v8471_v13 }
 0x411   : >> { %v4019_v29 = vadd.f32 %v7736_v28, %v3996_v25  ;;  %v3997_v44 = vadd.f32 %v3981_v47, %v3949_v19  ;;  %v5380_v47 = vmov (%p695_p6), 0.0|0.0   ;;  %v4071_v19 = vld [vmem:[%s8119_s3 + $0x18] sm:$0xff] (%p695_p6)  ;;  %4882 = vmatprep.mubr.msk.f32.mxu1 (%p695_p6), %vm5381_vm3, %v8471_v13 }
 0x412   : > { %4885 = vmatprep.subr.bf16.mxu0 (%p695_p6), %v5380_v47 }
 0x413   : >> { %4036 = vst [vmem:[%s7747_s28 + $0x50] sm:$0xff] %v4019_v29  ;;  %v4052_v53 = vadd.f32 %v4051_v45, %v4019_v29  ;;  %v4020_v8 = vadd.f32 %v7736_v28, %v3997_v44  ;;  %v4889_v29 = vpack.c.bf16 (%p695_p6), %v4071_v19, %v4070_v1  ;;  %v4072_v44 = vld [vmem:[%s8119_s3 + $0x20] sm:$0xff] (%p695_p6) }
 0x415   : >> { %4037 = vst [vmem:[%s7747_s28 + $0x58] sm:$0xff] %v4020_v8  ;;  %v4053_v49 = vadd.f32 %v4052_v53, %v4020_v8  ;;  %v4073_v53 = vld [vmem:[%s8119_s3 + $0x28] sm:$0xff] (%p695_p6) }
 0x416   : > { %v4892_v8 = vpack.c.bf16 (%p695_p6), %v4073_v53, %v4072_v44 }
 0x436   : >> { %v4814_v37 = vpop.f32.mrb[24].mxu1 }
 0x437   : >> { %v4815_v18 = vpop.f32.mrb[25].mxu1 }
 0x438   : >> { %v4816_v7 = vadd.f32 %v4815_v18, %v4814_v37  ;;  %v4817_v59 = vpop.f32.mrb[26].mxu1  ;;  %v4075_v37 = vld [vmem:[%s8119_s3 + $0x38] sm:$0xff] (%p695_p6) }
 0x439   : >> { %v4750_v36 = vpop.f32.mrb[24].mxu0  ;;  %v4818_v52 = vpop.f32.mrb[27].mxu1 }
 0x43a   : >> { %v4819_v48 = vadd.f32 %v4818_v52, %v4817_v59  ;;  %v4751_v57 = vpop.f32.mrb[25].mxu0  ;;  %v4077_v59 = vld [vmem:[%s8119_s3 + $0x48] sm:$0xff] (%p695_p6)  ;;  %v4078_v52 = vld [vmem:[%s8119_s3 + $0x50] sm:$0xff] (%p695_p6) }
 0x43b   : >> { %v4752_v0 = vadd.f32 %v4751_v57, %v4750_v36  ;;  %v4753_v23 = vpop.f32.mrb[26].mxu0 }
 0x43c   : >> { %v4754_v51 = vpop.f32.mrb[27].mxu0 }
 0x43d   : >> { %v3954_v43 = vadd.f32 %v4816_v7, %v4752_v0  ;;  %v4755_v16 = vadd.f32 %v4754_v51, %v4753_v23  ;;  %v4076_v7 = vld [vmem:[%s8119_s3 + $0x40] sm:$0xff] (%p695_p6)  ;;  %v4081_v23 = vld [vmem:[%s8119_s3 + $0x68] sm:$0xff] (%p695_p6)  ;;  %v4082_v51 = vld [vmem:[%s8119_s3 + $0x70] sm:$0xff] (%p695_p6) }
 0x43e   : > { %v4898_v36 = vpack.c.bf16 (%p695_p6), %v4077_v59, %v4076_v7  ;;  %v4080_v0 = vld [vmem:[%s8119_s3 + $0x60] sm:$0xff] (%p695_p6) }
 0x43f   : >> { %v3998_v55 = vadd.f32 %v3982_v31, %v3954_v43  ;;  %v3957_v33 = vadd.f32 %v4819_v48, %v4755_v16  ;;  %v4079_v48 = vld [vmem:[%s8119_s3 + $0x58] sm:$0xff] (%p695_p6)  ;;  %v4904_v31 = vpack.c.bf16 (%p695_p6), %v4081_v23, %v4080_v0 }
 0x440   : > { %v4901_v57 = vpack.c.bf16 (%p695_p6), %v4079_v48, %v4078_v52  ;;  %v4083_v43 = vld [vmem:[%s8119_s3 + $0x78] sm:$0xff] (%p695_p6) }
 0x441   : >> { %v4021_v15 = vadd.f32 %v7736_v28, %v3998_v55  ;;  %v3999_v34 = vadd.f32 %v3983_v60, %v3957_v33  ;;  %v4907_v16 = vpack.c.bf16 (%p695_p6), %v4083_v43, %v4082_v51  ;;  %v4155_v33 = vld [vmem:[%s8120_s4] sm:$0xf] (%p695_p6) }
 0x442   : > { %4881 = vmatpush3.msk.msra.mxu1 (%p695_p6), %vm4160_vm4, %v4155_v33 }
 0x443   : >> { %4038 = vst [vmem:[%s7747_s28 + $0x60] sm:$0xff] %v4021_v15  ;;  %v4054_v12 = vadd.f32 %v4053_v49, %v4021_v15  ;;  %v4022_v3 = vadd.f32 %v7736_v28, %v3999_v34  ;;  %v4074_v49 = vld [vmem:[%s8119_s3 + $0x30] sm:$0xff] (%p695_p6) }
 0x444   : > { %v4895_v18 = vpack.c.bf16 (%p695_p6), %v4075_v37, %v4074_v49 }
 0x445   : >> { %4039 = vst [vmem:[%s7747_s28 + $0x68] sm:$0xff] %v4022_v3  ;;  %v4055_v26 = vadd.f32 %v4054_v12, %v4022_v3 }
 0x462   : >> { %v4820_v24 = vpop.f32.mrb[28].mxu1 }
 0x463   : >> { %v4821_v11 = vpop.f32.mrb[29].mxu1 }
 0x464   : >> { %v4822_v41 = vadd.f32 %v4821_v11, %v4820_v24  ;;  %v4823_v50 = vpop.f32.mrb[30].mxu1 }
 0x465   : >> { %v4756_v6 = vpop.f32.mrb[28].mxu0  ;;  %v4824_v20 = vpop.f32.mrb[31].mxu1 }
 0x466   : >> { %v4825_v30 = vadd.f32 %v4824_v20, %v4823_v50  ;;  %v4757_v35 = vpop.f32.mrb[29].mxu0 }
 0x467   : >> { %v4758_v54 = vadd.f32 %v4757_v35, %v4756_v6  ;;  %v4759_v4 = vpop.f32.mrb[30].mxu0 }
 0x468   : >> { %v4760_v14 = vpop.f32.mrb[31].mxu0 }
 0x469   : >> { %v3962_v63 = vadd.f32 %v4822_v41, %v4758_v54  ;;  %v4761_v5 = vadd.f32 %v4760_v14, %v4759_v4 }
 0x46b   : >> { %v4000_v17 = vadd.f32 %v3984_v42, %v3962_v63  ;;  %v3965_v9 = vadd.f32 %v4825_v30, %v4761_v5 }
 0x46d   : >> { %v4023_v39 = vadd.f32 %v7736_v28, %v4000_v17  ;;  %v4001_v45 = vadd.f32 %v3985_v10, %v3965_v9 }
 0x46f   : >> { %4040 = vst [vmem:[%s7747_s28 + $0x70] sm:$0xff] %v4023_v39  ;;  %v4056_v22 = vadd.f32 %v4055_v26, %v4023_v39  ;;  %v4024_v21 = vadd.f32 %v7736_v28, %v4001_v45  ;;  %v4068_v28 = vld [vmem:[%s8119_s3] sm:$0xff] (%p695_p6) }
 0x470   : > { %v4886_v25 = vpack.c.bf16 (%p695_p6), %v4069_v58, %v4068_v28 }
 0x471   : >> { %4041 = vst [vmem:[%s7747_s28 + $0x78] sm:$0xff] %v4024_v21  ;;  %v4057_v62 = vadd.f32 %v4056_v22, %v4024_v21 }
 0x472   : > { %4887 = vmatpush3.bf16.msra.mxu0 (%p695_p6), %v4886_v25 }
 0x473   : >> { %v4058_v2 = vrot.slane %v4057_v62, 4  ;;  %4888 = vmatprep.subr.bf16.mxu0 (%p695_p6), %v5380_v47 }
 0x475   : >> { %v4059_v38 = vadd.f32 %v4058_v2, %v4057_v62 }
 0x476   : > { %4890 = vmatpush3.bf16.msra.mxu0 (%p695_p6), %v4889_v29 }
 0x477   : >> { %v4060_v27 = vrot.slane %v4059_v38, 2  ;;  %4891 = vmatprep.subr.bf16.mxu0 (%p695_p6), %v5380_v47 }
 0x479   : >> { %v4061_v46 = vadd.f32 %v4060_v27, %v4059_v38 }
 0x47a   : > { %4893 = vmatpush3.bf16.msra.mxu0 (%p695_p6), %v4892_v8 }
 0x47b   : >> { %v4062_v32 = vrot.slane %v4061_v46, 1  ;;  %697 = sbr.rel (!%p695_p6) target bundleno = 164 (0xa4), region = 129  ;;  %4894 = vmatprep.subr.bf16.mxu0 (%p695_p6), %v5380_v47 }
 0x47d   : >> { %v4063_v61 = vadd.f32 %v4062_v32, %v4061_v46 }
 0x47e   : > { %4896 = vmatpush3.bf16.msra.mxu0 (%p695_p6), %v4895_v18 }
 0x47f   : >> { %v4064_v56 = vadd.f32 %v4063_v61, %v4042_v40  ;;  %4897 = vmatprep.subr.bf16.mxu0 (%p695_p6), %v5380_v47 }
 0x481   : >> { %4065 = vst [vmem:[#allocation4] sm:$0x1] %v4064_v56 }
 0x482   : > { %4899 = vmatpush3.bf16.msra.mxu0 %v4898_v36 }
 0x483   : > { %4900 = vmatprep.subr.bf16.mxu0 %v5380_v47 }
 0x486   : > { %4902 = vmatpush3.bf16.msra.mxu0 %v4901_v57 }
 0x487   : > { %4903 = vmatprep.subr.bf16.mxu0 %v5380_v47 }
 0x488   : > { %v4066_v60 = vld [vmem:[#allocation4] sm:$0x1] }
 0x489   : > { %v4067_v55 = vmul.f32 0.00390625, %v4066_v60 }
 0x48a   : > { %4905 = vmatpush3.bf16.msra.mxu0 %v4904_v31 }
 0x48b   : > { %4906 = vmatprep.subr.bf16.mxu0 %v5380_v47 }
 0x48e   : > { %4908 = vmatpush3.bf16.msra.mxu0 %v4907_v16 }
 0x491   : > { %4878 = vmatmul.mubr.f32.vlgmr.msra.gmra.mrb[0].mxu0 %v4067_v55 }
 0x564   : > { %v4150_v15 = vpop.f32.mrb[0].mxu0 }
 0x565   : > { %v4154_v34 = vmax.f32 %v4150_v15, 0.0  ;;  %v4879_v12 = vpop.f32.mrb[1].mxu0 }
 0x567   : > { %4883 = vmatmul.mubr.msk.f32.vlgmr.msra.gmra.mrb[0].mxu1 %vm4156_vm5, %v4154_v34 }
 0x63a   : > { %v4230_v3 = vpop.f32.mrb[0].mxu1 }
 0x63b   : > { %v4667_v26 = vmul.f32 -1.442695, %v4230_v3  ;;  %v4884_v24 = vpop.f32.mrb[1].mxu1 }
 0x63d   : > { %5207 = vpow2.f32 %v4667_v26 }
 0x647   : > { %v5208_v11 = vpop.eup %5207 }
 0x648   : > { %v4237_v41 = vadd.f32 1.0, %v5208_v11 }
 0x64a   : > { %5209 = vrcp.f32 %v4237_v41 }
 0x654   : > { %v5210_v50 = vpop.eup %5209 }
 0x655   : > { %4240 = vst [vmem:[#allocation4] sm:$0x1] %v5210_v50 }
 0x656 LB: >> { %s4696_s10 = sshll.u32 %s5363_s14, 7  ;;  %s4246_s14 = sadd.s32 1, %s5363_s14   ;;  %s5363_s14 = sphi %s8021_s14, %s4246_s14  }
 0x657   : >> { %s8028_s12 = scalar_lea.vmem %s5647_s24, %s4696_s10 [#allocation10]  ;;  %p4243_p8 = scmp.ge.s32.totalorder %s4246_s14, 2  }
 0x658   : >> { %v4251_v20 = vld [vmem:[%s8028_s12] sm:$0xff]  ;;  %v4252_v30 = vld [vmem:[%s8028_s12 + $0x8] sm:$0xff]  ;;  %v4253_v35 = vld [vmem:[%s8028_s12 + $0x10] sm:$0xff]  ;;  %s4697_s6 = sshll.u32 (%p4243_p8), %s5436_s22, 12  ;;  %s4319_s28 = sshll.u32 (%p4243_p8), %s5647_s24, 4  ;;  %s8072_s28 = int_to_ptr.vmem [resolvable:$true] %s4319_s28 }
 0x659   : >> { %v4254_v14 = vld [vmem:[%s8028_s12 + $0x18] sm:$0xff]  ;;  %v4255_v63 = vld [vmem:[%s8028_s12 + $0x20] sm:$0xff]  ;;  %v4256_v5 = vld [vmem:[%s8028_s12 + $0x28] sm:$0xff]  ;;  %s8069_s29 = scalar_lea.hbm (%p4243_p8), %s8121_s5, %s4697_s6  ;;  %s4306_s13 = scalar_lea.sflag (%p4243_p8), [#allocation7], %s5554_s23 }
 0x65a   : >> { %v4257_v39 = vld [vmem:[%s8028_s12 + $0x30] sm:$0xff]  ;;  %v4258_v45 = vld [vmem:[%s8028_s12 + $0x38] sm:$0xff]  ;;  %v4259_v22 = vld [vmem:[%s8028_s12 + $0x40] sm:$0xff]  ;;  %s5269_s16 = scalar_lea.vmem (%p4243_p8), %s8072_s28, 4096  ;;  %s5382_s17 = smov (%p4243_p8), [#allocation10]  }
 0x65b   : >> { %v4260_v38 = vld [vmem:[%s8028_s12 + $0x48] sm:$0xff]  ;;  %v4261_v27 = vld [vmem:[%s8028_s12 + $0x50] sm:$0xff]  ;;  %v4262_v46 = vld [vmem:[%s8028_s12 + $0x58] sm:$0xff]  ;;  %p5270_p10 = scmp.ne.s32.totalorder (%p4243_p8), %s8072_s28, %s5269_s16  ;;  %s5273_s27 = sshll.u32 (%p4243_p8), %s5382_s17, 4  ;;  %s5274_s27 = int_to_ptr.vmem [resolvable:$false] %s5273_s27 }
 0x65c   : >> { %v4670_v6 = vld [vmem:[#allocation4] ss:$0 sm:$0xff]  ;;  %v4263_v56 = vld [vmem:[%s8028_s12 + $0x60] sm:$0xff]  ;;  %v4265_v58 = vld [vmem:[%s8028_s12 + $0x70] sm:$0xff]  ;;  %s5275_s22 = scalar_lea.vmem (%p4243_p8), %s5274_s27, 8192  ;;  %p5276_p7 = scmp.lt.s32.totalorder (%p4243_p8), %s8072_s28, %s5274_s27 }
 0x65d   : >> { %v4273_v54 = vmul.f32 %v4670_v6, %v4251_v20  ;;  %v4274_v4 = vmul.f32 %v4670_v6, %v4252_v30  ;;  %v4275_v42 = vmul.f32 %v4670_v6, %v4253_v35  ;;  %v4276_v10 = vmul.f32 %v4670_v6, %v4254_v14  ;;  %v4264_v28 = vld [vmem:[%s8028_s12 + $0x68] sm:$0xff]  ;;  %v4266_v25 = vld [vmem:[%s8028_s12 + $0x78] sm:$0xff]  ;;  %p5271_p13 = pnand (%p4243_p8), %p5270_p10, %p5506_p12  ;;  %p5277_p9 = scmp.lt.s32.totalorder (%p4243_p8), %s5275_s22, %s5269_s16 }
 0x65e   : >> { %v4277_v17 = vmul.f32 %v4670_v6, %v4255_v63  ;;  %v4278_v9 = vmul.f32 %v4670_v6, %v4256_v5  ;;  %v4279_v21 = vmul.f32 %v4670_v6, %v4257_v39  ;;  %v4280_v62 = vmul.f32 %v4670_v6, %v4258_v45 }
 0x65f   : >> { %4289 = vst [vmem:[%s8028_s12] sm:$0xff] %v4273_v54  ;;  %4290 = vst [vmem:[%s8028_s12 + $0x8] sm:$0xff] %v4274_v4  ;;  %v4281_v2 = vmul.f32 %v4670_v6, %v4259_v22  ;;  %v4282_v32 = vmul.f32 %v4670_v6, %v4260_v38  ;;  %v4283_v40 = vmul.f32 %v4670_v6, %v4261_v27  ;;  %p5272_p3 = pneg (%p4243_p8), %p5271_p13  ;;  %p5278_p2 = por (%p4243_p8), %p5277_p9, %p5276_p7 }
 0x660   : >> { %4291 = vst [vmem:[%s8028_s12 + $0x10] sm:$0xff] %v4275_v42  ;;  %4292 = vst [vmem:[%s8028_s12 + $0x18] sm:$0xff] %v4276_v10  ;;  %v4284_v61 = vmul.f32 %v4670_v6, %v4262_v46  ;;  %v4285_v1 = vmul.f32 %v4670_v6, %v4263_v56  ;;  %v4286_v13 = vmul.f32 %v4670_v6, %v4264_v28 }
 0x661   : >> { %4293 = vst [vmem:[%s8028_s12 + $0x20] sm:$0xff] %v4277_v17  ;;  %4294 = vst [vmem:[%s8028_s12 + $0x28] sm:$0xff] %v4278_v9  ;;  %v4287_v47 = vmul.f32 %v4670_v6, %v4265_v58  ;;  %v4288_v19 = vmul.f32 %v4670_v6, %v4266_v25  ;;  %p5279_p0 = pnand (%p4243_p8), %p5278_p2, %p5272_p3 }
 0x662   : >> { %4295 = vst [vmem:[%s8028_s12 + $0x30] sm:$0xff] %v4279_v21  ;;  %4296 = vst [vmem:[%s8028_s12 + $0x38] sm:$0xff] %v4280_v62 }
 0x663   : >> { %4297 = vst [vmem:[%s8028_s12 + $0x40] sm:$0xff] %v4281_v2  ;;  %4298 = vst [vmem:[%s8028_s12 + $0x48] sm:$0xff] %v4282_v32  ;;  %4245 = sbr.rel (!%p4243_p8) target bundleno = 1622 (0x656), region = 140 }
 0x664   : >> { %4299 = vst [vmem:[%s8028_s12 + $0x50] sm:$0xff] %v4283_v40  ;;  %4300 = vst [vmem:[%s8028_s12 + $0x58] sm:$0xff] %v4284_v61 }
 0x665   : >> { %4301 = vst [vmem:[%s8028_s12 + $0x60] sm:$0xff] %v4285_v1  ;;  %4302 = vst [vmem:[%s8028_s12 + $0x68] sm:$0xff] %v4286_v13 }
 0x666   : >> { %4303 = vst [vmem:[%s8028_s12 + $0x70] sm:$0xff] %v4287_v47  ;;  %4304 = vst [vmem:[%s8028_s12 + $0x78] sm:$0xff] %v4288_v19 }
 0x66a   : > { %5282 = shalt.err (!%p5279_p0)
}
 0x66b   : > { %s5283_s24 = scalar_lea.hbm %s8069_s29, 4096  ;;  %s5287_s14 = scalar_lea.hbm %s8121_s5, 8192 }
 0x66c   : > { %p5284_p5 = scmp.ne.s32.totalorder %s8069_s29, %s5283_s24  ;;  %p5288_p4 = scmp.lt.u32.totalorder %s8069_s29, %s8121_s5 }
 0x66d   : > { %p5289_p6 = scmp.lt.u32.totalorder %s5287_s14, %s5283_s24  ;;  %p5291_p10 = scmp.lt.u32.totalorder %s5283_s24, %s8069_s29 }
 0x66e   : > { %p5285_p11 = pnand %p5284_p5, %p5506_p12 }
 0x66f   : > { %p5290_p8 = por %p5289_p6, %p5288_p4 }
 0x670   : > { %p5286_p1 = pneg %p5285_p11 }
 0x671   : > { %p5292_p13 = por %p5291_p10, %p5290_p8 }
 0x673   : > { %p5293_p3 = pnand %p5292_p13, %p5286_p1 }
 0x675   : > { %5296 = shalt.err (!%p5293_p3)
}
 0x676   : > { %s5383_s6 = smov 128   ;;  %s5384_s7 = smov 8  }
 0x677   : > { %4915 = dma.vmem_to_hbm [thread:$0]  (%p5506_p12), %s8072_s28, 4096, %s8069_s29, %s4306_s13, %s5383_s6, %s5383_s6, %s5384_s7  }
 0x678 PF: > { %s4334_s15 = sand.u32 1, %s5339_s18   ;;  %p8472_p7 = scmp.ne.s32.totalorder %s8164_s25, 0 }
 0x679   : > { %p8473_p9 = scmp.ge.s32.totalorder %s5351_s21, 2  ;;  %s4335_s16 = scalar_lea.sflag [#allocation7], %s4334_s15 }
 0x67b   : > { %p4926_p2 = pnand %p8473_p9, %p8472_p7 }
 0x67d   : > { %5334 = dma.done.wait (!%p4926_p2), %s4335_s16, 4096  }
 0x67e   : > { %5336 = vsyncadd (!%p4926_p2), %s4335_s16, 4294963200  ;;  %p19_p0 = scmp.ge.s32.totalorder %s5471_s30, 4   ;;  %s8474_s18 = smov %s5343_s19 }
 0x67f   : > { %s8475_s19 = smov %s5347_s20  ;;  %s8476_s20 = smov %s5502_s8 }
 0x680   : > { %s8477_s21 = smov %s5471_s30  ;;  %21 = sbr.rel (!%p19_p0) target bundleno = 6 (0x6), region = 151 }
 0x687   :  { %4340 = vsyncpa [#allocation6], 1 }
 0x688   :  { %4342 = vsyncpa [#allocation6 + $0x1], 1 }
 0x689   :  { %4343 = vsyncpa [#allocation9], 1 }
 0x68a   :  { %4344 = vsyncpa [#allocation7], 1 }
 0x68b   :  { %4346 = vsyncpa [#allocation7 + $0x1], 1 }

</bundles_post_ra>
